<compile_context>
chip_gen: v6e
topology: v6e:2x2x1
jax: 0.10.0
libtpu: 0.0.40
codegen_flags: <defaults>
</compile_context>

<pallas_src>
import jax
import jax.numpy as jnp
from jax.experimental import pallas as pl
from jax.experimental.pallas import tpu as pltpu

HIDDEN = 32
MAX_PIX_TILE = 8192                  # target 4K-8K HR pixels per tile
VMEM_CAP_BYTES = 48 * 1024 * 1024    # stay below v7x's 64 MiB physical VMEM


# ------------------------------------------------------------------ tiling --
def _pick_row_tile(H, W, Hl, rh):
    """HR rows per tile TR such that:
       * TR divides H and is a multiple of rh (tiles align to LR row groups)
       * TR/rh is sublane friendly (multiple of 8, or == Hl)
       * TR*W is lane friendly (multiple of 128, or == H*W)
       * TR*W <= MAX_PIX_TILE when possible; otherwise the smallest legal TR
         (never the old whole-image fallback that blew up VMEM)."""
    best, smallest = None, None
    for TR in range(rh, H + 1, rh):
        if H % TR:
            continue
        TRl = TR // rh
        if (TRl % 8) and (TRl != Hl):
            continue
        if ((TR * W) % 128) and (TR != H):
            continue
        if smallest is None:
            smallest = TR
        if TR * W <= MAX_PIX_TILE:
            best = TR
    if best is None:
        best = smallest if smallest is not None else H
    return best


def _col_upsample_matrix(Wl, W, rh, rw):
    """(Wl, rh*W) 0/1 matrix: one LR row (Wl pixels) -> rh replicated HR rows
    laid side by side on the lane axis.  Tile-size independent (replaces the
    old dense (TPl, TP) matrix whose FLOPs/VMEM were quadratic in TP)."""
    j = jnp.arange(rh * W)
    lr_col = (j % W) // rw
    return (jnp.arange(Wl)[:, None] == lr_col[None, :]).astype(jnp.float32)


# ------------------------------------------------------------- kernel body --
def _model_tile(t1_ref, t2l_ref, m_ref, u_ref, w1_ref, b1_ref, w2_ref, b2_ref,
                up_ref):
    """Compute one (C, TP) tile of t2_sp entirely in VMEM/vregs."""
    # TODO(synk): real `model` architecture is injected in the reference code and
    # not provided; this is a deterministic mask-gated 1x1-conv surrogate.
    _, C, TP = t1_ref.shape
    _, _, TRl, Wl = t2l_ref.shape
    seg = u_ref.shape[1]                            # rh * W HR pixels per LR row

    # Factorized nearest-neighbour upsample: one small (C, Wl) x (Wl, rh*W)
    # matmul per LR row group, stored to a lane slice of a VMEM scratch.
    u = u_ref[...]
    for r in range(TRl):                            # static unroll
        up_ref[:, r * seg:(r + 1) * seg] = jnp.dot(
            t2l_ref[0, :, r, :], u, preferred_element_type=jnp.float32)
    t2_up = up_ref[...]                             # (C, TP) f32, exact copy of LR values

    # Fused hidden layer: one K=2C bf16 matmul instead of two K=C matmuls.
    t1 = t1_ref[0]                                  # (C, TP) bf16
    x = jnp.concatenate([t1, t2_up.astype(t1.dtype)], axis=0)      # (2C, TP) bf16
    h = jnp.dot(w1_ref[...], x, preferred_element_type=jnp.float32) + b1_ref[...]
    h = jnp.maximum(h, 0.0)                                        # (HIDDEN, TP) f32
    pred = (jnp.dot(w2_ref[...], h.astype(w2_ref.dtype),
                    preferred_element_type=jnp.float32) + b2_ref[...])  # (C, TP) f32

    m = m_ref[0]                                    # (1, TP) f32
    return m * pred + (1.0 - m) * t2_up             # (C, TP) f32 (blend stays f32)


def _fused_loss_kernel(t1_ref, t2l_ref, m_ref, t2hr_ref, u_ref,
                       w1_ref, b1_ref, w2_ref, b2_ref,
                       out_ref, up_ref, acc_ref):
    # TODO(synk): `loss_fn` is injected in the reference code; L1 (mean abs) used.
    i = pl.program_id(1)

    @pl.when(i == 0)
    def _init():
        acc_ref[...] = jnp.zeros_like(acc_ref)

    t2_sp = _model_tile(t1_ref, t2l_ref, m_ref, u_ref,
                        w1_ref, b1_ref, w2_ref, b2_ref, up_ref)
    # Lane-wide accumulator: pure VPU adds per step, no per-step reduction.
    acc_ref[...] += jnp.abs(t2_sp - t2hr_ref[0])

    @pl.when(i == pl.num_programs(1) - 1)
    def _finalize():
        # single reduction + single (1,1,1) store per batch item
        out_ref[...] = jnp.sum(acc_ref[...]).reshape(1, 1, 1)


def _preds_kernel(t1_ref, t2l_ref, m_ref, u_ref,
                  w1_ref, b1_ref, w2_ref, b2_ref, out_ref, up_ref):
    out_ref[0] = _model_tile(t1_ref, t2l_ref, m_ref, u_ref,
                             w1_ref, b1_ref, w2_ref, b2_ref, up_ref)


# ------------------------------------------------------------------ wrapper --
def mask_model_wrapper_forward(batch_data, params, return_preds=False):
    t1_hr = batch_data['t1_hr']
    t2_hr = batch_data['t2_hr']
    t2_lr = batch_data['t2_lr']
    mask = batch_data['mask']

    B, C, H, W = t1_hr.shape
    Hl, Wl = t2_lr.shape[2], t2_lr.shape[3]
    assert H % Hl == 0 and W % Wl == 0, "integer upsample factor expected"
    rh, rw = H // Hl, W // Wl
    HW = H * W

    TR = _pick_row_tile(H, W, Hl, rh)       # HR rows per tile
    TRl = TR // rh                          # LR rows per tile
    TP = TR * W                             # HR pixels per tile (lane axis)
    n_pix = H // TR

    # Lane-dense flattening of HR tensors (free: pixels already contiguous).
    # t1 streamed as bf16 (matmul operand: full-rate MXU + half the DMA bytes);
    # mask / t2_lr / t2_hr stay f32 so the blend, |.| and accumulation are f32.
    t1_f = t1_hr.reshape(B, C, HW).astype(jnp.bfloat16)
    mask_f = mask.reshape(B, 1, HW).astype(jnp.float32)
    t2hr_f = t2_hr.reshape(B, C, HW).astype(jnp.float32)
    t2lr_4d = t2_lr.astype(jnp.float32)                         # (B, C, Hl, Wl)

    u = _col_upsample_matrix(Wl, W, rh, rw)                     # (Wl, rh*W) f32
    w1a, w1b, b1, w2, b2 = params
    w1 = jnp.concatenate([w1a, w1b], axis=1).astype(jnp.bfloat16)   # (HIDDEN, 2C)
    w2_b = w2.astype(jnp.bfloat16)
    b1_f = b1.astype(jnp.float32)
    b2_f = b2.astype(jnp.float32)

    def hr_spec(c):
        return pl.BlockSpec((1, c, TP), lambda b, i: (b, 0, i))

    lr_spec = pl.BlockSpec((1, C, TRl, Wl), lambda b, i: (b, 0, i, 0))

    def resident(a):                     # weights / U: loaded once, stay in VMEM
        nd = a.ndim
        return pl.BlockSpec(a.shape, lambda b, i, _nd=nd: (0,) * _nd)

    weight_args = (u, w1, b1_f, w2_b, b2_f)
    weight_specs = [resident(a) for a in weight_args]

    # Explicit VMEM budget: double-buffered streamed blocks + residents + scratch,
    # clamped so the same tiling is safe across v5e/v6e/v7x.
    blk_bytes = (C * TP * 2 + TP * 4 + C * TP * 4          # t1(bf16), mask, t2_hr
                 + C * TRl * max(Wl, 128) * 4               # t2_lr block (lane padded)
                 + C * TP * 4)                               # preds output block
    resident_bytes = sum(int(a.size) * a.dtype.itemsize for a in weight_args)
    scratch_bytes = 2 * C * TP * 4
    est = 2 * (blk_bytes + resident_bytes) + scratch_bytes
    vmem_limit = int(min(VMEM_CAP_BYTES, max(16 * 1024 * 1024, 4 * est)))

    flops_model = B * HW * (2 * C * Wl + 4 * C * HIDDEN + 2 * HIDDEN * C + 6 * C)

    if return_preds:
        t2_sp_flat = pl.pallas_call(
            _preds_kernel,
            grid=(B, n_pix),
            in_specs=[hr_spec(C), lr_spec, hr_spec(1), *weight_specs],
            out_specs=hr_spec(C),
            out_shape=jax.ShapeDtypeStruct((B, C, HW), jnp.float32),
            scratch_shapes=[pltpu.VMEM((C, TP), jnp.float32)],
            compiler_params=pltpu.CompilerParams(
                dimension_semantics=("parallel", "parallel"),
                vmem_limit_bytes=vmem_limit),
            cost_estimate=pl.CostEstimate(
                flops=flops_model, transcendentals=0,
                bytes_accessed=(t1_f.size * 2 + t2lr_4d.size * 4
                                + mask_f.size * 4 + B * C * HW * 4
                                + resident_bytes)),
        )(t1_f, t2lr_4d, mask_f, *weight_args)
        return t2_sp_flat.reshape(B, C, H, W), t2_hr

    # Fused loss path: per-batch partial |.| sums (batch axis stays "parallel"
    # so both v7x TensorCores run it); final reduction + 1/N scale in the wrapper.
    partials = pl.pallas_call(
        _fused_loss_kernel,
        grid=(B, n_pix),
        in_specs=[hr_spec(C), lr_spec, hr_spec(1), hr_spec(C), *weight_specs],
        out_specs=pl.BlockSpec((1, 1, 1), lambda b, i: (b, 0, 0)),
        out_shape=jax.ShapeDtypeStruct((B, 1, 1), jnp.float32),
        scratch_shapes=[pltpu.VMEM((C, TP), jnp.float32),     # t2_up scratch
                        pltpu.VMEM((C, TP), jnp.float32)],    # |.| accumulator
        compiler_params=pltpu.CompilerParams(
            dimension_semantics=("parallel", "arbitrary"),
            vmem_limit_bytes=vmem_limit),
        cost_estimate=pl.CostEstimate(
            flops=flops_model + 3 * B * HW * C, transcendentals=0,
            bytes_accessed=(t1_f.size * 2 + t2lr_4d.size * 4 + mask_f.size * 4
                            + t2hr_f.size * 4 + B * 4 + resident_bytes)),
    )(t1_f, t2lr_4d, mask_f, t2hr_f, *weight_args)
    return jnp.sum(partials) / float(t2_hr.size)


# --------------------------------------------------------- pure-JAX reference --
def _ref_forward(batch_data, params, return_preds=False):
    t1_hr = batch_data['t1_hr']
    t2_hr = batch_data['t2_hr']
    t2_lr = batch_data['t2_lr']
    mask = batch_data['mask'].astype(jnp.float32)
    rh = t1_hr.shape[2] // t2_lr.shape[2]
    rw = t1_hr.shape[3] // t2_lr.shape[3]
    t2_up = jnp.repeat(jnp.repeat(t2_lr, rh, axis=2), rw, axis=3)
    w1a, w1b, b1, w2, b2 = params
    hi = jax.lax.Precision.HIGHEST
    h = (jnp.einsum('oc,bchw->bohw', w1a, t1_hr, precision=hi)
         + jnp.einsum('oc,bchw->bohw', w1b, t2_up, precision=hi)
         + b1.reshape(1, -1, 1, 1))
    h = jnp.maximum(h, 0.0)
    pred = (jnp.einsum('oc,bchw->bohw', w2, h, precision=hi)
            + b2.reshape(1, -1, 1, 1))
    t2_sp = mask * pred + (1.0 - mask) * t2_up
    if return_preds:
        return t2_sp, t2_hr
    return jnp.mean(jnp.abs(t2_sp - t2_hr))


if __name__ == "__main__":
    key = jax.random.PRNGKey(0)
    k1, k2, k3, k4, kw1, kw2, kw3 = jax.random.split(key, 7)

    # 128x128 so the pixel grid axis has >1 step (exercises init/accumulate/
    # finalize); still tiny (< 1 MB per tensor).
    B, C, H, W = 2, 4, 128, 128
    Hl, Wl = H // 2, W // 2

    def bf16_exact(x):
        # keep values bf16-representable so the kernel's bf16 matmul casts are
        # exact; tolerances below only absorb intermediate-precision effects.
        return x.astype(jnp.bfloat16).astype(jnp.float32)

    batch_data = {
        't1_hr': bf16_exact(jax.random.normal(k1, (B, C, H, W), jnp.float32)),
        't2_hr': jax.random.normal(k2, (B, C, H, W), jnp.float32),
        't2_lr': bf16_exact(jax.random.normal(k3, (B, C, Hl, Wl), jnp.float32)),
        'mask': (jax.random.uniform(k4, (B, 1, H, W)) > 0.5).astype(jnp.float32),
    }

    # deterministic surrogate parameters (1x1-conv weights as matrices)
    w1a = bf16_exact(0.1 * jax.random.normal(kw1, (HIDDEN, C), jnp.float32))
    w1b = bf16_exact(0.1 * jax.random.normal(kw2, (HIDDEN, C), jnp.float32))
    b1 = jnp.zeros((HIDDEN, 1), jnp.float32)
    w2 = bf16_exact(0.1 * jax.random.normal(kw3, (C, HIDDEN), jnp.float32))
    b2 = jnp.zeros((C, 1), jnp.float32)
    params = (w1a, w1b, b1, w2, b2)

    # fused-loss path (tolerance relaxed slightly: kernel matmuls use bf16 operands)
    loss = jax.block_until_ready(mask_model_wrapper_forward(batch_data, params))
    ref_loss = jax.block_until_ready(_ref_forward(batch_data, params))
    assert jnp.allclose(loss, ref_loss, rtol=1e-2, atol=1e-4), (loss, ref_loss)

    # return_preds path
    t2_sp, t2_hr_out = mask_model_wrapper_forward(batch_data, params,
                                                  return_preds=True)
    jax.block_until_ready(t2_sp)
    t2_sp_ref, _ = _ref_forward(batch_data, params, return_preds=True)
    assert t2_sp.shape == t2_hr_out.shape == (B, C, H, W)
    assert jnp.allclose(t2_sp, t2_sp_ref, rtol=2e-2, atol=2e-2)

    print("KERNEL_OK")
</pallas_src>

<mosaic_0001>
module attributes {stable_mosaic.version = 11 : i64} {
  func.func @_fused_loss_kernel(%arg0: i32, %arg1: i32, %arg2: memref<1x4x8192xbf16, #tpu.memory_space<vmem>>, %arg3: memref<1x4x32x64xf32, #tpu.memory_space<vmem>>, %arg4: memref<1x1x8192xf32, #tpu.memory_space<vmem>>, %arg5: memref<1x4x8192xf32, #tpu.memory_space<vmem>>, %arg6: memref<64x256xf32, #tpu.memory_space<vmem>>, %arg7: memref<32x8xbf16, #tpu.memory_space<vmem>>, %arg8: memref<32x1xf32, #tpu.memory_space<vmem>>, %arg9: memref<4x32xbf16, #tpu.memory_space<vmem>>, %arg10: memref<4x1xf32, #tpu.memory_space<vmem>>, %arg11: memref<1x1x1xf32, #tpu.memory_space<vmem>>, %arg12: memref<4x8192xf32, #tpu.memory_space<vmem>>, %arg13: memref<4x8192xf32, #tpu.memory_space<vmem>>) attributes {dimension_semantics = [#tpu.dimension_semantics<parallel>, #tpu.dimension_semantics<arbitrary>], iteration_bounds = array<i64: 2, 2>, scalar_prefetch = 0 : i64, scratch_operands = 2 : i64, tpu.core_type = #tpu.core_type<tc>, window_params = [{transform_indices = @transform_0, window_bounds = array<i64: 1, 4, 8192>}, {transform_indices = @transform_1, window_bounds = array<i64: 1, 4, 32, 64>}, {transform_indices = @transform_2, window_bounds = array<i64: 1, 1, 8192>}, {transform_indices = @transform_3, window_bounds = array<i64: 1, 4, 8192>}, {pipeline_mode = #tpu.pipeline_mode<synchronous>, transform_indices = @transform_4, window_bounds = array<i64: 64, 256>}, {pipeline_mode = #tpu.pipeline_mode<synchronous>, transform_indices = @transform_5, window_bounds = array<i64: 32, 8>}, {pipeline_mode = #tpu.pipeline_mode<synchronous>, transform_indices = @transform_6, window_bounds = array<i64: 32, 1>}, {pipeline_mode = #tpu.pipeline_mode<synchronous>, transform_indices = @transform_7, window_bounds = array<i64: 4, 32>}, {pipeline_mode = #tpu.pipeline_mode<synchronous>, transform_indices = @transform_8, window_bounds = array<i64: 4, 1>}, {transform_indices = @transform_9, window_bounds = array<i64: 1, 1, 1>}]} {
    %c0_i32 = arith.constant 0 : i32
    %0 = arith.cmpi eq, %arg1, %c0_i32 : i32
    %1 = arith.extui %0 : i1 to i32
    %c0_i32_0 = arith.constant 0 : i32
    %2 = arith.cmpi ne, %1, %c0_i32_0 : i32
    scf.if %2 {
      %cst_191 = arith.constant 0.000000e+00 : f32
      %169 = vector.broadcast %cst_191 : f32 to vector<4x8192xf32>
      %c0_192 = arith.constant 0 : index
      %c0_193 = arith.constant 0 : index
      %170 = vector.load %arg13[%c0_192, %c0_193] : memref<4x8192xf32, #tpu.memory_space<vmem>>, vector<4x8192xf32>
      tpu.vector_store %arg13[%c0_192, %c0_193], %169 {strides = array<i32>} : memref<4x8192xf32, #tpu.memory_space<vmem>>, vector<4x8192xf32>,
    } else {
    }
    %c0 = arith.constant 0 : index
    %c0_1 = arith.constant 0 : index
    %3 = vector.load %arg6[%c0, %c0_1] : memref<64x256xf32, #tpu.memory_space<vmem>>, vector<64x256xf32>
    %c0_2 = arith.constant 0 : index
    %c0_3 = arith.constant 0 : index
    %c0_4 = arith.constant 0 : index
    %c0_5 = arith.constant 0 : index
    %4 = vector.load %arg3[%c0_2, %c0_3, %c0_4, %c0_5] : memref<1x4x32x64xf32, #tpu.memory_space<vmem>>, vector<1x4x1x64xf32>
    %5 = vector.shape_cast %4 : vector<1x4x1x64xf32> to vector<4x64xf32>
    %cst = arith.constant dense<0.000000e+00> : vector<4x256xf32>
    %6 = tpu.matmul %5, %3, %cst {dimension_numbers = #tpu.dot_dimension_numbers<[1], [0], [0], [1], [0, 0, 1, 1], [], []>} : vector<4x64xf32>, vector<64x256xf32>, vector<4x256xf32> -> vector<4x256xf32>
    %c0_6 = arith.constant 0 : index
    %c0_7 = arith.constant 0 : index
    %7 = vector.load %arg12[%c0_6, %c0_7] : memref<4x8192xf32, #tpu.memory_space<vmem>>, vector<4x256xf32>
    tpu.vector_store %arg12[%c0_6, %c0_7], %6 {strides = array<i32>} : memref<4x8192xf32, #tpu.memory_space<vmem>>, vector<4x256xf32>,
    %c0_8 = arith.constant 0 : index
    %c0_9 = arith.constant 0 : index
    %c1 = arith.constant 1 : index
    %c0_10 = arith.constant 0 : index
    %8 = vector.load %arg3[%c0_8, %c0_9, %c1, %c0_10] : memref<1x4x32x64xf32, #tpu.memory_space<vmem>>, vector<1x4x1x64xf32>
    %9 = vector.shape_cast %8 : vector<1x4x1x64xf32> to vector<4x64xf32>
    %cst_11 = arith.constant dense<0.000000e+00> : vector<4x256xf32>
    %10 = tpu.matmul %9, %3, %cst_11 {dimension_numbers = #tpu.dot_dimension_numbers<[1], [0], [0], [1], [0, 0, 1, 1], [], []>} : vector<4x64xf32>, vector<64x256xf32>, vector<4x256xf32> -> vector<4x256xf32>
    %c0_12 = arith.constant 0 : index
    %c256 = arith.constant 256 : index
    %11 = vector.load %arg12[%c0_12, %c256] : memref<4x8192xf32, #tpu.memory_space<vmem>>, vector<4x256xf32>
    tpu.vector_store %arg12[%c0_12, %c256], %10 {strides = array<i32>} : memref<4x8192xf32, #tpu.memory_space<vmem>>, vector<4x256xf32>,
    %c0_13 = arith.constant 0 : index
    %c0_14 = arith.constant 0 : index
    %c2 = arith.constant 2 : index
    %c0_15 = arith.constant 0 : index
    %12 = vector.load %arg3[%c0_13, %c0_14, %c2, %c0_15] : memref<1x4x32x64xf32, #tpu.memory_space<vmem>>, vector<1x4x1x64xf32>
    %13 = vector.shape_cast %12 : vector<1x4x1x64xf32> to vector<4x64xf32>
    %cst_16 = arith.constant dense<0.000000e+00> : vector<4x256xf32>
    %14 = tpu.matmul %13, %3, %cst_16 {dimension_numbers = #tpu.dot_dimension_numbers<[1], [0], [0], [1], [0, 0, 1, 1], [], []>} : vector<4x64xf32>, vector<64x256xf32>, vector<4x256xf32> -> vector<4x256xf32>
    %c0_17 = arith.constant 0 : index
    %c512 = arith.constant 512 : index
    %15 = vector.load %arg12[%c0_17, %c512] : memref<4x8192xf32, #tpu.memory_space<vmem>>, vector<4x256xf32>
    tpu.vector_store %arg12[%c0_17, %c512], %14 {strides = array<i32>} : memref<4x8192xf32, #tpu.memory_space<vmem>>, vector<4x256xf32>,
    %c0_18 = arith.constant 0 : index
    %c0_19 = arith.constant 0 : index
    %c3 = arith.constant 3 : index
    %c0_20 = arith.constant 0 : index
    %16 = vector.load %arg3[%c0_18, %c0_19, %c3, %c0_20] : memref<1x4x32x64xf32, #tpu.memory_space<vmem>>, vector<1x4x1x64xf32>
    %17 = vector.shape_cast %16 : vector<1x4x1x64xf32> to vector<4x64xf32>
    %cst_21 = arith.constant dense<0.000000e+00> : vector<4x256xf32>
    %18 = tpu.matmul %17, %3, %cst_21 {dimension_numbers = #tpu.dot_dimension_numbers<[1], [0], [0], [1], [0, 0, 1, 1], [], []>} : vector<4x64xf32>, vector<64x256xf32>, vector<4x256xf32> -> vector<4x256xf32>
    %c0_22 = arith.constant 0 : index
    %c768 = arith.constant 768 : index
    %19 = vector.load %arg12[%c0_22, %c768] : memref<4x8192xf32, #tpu.memory_space<vmem>>, vector<4x256xf32>
    tpu.vector_store %arg12[%c0_22, %c768], %18 {strides = array<i32>} : memref<4x8192xf32, #tpu.memory_space<vmem>>, vector<4x256xf32>,
    %c0_23 = arith.constant 0 : index
    %c0_24 = arith.constant 0 : index
    %c4 = arith.constant 4 : index
    %c0_25 = arith.constant 0 : index
    %20 = vector.load %arg3[%c0_23, %c0_24, %c4, %c0_25] : memref<1x4x32x64xf32, #tpu.memory_space<vmem>>, vector<1x4x1x64xf32>
    %21 = vector.shape_cast %20 : vector<1x4x1x64xf32> to vector<4x64xf32>
    %cst_26 = arith.constant dense<0.000000e+00> : vector<4x256xf32>
    %22 = tpu.matmul %21, %3, %cst_26 {dimension_numbers = #tpu.dot_dimension_numbers<[1], [0], [0], [1], [0, 0, 1, 1], [], []>} : vector<4x64xf32>, vector<64x256xf32>, vector<4x256xf32> -> vector<4x256xf32>
    %c0_27 = arith.constant 0 : index
    %c1024 = arith.constant 1024 : index
    %23 = vector.load %arg12[%c0_27, %c1024] : memref<4x8192xf32, #tpu.memory_space<vmem>>, vector<4x256xf32>
    tpu.vector_store %arg12[%c0_27, %c1024], %22 {strides = array<i32>} : memref<4x8192xf32, #tpu.memory_space<vmem>>, vector<4x256xf32>,
    %c0_28 = arith.constant 0 : index
    %c0_29 = arith.constant 0 : index
    %c5 = arith.constant 5 : index
    %c0_30 = arith.constant 0 : index
    %24 = vector.load %arg3[%c0_28, %c0_29, %c5, %c0_30] : memref<1x4x32x64xf32, #tpu.memory_space<vmem>>, vector<1x4x1x64xf32>
    %25 = vector.shape_cast %24 : vector<1x4x1x64xf32> to vector<4x64xf32>
    %cst_31 = arith.constant dense<0.000000e+00> : vector<4x256xf32>
    %26 = tpu.matmul %25, %3, %cst_31 {dimension_numbers = #tpu.dot_dimension_numbers<[1], [0], [0], [1], [0, 0, 1, 1], [], []>} : vector<4x64xf32>, vector<64x256xf32>, vector<4x256xf32> -> vector<4x256xf32>
    %c0_32 = arith.constant 0 : index
    %c1280 = arith.constant 1280 : index
    %27 = vector.load %arg12[%c0_32, %c1280] : memref<4x8192xf32, #tpu.memory_space<vmem>>, vector<4x256xf32>
    tpu.vector_store %arg12[%c0_32, %c1280], %26 {strides = array<i32>} : memref<4x8192xf32, #tpu.memory_space<vmem>>, vector<4x256xf32>,
    %c0_33 = arith.constant 0 : index
    %c0_34 = arith.constant 0 : index
    %c6 = arith.constant 6 : index
    %c0_35 = arith.constant 0 : index
    %28 = vector.load %arg3[%c0_33, %c0_34, %c6, %c0_35] : memref<1x4x32x64xf32, #tpu.memory_space<vmem>>, vector<1x4x1x64xf32>
    %29 = vector.shape_cast %28 : vector<1x4x1x64xf32> to vector<4x64xf32>
    %cst_36 = arith.constant dense<0.000000e+00> : vector<4x256xf32>
    %30 = tpu.matmul %29, %3, %cst_36 {dimension_numbers = #tpu.dot_dimension_numbers<[1], [0], [0], [1], [0, 0, 1, 1], [], []>} : vector<4x64xf32>, vector<64x256xf32>, vector<4x256xf32> -> vector<4x256xf32>
    %c0_37 = arith.constant 0 : index
    %c1536 = arith.constant 1536 : index
    %31 = vector.load %arg12[%c0_37, %c1536] : memref<4x8192xf32, #tpu.memory_space<vmem>>, vector<4x256xf32>
    tpu.vector_store %arg12[%c0_37, %c1536], %30 {strides = array<i32>} : memref<4x8192xf32, #tpu.memory_space<vmem>>, vector<4x256xf32>,
    %c0_38 = arith.constant 0 : index
    %c0_39 = arith.constant 0 : index
    %c7 = arith.constant 7 : index
    %c0_40 = arith.constant 0 : index
    %32 = vector.load %arg3[%c0_38, %c0_39, %c7, %c0_40] : memref<1x4x32x64xf32, #tpu.memory_space<vmem>>, vector<1x4x1x64xf32>
    %33 = vector.shape_cast %32 : vector<1x4x1x64xf32> to vector<4x64xf32>
    %cst_41 = arith.constant dense<0.000000e+00> : vector<4x256xf32>
    %34 = tpu.matmul %33, %3, %cst_41 {dimension_numbers = #tpu.dot_dimension_numbers<[1], [0], [0], [1], [0, 0, 1, 1], [], []>} : vector<4x64xf32>, vector<64x256xf32>, vector<4x256xf32> -> vector<4x256xf32>
    %c0_42 = arith.constant 0 : index
    %c1792 = arith.constant 1792 : index
    %35 = vector.load %arg12[%c0_42, %c1792] : memref<4x8192xf32, #tpu.memory_space<vmem>>, vector<4x256xf32>
    tpu.vector_store %arg12[%c0_42, %c1792], %34 {strides = array<i32>} : memref<4x8192xf32, #tpu.memory_space<vmem>>, vector<4x256xf32>,
    %c0_43 = arith.constant 0 : index
    %c0_44 = arith.constant 0 : index
    %c8 = arith.constant 8 : index
    %c0_45 = arith.constant 0 : index
    %36 = vector.load %arg3[%c0_43, %c0_44, %c8, %c0_45] : memref<1x4x32x64xf32, #tpu.memory_space<vmem>>, vector<1x4x1x64xf32>
    %37 = vector.shape_cast %36 : vector<1x4x1x64xf32> to vector<4x64xf32>
    %cst_46 = arith.constant dense<0.000000e+00> : vector<4x256xf32>
    %38 = tpu.matmul %37, %3, %cst_46 {dimension_numbers = #tpu.dot_dimension_numbers<[1], [0], [0], [1], [0, 0, 1, 1], [], []>} : vector<4x64xf32>, vector<64x256xf32>, vector<4x256xf32> -> vector<4x256xf32>
    %c0_47 = arith.constant 0 : index
    %c2048 = arith.constant 2048 : index
    %39 = vector.load %arg12[%c0_47, %c2048] : memref<4x8192xf32, #tpu.memory_space<vmem>>, vector<4x256xf32>
    tpu.vector_store %arg12[%c0_47, %c2048], %38 {strides = array<i32>} : memref<4x8192xf32, #tpu.memory_space<vmem>>, vector<4x256xf32>,
    %c0_48 = arith.constant 0 : index
    %c0_49 = arith.constant 0 : index
    %c9 = arith.constant 9 : index
    %c0_50 = arith.constant 0 : index
    %40 = vector.load %arg3[%c0_48, %c0_49, %c9, %c0_50] : memref<1x4x32x64xf32, #tpu.memory_space<vmem>>, vector<1x4x1x64xf32>
    %41 = vector.shape_cast %40 : vector<1x4x1x64xf32> to vector<4x64xf32>
    %cst_51 = arith.constant dense<0.000000e+00> : vector<4x256xf32>
    %42 = tpu.matmul %41, %3, %cst_51 {dimension_numbers = #tpu.dot_dimension_numbers<[1], [0], [0], [1], [0, 0, 1, 1], [], []>} : vector<4x64xf32>, vector<64x256xf32>, vector<4x256xf32> -> vector<4x256xf32>
    %c0_52 = arith.constant 0 : index
    %c2304 = arith.constant 2304 : index
    %43 = vector.load %arg12[%c0_52, %c2304] : memref<4x8192xf32, #tpu.memory_space<vmem>>, vector<4x256xf32>
    tpu.vector_store %arg12[%c0_52, %c2304], %42 {strides = array<i32>} : memref<4x8192xf32, #tpu.memory_space<vmem>>, vector<4x256xf32>,
    %c0_53 = arith.constant 0 : index
    %c0_54 = arith.constant 0 : index
    %c10 = arith.constant 10 : index
    %c0_55 = arith.constant 0 : index
    %44 = vector.load %arg3[%c0_53, %c0_54, %c10, %c0_55] : memref<1x4x32x64xf32, #tpu.memory_space<vmem>>, vector<1x4x1x64xf32>
    %45 = vector.shape_cast %44 : vector<1x4x1x64xf32> to vector<4x64xf32>
    %cst_56 = arith.constant dense<0.000000e+00> : vector<4x256xf32>
    %46 = tpu.matmul %45, %3, %cst_56 {dimension_numbers = #tpu.dot_dimension_numbers<[1], [0], [0], [1], [0, 0, 1, 1], [], []>} : vector<4x64xf32>, vector<64x256xf32>, vector<4x256xf32> -> vector<4x256xf32>
    %c0_57 = arith.constant 0 : index
    %c2560 = arith.constant 2560 : index
    %47 = vector.load %arg12[%c0_57, %c2560] : memref<4x8192xf32, #tpu.memory_space<vmem>>, vector<4x256xf32>
    tpu.vector_store %arg12[%c0_57, %c2560], %46 {strides = array<i32>} : memref<4x8192xf32, #tpu.memory_space<vmem>>, vector<4x256xf32>,
    %c0_58 = arith.constant 0 : index
    %c0_59 = arith.constant 0 : index
    %c11 = arith.constant 11 : index
    %c0_60 = arith.constant 0 : index
    %48 = vector.load %arg3[%c0_58, %c0_59, %c11, %c0_60] : memref<1x4x32x64xf32, #tpu.memory_space<vmem>>, vector<1x4x1x64xf32>
    %49 = vector.shape_cast %48 : vector<1x4x1x64xf32> to vector<4x64xf32>
    %cst_61 = arith.constant dense<0.000000e+00> : vector<4x256xf32>
    %50 = tpu.matmul %49, %3, %cst_61 {dimension_numbers = #tpu.dot_dimension_numbers<[1], [0], [0], [1], [0, 0, 1, 1], [], []>} : vector<4x64xf32>, vector<64x256xf32>, vector<4x256xf32> -> vector<4x256xf32>
    %c0_62 = arith.constant 0 : index
    %c2816 = arith.constant 2816 : index
    %51 = vector.load %arg12[%c0_62, %c2816] : memref<4x8192xf32, #tpu.memory_space<vmem>>, vector<4x256xf32>
    tpu.vector_store %arg12[%c0_62, %c2816], %50 {strides = array<i32>} : memref<4x8192xf32, #tpu.memory_space<vmem>>, vector<4x256xf32>,
    %c0_63 = arith.constant 0 : index
    %c0_64 = arith.constant 0 : index
    %c12 = arith.constant 12 : index
    %c0_65 = arith.constant 0 : index
    %52 = vector.load %arg3[%c0_63, %c0_64, %c12, %c0_65] : memref<1x4x32x64xf32, #tpu.memory_space<vmem>>, vector<1x4x1x64xf32>
    %53 = vector.shape_cast %52 : vector<1x4x1x64xf32> to vector<4x64xf32>
    %cst_66 = arith.constant dense<0.000000e+00> : vector<4x256xf32>
    %54 = tpu.matmul %53, %3, %cst_66 {dimension_numbers = #tpu.dot_dimension_numbers<[1], [0], [0], [1], [0, 0, 1, 1], [], []>} : vector<4x64xf32>, vector<64x256xf32>, vector<4x256xf32> -> vector<4x256xf32>
    %c0_67 = arith.constant 0 : index
    %c3072 = arith.constant 3072 : index
    %55 = vector.load %arg12[%c0_67, %c3072] : memref<4x8192xf32, #tpu.memory_space<vmem>>, vector<4x256xf32>
    tpu.vector_store %arg12[%c0_67, %c3072], %54 {strides = array<i32>} : memref<4x8192xf32, #tpu.memory_space<vmem>>, vector<4x256xf32>,
    %c0_68 = arith.constant 0 : index
    %c0_69 = arith.constant 0 : index
    %c13 = arith.constant 13 : index
    %c0_70 = arith.constant 0 : index
    %56 = vector.load %arg3[%c0_68, %c0_69, %c13, %c0_70] : memref<1x4x32x64xf32, #tpu.memory_space<vmem>>, vector<1x4x1x64xf32>
    %57 = vector.shape_cast %56 : vector<1x4x1x64xf32> to vector<4x64xf32>
    %cst_71 = arith.constant dense<0.000000e+00> : vector<4x256xf32>
    %58 = tpu.matmul %57, %3, %cst_71 {dimension_numbers = #tpu.dot_dimension_numbers<[1], [0], [0], [1], [0, 0, 1, 1], [], []>} : vector<4x64xf32>, vector<64x256xf32>, vector<4x256xf32> -> vector<4x256xf32>
    %c0_72 = arith.constant 0 : index
    %c3328 = arith.constant 3328 : index
    %59 = vector.load %arg12[%c0_72, %c3328] : memref<4x8192xf32, #tpu.memory_space<vmem>>, vector<4x256xf32>
    tpu.vector_store %arg12[%c0_72, %c3328], %58 {strides = array<i32>} : memref<4x8192xf32, #tpu.memory_space<vmem>>, vector<4x256xf32>,
    %c0_73 = arith.constant 0 : index
    %c0_74 = arith.constant 0 : index
    %c14 = arith.constant 14 : index
    %c0_75 = arith.constant 0 : index
    %60 = vector.load %arg3[%c0_73, %c0_74, %c14, %c0_75] : memref<1x4x32x64xf32, #tpu.memory_space<vmem>>, vector<1x4x1x64xf32>
    %61 = vector.shape_cast %60 : vector<1x4x1x64xf32> to vector<4x64xf32>
    %cst_76 = arith.constant dense<0.000000e+00> : vector<4x256xf32>
    %62 = tpu.matmul %61, %3, %cst_76 {dimension_numbers = #tpu.dot_dimension_numbers<[1], [0], [0], [1], [0, 0, 1, 1], [], []>} : vector<4x64xf32>, vector<64x256xf32>, vector<4x256xf32> -> vector<4x256xf32>
    %c0_77 = arith.constant 0 : index
    %c3584 = arith.constant 3584 : index
    %63 = vector.load %arg12[%c0_77, %c3584] : memref<4x8192xf32, #tpu.memory_space<vmem>>, vector<4x256xf32>
    tpu.vector_store %arg12[%c0_77, %c3584], %62 {strides = array<i32>} : memref<4x8192xf32, #tpu.memory_space<vmem>>, vector<4x256xf32>,
    %c0_78 = arith.constant 0 : index
    %c0_79 = arith.constant 0 : index
    %c15 = arith.constant 15 : index
    %c0_80 = arith.constant 0 : index
    %64 = vector.load %arg3[%c0_78, %c0_79, %c15, %c0_80] : memref<1x4x32x64xf32, #tpu.memory_space<vmem>>, vector<1x4x1x64xf32>
    %65 = vector.shape_cast %64 : vector<1x4x1x64xf32> to vector<4x64xf32>
    %cst_81 = arith.constant dense<0.000000e+00> : vector<4x256xf32>
    %66 = tpu.matmul %65, %3, %cst_81 {dimension_numbers = #tpu.dot_dimension_numbers<[1], [0], [0], [1], [0, 0, 1, 1], [], []>} : vector<4x64xf32>, vector<64x256xf32>, vector<4x256xf32> -> vector<4x256xf32>
    %c0_82 = arith.constant 0 : index
    %c3840 = arith.constant 3840 : index
    %67 = vector.load %arg12[%c0_82, %c3840] : memref<4x8192xf32, #tpu.memory_space<vmem>>, vector<4x256xf32>
    tpu.vector_store %arg12[%c0_82, %c3840], %66 {strides = array<i32>} : memref<4x8192xf32, #tpu.memory_space<vmem>>, vector<4x256xf32>,
    %c0_83 = arith.constant 0 : index
    %c0_84 = arith.constant 0 : index
    %c16 = arith.constant 16 : index
    %c0_85 = arith.constant 0 : index
    %68 = vector.load %arg3[%c0_83, %c0_84, %c16, %c0_85] : memref<1x4x32x64xf32, #tpu.memory_space<vmem>>, vector<1x4x1x64xf32>
    %69 = vector.shape_cast %68 : vector<1x4x1x64xf32> to vector<4x64xf32>
    %cst_86 = arith.constant dense<0.000000e+00> : vector<4x256xf32>
    %70 = tpu.matmul %69, %3, %cst_86 {dimension_numbers = #tpu.dot_dimension_numbers<[1], [0], [0], [1], [0, 0, 1, 1], [], []>} : vector<4x64xf32>, vector<64x256xf32>, vector<4x256xf32> -> vector<4x256xf32>
    %c0_87 = arith.constant 0 : index
    %c4096 = arith.constant 4096 : index
    %71 = vector.load %arg12[%c0_87, %c4096] : memref<4x8192xf32, #tpu.memory_space<vmem>>, vector<4x256xf32>
    tpu.vector_store %arg12[%c0_87, %c4096], %70 {strides = array<i32>} : memref<4x8192xf32, #tpu.memory_space<vmem>>, vector<4x256xf32>,
    %c0_88 = arith.constant 0 : index
    %c0_89 = arith.constant 0 : index
    %c17 = arith.constant 17 : index
    %c0_90 = arith.constant 0 : index
    %72 = vector.load %arg3[%c0_88, %c0_89, %c17, %c0_90] : memref<1x4x32x64xf32, #tpu.memory_space<vmem>>, vector<1x4x1x64xf32>
    %73 = vector.shape_cast %72 : vector<1x4x1x64xf32> to vector<4x64xf32>
    %cst_91 = arith.constant dense<0.000000e+00> : vector<4x256xf32>
    %74 = tpu.matmul %73, %3, %cst_91 {dimension_numbers = #tpu.dot_dimension_numbers<[1], [0], [0], [1], [0, 0, 1, 1], [], []>} : vector<4x64xf32>, vector<64x256xf32>, vector<4x256xf32> -> vector<4x256xf32>
    %c0_92 = arith.constant 0 : index
    %c4352 = arith.constant 4352 : index
    %75 = vector.load %arg12[%c0_92, %c4352] : memref<4x8192xf32, #tpu.memory_space<vmem>>, vector<4x256xf32>
    tpu.vector_store %arg12[%c0_92, %c4352], %74 {strides = array<i32>} : memref<4x8192xf32, #tpu.memory_space<vmem>>, vector<4x256xf32>,
    %c0_93 = arith.constant 0 : index
    %c0_94 = arith.constant 0 : index
    %c18 = arith.constant 18 : index
    %c0_95 = arith.constant 0 : index
    %76 = vector.load %arg3[%c0_93, %c0_94, %c18, %c0_95] : memref<1x4x32x64xf32, #tpu.memory_space<vmem>>, vector<1x4x1x64xf32>
    %77 = vector.shape_cast %76 : vector<1x4x1x64xf32> to vector<4x64xf32>
    %cst_96 = arith.constant dense<0.000000e+00> : vector<4x256xf32>
    %78 = tpu.matmul %77, %3, %cst_96 {dimension_numbers = #tpu.dot_dimension_numbers<[1], [0], [0], [1], [0, 0, 1, 1], [], []>} : vector<4x64xf32>, vector<64x256xf32>, vector<4x256xf32> -> vector<4x256xf32>
    %c0_97 = arith.constant 0 : index
    %c4608 = arith.constant 4608 : index
    %79 = vector.load %arg12[%c0_97, %c4608] : memref<4x8192xf32, #tpu.memory_space<vmem>>, vector<4x256xf32>
    tpu.vector_store %arg12[%c0_97, %c4608], %78 {strides = array<i32>} : memref<4x8192xf32, #tpu.memory_space<vmem>>, vector<4x256xf32>,
    %c0_98 = arith.constant 0 : index
    %c0_99 = arith.constant 0 : index
    %c19 = arith.constant 19 : index
    %c0_100 = arith.constant 0 : index
    %80 = vector.load %arg3[%c0_98, %c0_99, %c19, %c0_100] : memref<1x4x32x64xf32, #tpu.memory_space<vmem>>, vector<1x4x1x64xf32>
    %81 = vector.shape_cast %80 : vector<1x4x1x64xf32> to vector<4x64xf32>
    %cst_101 = arith.constant dense<0.000000e+00> : vector<4x256xf32>
    %82 = tpu.matmul %81, %3, %cst_101 {dimension_numbers = #tpu.dot_dimension_numbers<[1], [0], [0], [1], [0, 0, 1, 1], [], []>} : vector<4x64xf32>, vector<64x256xf32>, vector<4x256xf32> -> vector<4x256xf32>
    %c0_102 = arith.constant 0 : index
    %c4864 = arith.constant 4864 : index
    %83 = vector.load %arg12[%c0_102, %c4864] : memref<4x8192xf32, #tpu.memory_space<vmem>>, vector<4x256xf32>
    tpu.vector_store %arg12[%c0_102, %c4864], %82 {strides = array<i32>} : memref<4x8192xf32, #tpu.memory_space<vmem>>, vector<4x256xf32>,
    %c0_103 = arith.constant 0 : index
    %c0_104 = arith.constant 0 : index
    %c20 = arith.constant 20 : index
    %c0_105 = arith.constant 0 : index
    %84 = vector.load %arg3[%c0_103, %c0_104, %c20, %c0_105] : memref<1x4x32x64xf32, #tpu.memory_space<vmem>>, vector<1x4x1x64xf32>
    %85 = vector.shape_cast %84 : vector<1x4x1x64xf32> to vector<4x64xf32>
    %cst_106 = arith.constant dense<0.000000e+00> : vector<4x256xf32>
    %86 = tpu.matmul %85, %3, %cst_106 {dimension_numbers = #tpu.dot_dimension_numbers<[1], [0], [0], [1], [0, 0, 1, 1], [], []>} : vector<4x64xf32>, vector<64x256xf32>, vector<4x256xf32> -> vector<4x256xf32>
    %c0_107 = arith.constant 0 : index
    %c5120 = arith.constant 5120 : index
    %87 = vector.load %arg12[%c0_107, %c5120] : memref<4x8192xf32, #tpu.memory_space<vmem>>, vector<4x256xf32>
    tpu.vector_store %arg12[%c0_107, %c5120], %86 {strides = array<i32>} : memref<4x8192xf32, #tpu.memory_space<vmem>>, vector<4x256xf32>,
    %c0_108 = arith.constant 0 : index
    %c0_109 = arith.constant 0 : index
    %c21 = arith.constant 21 : index
    %c0_110 = arith.constant 0 : index
    %88 = vector.load %arg3[%c0_108, %c0_109, %c21, %c0_110] : memref<1x4x32x64xf32, #tpu.memory_space<vmem>>, vector<1x4x1x64xf32>
    %89 = vector.shape_cast %88 : vector<1x4x1x64xf32> to vector<4x64xf32>
    %cst_111 = arith.constant dense<0.000000e+00> : vector<4x256xf32>
    %90 = tpu.matmul %89, %3, %cst_111 {dimension_numbers = #tpu.dot_dimension_numbers<[1], [0], [0], [1], [0, 0, 1, 1], [], []>} : vector<4x64xf32>, vector<64x256xf32>, vector<4x256xf32> -> vector<4x256xf32>
    %c0_112 = arith.constant 0 : index
    %c5376 = arith.constant 5376 : index
    %91 = vector.load %arg12[%c0_112, %c5376] : memref<4x8192xf32, #tpu.memory_space<vmem>>, vector<4x256xf32>
    tpu.vector_store %arg12[%c0_112, %c5376], %90 {strides = array<i32>} : memref<4x8192xf32, #tpu.memory_space<vmem>>, vector<4x256xf32>,
    %c0_113 = arith.constant 0 : index
    %c0_114 = arith.constant 0 : index
    %c22 = arith.constant 22 : index
    %c0_115 = arith.constant 0 : index
    %92 = vector.load %arg3[%c0_113, %c0_114, %c22, %c0_115] : memref<1x4x32x64xf32, #tpu.memory_space<vmem>>, vector<1x4x1x64xf32>
    %93 = vector.shape_cast %92 : vector<1x4x1x64xf32> to vector<4x64xf32>
    %cst_116 = arith.constant dense<0.000000e+00> : vector<4x256xf32>
    %94 = tpu.matmul %93, %3, %cst_116 {dimension_numbers = #tpu.dot_dimension_numbers<[1], [0], [0], [1], [0, 0, 1, 1], [], []>} : vector<4x64xf32>, vector<64x256xf32>, vector<4x256xf32> -> vector<4x256xf32>
    %c0_117 = arith.constant 0 : index
    %c5632 = arith.constant 5632 : index
    %95 = vector.load %arg12[%c0_117, %c5632] : memref<4x8192xf32, #tpu.memory_space<vmem>>, vector<4x256xf32>
    tpu.vector_store %arg12[%c0_117, %c5632], %94 {strides = array<i32>} : memref<4x8192xf32, #tpu.memory_space<vmem>>, vector<4x256xf32>,
    %c0_118 = arith.constant 0 : index
    %c0_119 = arith.constant 0 : index
    %c23 = arith.constant 23 : index
    %c0_120 = arith.constant 0 : index
    %96 = vector.load %arg3[%c0_118, %c0_119, %c23, %c0_120] : memref<1x4x32x64xf32, #tpu.memory_space<vmem>>, vector<1x4x1x64xf32>
    %97 = vector.shape_cast %96 : vector<1x4x1x64xf32> to vector<4x64xf32>
    %cst_121 = arith.constant dense<0.000000e+00> : vector<4x256xf32>
    %98 = tpu.matmul %97, %3, %cst_121 {dimension_numbers = #tpu.dot_dimension_numbers<[1], [0], [0], [1], [0, 0, 1, 1], [], []>} : vector<4x64xf32>, vector<64x256xf32>, vector<4x256xf32> -> vector<4x256xf32>
    %c0_122 = arith.constant 0 : index
    %c5888 = arith.constant 5888 : index
    %99 = vector.load %arg12[%c0_122, %c5888] : memref<4x8192xf32, #tpu.memory_space<vmem>>, vector<4x256xf32>
    tpu.vector_store %arg12[%c0_122, %c5888], %98 {strides = array<i32>} : memref<4x8192xf32, #tpu.memory_space<vmem>>, vector<4x256xf32>,
    %c0_123 = arith.constant 0 : index
    %c0_124 = arith.constant 0 : index
    %c24 = arith.constant 24 : index
    %c0_125 = arith.constant 0 : index
    %100 = vector.load %arg3[%c0_123, %c0_124, %c24, %c0_125] : memref<1x4x32x64xf32, #tpu.memory_space<vmem>>, vector<1x4x1x64xf32>
    %101 = vector.shape_cast %100 : vector<1x4x1x64xf32> to vector<4x64xf32>
    %cst_126 = arith.constant dense<0.000000e+00> : vector<4x256xf32>
    %102 = tpu.matmul %101, %3, %cst_126 {dimension_numbers = #tpu.dot_dimension_numbers<[1], [0], [0], [1], [0, 0, 1, 1], [], []>} : vector<4x64xf32>, vector<64x256xf32>, vector<4x256xf32> -> vector<4x256xf32>
    %c0_127 = arith.constant 0 : index
    %c6144 = arith.constant 6144 : index
    %103 = vector.load %arg12[%c0_127, %c6144] : memref<4x8192xf32, #tpu.memory_space<vmem>>, vector<4x256xf32>
    tpu.vector_store %arg12[%c0_127, %c6144], %102 {strides = array<i32>} : memref<4x8192xf32, #tpu.memory_space<vmem>>, vector<4x256xf32>,
    %c0_128 = arith.constant 0 : index
    %c0_129 = arith.constant 0 : index
    %c25 = arith.constant 25 : index
    %c0_130 = arith.constant 0 : index
    %104 = vector.load %arg3[%c0_128, %c0_129, %c25, %c0_130] : memref<1x4x32x64xf32, #tpu.memory_space<vmem>>, vector<1x4x1x64xf32>
    %105 = vector.shape_cast %104 : vector<1x4x1x64xf32> to vector<4x64xf32>
    %cst_131 = arith.constant dense<0.000000e+00> : vector<4x256xf32>
    %106 = tpu.matmul %105, %3, %cst_131 {dimension_numbers = #tpu.dot_dimension_numbers<[1], [0], [0], [1], [0, 0, 1, 1], [], []>} : vector<4x64xf32>, vector<64x256xf32>, vector<4x256xf32> -> vector<4x256xf32>
    %c0_132 = arith.constant 0 : index
    %c6400 = arith.constant 6400 : index
    %107 = vector.load %arg12[%c0_132, %c6400] : memref<4x8192xf32, #tpu.memory_space<vmem>>, vector<4x256xf32>
    tpu.vector_store %arg12[%c0_132, %c6400], %106 {strides = array<i32>} : memref<4x8192xf32, #tpu.memory_space<vmem>>, vector<4x256xf32>,
    %c0_133 = arith.constant 0 : index
    %c0_134 = arith.constant 0 : index
    %c26 = arith.constant 26 : index
    %c0_135 = arith.constant 0 : index
    %108 = vector.load %arg3[%c0_133, %c0_134, %c26, %c0_135] : memref<1x4x32x64xf32, #tpu.memory_space<vmem>>, vector<1x4x1x64xf32>
    %109 = vector.shape_cast %108 : vector<1x4x1x64xf32> to vector<4x64xf32>
    %cst_136 = arith.constant dense<0.000000e+00> : vector<4x256xf32>
    %110 = tpu.matmul %109, %3, %cst_136 {dimension_numbers = #tpu.dot_dimension_numbers<[1], [0], [0], [1], [0, 0, 1, 1], [], []>} : vector<4x64xf32>, vector<64x256xf32>, vector<4x256xf32> -> vector<4x256xf32>
    %c0_137 = arith.constant 0 : index
    %c6656 = arith.constant 6656 : index
    %111 = vector.load %arg12[%c0_137, %c6656] : memref<4x8192xf32, #tpu.memory_space<vmem>>, vector<4x256xf32>
    tpu.vector_store %arg12[%c0_137, %c6656], %110 {strides = array<i32>} : memref<4x8192xf32, #tpu.memory_space<vmem>>, vector<4x256xf32>,
    %c0_138 = arith.constant 0 : index
    %c0_139 = arith.constant 0 : index
    %c27 = arith.constant 27 : index
    %c0_140 = arith.constant 0 : index
    %112 = vector.load %arg3[%c0_138, %c0_139, %c27, %c0_140] : memref<1x4x32x64xf32, #tpu.memory_space<vmem>>, vector<1x4x1x64xf32>
    %113 = vector.shape_cast %112 : vector<1x4x1x64xf32> to vector<4x64xf32>
    %cst_141 = arith.constant dense<0.000000e+00> : vector<4x256xf32>
    %114 = tpu.matmul %113, %3, %cst_141 {dimension_numbers = #tpu.dot_dimension_numbers<[1], [0], [0], [1], [0, 0, 1, 1], [], []>} : vector<4x64xf32>, vector<64x256xf32>, vector<4x256xf32> -> vector<4x256xf32>
    %c0_142 = arith.constant 0 : index
    %c6912 = arith.constant 6912 : index
    %115 = vector.load %arg12[%c0_142, %c6912] : memref<4x8192xf32, #tpu.memory_space<vmem>>, vector<4x256xf32>
    tpu.vector_store %arg12[%c0_142, %c6912], %114 {strides = array<i32>} : memref<4x8192xf32, #tpu.memory_space<vmem>>, vector<4x256xf32>,
    %c0_143 = arith.constant 0 : index
    %c0_144 = arith.constant 0 : index
    %c28 = arith.constant 28 : index
    %c0_145 = arith.constant 0 : index
    %116 = vector.load %arg3[%c0_143, %c0_144, %c28, %c0_145] : memref<1x4x32x64xf32, #tpu.memory_space<vmem>>, vector<1x4x1x64xf32>
    %117 = vector.shape_cast %116 : vector<1x4x1x64xf32> to vector<4x64xf32>
    %cst_146 = arith.constant dense<0.000000e+00> : vector<4x256xf32>
    %118 = tpu.matmul %117, %3, %cst_146 {dimension_numbers = #tpu.dot_dimension_numbers<[1], [0], [0], [1], [0, 0, 1, 1], [], []>} : vector<4x64xf32>, vector<64x256xf32>, vector<4x256xf32> -> vector<4x256xf32>
    %c0_147 = arith.constant 0 : index
    %c7168 = arith.constant 7168 : index
    %119 = vector.load %arg12[%c0_147, %c7168] : memref<4x8192xf32, #tpu.memory_space<vmem>>, vector<4x256xf32>
    tpu.vector_store %arg12[%c0_147, %c7168], %118 {strides = array<i32>} : memref<4x8192xf32, #tpu.memory_space<vmem>>, vector<4x256xf32>,
    %c0_148 = arith.constant 0 : index
    %c0_149 = arith.constant 0 : index
    %c29 = arith.constant 29 : index
    %c0_150 = arith.constant 0 : index
    %120 = vector.load %arg3[%c0_148, %c0_149, %c29, %c0_150] : memref<1x4x32x64xf32, #tpu.memory_space<vmem>>, vector<1x4x1x64xf32>
    %121 = vector.shape_cast %120 : vector<1x4x1x64xf32> to vector<4x64xf32>
    %cst_151 = arith.constant dense<0.000000e+00> : vector<4x256xf32>
    %122 = tpu.matmul %121, %3, %cst_151 {dimension_numbers = #tpu.dot_dimension_numbers<[1], [0], [0], [1], [0, 0, 1, 1], [], []>} : vector<4x64xf32>, vector<64x256xf32>, vector<4x256xf32> -> vector<4x256xf32>
    %c0_152 = arith.constant 0 : index
    %c7424 = arith.constant 7424 : index
    %123 = vector.load %arg12[%c0_152, %c7424] : memref<4x8192xf32, #tpu.memory_space<vmem>>, vector<4x256xf32>
    tpu.vector_store %arg12[%c0_152, %c7424], %122 {strides = array<i32>} : memref<4x8192xf32, #tpu.memory_space<vmem>>, vector<4x256xf32>,
    %c0_153 = arith.constant 0 : index
    %c0_154 = arith.constant 0 : index
    %c30 = arith.constant 30 : index
    %c0_155 = arith.constant 0 : index
    %124 = vector.load %arg3[%c0_153, %c0_154, %c30, %c0_155] : memref<1x4x32x64xf32, #tpu.memory_space<vmem>>, vector<1x4x1x64xf32>
    %125 = vector.shape_cast %124 : vector<1x4x1x64xf32> to vector<4x64xf32>
    %cst_156 = arith.constant dense<0.000000e+00> : vector<4x256xf32>
    %126 = tpu.matmul %125, %3, %cst_156 {dimension_numbers = #tpu.dot_dimension_numbers<[1], [0], [0], [1], [0, 0, 1, 1], [], []>} : vector<4x64xf32>, vector<64x256xf32>, vector<4x256xf32> -> vector<4x256xf32>
    %c0_157 = arith.constant 0 : index
    %c7680 = arith.constant 7680 : index
    %127 = vector.load %arg12[%c0_157, %c7680] : memref<4x8192xf32, #tpu.memory_space<vmem>>, vector<4x256xf32>
    tpu.vector_store %arg12[%c0_157, %c7680], %126 {strides = array<i32>} : memref<4x8192xf32, #tpu.memory_space<vmem>>, vector<4x256xf32>,
    %c0_158 = arith.constant 0 : index
    %c0_159 = arith.constant 0 : index
    %c31 = arith.constant 31 : index
    %c0_160 = arith.constant 0 : index
    %128 = vector.load %arg3[%c0_158, %c0_159, %c31, %c0_160] : memref<1x4x32x64xf32, #tpu.memory_space<vmem>>, vector<1x4x1x64xf32>
    %129 = vector.shape_cast %128 : vector<1x4x1x64xf32> to vector<4x64xf32>
    %cst_161 = arith.constant dense<0.000000e+00> : vector<4x256xf32>
    %130 = tpu.matmul %129, %3, %cst_161 {dimension_numbers = #tpu.dot_dimension_numbers<[1], [0], [0], [1], [0, 0, 1, 1], [], []>} : vector<4x64xf32>, vector<64x256xf32>, vector<4x256xf32> -> vector<4x256xf32>
    %c0_162 = arith.constant 0 : index
    %c7936 = arith.constant 7936 : index
    %131 = vector.load %arg12[%c0_162, %c7936] : memref<4x8192xf32, #tpu.memory_space<vmem>>, vector<4x256xf32>
    tpu.vector_store %arg12[%c0_162, %c7936], %130 {strides = array<i32>} : memref<4x8192xf32, #tpu.memory_space<vmem>>, vector<4x256xf32>,
    %c0_163 = arith.constant 0 : index
    %c0_164 = arith.constant 0 : index
    %132 = vector.load %arg12[%c0_163, %c0_164] : memref<4x8192xf32, #tpu.memory_space<vmem>>, vector<4x8192xf32>
    %c0_165 = arith.constant 0 : index
    %c0_166 = arith.constant 0 : index
    %c0_167 = arith.constant 0 : index
    %133 = vector.load %arg2[%c0_165, %c0_166, %c0_167] : memref<1x4x8192xbf16, #tpu.memory_space<vmem>>, vector<1x4x8192xbf16>
    %134 = vector.shape_cast %133 : vector<1x4x8192xbf16> to vector<4x8192xbf16>
    %135 = arith.truncf %132 : vector<4x8192xf32> to vector<4x8192xbf16>
    %136 = tpu.concatenate %134, %135 in 0 : vector<4x8192xbf16>, vector<4x8192xbf16> -> vector<8x8192xbf16>
    %c0_168 = arith.constant 0 : index
    %c0_169 = arith.constant 0 : index
    %137 = vector.load %arg7[%c0_168, %c0_169] : memref<32x8xbf16, #tpu.memory_space<vmem>>, vector<32x8xbf16>
    %cst_170 = arith.constant dense<0.000000e+00> : vector<32x8192xf32>
    %138 = tpu.matmul %137, %136, %cst_170 {dimension_numbers = #tpu.dot_dimension_numbers<[1], [0], [0], [1], [0, 0, 1, 1], [], []>} : vector<32x8xbf16>, vector<8x8192xbf16>, vector<32x8192xf32> -> vector<32x8192xf32>
    %c0_171 = arith.constant 0 : index
    %c0_172 = arith.constant 0 : index
    %139 = vector.load %arg8[%c0_171, %c0_172] : memref<32x1xf32, #tpu.memory_space<vmem>>, vector<32x1xf32>
    %140 = vector.broadcast %139 : vector<32x1xf32> to vector<32x8192xf32>
    %141 = arith.addf %138, %140 : vector<32x8192xf32>
    %cst_173 = arith.constant 0.000000e+00 : f32
    %142 = vector.broadcast %cst_173 : f32 to vector<32x8192xf32>
    %143 = arith.maximumf %141, %142 : vector<32x8192xf32>
    %c0_174 = arith.constant 0 : index
    %c0_175 = arith.constant 0 : index
    %144 = vector.load %arg9[%c0_174, %c0_175] : memref<4x32xbf16, #tpu.memory_space<vmem>>, vector<4x32xbf16>
    %145 = arith.truncf %143 : vector<32x8192xf32> to vector<32x8192xbf16>
    %cst_176 = arith.constant dense<0.000000e+00> : vector<4x8192xf32>
    %146 = tpu.matmul %144, %145, %cst_176 {dimension_numbers = #tpu.dot_dimension_numbers<[1], [0], [0], [1], [0, 0, 1, 1], [], []>} : vector<4x32xbf16>, vector<32x8192xbf16>, vector<4x8192xf32> -> vector<4x8192xf32>
    %c0_177 = arith.constant 0 : index
    %c0_178 = arith.constant 0 : index
    %147 = vector.load %arg10[%c0_177, %c0_178] : memref<4x1xf32, #tpu.memory_space<vmem>>, vector<4x1xf32>
    %148 = vector.broadcast %147 : vector<4x1xf32> to vector<4x8192xf32>
    %149 = arith.addf %146, %148 : vector<4x8192xf32>
    %c0_179 = arith.constant 0 : index
    %c0_180 = arith.constant 0 : index
    %c0_181 = arith.constant 0 : index
    %150 = vector.load %arg4[%c0_179, %c0_180, %c0_181] : memref<1x1x8192xf32, #tpu.memory_space<vmem>>, vector<1x1x8192xf32>
    %151 = vector.shape_cast %150 : vector<1x1x8192xf32> to vector<1x8192xf32>
    %152 = vector.broadcast %151 : vector<1x8192xf32> to vector<4x8192xf32>
    %153 = arith.mulf %152, %149 : vector<4x8192xf32>
    %cst_182 = arith.constant 1.000000e+00 : f32
    %154 = vector.broadcast %cst_182 : f32 to vector<1x8192xf32>
    %155 = arith.subf %154, %151 : vector<1x8192xf32>
    %156 = vector.broadcast %155 : vector<1x8192xf32> to vector<4x8192xf32>
    %157 = arith.mulf %156, %132 : vector<4x8192xf32>
    %158 = arith.addf %153, %157 : vector<4x8192xf32>
    %c0_183 = arith.constant 0 : index
    %c0_184 = arith.constant 0 : index
    %159 = vector.load %arg13[%c0_183, %c0_184] : memref<4x8192xf32, #tpu.memory_space<vmem>>, vector<4x8192xf32>
    %c0_185 = arith.constant 0 : index
    %c0_186 = arith.constant 0 : index
    %c0_187 = arith.constant 0 : index
    %160 = vector.load %arg5[%c0_185, %c0_186, %c0_187] : memref<1x4x8192xf32, #tpu.memory_space<vmem>>, vector<1x4x8192xf32>
    %161 = vector.shape_cast %160 : vector<1x4x8192xf32> to vector<4x8192xf32>
    %162 = arith.subf %158, %161 : vector<4x8192xf32>
    %163 = math.absf %162 : vector<4x8192xf32>
    %164 = arith.addf %159, %163 : vector<4x8192xf32>
    %c0_188 = arith.constant 0 : index
    %c0_189 = arith.constant 0 : index
    %165 = vector.load %arg13[%c0_188, %c0_189] : memref<4x8192xf32, #tpu.memory_space<vmem>>, vector<4x8192xf32>
    tpu.vector_store %arg13[%c0_188, %c0_189], %164 {strides = array<i32>} : memref<4x8192xf32, #tpu.memory_space<vmem>>, vector<4x8192xf32>,
    %c1_i32 = arith.constant 1 : i32
    %166 = arith.cmpi eq, %arg1, %c1_i32 : i32
    %167 = arith.extui %166 : i1 to i32
    %c0_i32_190 = arith.constant 0 : i32
    %168 = arith.cmpi ne, %167, %c0_i32_190 : i32
    scf.if %168 {
      %c0_191 = arith.constant 0 : index
      %c0_192 = arith.constant 0 : index
      %169 = vector.load %arg13[%c0_191, %c0_192] : memref<4x8192xf32, #tpu.memory_space<vmem>>, vector<4x8192xf32>
      %170 = vector.shape_cast %169 : vector<4x8192xf32> to vector<1x4x8192xf32>
      %cst_193 = arith.constant dense<0.000000e+00> : vector<1xf32>
      %171 = vector.multi_reduction <add>, %170, %cst_193 [1, 2] : vector<1x4x8192xf32> to vector<1xf32>
      %172 = vector.shape_cast %171 : vector<1xf32> to vector<1x1x1xf32>
      %173 = vector.extract %172[0, 0, 0] : f32 from vector<1x1x1xf32>
      %174 = vector.broadcast %173 : f32 to vector<1x1x1xf32>
      %c0_194 = arith.constant 0 : index
      %c0_195 = arith.constant 0 : index
      %c0_196 = arith.constant 0 : index
      %175 = vector.load %arg11[%c0_194, %c0_195, %c0_196] : memref<1x1x1xf32, #tpu.memory_space<vmem>>, vector<1x1x1xf32>
      tpu.vector_store %arg11[%c0_194, %c0_195, %c0_196], %174 {strides = array<i32>} : memref<1x1x1xf32, #tpu.memory_space<vmem>>, vector<1x1x1xf32>,
    } else {
    }
    return
  }
  func.func @transform_0(%arg0: i32, %arg1: i32) -> (i32, i32, i32) {
    %c0_i32 = arith.constant 0 : i32
    %c0_i32_0 = arith.constant 0 : i32
    return %arg0, %c0_i32, %arg1 : i32, i32, i32
  }
  func.func @transform_1(%arg0: i32, %arg1: i32) -> (i32, i32, i32, i32) {
    %c0_i32 = arith.constant 0 : i32
    %c0_i32_0 = arith.constant 0 : i32
    %c0_i32_1 = arith.constant 0 : i32
    return %arg0, %c0_i32, %arg1, %c0_i32_0 : i32, i32, i32, i32
  }
  func.func @transform_2(%arg0: i32, %arg1: i32) -> (i32, i32, i32) {
    %c0_i32 = arith.constant 0 : i32
    %c0_i32_0 = arith.constant 0 : i32
    return %arg0, %c0_i32, %arg1 : i32, i32, i32
  }
  func.func @transform_3(%arg0: i32, %arg1: i32) -> (i32, i32, i32) {
    %c0_i32 = arith.constant 0 : i32
    %c0_i32_0 = arith.constant 0 : i32
    return %arg0, %c0_i32, %arg1 : i32, i32, i32
  }
  func.func @transform_4(%arg0: i32, %arg1: i32) -> (i32, i32) {
    %c0_i32 = arith.constant 0 : i32
    %c0_i32_0 = arith.constant 0 : i32
    %c0_i32_1 = arith.constant 0 : i32
    return %c0_i32, %c0_i32_0 : i32, i32
  }
  func.func @transform_5(%arg0: i32, %arg1: i32) -> (i32, i32) {
    %c0_i32 = arith.constant 0 : i32
    %c0_i32_0 = arith.constant 0 : i32
    %c0_i32_1 = arith.constant 0 : i32
    return %c0_i32, %c0_i32_0 : i32, i32
  }
  func.func @transform_6(%arg0: i32, %arg1: i32) -> (i32, i32) {
    %c0_i32 = arith.constant 0 : i32
    %c0_i32_0 = arith.constant 0 : i32
    %c0_i32_1 = arith.constant 0 : i32
    return %c0_i32, %c0_i32_0 : i32, i32
  }
  func.func @transform_7(%arg0: i32, %arg1: i32) -> (i32, i32) {
    %c0_i32 = arith.constant 0 : i32
    %c0_i32_0 = arith.constant 0 : i32
    %c0_i32_1 = arith.constant 0 : i32
    return %c0_i32, %c0_i32_0 : i32, i32
  }
  func.func @transform_8(%arg0: i32, %arg1: i32) -> (i32, i32) {
    %c0_i32 = arith.constant 0 : i32
    %c0_i32_0 = arith.constant 0 : i32
    %c0_i32_1 = arith.constant 0 : i32
    return %c0_i32, %c0_i32_0 : i32, i32
  }
  func.func @transform_9(%arg0: i32, %arg1: i32) -> (i32, i32, i32) {
    %c0_i32 = arith.constant 0 : i32
    %c0_i32_0 = arith.constant 0 : i32
    %c0_i32_1 = arith.constant 0 : i32
    return %arg0, %c0_i32, %c0_i32_0 : i32, i32, i32
  }
}

</mosaic_0001>

<bundles_post_ra>
// kernel: tpu_custom_call.1
= control target key start
LH: loop header
LB: loop body
LE: loop exit
PB: predicated region body
PF: predicated region fallthrough
CT: control target
= control target key end

     0   :  { %s13572_s0 = inlined_call_operand.hbm [shape: bf16[2,4,16384], index: 0, kind: input, shape index: {}]   ;;  %s13573_s1 = inlined_call_operand.hbm [shape: f32[2,4,64,64], index: 1, kind: input, shape index: {}]   ;;  %s13574_s2 = inlined_call_operand.hbm [shape: f32[2,1,16384], index: 2, kind: input, shape index: {}]   ;;  %s13575_s3 = inlined_call_operand.hbm [shape: f32[2,4,16384], index: 3, kind: input, shape index: {}]   ;;  %s13576_s4 = inlined_call_operand.hbm [shape: f32[64,256], index: 4, kind: input, shape index: {}]   ;;  %s13577_s5 = inlined_call_operand.vmem [shape: bf16[32,8], index: 5, kind: input, shape index: {}]   ;;  %s13578_s6 = inlined_call_operand.vmem [shape: f32[32,1], index: 6, kind: input, shape index: {}]   ;;  %s13579_s7 = inlined_call_operand.vmem [shape: bf16[4,32], index: 7, kind: input, shape index: {}]   ;;  %s13580_s8 = inlined_call_operand.vmem [shape: f32[4,1], index: 8, kind: input, shape index: {}]   ;;  %s13581_s9 = inlined_call_operand.vmem [shape: f32[2,1,1], index: 9, kind: output, shape index: {}]  }
   0x1   :  { %13659 = sst [smem:[#allocation89_spill]] %s13572_s0 }
   0x2   :  { %13660 = sst [smem:[#allocation90_spill]] %s13573_s1 }
   0x3   :  { %13661 = sst [smem:[#allocation91_spill]] %s13576_s4 }
   0x4   :  { %13662 = sst [smem:[#allocation92_spill]] %s13578_s6 }
   0x5   :  { %13663 = sst [smem:[#allocation93_spill]] %s13579_s7 }
   0x6   :  { %13664 = sst [smem:[#allocation94_spill]] %s13580_s8 }
   0x7   :  { %14 = vsyncpa [#allocation5], 0 }
   0x8   :  { %16 = vsyncpa [#allocation5 + $0x1], 0 }
   0x9   :  { %17 = vsyncpa [#allocation7], 0 }
   0xa   :  { %19 = vsyncpa [#allocation7 + $0x1], 0 }
   0xb   :  { %20 = vsyncpa [#allocation10], 0 }
   0xc   :  { %22 = vsyncpa [#allocation10 + $0x1], 0  ;;  %s10382_s30 = smov 0   ;;  %s10384_s10 = smov 0  }
   0xd   :  { %s10386_s11 = smov 0   ;;  %s10388_s12 = smov 0  }
   0xe   :  { %s10390_s13 = smov 0   ;;  %s10392_s14 = smov 0  }
   0xf   :  { %s10394_s15 = smov 0   ;;  %s10396_s16 = smov 0  }
  0x10 LB: > { %13665 = sst [smem:[#allocation19_spill]] %s10294_s11  ;;  %s13582_s17 = sadd.s32 4294967295, %s10314_s16   ;;  %s10314_s16 = sphi %s10396_s16, %s28_s16   ;;  %s10310_s15 = sphi %s10394_s15, %s13836_s15   ;;  %s10306_s14 = sphi %s10392_s14, %s13840_s14   ;;  %s10302_s13 = sphi %s10390_s13, %s13834_s13   ;;  %s10298_s12 = sphi %s10388_s12, %s13839_s12   ;;  %s10294_s11 = sphi %s10386_s11, %s13833_s11   ;;  %s10290_s10 = sphi %s10384_s10, %s13838_s10   ;;  %s10286_s30 = sphi %s10382_s30, %s13837_s30  }
  0x11   : > { %13666 = sst [smem:[#allocation20_spill]] %s10310_s15  ;;  %s37_s18 = sadd.s32 1, %s10306_s14 }
  0x12   : > { %p38_p0 = scmp.ge.s32.totalorder %s37_s18, 2  ;;  %s40_s19 = sadd.s32 1, %s10310_s15 }
  0x13   : > { %s49_s20 = sadd.s32 1, %s10294_s11  ;;  %p56_p1 = scmp.ne.s32.totalorder %s10294_s11, %s10290_s10 }
  0x14   : > { %s13842_s18 = smov (%p38_p0, %s37_s18), 0  ;;  %s13844_s19 = smov (!%p38_p0, %s40_s19), %s10310_s15 }
  0x15   : > { %13667 = sst [smem:[#allocation21_spill]] %s13842_s18  ;;  %s45_s21 = ssub.s32 %s10306_s14, %s13842_s18 }
  0x16   : > { %p57_p2 = scmp.eq.s32.totalorder %s10314_s16, 0  ;;  %p42_p3 = scmp.ge.s32.totalorder %s13844_s19, 2 }
  0x17   : > { %p62_p4 = scmp.ne.s32.totalorder %s10290_s10, %s10286_s30  ;;  %p10439_p6 = scmp.eq.s32.totalorder %s13582_s17, 0 }
  0x18   : > { %p10433_p5 = por %p57_p2, %p56_p1  ;;  %s13846_s19 = smov (%p42_p3, %s13844_s19), 0 }
  0x19   : > { %13670 = sst [smem:[#allocation22_spill]] %s13846_s19  ;;  %p10447_p7 = por %p10439_p6, %p62_p4 }
  0x1a   : > { %p9700_p8 = scmp.ge.s32.totalorder %s10314_s16, 1  ;;  %s44_s25 = ssub.s32 %s10310_s15, %s13846_s19 }
  0x1b   : > { %s13671_s24 = scalar_select %p10447_p7, 1, 0 }
  0x1c   : > { %p288_p9 = scmp.lt.s32.totalorder %s10314_s16, 5  ;;  %s46_s26 = sor.u32 %s45_s21, %s44_s25 }
  0x1d   : > { %p47_p10 = scmp.eq.s32.totalorder %s46_s26, 0  ;;  %s10316_s29 = smov [#allocation11]  }
  0x1e   : > { %p10455_p11 = pnand %p9700_p8, %p288_p9  ;;  %s300_s30 = sshll.u32 %s10316_s29, 4  ;;  %s301_s30 = int_to_ptr.vmem [resolvable:$true] %s300_s30 }
  0x1f   : > { %s10460_s28 = scalar_select %p47_p10, %s10294_s11, %s49_s20  }
  0x20   : > { %p9946_p12 = pneg %p10455_p11  ;;  %s10143_s17 = scalar_lea.vmem %s301_s30, 2048 }
  0x21   : > { %13673 = sst [smem:[#allocation23_spill]] %s10460_s28  ;;  %p10144_p1 = scmp.ne.s32.totalorder %s301_s30, %s10143_s17 }
  0x22   : > { %p9947_p13 = pnand %p9946_p12, %p10439_p6  ;;  %p10151_p4 = scmp.lt.s32.totalorder %s301_s30, %s301_s30 }
  0x23   : > { %p10152_p8 = scmp.lt.s32.totalorder %s10143_s17, %s10143_s17 }
  0x24   : > { %p10134_p0 = pneg %p9947_p13 }
  0x25   : > { %p10153_p9 = por %p10152_p8, %p10151_p4 }
  0x26   : > { %p10146_p2 = pnand %p10144_p1, %p10134_p0 }
  0x28   : > { %p10147_p3 = pneg %p10146_p2 }
  0x2a   : > { %p10154_p7 = pnand %p10153_p9, %p10147_p3 }
  0x2c   : > { %10157 = shalt.err (!%p10154_p7)
}
  0x2d   : > { %s10317_s21 = smov 256   ;;  %s10318_s20 = smov 16  }
  0x2e   : > { %s13674_s4 = sld [smem:[#allocation91_spill]]  ;;  %p9702_p10 = scmp.ge.s32.totalorder %s10314_s16, 4 }
  0x2f   : > { %s10471_s29 = sand.u32 (!%p9702_p10), 1, %s10294_s11   ;;  %s9704_s17 = sshll.u32 (!%p9702_p10), %s10306_s14, 6 }
  0x30   : > { %322 = sbr.rel (%p9702_p10) target bundleno = 109 (0x6d), region = 36  ;;  %s9703_s19 = sshll.u32 (!%p9702_p10), %s10471_s29, 7 }
  0x31   : > { %s9705_s18 = sshll.u32 (!%p9702_p10), %s10310_s15, 7  ;;  %s330_s7 = scalar_lea.vmem (!%p9702_p10), [#allocation4], %s9703_s19 }
  0x32   : > { %s10476_s28 = sadd.s32 (!%p9702_p10), %s9705_s18, %s9704_s17  ;;  %s340_s25 = sshll.u32 (!%p9702_p10), %s330_s7, 4  ;;  %s341_s25 = int_to_ptr.vmem [resolvable:$true] %s340_s25 }
  0x33   : > { %s13675_s0 = sld [smem:[#allocation89_spill]] (!%p9702_p10)  ;;  %s10170_s8 = scalar_lea.vmem (!%p9702_p10), %s341_s25, 2048 }
  0x34   : > { %9949 = dma.hbm_to_vmem [thread:$0]  (!%p9947_p13), %s13674_s4, 2048, %s301_s30, [#allocation10], %s10317_s21, %s10317_s21, %s10318_s20  }
  0x35   : > { %s9706_s30 = sshll.u32 %s10476_s28, 5  ;;  %s327_s4 = scalar_lea.sflag [#allocation5], %s10471_s29 }
  0x36   : > { %p10171_p7 = scmp.ne.s32.totalorder %s341_s25, %s10170_s8  ;;  %s10319_s11 = smov [#allocation4]  }
  0x37   : > { %s10174_s6 = sshll.u32 %s10319_s11, 4  ;;  %s10175_s6 = int_to_ptr.vmem [resolvable:$false] %s10174_s6 }
  0x38   : > { %p10172_p12 = pnand %p10171_p7, %p10433_p5  ;;  %s10176_s18 = scalar_lea.vmem %s10175_s6, 4096 }
  0x39   : > { %s338_s26 = scalar_lea.hbm %s13675_s0, %s9706_s30  ;;  %p10177_p0 = scmp.lt.s32.totalorder %s341_s25, %s10175_s6 }
  0x3a   : > { %p10173_p13 = pneg %p10172_p12  ;;  %p10178_p1 = scmp.lt.s32.totalorder %s10176_s18, %s10170_s8 }
  0x3c   : > { %p10179_p2 = por %p10178_p1, %p10177_p0 }
  0x3e   : > { %p10180_p3 = pnand %p10179_p2, %p10173_p13 }
  0x40   : > { %10183 = shalt.err (!%p10180_p3)
}
  0x41   : > { %9929 = dma.hbm_to_vmem [thread:$0]  (%p10433_p5), %s338_s26, 2048, %s341_s25, %s327_s4  }
  0x42   : > { %s347_s7 = sand.u32 1, %s10314_s16   ;;  %s9708_s17 = sshll.u32 %s10306_s14, 2 }
  0x43   : > { %s9709_s11 = sshll.u32 %s10310_s15, 5  ;;  %s351_s30 = scalar_lea.vmem [#allocation6], %s9703_s19 }
  0x44   : > { %s372_s6 = sshll.u32 %s351_s30, 4  ;;  %s357_s8 = sadd.s32 %s9709_s11, %s9708_s17  ;;  %s373_s6 = int_to_ptr.vmem [resolvable:$true] %s372_s6 }
  0x45   : > { %s10320_s21 = smov 1024   ;;  %s9710_s20 = sshll.u32 %s357_s8, 7 }
  0x46   : > { %9931 = sst [smem:[#allocation13]] (%p10433_p5), %s10320_s21  ;;  %s10321_s26 = smov 512  }
  0x47   : > { %s9930_s4 = scalar_select %p10433_p5, [#allocation0], [#allocation14] }
  0x48   : > { %9932 = sst [smem:[#allocation13 + $0x1]] (%p10433_p5), %s10321_s26  ;;  %s10322_s18 = smov 4  }
  0x49   : > { %s364_s25 = sld [smem:[%s9930_s4]]   ;;  %s10323_s19 = smov 128  }
  0x4a   : > { %9933 = sst [smem:[#allocation13 + $0x2]] (%p10433_p5), %s10322_s18  ;;  %s10324_s21 = smov 8  }
  0x4b   : > { %9934 = sst [smem:[#allocation13 + $0x3]] (%p10433_p5), %s10323_s19  ;;  %s348_s26 = scalar_lea.sflag [#allocation7], %s347_s7 }
  0x4c   : > { %s13676_s1 = sld [smem:[#allocation90_spill]]  ;;  %s10325_s0 = smov 131072  }
  0x4d   : > { %9935 = sst [smem:[#allocation13 + $0x4]] (%p10433_p5), %s10323_s19  ;;  %s9713_s18 = sshll.u32 %s10471_s29, 6 }
  0x4e   : > { %9936 = sst [smem:[#allocation13 + $0x5]] (%p10433_p5), %s10324_s21  ;;  %s9716_s15 = sshll.u32 %s10476_s28, 4 }
  0x4f   : > { %s9711_s8 = sshll.u32 %s364_s25, 26  ;;  %s407_s19 = scalar_lea.hbm %s13574_s2, %s9716_s15 }
  0x50   : > { %s9712_s4 = sadd.s32 134217728, %s9711_s8  ;;  %s399_s11 = scalar_lea.vmem [#allocation8], %s9713_s18 }
  0x51   : > { %s9717_s25 = sshll.u32 %s10471_s29, 8 }
  0x52   : > { %s359_s30 = scalar_lea.hbm %s13676_s1, %s9710_s20  ;;  %s409_s1 = sshll.u32 %s399_s11, 4  ;;  %s410_s1 = int_to_ptr.vmem [resolvable:$true] %s409_s1 }
  0x53   : > { %9937 = dma.general (%p10433_p5), %s359_s30, 2048, %s373_s6, %s348_s26, %s10325_s0, [#allocation13], %s9712_s4, 0  }
  0x54   : > { %s10196_s21 = scalar_lea.vmem %s410_s1, 1024  ;;  %s10326_s0 = smov [#allocation8]  }
  0x55   : > { %p10197_p4 = scmp.ne.s32.totalorder %s410_s1, %s10196_s21  ;;  %s10200_s6 = sshll.u32 %s10326_s0, 4  ;;  %s10201_s6 = int_to_ptr.vmem [resolvable:$false] %s10200_s6 }
  0x56   : > { %s10202_s30 = scalar_lea.vmem %s10201_s6, 2048  ;;  %p10203_p10 = scmp.lt.s32.totalorder %s410_s1, %s10201_s6 }
  0x57   : > { %p10198_p8 = pnand %p10197_p4, %p10433_p5  ;;  %p10204_p7 = scmp.lt.s32.totalorder %s10202_s30, %s10196_s21 }
  0x59   : > { %p10199_p9 = pneg %p10198_p8  ;;  %p10205_p12 = por %p10204_p7, %p10203_p10 }
  0x5b   : > { %p10206_p13 = pnand %p10205_p12, %p10199_p9 }
  0x5d   : > { %10209 = shalt.err (!%p10206_p13)
}
  0x5e   : > { %9938 = dma.hbm_to_vmem [thread:$0]  (%p10433_p5), %s407_s19, 1024, %s410_s1, %s348_s26  }
  0x5f   : > { %s9720_s15 = sshll.u32 %s10476_s28, 6  ;;  %s420_s18 = scalar_lea.vmem [#allocation9], %s9717_s25 }
  0x60   : > { %s428_s4 = scalar_lea.hbm %s13575_s3, %s9720_s15  ;;  %s430_s17 = sshll.u32 %s420_s18, 4  ;;  %s431_s17 = int_to_ptr.vmem [resolvable:$true] %s430_s17 }
  0x61   : > { %s417_s20 = scalar_lea.sflag [#allocation10], %s347_s7  ;;  %s10222_s11 = scalar_lea.vmem %s431_s17, 4096 }
  0x62   : > { %p10223_p0 = scmp.ne.s32.totalorder %s431_s17, %s10222_s11  ;;  %s10327_s21 = smov [#allocation9]  }
  0x63   : > { %s10226_s0 = sshll.u32 %s10327_s21, 4  ;;  %s10227_s0 = int_to_ptr.vmem [resolvable:$false] %s10226_s0 }
  0x64   : > { %p10224_p1 = pnand %p10223_p0, %p10433_p5  ;;  %s10228_s6 = scalar_lea.vmem %s10227_s0, 8192 }
  0x65   : > { %p10229_p3 = scmp.lt.s32.totalorder %s431_s17, %s10227_s0  ;;  %p10230_p4 = scmp.lt.s32.totalorder %s10228_s6, %s10222_s11 }
  0x66   : > { %p10225_p2 = pneg %p10224_p1 }
  0x67   : > { %p10231_p8 = por %p10230_p4, %p10229_p3 }
  0x69   : > { %p10232_p9 = pnand %p10231_p8, %p10225_p2 }
  0x6b   : > { %10235 = shalt.err (!%p10232_p9)
}
  0x6c   : > { %9939 = dma.hbm_to_vmem [thread:$0]  (%p10433_p5), %s428_s4, 4096, %s431_s17, %s417_s20  }
  0x6d PF: > { %439 = sbr.rel (%p10455_p11) target bundleno = 1448 (0x5a8), region = 56 }
  0x72   : > { %s441_s1 = sand.u32 1, %s10290_s10   ;;  %p13677_p10 = scmp.ne.s32.totalorder %s13671_s24, 0 }
  0x73   : > { %s9722_s28 = sshll.u32 %s441_s1, 7  ;;  %s442_s7 = scalar_lea.sflag [#allocation5], %s441_s1 }
  0x74   : > { %s10534_s26 = scalar_lea.vmem [#allocation4], %s9722_s28 }
  0x75   : > { %10269 = dma.done.wait (%p13677_p10), %s442_s7, 2048  }
  0x76   : > { %10271 = vsyncadd (%p13677_p10), %s442_s7, 4294965248  ;;  %s13678_s19 = sadd.s32 4294967295, %s10314_s16   ;;  %s10542_s30 = scalar_lea.vmem [#allocation6], %s9722_s28 }
  0x77   : > { %s450_s22 = sand.u32 1, %s13678_s19  }
  0x78   : > { %s451_s25 = scalar_lea.sflag [#allocation7], %s450_s22 }
  0x79   : > { %10273 = dma.done.wait (%p13677_p10), %s451_s25, 3072  }
  0x7a   : > { %10275 = vsyncadd (%p13677_p10), %s451_s25, 4294964224  ;;  %s9724_s27 = sshll.u32 %s441_s1, 6  ;;  %s9725_s15 = sshll.u32 %s441_s1, 8 }
  0x7b   : > { %s10548_s29 = scalar_lea.vmem [#allocation8], %s9724_s27  ;;  %s469_s8 = scalar_lea.sflag [#allocation10], %s450_s22 }
  0x7c   : > { %s10550_s4 = scalar_lea.vmem [#allocation9], %s9725_s15 }
  0x7d   : > { %10277 = dma.done.wait (%p13677_p10), %s469_s8, 4096  }
  0x7e   : > { %10279 = vsyncadd (%p13677_p10), %s469_s8, 4294963200 }
  0x7f   : > { %10281 = dma.done.wait (%p10439_p6), [#allocation10], 2048  }
  0x80   : > { %10283 = vsyncadd (%p10439_p6), [#allocation10], 4294965248  ;;  %p528_p5 = scmp.lt.s32.totalorder %s10302_s13, 1  ;;  %p9727_p11 = scmp.ne.s32.totalorder %s10298_s12, 0 }
  0x82   : > { %s13848_s13 = smov (!%p528_p5, %s10302_s13), 1  ;;  %535 = sbr.rel (%p9727_p11) target bundleno = 152 (0x98), region = 80 }
  0x83   : > { %s530_s20 = scalar_lea.vmem %s13581_s9, %s13848_s13 }
  0x87   : > { %v10328_v0 = vmov 0.0  }
  0x88   : > { %536 = vst [vmem:[#allocation3 + $0xb0] sm:$0xff] %v10328_v0  ;;  %537 = vst [vmem:[#allocation3] sm:$0xff] %v10328_v0 }
  0x89   : > { %538 = vst [vmem:[#allocation3 + $0xd8] sm:$0xff] %v10328_v0  ;;  %539 = vst [vmem:[#allocation3 + $0x18] sm:$0xff] %v10328_v0 }
  0x8a   : > { %540 = vst [vmem:[#allocation3 + $0x50] sm:$0xff] %v10328_v0  ;;  %541 = vst [vmem:[#allocation3 + $0x68] sm:$0xff] %v10328_v0 }
  0x8b   : > { %542 = vst [vmem:[#allocation3 + $0x30] sm:$0xff] %v10328_v0  ;;  %543 = vst [vmem:[#allocation3 + $0x48] sm:$0xff] %v10328_v0 }
  0x8c   : > { %544 = vst [vmem:[#allocation3 + $0x80] sm:$0xff] %v10328_v0  ;;  %545 = vst [vmem:[#allocation3 + $0x88] sm:$0xff] %v10328_v0 }
  0x8d   : > { %546 = vst [vmem:[#allocation3 + $0xe8] sm:$0xff] %v10328_v0  ;;  %547 = vst [vmem:[#allocation3 + $0xb8] sm:$0xff] %v10328_v0 }
  0x8e   : > { %548 = vst [vmem:[#allocation3 + $0x60] sm:$0xff] %v10328_v0  ;;  %549 = vst [vmem:[#allocation3 + $0xf0] sm:$0xff] %v10328_v0 }
  0x8f   : > { %550 = vst [vmem:[#allocation3 + $0x8] sm:$0xff] %v10328_v0  ;;  %551 = vst [vmem:[#allocation3 + $0x78] sm:$0xff] %v10328_v0 }
  0x90   : > { %552 = vst [vmem:[#allocation3 + $0x38] sm:$0xff] %v10328_v0  ;;  %553 = vst [vmem:[#allocation3 + $0x58] sm:$0xff] %v10328_v0 }
  0x91   : > { %554 = vst [vmem:[#allocation3 + $0x40] sm:$0xff] %v10328_v0  ;;  %555 = vst [vmem:[#allocation3 + $0xc8] sm:$0xff] %v10328_v0 }
  0x92   : > { %556 = vst [vmem:[#allocation3 + $0xe0] sm:$0xff] %v10328_v0  ;;  %557 = vst [vmem:[#allocation3 + $0x90] sm:$0xff] %v10328_v0 }
  0x93   : > { %558 = vst [vmem:[#allocation3 + $0x70] sm:$0xff] %v10328_v0  ;;  %559 = vst [vmem:[#allocation3 + $0xc0] sm:$0xff] %v10328_v0 }
  0x94   : > { %560 = vst [vmem:[#allocation3 + $0xa8] sm:$0xff] %v10328_v0  ;;  %561 = vst [vmem:[#allocation3 + $0xd0] sm:$0xff] %v10328_v0 }
  0x95   : > { %562 = vst [vmem:[#allocation3 + $0x10] sm:$0xff] %v10328_v0  ;;  %563 = vst [vmem:[#allocation3 + $0x28] sm:$0xff] %v10328_v0 }
  0x96   : > { %564 = vst [vmem:[#allocation3 + $0xa0] sm:$0xff] %v10328_v0  ;;  %565 = vst [vmem:[#allocation3 + $0xf8] sm:$0xff] %v10328_v0 }
  0x97   : > { %566 = vst [vmem:[#allocation3 + $0x20] sm:$0xff] %v10328_v0  ;;  %567 = vst [vmem:[#allocation3 + $0x98] sm:$0xff] %v10328_v0 }
  0x98 PF: > { %v10569_v1 = vld [vmem:[#allocation11 + $0x78] sm:$0xff]  ;;  %v10571_v2 = vld [vmem:[#allocation11 + $0x70] sm:$0xff]  ;;  %v10573_v3 = vld [vmem:[#allocation11 + $0x68] sm:$0xff]  ;;  %vm593_vm0 = vcmask 1041409   ;;  %vm596_vm1 = vcmask 1042434   ;;  %vm599_vm2 = vcmask 1043459  }
  0x99   : > { %620 = vmatprep.subr.mxu0 %v10569_v1  ;;  %712 = vmatprep.subr.mxu1 %v10569_v1  ;;  %v10577_v4 = vld [vmem:[#allocation11 + $0x60] sm:$0xff]  ;;  %v10581_v5 = vld [vmem:[#allocation11 + $0x58] sm:$0xff]  ;;  %v10585_v6 = vld [vmem:[#allocation11 + $0x50] sm:$0xff]  ;;  %vm601_vm3 = vcmask 523264   ;;  %v10329_v37 = vmov 0.0   ;;  %vm4156_vm4 = vcmask 1041408  }
  0x9a   : > { %621 = vmatpush1.msra.mxu0 %v10571_v2  ;;  %713 = vmatpush1.msra.mxu1 %v10571_v2  ;;  %v10589_v7 = vld [vmem:[#allocation11 + $0x48] sm:$0xff]  ;;  %v10591_v8 = vld [vmem:[#allocation11 + $0x40] sm:$0xff]  ;;  %v10595_v9 = vld [vmem:[#allocation11 + $0x38] sm:$0xff]  ;;  %vm4394_vm5 = vcmask 1043456   ;;  %vm4387_vm6 = vcmask 64512   ;;  %s13690_s0 = sld [smem:[#allocation92_spill]] }
  0x9b   : > { %622 = vmatprep.subr.mxu0 %v10573_v3  ;;  %714 = vmatprep.subr.mxu1 %v10573_v3  ;;  %v10597_v10 = vld [vmem:[#allocation11 + $0x30] sm:$0xff]  ;;  %v585_v11 = vld [vmem:[%s10542_s30 + $0x20] sm:$0x1]  ;;  %v10602_v12 = vld [vmem:[#allocation11 + $0x28] sm:$0xff]  ;;  %s13707_s8 = sld [smem:[#allocation94_spill]]  ;;  %vm6610_vm7 = vcmask 261120  }
  0x9c   : > { %623 = vmatpush1.msra.mxu0 %v10577_v4  ;;  %715 = vmatpush1.msra.mxu1 %v10577_v4  ;;  %v584_v13 = vld [vmem:[%s10542_s30] sm:$0x1]  ;;  %v592_v15 = vrot.slane %v585_v11, 7  ;;  %v680_v17 = vld [vmem:[%s10542_s30 + $0x1] sm:$0x1]  ;;  %v10622_v26 = vld [vmem:[#allocation11 + $0x18] sm:$0xff] }
  0x9d   : > { %624 = vmatprep.subr.mxu0 %v10581_v5  ;;  %716 = vmatprep.subr.mxu1 %v10581_v5  ;;  %v586_v14 = vld [vmem:[%s10542_s30 + $0x40] sm:$0x1]  ;;  %v681_v18 = vld [vmem:[%s10542_s30 + $0x21] sm:$0x1]  ;;  %v10627_v28 = vld [vmem:[#allocation11 + $0x10] sm:$0xff]  ;;  %s13745_s21 = sld [smem:[#allocation93_spill]] }
  0x9e   : > { %625 = vmatpush1.msra.mxu0 %v10585_v6  ;;  %717 = vmatpush1.msra.mxu1 %v10585_v6  ;;  %v587_v16 = vld [vmem:[%s10542_s30 + $0x60] sm:$0x1]  ;;  %v595_v19 = vrot.slane %v586_v14, 6  ;;  %v682_v20 = vld [vmem:[%s10542_s30 + $0x41] sm:$0x1]  ;;  %v688_v22 = vrot.slane %v681_v18, 7  ;;  %v594_v24 = vsel %vm593_vm0, %v592_v15, %v584_v13 }
  0x9f   : > { %626 = vmatprep.subr.mxu0 %v10589_v7  ;;  %718 = vmatprep.subr.mxu1 %v10589_v7  ;;  %v683_v21 = vld [vmem:[%s10542_s30 + $0x61] sm:$0x1]  ;;  %v690_v25 = vrot.slane %v682_v20, 6  ;;  %v598_v29 = vrot.slane %v587_v16, 5  ;;  %v10631_v31 = vld [vmem:[#allocation11 + $0x8] sm:$0xff]  ;;  %p9890_p6 = scmp.ne.s32.totalorder %s10298_s12, 1 }
  0xa0   : > { %627 = vmatpush1.msra.mxu0 %v10591_v8  ;;  %719 = vmatpush1.msra.mxu1 %v10591_v8  ;;  %v10617_v23 = vld [vmem:[#allocation11 + $0x20] sm:$0xff]  ;;  %v689_v27 = vsel %vm593_vm0, %v688_v22, %v680_v17  ;;  %v692_v30 = vrot.slane %v683_v21, 5  ;;  %v597_v32 = vsel %vm596_vm1, %v595_v19, %v594_v24 }
  0xa1   : > { %628 = vmatprep.subr.mxu0 %v10595_v9  ;;  %720 = vmatprep.subr.mxu1 %v10595_v9  ;;  %v691_v33 = vsel %vm596_vm1, %v690_v25, %v689_v27  ;;  %v10637_v34 = vld [vmem:[#allocation11] sm:$0xff]  ;;  %v600_v35 = vsel %vm599_vm2, %v598_v29, %v597_v32 }
  0xa2   : > { %629 = vmatpush1.msra.mxu0 %v10597_v10  ;;  %721 = vmatpush1.msra.mxu1 %v10597_v10  ;;  %v693_v36 = vsel %vm599_vm2, %v692_v30, %v691_v33  ;;  %v773_v38 = vld [vmem:[%s10542_s30 + $0x22] sm:$0x1]  ;;  %v865_v39 = vld [vmem:[%s10542_s30 + $0x23] sm:$0x1]  ;;  %v957_v58 = vld [vmem:[%s10542_s30 + $0x24] sm:$0x1] }
  0xa3   : > { %630 = vmatprep.subr.mxu0 %v10602_v12  ;;  %722 = vmatprep.subr.mxu1 %v10602_v12  ;;  %v774_v40 = vld [vmem:[%s10542_s30 + $0x42] sm:$0x1]  ;;  %v780_v41 = vrot.slane %v773_v38, 7  ;;  %v866_v42 = vld [vmem:[%s10542_s30 + $0x43] sm:$0x1]  ;;  %v872_v43 = vrot.slane %v865_v39, 7 }
  0xa4   : > { %631 = vmatpush1.msra.mxu0 %v10617_v23  ;;  %723 = vmatpush1.msra.mxu1 %v10617_v23  ;;  %v772_v44 = vld [vmem:[%s10542_s30 + $0x2] sm:$0x1]  ;;  %v864_v45 = vld [vmem:[%s10542_s30 + $0x3] sm:$0x1]  ;;  %v782_v47 = vrot.slane %v774_v40, 6  ;;  %v874_v49 = vrot.slane %v866_v42, 6 }
  0xa5   : > { %632 = vmatprep.subr.mxu0 %v10622_v26  ;;  %724 = vmatprep.subr.mxu1 %v10622_v26  ;;  %v775_v46 = vld [vmem:[%s10542_s30 + $0x62] sm:$0x1]  ;;  %v867_v48 = vld [vmem:[%s10542_s30 + $0x63] sm:$0x1]  ;;  %v781_v50 = vsel %vm593_vm0, %v780_v41, %v772_v44  ;;  %v873_v51 = vsel %vm593_vm0, %v872_v43, %v864_v45  ;;  %v1049_v59 = vld [vmem:[%s10542_s30 + $0x25] sm:$0x1] }
  0xa6   : > { %633 = vmatpush1.msra.mxu0 %v10627_v28  ;;  %725 = vmatpush1.msra.mxu1 %v10627_v28  ;;  %v784_v52 = vrot.slane %v775_v46, 5  ;;  %v876_v53 = vrot.slane %v867_v48, 5  ;;  %v783_v54 = vsel %vm596_vm1, %v782_v47, %v781_v50  ;;  %v875_v55 = vsel %vm596_vm1, %v874_v49, %v873_v51  ;;  %v956_v60 = vld [vmem:[%s10542_s30 + $0x4] sm:$0x1]  ;;  %v1050_v62 = vld [vmem:[%s10542_s30 + $0x45] sm:$0x1] }
  0xa7   : > { %634 = vmatprep.subr.mxu0 %v10631_v31  ;;  %726 = vmatprep.subr.mxu1 %v10631_v31  ;;  %v958_v61 = vld [vmem:[%s10542_s30 + $0x44] sm:$0x1]  ;;  %v964_v63 = vrot.slane %v957_v58, 7  ;;  %v1056_v0 = vrot.slane %v1049_v59, 7  ;;  %v1048_v11 = vld [vmem:[%s10542_s30 + $0x5] sm:$0x1] }
  0xa8   : > { %635 = vmatpush1.msra.mxu0 %v10637_v34  ;;  %668 = vmatprep.mubr.f32.mxu0 %v10329_v37  ;;  %v785_v56 = vsel %vm599_vm2, %v784_v52, %v783_v54  ;;  %v877_v57 = vsel %vm599_vm2, %v876_v53, %v875_v55  ;;  %v959_v13 = vld [vmem:[%s10542_s30 + $0x64] sm:$0x1]  ;;  %v966_v14 = vrot.slane %v958_v61, 6  ;;  %v1051_v15 = vld [vmem:[%s10542_s30 + $0x65] sm:$0x1]  ;;  %v1058_v16 = vrot.slane %v1050_v62, 6 }
  0xa9   : > { %727 = vmatpush1.msra.mxu1 %v10637_v34  ;;  %760 = vmatprep.mubr.f32.mxu1 %v10329_v37  ;;  %v965_v17 = vsel %vm593_vm0, %v964_v63, %v956_v60  ;;  %v1057_v18 = vsel %vm593_vm0, %v1056_v0, %v1048_v11  ;;  %v968_v19 = vrot.slane %v959_v13, 5  ;;  %v1060_v20 = vrot.slane %v1051_v15, 5  ;;  %v1141_v27 = vld [vmem:[%s10542_s30 + $0x26] sm:$0x1]  ;;  %v1233_v29 = vld [vmem:[%s10542_s30 + $0x27] sm:$0x1] }
  0xaa   : > { %9728 = vmatmul.mubr.msk.f32.vlgmr.msra.gmra.mxu0 %vm601_vm3, %v600_v35  ;;  %9729 = vmatmul.mubr.msk.f32.vlgmr.msra.gmra.mxu1 %vm601_vm3, %v693_v36  ;;  %v967_v21 = vsel %vm596_vm1, %v966_v14, %v965_v17  ;;  %v1059_v22 = vsel %vm596_vm1, %v1058_v16, %v1057_v18  ;;  %v1142_v30 = vld [vmem:[%s10542_s30 + $0x46] sm:$0x1]  ;;  %v1148_v32 = vrot.slane %v1141_v27, 7  ;;  %v1234_v33 = vld [vmem:[%s10542_s30 + $0x47] sm:$0x1]  ;;  %v1240_v35 = vrot.slane %v1233_v29, 7 }
  0xab   : > { %804 = vmatprep.subr.mxu0 %v10569_v1  ;;  %896 = vmatprep.subr.mxu1 %v10569_v1  ;;  %v969_v24 = vsel %vm599_vm2, %v968_v19, %v967_v21  ;;  %v1061_v25 = vsel %vm599_vm2, %v1060_v20, %v1059_v22  ;;  %v1140_v36 = vld [vmem:[%s10542_s30 + $0x6] sm:$0x1]  ;;  %v1232_v38 = vld [vmem:[%s10542_s30 + $0x7] sm:$0x1]  ;;  %v1150_v40 = vrot.slane %v1142_v30, 6  ;;  %v1242_v42 = vrot.slane %v1234_v33, 6 }
  0xac   : > { %805 = vmatpush1.msra.mxu0 %v10571_v2  ;;  %897 = vmatpush1.msra.mxu1 %v10571_v2  ;;  %v1143_v39 = vld [vmem:[%s10542_s30 + $0x66] sm:$0x1]  ;;  %v1235_v41 = vld [vmem:[%s10542_s30 + $0x67] sm:$0x1]  ;;  %v1149_v43 = vsel %vm593_vm0, %v1148_v32, %v1140_v36  ;;  %v1241_v44 = vsel %vm593_vm0, %v1240_v35, %v1232_v38  ;;  %v1325_v51 = vld [vmem:[%s10542_s30 + $0x28] sm:$0x1] }
  0xad   : > { %806 = vmatprep.subr.mxu0 %v10573_v3  ;;  %898 = vmatprep.subr.mxu1 %v10573_v3  ;;  %v1152_v45 = vrot.slane %v1143_v39, 5  ;;  %v1244_v46 = vrot.slane %v1235_v41, 5  ;;  %v1151_v47 = vsel %vm596_vm1, %v1150_v40, %v1149_v43  ;;  %v1243_v48 = vsel %vm596_vm1, %v1242_v42, %v1241_v44  ;;  %v1417_v52 = vld [vmem:[%s10542_s30 + $0x29] sm:$0x1]  ;;  %v1326_v53 = vld [vmem:[%s10542_s30 + $0x48] sm:$0x1] }
  0xae   : > { %807 = vmatpush1.msra.mxu0 %v10577_v4  ;;  %899 = vmatpush1.msra.mxu1 %v10577_v4  ;;  %v1332_v54 = vrot.slane %v1325_v51, 7  ;;  %v1418_v55 = vld [vmem:[%s10542_s30 + $0x49] sm:$0x1]  ;;  %v1327_v59 = vld [vmem:[%s10542_s30 + $0x68] sm:$0x1]  ;;  %v1334_v60 = vrot.slane %v1326_v53, 6 }
  0xaf   : > { %808 = vmatprep.subr.mxu0 %v10581_v5  ;;  %900 = vmatprep.subr.mxu1 %v10581_v5  ;;  %v1153_v49 = vsel %vm599_vm2, %v1152_v45, %v1151_v47  ;;  %v1245_v50 = vsel %vm599_vm2, %v1244_v46, %v1243_v48  ;;  %v1416_v58 = vld [vmem:[%s10542_s30 + $0x9] sm:$0x1]  ;;  %v1426_v62 = vrot.slane %v1418_v55, 6  ;;  %v1336_v11 = vrot.slane %v1327_v59, 5  ;;  %v1509_v18 = vld [vmem:[%s10542_s30 + $0x2a] sm:$0x1] }
  0xb0   : > { %809 = vmatpush1.msra.mxu0 %v10585_v6  ;;  %901 = vmatpush1.msra.mxu1 %v10585_v6  ;;  %v1419_v61 = vld [vmem:[%s10542_s30 + $0x69] sm:$0x1]  ;;  %v1601_v19 = vld [vmem:[%s10542_s30 + $0x2b] sm:$0x1]  ;;  %v1510_v20 = vld [vmem:[%s10542_s30 + $0x4a] sm:$0x1] }
  0xb1   : > { %810 = vmatprep.subr.mxu0 %v10589_v7  ;;  %902 = vmatprep.subr.mxu1 %v10589_v7  ;;  %v1428_v13 = vrot.slane %v1419_v61, 5  ;;  %v1516_v21 = vrot.slane %v1509_v18, 7  ;;  %v1602_v22 = vld [vmem:[%s10542_s30 + $0x4b] sm:$0x1]  ;;  %v1511_v29 = vld [vmem:[%s10542_s30 + $0x6a] sm:$0x1] }
  0xb2   : > { %811 = vmatpush1.msra.mxu0 %v10591_v8  ;;  %903 = vmatpush1.msra.mxu1 %v10591_v8  ;;  %v1600_v27 = vld [vmem:[%s10542_s30 + $0xb] sm:$0x1]  ;;  %v1518_v30 = vrot.slane %v1510_v20, 6  ;;  %v1610_v33 = vrot.slane %v1602_v22, 6  ;;  %v1520_v38 = vrot.slane %v1511_v29, 5 }
  0xb3   : > { %812 = vmatprep.subr.mxu0 %v10595_v9  ;;  %904 = vmatprep.subr.mxu1 %v10595_v9  ;;  %v1603_v32 = vld [vmem:[%s10542_s30 + $0x6b] sm:$0x1]  ;;  %v1693_v44 = vld [vmem:[%s10542_s30 + $0x2c] sm:$0x1]  ;;  %v1785_v45 = vld [vmem:[%s10542_s30 + $0x2d] sm:$0x1] }
  0xb4   : > { %813 = vmatpush1.msra.mxu0 %v10597_v10  ;;  %905 = vmatpush1.msra.mxu1 %v10597_v10  ;;  %v1612_v39 = vrot.slane %v1603_v32, 5  ;;  %v1694_v46 = vld [vmem:[%s10542_s30 + $0x4c] sm:$0x1]  ;;  %v1700_v47 = vrot.slane %v1693_v44, 7  ;;  %v1786_v48 = vld [vmem:[%s10542_s30 + $0x4d] sm:$0x1] }
  0xb5   : > { %814 = vmatprep.subr.mxu0 %v10602_v12  ;;  %906 = vmatprep.subr.mxu1 %v10602_v12  ;;  %v1784_v51 = vld [vmem:[%s10542_s30 + $0xd] sm:$0x1]  ;;  %v1702_v53 = vrot.slane %v1694_v46, 6  ;;  %v1794_v55 = vrot.slane %v1786_v48, 6  ;;  %v1968_v18 = vld [vmem:[%s10542_s30 + $0xf] sm:$0x1] }
  0xb6   : > { %815 = vmatpush1.msra.mxu0 %v10617_v23  ;;  %907 = vmatpush1.msra.mxu1 %v10617_v23  ;;  %v11065_v46 = vld [vmem:[#allocation11 + $0x60] sm:$0xff]  ;;  %v2246_v48 = vld [vmem:[%s10542_s30 + $0x52] sm:$0x1] }
  0xb7   : > { %816 = vmatprep.subr.mxu0 %v10622_v26  ;;  %908 = vmatprep.subr.mxu1 %v10622_v26 }
  0xb8   : > { %817 = vmatpush1.msra.mxu0 %v10627_v28  ;;  %909 = vmatpush1.msra.mxu1 %v10627_v28 }
  0xb9   : > { %818 = vmatprep.subr.mxu0 %v10631_v31  ;;  %910 = vmatprep.subr.mxu1 %v10631_v31 }
  0xba   : > { %819 = vmatpush1.msra.mxu0 %v10637_v34  ;;  %852 = vmatprep.mubr.f32.mxu0 %v10329_v37 }
  0xbb   : > { %911 = vmatpush1.msra.mxu1 %v10637_v34  ;;  %944 = vmatprep.mubr.f32.mxu1 %v10329_v37 }
  0xbc   : > { %9730 = vmatmul.mubr.msk.f32.vlgmr.msra.gmra.mxu0 %vm601_vm3, %v785_v56  ;;  %9731 = vmatmul.mubr.msk.f32.vlgmr.msra.gmra.mxu1 %vm601_vm3, %v877_v57  ;;  %v1424_v56 = vrot.slane %v1417_v52, 7  ;;  %v1324_v57 = vld [vmem:[%s10542_s30 + $0x8] sm:$0x1]  ;;  %v1695_v52 = vld [vmem:[%s10542_s30 + $0x6c] sm:$0x1] }
  0xbd   : > { %988 = vmatprep.subr.mxu0 %v10569_v1  ;;  %1080 = vmatprep.subr.mxu1 %v10569_v1  ;;  %v1333_v63 = vsel %vm593_vm0, %v1332_v54, %v1324_v57  ;;  %v1787_v54 = vld [vmem:[%s10542_s30 + $0x6d] sm:$0x1] }
  0xbe   : > { %989 = vmatpush1.msra.mxu0 %v10571_v2  ;;  %1081 = vmatpush1.msra.mxu1 %v10571_v2  ;;  %v1425_v0 = vsel %vm593_vm0, %v1424_v56, %v1416_v58  ;;  %v1335_v14 = vsel %vm596_vm1, %v1334_v60, %v1333_v63  ;;  %v1704_v58 = vrot.slane %v1695_v52, 5  ;;  %v1796_v59 = vrot.slane %v1787_v54, 5  ;;  %v11075_v52 = vld [vmem:[#allocation11 + $0x50] sm:$0xff] }
  0xbf   : > { %990 = vmatprep.subr.mxu0 %v10573_v3  ;;  %1082 = vmatprep.subr.mxu1 %v10573_v3  ;;  %v1427_v15 = vsel %vm596_vm1, %v1426_v62, %v1425_v0  ;;  %v1337_v16 = vsel %vm599_vm2, %v1336_v11, %v1335_v14  ;;  %v1877_v0 = vld [vmem:[%s10542_s30 + $0x2e] sm:$0x1]  ;;  %v1969_v11 = vld [vmem:[%s10542_s30 + $0x2f] sm:$0x1]  ;;  %v2336_v54 = vld [vmem:[%s10542_s30 + $0x13] sm:$0x1] }
  0xc0   : > { %991 = vmatpush1.msra.mxu0 %v10577_v4  ;;  %1083 = vmatpush1.msra.mxu1 %v10577_v4  ;;  %v1429_v17 = vsel %vm599_vm2, %v1428_v13, %v1427_v15  ;;  %v1878_v13 = vld [vmem:[%s10542_s30 + $0x4e] sm:$0x1]  ;;  %v1884_v14 = vrot.slane %v1877_v0, 7  ;;  %v1970_v15 = vld [vmem:[%s10542_s30 + $0x4f] sm:$0x1]  ;;  %v11097_v0 = vld [vmem:[#allocation11 + $0x30] sm:$0xff] }
  0xc1   : > { %992 = vmatprep.subr.mxu0 %v10581_v5  ;;  %1084 = vmatprep.subr.mxu1 %v10581_v5  ;;  %v1886_v20 = vrot.slane %v1878_v13, 6  ;;  %v1978_v22 = vrot.slane %v1970_v15, 6  ;;  %v11105_v15 = vld [vmem:[#allocation11 + $0x20] sm:$0xff] }
  0xc2   : > { %993 = vmatpush1.msra.mxu0 %v10585_v6  ;;  %1085 = vmatpush1.msra.mxu1 %v10585_v6 }
  0xc3   : > { %994 = vmatprep.subr.mxu0 %v10589_v7  ;;  %1086 = vmatprep.subr.mxu1 %v10589_v7 }
  0xc4   : > { %995 = vmatpush1.msra.mxu0 %v10591_v8  ;;  %1087 = vmatpush1.msra.mxu1 %v10591_v8 }
  0xc5   : > { %996 = vmatprep.subr.mxu0 %v10595_v9  ;;  %1088 = vmatprep.subr.mxu1 %v10595_v9 }
  0xc6   : > { %997 = vmatpush1.msra.mxu0 %v10597_v10  ;;  %1089 = vmatpush1.msra.mxu1 %v10597_v10 }
  0xc7   : > { %998 = vmatprep.subr.mxu0 %v10602_v12  ;;  %1090 = vmatprep.subr.mxu1 %v10602_v12 }
  0xc8   : > { %999 = vmatpush1.msra.mxu0 %v10617_v23  ;;  %1091 = vmatpush1.msra.mxu1 %v10617_v23 }
  0xc9   : > { %1000 = vmatprep.subr.mxu0 %v10622_v26  ;;  %1092 = vmatprep.subr.mxu1 %v10622_v26 }
  0xca   : > { %1001 = vmatpush1.msra.mxu0 %v10627_v28  ;;  %1093 = vmatpush1.msra.mxu1 %v10627_v28 }
  0xcb   : > { %1002 = vmatprep.subr.mxu0 %v10631_v31  ;;  %1094 = vmatprep.subr.mxu1 %v10631_v31 }
  0xcc   : > { %1003 = vmatpush1.msra.mxu0 %v10637_v34  ;;  %1036 = vmatprep.mubr.f32.mxu0 %v10329_v37 }
  0xcd   : > { %1095 = vmatpush1.msra.mxu1 %v10637_v34  ;;  %1128 = vmatprep.mubr.f32.mxu1 %v10329_v37 }
  0xce   : > { %9732 = vmatmul.mubr.msk.f32.vlgmr.msra.gmra.mxu0 %vm601_vm3, %v969_v24  ;;  %9733 = vmatmul.mubr.msk.f32.vlgmr.msra.gmra.mxu1 %vm601_vm3, %v1061_v25  ;;  %v1608_v24 = vrot.slane %v1601_v19, 7  ;;  %v1508_v25 = vld [vmem:[%s10542_s30 + $0xa] sm:$0x1]  ;;  %v1879_v19 = vld [vmem:[%s10542_s30 + $0x6e] sm:$0x1] }
  0xcf   : > { %1172 = vmatprep.subr.mxu0 %v10569_v1  ;;  %1264 = vmatprep.subr.mxu1 %v10569_v1  ;;  %v1517_v35 = vsel %vm593_vm0, %v1516_v21, %v1508_v25  ;;  %v1971_v21 = vld [vmem:[%s10542_s30 + $0x6f] sm:$0x1] }
  0xd0   : > { %1173 = vmatpush1.msra.mxu0 %v10571_v2  ;;  %1265 = vmatpush1.msra.mxu1 %v10571_v2  ;;  %v1609_v36 = vsel %vm593_vm0, %v1608_v24, %v1600_v27  ;;  %v1519_v40 = vsel %vm596_vm1, %v1518_v30, %v1517_v35  ;;  %v1888_v27 = vrot.slane %v1879_v19, 5  ;;  %v1980_v29 = vrot.slane %v1971_v21, 5  ;;  %v11115_v19 = vld [vmem:[#allocation11 + $0x10] sm:$0xff] }
  0xd1   : > { %1174 = vmatprep.subr.mxu0 %v10573_v3  ;;  %1266 = vmatprep.subr.mxu1 %v10573_v3  ;;  %v1611_v41 = vsel %vm596_vm1, %v1610_v33, %v1609_v36  ;;  %v1521_v42 = vsel %vm599_vm2, %v1520_v38, %v1519_v40  ;;  %v2061_v36 = vld [vmem:[%s10542_s30 + $0x30] sm:$0x1]  ;;  %v2153_v38 = vld [vmem:[%s10542_s30 + $0x31] sm:$0x1] }
  0xd2   : > { %1175 = vmatpush1.msra.mxu0 %v10577_v4  ;;  %1267 = vmatpush1.msra.mxu1 %v10577_v4  ;;  %v1613_v43 = vsel %vm599_vm2, %v1612_v39, %v1611_v41  ;;  %v2068_v39 = vrot.slane %v2061_v36, 7  ;;  %v2160_v40 = vrot.slane %v2153_v38, 7  ;;  %v2060_v41 = vld [vmem:[%s10542_s30 + $0x10] sm:$0x1]  ;;  %v2520_v36 = vld [vmem:[%s10542_s30 + $0x15] sm:$0x1] }
  0xd3   : > { %1176 = vmatprep.subr.mxu0 %v10581_v5  ;;  %1268 = vmatprep.subr.mxu1 %v10581_v5  ;;  %v2431_v38 = vld [vmem:[%s10542_s30 + $0x74] sm:$0x1] }
  0xd4   : > { %1177 = vmatpush1.msra.mxu0 %v10585_v6  ;;  %1269 = vmatpush1.msra.mxu1 %v10585_v6 }
  0xd5   : > { %1178 = vmatprep.subr.mxu0 %v10589_v7  ;;  %1270 = vmatprep.subr.mxu1 %v10589_v7 }
  0xd6   : > { %1179 = vmatpush1.msra.mxu0 %v10591_v8  ;;  %1271 = vmatpush1.msra.mxu1 %v10591_v8 }
  0xd7   : > { %1180 = vmatprep.subr.mxu0 %v10595_v9  ;;  %1272 = vmatprep.subr.mxu1 %v10595_v9 }
  0xd8   : > { %1181 = vmatpush1.msra.mxu0 %v10597_v10  ;;  %1273 = vmatpush1.msra.mxu1 %v10597_v10 }
  0xd9   : > { %1182 = vmatprep.subr.mxu0 %v10602_v12  ;;  %1274 = vmatprep.subr.mxu1 %v10602_v12 }
  0xda   : > { %1183 = vmatpush1.msra.mxu0 %v10617_v23  ;;  %1275 = vmatpush1.msra.mxu1 %v10617_v23 }
  0xdb   : > { %1184 = vmatprep.subr.mxu0 %v10622_v26  ;;  %1276 = vmatprep.subr.mxu1 %v10622_v26 }
  0xdc   : > { %1185 = vmatpush1.msra.mxu0 %v10627_v28  ;;  %1277 = vmatpush1.msra.mxu1 %v10627_v28 }
  0xdd   : > { %1186 = vmatprep.subr.mxu0 %v10631_v31  ;;  %1278 = vmatprep.subr.mxu1 %v10631_v31 }
  0xde   : > { %1187 = vmatpush1.msra.mxu0 %v10637_v34  ;;  %1220 = vmatprep.mubr.f32.mxu0 %v10329_v37 }
  0xdf   : > { %1279 = vmatpush1.msra.mxu1 %v10637_v34  ;;  %1312 = vmatprep.mubr.f32.mxu1 %v10329_v37 }
  0xe0   : > { %9734 = vmatmul.mubr.msk.f32.vlgmr.msra.gmra.mxu0 %vm601_vm3, %v1153_v49  ;;  %9735 = vmatmul.mubr.msk.f32.vlgmr.msra.gmra.mxu1 %vm601_vm3, %v1245_v50  ;;  %v1792_v49 = vrot.slane %v1785_v45, 7  ;;  %v1692_v50 = vld [vmem:[%s10542_s30 + $0xc] sm:$0x1] }
  0xe1   : > { %1356 = vmatprep.subr.mxu0 %v10569_v1  ;;  %1448 = vmatprep.subr.mxu1 %v10569_v1  ;;  %v1701_v56 = vsel %vm593_vm0, %v1700_v47, %v1692_v50  ;;  %v11069_v47 = vld [vmem:[#allocation11 + $0x58] sm:$0xff]  ;;  %v2338_v50 = vld [vmem:[%s10542_s30 + $0x53] sm:$0x1] }
  0xe2   : > { %1357 = vmatpush1.msra.mxu0 %v10571_v2  ;;  %1449 = vmatpush1.msra.mxu1 %v10571_v2  ;;  %v1793_v57 = vsel %vm593_vm0, %v1792_v49, %v1784_v51  ;;  %v1703_v60 = vsel %vm596_vm1, %v1702_v53, %v1701_v56  ;;  %v2244_v53 = vld [vmem:[%s10542_s30 + $0x12] sm:$0x1]  ;;  %v11085_v56 = vld [vmem:[#allocation11 + $0x40] sm:$0xff] }
  0xe3   : > { %1358 = vmatprep.subr.mxu0 %v10573_v3  ;;  %1450 = vmatprep.subr.mxu1 %v10573_v3  ;;  %v1795_v61 = vsel %vm596_vm1, %v1794_v55, %v1793_v57  ;;  %v1705_v62 = vsel %vm599_vm2, %v1704_v58, %v1703_v60  ;;  %v11081_v55 = vld [vmem:[#allocation11 + $0x48] sm:$0xff]  ;;  %v2247_v57 = vld [vmem:[%s10542_s30 + $0x72] sm:$0x1]  ;;  %v2254_v58 = vrot.slane %v2246_v48, 6  ;;  %v2346_v60 = vrot.slane %v2338_v50, 6 }
  0xe4   : > { %1359 = vmatpush1.msra.mxu0 %v10577_v4  ;;  %1451 = vmatpush1.msra.mxu1 %v10577_v4  ;;  %v1797_v63 = vsel %vm599_vm2, %v1796_v59, %v1795_v61  ;;  %v2339_v59 = vld [vmem:[%s10542_s30 + $0x73] sm:$0x1]  ;;  %v11091_v61 = vld [vmem:[#allocation11 + $0x38] sm:$0xff]  ;;  %v2256_v13 = vrot.slane %v2247_v57, 5 }
  0xe5   : > { %1360 = vmatprep.subr.mxu0 %v10581_v5  ;;  %1452 = vmatprep.subr.mxu1 %v10581_v5 }
  0xe6   : > { %1361 = vmatpush1.msra.mxu0 %v10585_v6  ;;  %1453 = vmatpush1.msra.mxu1 %v10585_v6 }
  0xe7   : > { %1362 = vmatprep.subr.mxu0 %v10589_v7  ;;  %1454 = vmatprep.subr.mxu1 %v10589_v7 }
  0xe8   : > { %1363 = vmatpush1.msra.mxu0 %v10591_v8  ;;  %1455 = vmatpush1.msra.mxu1 %v10591_v8 }
  0xe9   : > { %1364 = vmatprep.subr.mxu0 %v10595_v9  ;;  %1456 = vmatprep.subr.mxu1 %v10595_v9 }
  0xea   : > { %1365 = vmatpush1.msra.mxu0 %v10597_v10  ;;  %1457 = vmatpush1.msra.mxu1 %v10597_v10 }
  0xeb   : > { %1366 = vmatprep.subr.mxu0 %v10602_v12  ;;  %1458 = vmatprep.subr.mxu1 %v10602_v12 }
  0xec   : > { %1367 = vmatpush1.msra.mxu0 %v10617_v23  ;;  %1459 = vmatpush1.msra.mxu1 %v10617_v23 }
  0xed   : > { %1368 = vmatprep.subr.mxu0 %v10622_v26  ;;  %1460 = vmatprep.subr.mxu1 %v10622_v26 }
  0xee   : > { %1369 = vmatpush1.msra.mxu0 %v10627_v28  ;;  %1461 = vmatpush1.msra.mxu1 %v10627_v28 }
  0xef   : > { %1370 = vmatprep.subr.mxu0 %v10631_v31  ;;  %1462 = vmatprep.subr.mxu1 %v10631_v31 }
  0xf0   : > { %1371 = vmatpush1.msra.mxu0 %v10637_v34  ;;  %1404 = vmatprep.mubr.f32.mxu0 %v10329_v37 }
  0xf1   : > { %1463 = vmatpush1.msra.mxu1 %v10637_v34  ;;  %1496 = vmatprep.mubr.f32.mxu1 %v10329_v37 }
  0xf2   : > { %9736 = vmatmul.mubr.msk.f32.vlgmr.msra.gmra.mxu0 %vm601_vm3, %v1337_v16  ;;  %9737 = vmatmul.mubr.msk.f32.vlgmr.msra.gmra.mxu1 %vm601_vm3, %v1429_v17  ;;  %v1976_v16 = vrot.slane %v1969_v11, 7  ;;  %v1876_v17 = vld [vmem:[%s10542_s30 + $0xe] sm:$0x1] }
  0xf3   : > { %1540 = vmatprep.subr.mxu0 %v10569_v1  ;;  %1632 = vmatprep.subr.mxu1 %v10569_v1  ;;  %v1885_v24 = vsel %vm593_vm0, %v1884_v14, %v1876_v17  ;;  %v11101_v11 = vld [vmem:[#allocation11 + $0x28] sm:$0xff]  ;;  %v2348_v14 = vrot.slane %v2339_v59, 5 }
  0xf4   : > { %1541 = vmatpush1.msra.mxu0 %v10571_v2  ;;  %1633 = vmatpush1.msra.mxu1 %v10571_v2  ;;  %v1977_v25 = vsel %vm593_vm0, %v1976_v16, %v1968_v18  ;;  %v1887_v30 = vsel %vm596_vm1, %v1886_v20, %v1885_v24  ;;  %v11111_v18 = vld [vmem:[#allocation11 + $0x18] sm:$0xff]  ;;  %v11119_v20 = vld [vmem:[#allocation11 + $0x8] sm:$0xff]  ;;  %v11125_v24 = vld [vmem:[#allocation11] sm:$0xff] }
  0xf5   : > { %1542 = vmatprep.subr.mxu0 %v10573_v3  ;;  %1634 = vmatprep.subr.mxu1 %v10573_v3  ;;  %v1979_v32 = vsel %vm596_vm1, %v1978_v22, %v1977_v25  ;;  %v1889_v33 = vsel %vm599_vm2, %v1888_v27, %v1887_v30  ;;  %v2429_v25 = vld [vmem:[%s10542_s30 + $0x34] sm:$0x1]  ;;  %v2521_v27 = vld [vmem:[%s10542_s30 + $0x35] sm:$0x1] }
  0xf6   : > { %1543 = vmatpush1.msra.mxu0 %v10577_v4  ;;  %1635 = vmatpush1.msra.mxu1 %v10577_v4  ;;  %v1981_v35 = vsel %vm599_vm2, %v1980_v29, %v1979_v32  ;;  %v2430_v29 = vld [vmem:[%s10542_s30 + $0x54] sm:$0x1]  ;;  %v2436_v30 = vrot.slane %v2429_v25, 7  ;;  %v2522_v32 = vld [vmem:[%s10542_s30 + $0x55] sm:$0x1] }
  0xf7   : > { %1544 = vmatprep.subr.mxu0 %v10581_v5  ;;  %1636 = vmatprep.subr.mxu1 %v10581_v5  ;;  %v2888_v25 = vld [vmem:[%s10542_s30 + $0x19] sm:$0x1] }
  0xf8   : > { %1545 = vmatpush1.msra.mxu0 %v10585_v6  ;;  %1637 = vmatpush1.msra.mxu1 %v10585_v6 }
  0xf9   : > { %1546 = vmatprep.subr.mxu0 %v10589_v7  ;;  %1638 = vmatprep.subr.mxu1 %v10589_v7 }
  0xfa   : > { %1547 = vmatpush1.msra.mxu0 %v10591_v8  ;;  %1639 = vmatpush1.msra.mxu1 %v10591_v8 }
  0xfb   : > { %1548 = vmatprep.subr.mxu0 %v10595_v9  ;;  %1640 = vmatprep.subr.mxu1 %v10595_v9 }
  0xfc   : > { %1549 = vmatpush1.msra.mxu0 %v10597_v10  ;;  %1641 = vmatpush1.msra.mxu1 %v10597_v10 }
  0xfd   : > { %1550 = vmatprep.subr.mxu0 %v10602_v12  ;;  %1642 = vmatprep.subr.mxu1 %v10602_v12 }
  0xfe   : > { %1551 = vmatpush1.msra.mxu0 %v10617_v23  ;;  %1643 = vmatpush1.msra.mxu1 %v10617_v23 }
  0xff   : > { %1552 = vmatprep.subr.mxu0 %v10622_v26  ;;  %1644 = vmatprep.subr.mxu1 %v10622_v26 }
 0x100   : > { %1553 = vmatpush1.msra.mxu0 %v10627_v28  ;;  %1645 = vmatpush1.msra.mxu1 %v10627_v28 }
 0x101   : > { %1554 = vmatprep.subr.mxu0 %v10631_v31  ;;  %1646 = vmatprep.subr.mxu1 %v10631_v31 }
 0x102   : > { %1555 = vmatpush1.msra.mxu0 %v10637_v34  ;;  %1588 = vmatprep.mubr.f32.mxu0 %v10329_v37 }
 0x103   : > { %1647 = vmatpush1.msra.mxu1 %v10637_v34  ;;  %1680 = vmatprep.mubr.f32.mxu1 %v10329_v37 }
 0x104   : > { %9738 = vmatmul.mubr.msk.f32.vlgmr.msra.gmra.mxu0 %vm601_vm3, %v1521_v42  ;;  %9739 = vmatmul.mubr.msk.f32.vlgmr.msra.gmra.mxu1 %vm601_vm3, %v1613_v43  ;;  %v2155_v42 = vld [vmem:[%s10542_s30 + $0x71] sm:$0x1] }
 0x105   : > { %1724 = vmatprep.subr.mxu0 %v10569_v1  ;;  %1816 = vmatprep.subr.mxu1 %v10569_v1 }
 0x106   : > { %1725 = vmatpush1.msra.mxu0 %v10571_v2  ;;  %1817 = vmatpush1.msra.mxu1 %v10571_v2 }
 0x107   : > { %1726 = vmatprep.subr.mxu0 %v10573_v3  ;;  %1818 = vmatprep.subr.mxu1 %v10573_v3 }
 0x108   : > { %1727 = vmatpush1.msra.mxu0 %v10577_v4  ;;  %1819 = vmatpush1.msra.mxu1 %v10577_v4 }
 0x109   : > { %1728 = vmatprep.subr.mxu0 %v10581_v5  ;;  %1820 = vmatprep.subr.mxu1 %v10581_v5 }
 0x10a   : > { %1729 = vmatpush1.msra.mxu0 %v10585_v6  ;;  %1821 = vmatpush1.msra.mxu1 %v10585_v6 }
 0x10b   : > { %1730 = vmatprep.subr.mxu0 %v10589_v7  ;;  %1822 = vmatprep.subr.mxu1 %v10589_v7 }
 0x10c   : > { %1731 = vmatpush1.msra.mxu0 %v10591_v8  ;;  %1823 = vmatpush1.msra.mxu1 %v10591_v8 }
 0x10d   : > { %1732 = vmatprep.subr.mxu0 %v10595_v9  ;;  %1824 = vmatprep.subr.mxu1 %v10595_v9 }
 0x10e   : > { %1733 = vmatpush1.msra.mxu0 %v10597_v10  ;;  %1825 = vmatpush1.msra.mxu1 %v10597_v10 }
 0x10f   : > { %1734 = vmatprep.subr.mxu0 %v10602_v12  ;;  %1826 = vmatprep.subr.mxu1 %v10602_v12 }
 0x110   : > { %1735 = vmatpush1.msra.mxu0 %v10617_v23  ;;  %1827 = vmatpush1.msra.mxu1 %v10617_v23 }
 0x111   : > { %1736 = vmatprep.subr.mxu0 %v10622_v26  ;;  %1828 = vmatprep.subr.mxu1 %v10622_v26 }
 0x112   : > { %1737 = vmatpush1.msra.mxu0 %v10627_v28  ;;  %1829 = vmatpush1.msra.mxu1 %v10627_v28 }
 0x113   : > { %1738 = vmatprep.subr.mxu0 %v10631_v31  ;;  %1830 = vmatprep.subr.mxu1 %v10631_v31 }
 0x114   : > { %1739 = vmatpush1.msra.mxu0 %v10637_v34  ;;  %1772 = vmatprep.mubr.f32.mxu0 %v10329_v37 }
 0x115   : > { %1831 = vmatpush1.msra.mxu1 %v10637_v34  ;;  %1864 = vmatprep.mubr.f32.mxu1 %v10329_v37 }
 0x116   : > { %9740 = vmatmul.mubr.msk.f32.vlgmr.msra.gmra.mxu0 %vm601_vm3, %v1705_v62  ;;  %9741 = vmatmul.mubr.msk.f32.vlgmr.msra.gmra.mxu1 %vm601_vm3, %v1797_v63 }
 0x117   : > { %1908 = vmatprep.subr.mxu0 %v10569_v1  ;;  %2000 = vmatprep.subr.mxu1 %v10569_v1 }
 0x118   : > { %1909 = vmatpush1.msra.mxu0 %v10571_v2  ;;  %2001 = vmatpush1.msra.mxu1 %v10571_v2 }
 0x119   : > { %1910 = vmatprep.subr.mxu0 %v10573_v3  ;;  %2002 = vmatprep.subr.mxu1 %v10573_v3 }
 0x11a   : > { %1911 = vmatpush1.msra.mxu0 %v10577_v4  ;;  %2003 = vmatpush1.msra.mxu1 %v10577_v4 }
 0x11b   : > { %1912 = vmatprep.subr.mxu0 %v10581_v5  ;;  %2004 = vmatprep.subr.mxu1 %v10581_v5 }
 0x11c   : > { %1913 = vmatpush1.msra.mxu0 %v10585_v6  ;;  %2005 = vmatpush1.msra.mxu1 %v10585_v6 }
 0x11d   : > { %1914 = vmatprep.subr.mxu0 %v10589_v7  ;;  %2006 = vmatprep.subr.mxu1 %v10589_v7 }
 0x11e   : > { %1915 = vmatpush1.msra.mxu0 %v10591_v8  ;;  %2007 = vmatpush1.msra.mxu1 %v10591_v8 }
 0x11f   : > { %1916 = vmatprep.subr.mxu0 %v10595_v9  ;;  %2008 = vmatprep.subr.mxu1 %v10595_v9 }
 0x120   : > { %1917 = vmatpush1.msra.mxu0 %v10597_v10  ;;  %2009 = vmatpush1.msra.mxu1 %v10597_v10 }
 0x121   : > { %1918 = vmatprep.subr.mxu0 %v10602_v12  ;;  %2010 = vmatprep.subr.mxu1 %v10602_v12 }
 0x122   : > { %1919 = vmatpush1.msra.mxu0 %v10617_v23  ;;  %2011 = vmatpush1.msra.mxu1 %v10617_v23 }
 0x123   : > { %1920 = vmatprep.subr.mxu0 %v10622_v26  ;;  %2012 = vmatprep.subr.mxu1 %v10622_v26 }
 0x124   : > { %1921 = vmatpush1.msra.mxu0 %v10627_v28  ;;  %2013 = vmatpush1.msra.mxu1 %v10627_v28 }
 0x125   : > { %1922 = vmatprep.subr.mxu0 %v10631_v31  ;;  %2014 = vmatprep.subr.mxu1 %v10631_v31 }
 0x126   : > { %1923 = vmatpush1.msra.mxu0 %v10637_v34  ;;  %1956 = vmatprep.mubr.f32.mxu0 %v10329_v37 }
 0x127   : > { %2015 = vmatpush1.msra.mxu1 %v10637_v34  ;;  %2048 = vmatprep.mubr.f32.mxu1 %v10329_v37 }
 0x128   : > { %9742 = vmatmul.mubr.msk.f32.vlgmr.msra.gmra.mxu0 %vm601_vm3, %v1889_v33  ;;  %9743 = vmatmul.mubr.msk.f32.vlgmr.msra.gmra.mxu1 %vm601_vm3, %v1981_v35  ;;  %v2528_v33 = vrot.slane %v2521_v27, 7  ;;  %v2428_v35 = vld [vmem:[%s10542_s30 + $0x14] sm:$0x1]  ;;  %v2799_v27 = vld [vmem:[%s10542_s30 + $0x78] sm:$0x1] }
 0x129   : > { %2092 = vmatprep.subr.mxu0 %v10569_v1  ;;  %2184 = vmatprep.subr.mxu1 %v10569_v1  ;;  %v2062_v1 = vld [vmem:[%s10542_s30 + $0x50] sm:$0x1] }
 0x12a   : > { %2093 = vmatpush1.msra.mxu0 %v10571_v2  ;;  %2185 = vmatpush1.msra.mxu1 %v10571_v2  ;;  %v2154_v2 = vld [vmem:[%s10542_s30 + $0x51] sm:$0x1] }
 0x12b   : > { %2094 = vmatprep.subr.mxu0 %v10573_v3  ;;  %2186 = vmatprep.subr.mxu1 %v10573_v3  ;;  %v2152_v3 = vld [vmem:[%s10542_s30 + $0x11] sm:$0x1]  ;;  %v2162_v43 = vrot.slane %v2154_v2, 6  ;;  %v2530_v2 = vrot.slane %v2522_v32, 6 }
 0x12c   : > { %2095 = vmatpush1.msra.mxu0 %v10577_v4  ;;  %2187 = vmatpush1.msra.mxu1 %v10577_v4  ;;  %v2063_v4 = vld [vmem:[%s10542_s30 + $0x70] sm:$0x1]  ;;  %v2161_v44 = vsel %vm593_vm0, %v2160_v40, %v2152_v3  ;;  %v2437_v40 = vsel %vm593_vm0, %v2436_v30, %v2428_v35  ;;  %v2440_v3 = vrot.slane %v2431_v38, 5  ;;  %v2891_v30 = vld [vmem:[%s10542_s30 + $0x79] sm:$0x1] }
 0x12d   : > { %2096 = vmatprep.subr.mxu0 %v10581_v5  ;;  %2188 = vmatprep.subr.mxu1 %v10581_v5  ;;  %v2070_v5 = vrot.slane %v2062_v1, 6  ;;  %v2163_v45 = vsel %vm596_vm1, %v2162_v43, %v2161_v44  ;;  %v2438_v1 = vrot.slane %v2430_v29, 6  ;;  %v2613_v44 = vld [vmem:[%s10542_s30 + $0x36] sm:$0x1]  ;;  %v2900_v38 = vrot.slane %v2891_v30, 5 }
 0x12e   : > { %2097 = vmatpush1.msra.mxu0 %v10585_v6  ;;  %2189 = vmatpush1.msra.mxu1 %v10585_v6  ;;  %v2069_v6 = vsel %vm593_vm0, %v2068_v39, %v2060_v41  ;;  %v2523_v39 = vld [vmem:[%s10542_s30 + $0x75] sm:$0x1]  ;;  %v2529_v41 = vsel %vm593_vm0, %v2528_v33, %v2520_v36  ;;  %v2808_v36 = vrot.slane %v2799_v27, 5 }
 0x12f   : > { %2098 = vmatprep.subr.mxu0 %v10589_v7  ;;  %2190 = vmatprep.subr.mxu1 %v10589_v7  ;;  %v2072_v7 = vrot.slane %v2063_v4, 5  ;;  %v2532_v4 = vrot.slane %v2523_v39, 5 }
 0x130   : > { %2099 = vmatpush1.msra.mxu0 %v10591_v8  ;;  %2191 = vmatpush1.msra.mxu1 %v10591_v8  ;;  %v2164_v8 = vrot.slane %v2155_v42, 5  ;;  %v2531_v42 = vsel %vm596_vm1, %v2530_v2, %v2529_v41  ;;  %v2981_v41 = vld [vmem:[%s10542_s30 + $0x3a] sm:$0x1] }
 0x131   : > { %2100 = vmatprep.subr.mxu0 %v10595_v9  ;;  %2192 = vmatprep.subr.mxu1 %v10595_v9  ;;  %v2071_v9 = vsel %vm596_vm1, %v2070_v5, %v2069_v6  ;;  %v2439_v5 = vsel %vm596_vm1, %v2438_v1, %v2437_v40  ;;  %v2533_v6 = vsel %vm599_vm2, %v2532_v4, %v2531_v42  ;;  %v2982_v4 = vld [vmem:[%s10542_s30 + $0x5a] sm:$0x1]  ;;  %v3074_v42 = vld [vmem:[%s10542_s30 + $0x5b] sm:$0x1] }
 0x132   : > { %2101 = vmatpush1.msra.mxu0 %v10597_v10  ;;  %2193 = vmatpush1.msra.mxu1 %v10597_v10  ;;  %v2073_v10 = vsel %vm599_vm2, %v2072_v7, %v2071_v9  ;;  %v2441_v43 = vsel %vm599_vm2, %v2440_v3, %v2439_v5  ;;  %v2705_v7 = vld [vmem:[%s10542_s30 + $0x37] sm:$0x1]  ;;  %v2620_v9 = vrot.slane %v2613_v44, 7  ;;  %v3073_v3 = vld [vmem:[%s10542_s30 + $0x3b] sm:$0x1]  ;;  %v2988_v5 = vrot.slane %v2981_v41, 7 }
 0x133   : > { %2102 = vmatprep.subr.mxu0 %v10602_v12  ;;  %2194 = vmatprep.subr.mxu1 %v10602_v12  ;;  %v2165_v12 = vsel %vm599_vm2, %v2164_v8, %v2163_v45  ;;  %v2614_v8 = vld [vmem:[%s10542_s30 + $0x56] sm:$0x1]  ;;  %v2706_v45 = vld [vmem:[%s10542_s30 + $0x57] sm:$0x1]  ;;  %v3072_v44 = vld [vmem:[%s10542_s30 + $0x1b] sm:$0x1] }
 0x134   : > { %2103 = vmatpush1.msra.mxu0 %v10617_v23  ;;  %2195 = vmatpush1.msra.mxu1 %v10617_v23  ;;  %v11051_v23 = vld [vmem:[#allocation11 + $0x78] sm:$0xff]  ;;  %v2622_v48 = vrot.slane %v2614_v8, 6  ;;  %v2714_v50 = vrot.slane %v2706_v45, 6  ;;  %v2990_v8 = vrot.slane %v2982_v4, 6  ;;  %v3082_v45 = vrot.slane %v3074_v42, 6 }
 0x135   : > { %2104 = vmatprep.subr.mxu0 %v10622_v26  ;;  %2196 = vmatprep.subr.mxu1 %v10622_v26  ;;  %v11055_v26 = vld [vmem:[#allocation11 + $0x70] sm:$0xff] }
 0x136   : > { %2105 = vmatpush1.msra.mxu0 %v10627_v28  ;;  %2197 = vmatpush1.msra.mxu1 %v10627_v28  ;;  %v2245_v28 = vld [vmem:[%s10542_s30 + $0x32] sm:$0x1] }
 0x137   : > { %2106 = vmatprep.subr.mxu0 %v10631_v31  ;;  %2198 = vmatprep.subr.mxu1 %v10631_v31  ;;  %v2337_v31 = vld [vmem:[%s10542_s30 + $0x33] sm:$0x1]  ;;  %v2252_v49 = vrot.slane %v2245_v28, 7  ;;  %v2704_v28 = vld [vmem:[%s10542_s30 + $0x17] sm:$0x1] }
 0x138   : > { %2107 = vmatpush1.msra.mxu0 %v10637_v34  ;;  %2140 = vmatprep.mubr.f32.mxu0 %v10329_v37  ;;  %v2344_v51 = vrot.slane %v2337_v31, 7  ;;  %v2615_v31 = vld [vmem:[%s10542_s30 + $0x76] sm:$0x1] }
 0x139   : > { %2199 = vmatpush1.msra.mxu1 %v10637_v34  ;;  %2232 = vmatprep.mubr.f32.mxu1 %v10329_v37  ;;  %v11061_v34 = vld [vmem:[#allocation11 + $0x68] sm:$0xff]  ;;  %v2253_v62 = vsel %vm593_vm0, %v2252_v49, %v2244_v53  ;;  %v2707_v49 = vld [vmem:[%s10542_s30 + $0x77] sm:$0x1] }
 0x13a   : > { %9744 = vmatmul.mubr.msk.f32.vlgmr.msra.gmra.mxu0 %vm601_vm3, %v2073_v10  ;;  %9745 = vmatmul.mubr.msk.f32.vlgmr.msra.gmra.mxu1 %vm601_vm3, %v2165_v12  ;;  %v2345_v63 = vsel %vm593_vm0, %v2344_v51, %v2336_v54  ;;  %v2255_v16 = vsel %vm596_vm1, %v2254_v58, %v2253_v62  ;;  %v2712_v10 = vrot.slane %v2705_v7, 7  ;;  %v2612_v12 = vld [vmem:[%s10542_s30 + $0x16] sm:$0x1]  ;;  %v2624_v54 = vrot.slane %v2615_v31, 5  ;;  %v2983_v7 = vld [vmem:[%s10542_s30 + $0x7a] sm:$0x1] }
 0x13b   : > { %2276 = vmatprep.subr.mxu0 %v11051_v23  ;;  %2368 = vmatprep.subr.mxu1 %v11051_v23  ;;  %v2347_v17 = vsel %vm596_vm1, %v2346_v60, %v2345_v63  ;;  %v2257_v21 = vsel %vm599_vm2, %v2256_v13, %v2255_v16  ;;  %v2621_v51 = vsel %vm593_vm0, %v2620_v9, %v2612_v12  ;;  %v2716_v57 = vrot.slane %v2707_v49, 5  ;;  %v2797_v63 = vld [vmem:[%s10542_s30 + $0x38] sm:$0x1]  ;;  %v2889_v13 = vld [vmem:[%s10542_s30 + $0x39] sm:$0x1] }
 0x13c   : > { %2277 = vmatpush1.msra.mxu0 %v11055_v26  ;;  %2369 = vmatpush1.msra.mxu1 %v11055_v26  ;;  %v2349_v22 = vsel %vm599_vm2, %v2348_v14, %v2347_v17  ;;  %v2713_v53 = vsel %vm593_vm0, %v2712_v10, %v2704_v28  ;;  %v2623_v58 = vsel %vm596_vm1, %v2622_v48, %v2621_v51  ;;  %v2798_v14 = vld [vmem:[%s10542_s30 + $0x58] sm:$0x1]  ;;  %v2804_v16 = vrot.slane %v2797_v63, 7  ;;  %v2890_v17 = vld [vmem:[%s10542_s30 + $0x59] sm:$0x1] }
 0x13d   : > { %2278 = vmatprep.subr.mxu0 %v11061_v34  ;;  %2370 = vmatprep.subr.mxu1 %v11061_v34  ;;  %v2715_v59 = vsel %vm596_vm1, %v2714_v50, %v2713_v53  ;;  %v2625_v60 = vsel %vm599_vm2, %v2624_v54, %v2623_v58  ;;  %v2806_v29 = vrot.slane %v2798_v14, 6  ;;  %v2898_v32 = vrot.slane %v2890_v17, 6  ;;  %v3075_v9 = vld [vmem:[%s10542_s30 + $0x7b] sm:$0x1]  ;;  %v3165_v53 = vld [vmem:[%s10542_s30 + $0x3c] sm:$0x1] }
 0x13e   : > { %2279 = vmatpush1.msra.mxu0 %v11065_v46  ;;  %2371 = vmatpush1.msra.mxu1 %v11065_v46  ;;  %v2717_v62 = vsel %vm599_vm2, %v2716_v57, %v2715_v59  ;;  %v2992_v28 = vrot.slane %v2983_v7, 5  ;;  %v3084_v31 = vrot.slane %v3075_v9, 5  ;;  %v3257_v54 = vld [vmem:[%s10542_s30 + $0x3d] sm:$0x1]  ;;  %v3166_v57 = vld [vmem:[%s10542_s30 + $0x5c] sm:$0x1] }
 0x13f   : > { %2280 = vmatprep.subr.mxu0 %v11069_v47  ;;  %2372 = vmatprep.subr.mxu1 %v11069_v47  ;;  %v3172_v58 = vrot.slane %v3165_v53, 7  ;;  %v3258_v59 = vld [vmem:[%s10542_s30 + $0x5d] sm:$0x1]  ;;  %v3167_v17 = vld [vmem:[%s10542_s30 + $0x7c] sm:$0x1] }
 0x140   : > { %2281 = vmatpush1.msra.mxu0 %v11075_v52  ;;  %2373 = vmatpush1.msra.mxu1 %v11075_v52  ;;  %v3256_v14 = vld [vmem:[%s10542_s30 + $0x1d] sm:$0x1] }
 0x141   : > { %2282 = vmatprep.subr.mxu0 %v11081_v55  ;;  %2374 = vmatprep.subr.mxu1 %v11081_v55 }
 0x142   : > { %2283 = vmatpush1.msra.mxu0 %v11085_v56  ;;  %2375 = vmatpush1.msra.mxu1 %v11085_v56 }
 0x143   : > { %2284 = vmatprep.subr.mxu0 %v11091_v61  ;;  %2376 = vmatprep.subr.mxu1 %v11091_v61 }
 0x144   : > { %2285 = vmatpush1.msra.mxu0 %v11097_v0  ;;  %2377 = vmatpush1.msra.mxu1 %v11097_v0 }
 0x145   : > { %2286 = vmatprep.subr.mxu0 %v11101_v11  ;;  %2378 = vmatprep.subr.mxu1 %v11101_v11 }
 0x146   : > { %2287 = vmatpush1.msra.mxu0 %v11105_v15  ;;  %2379 = vmatpush1.msra.mxu1 %v11105_v15 }
 0x147   : > { %2288 = vmatprep.subr.mxu0 %v11111_v18  ;;  %2380 = vmatprep.subr.mxu1 %v11111_v18 }
 0x148   : > { %2289 = vmatpush1.msra.mxu0 %v11115_v19  ;;  %2381 = vmatpush1.msra.mxu1 %v11115_v19 }
 0x149   : > { %2290 = vmatprep.subr.mxu0 %v11119_v20  ;;  %2382 = vmatprep.subr.mxu1 %v11119_v20 }
 0x14a   : > { %2291 = vmatpush1.msra.mxu0 %v11125_v24  ;;  %2324 = vmatprep.mubr.f32.mxu0 %v10329_v37 }
 0x14b   : > { %2383 = vmatpush1.msra.mxu1 %v11125_v24  ;;  %2416 = vmatprep.mubr.f32.mxu1 %v10329_v37 }
 0x14c   : > { %9746 = vmatmul.mubr.msk.f32.vlgmr.msra.gmra.mxu0 %vm601_vm3, %v2257_v21  ;;  %9747 = vmatmul.mubr.msk.f32.vlgmr.msra.gmra.mxu1 %vm601_vm3, %v2349_v22  ;;  %v2896_v21 = vrot.slane %v2889_v13, 7  ;;  %v2796_v22 = vld [vmem:[%s10542_s30 + $0x18] sm:$0x1]  ;;  %v3164_v13 = vld [vmem:[%s10542_s30 + $0x1c] sm:$0x1] }
 0x14d   : > { %2460 = vmatprep.subr.mxu0 %v11051_v23  ;;  %2552 = vmatprep.subr.mxu1 %v11051_v23  ;;  %v2805_v33 = vsel %vm593_vm0, %v2804_v16, %v2796_v22  ;;  %v3760_v16 = vlaneseq  ;;  %v3259_v22 = vld [vmem:[%s10542_s30 + $0x7d] sm:$0x1]  ;;  %v3173_v27 = vsel %vm593_vm0, %v3172_v58, %v3164_v13 }
 0x14e   : > { %2461 = vmatpush1.msra.mxu0 %v11055_v26  ;;  %2553 = vmatpush1.msra.mxu1 %v11055_v26  ;;  %v2897_v35 = vsel %vm593_vm0, %v2896_v21, %v2888_v25  ;;  %v2807_v1 = vsel %vm596_vm1, %v2806_v29, %v2805_v33  ;;  %v3174_v21 = vrot.slane %v3166_v57, 6  ;;  %v3266_v25 = vrot.slane %v3258_v59, 6 }
 0x14f   : > { %2462 = vmatprep.subr.mxu0 %v11061_v34  ;;  %2554 = vmatprep.subr.mxu1 %v11061_v34  ;;  %v2899_v39 = vsel %vm596_vm1, %v2898_v32, %v2897_v35  ;;  %v2809_v2 = vsel %vm599_vm2, %v2808_v36, %v2807_v1  ;;  %v11363_v35 = vshrl.u32 %v3760_v16, 7  ;;  %v3176_v36 = vrot.slane %v3167_v17, 5  ;;  %v3564_v1 = vld [vmem:[%s10534_s26] sm:$0xff]  ;;  %v3351_v17 = vld [vmem:[%s10542_s30 + $0x7e] sm:$0x1] }
 0x150   : > { %2463 = vmatpush1.msra.mxu0 %v11065_v46  ;;  %2555 = vmatpush1.msra.mxu1 %v11065_v46  ;;  %v2901_v40 = vsel %vm599_vm2, %v2900_v38, %v2899_v39  ;;  %v3268_v38 = vrot.slane %v3259_v22, 5  ;;  %v3175_v39 = vsel %vm596_vm1, %v3174_v21, %v3173_v27  ;;  %v3756_v41 = vcombine.high %v3564_v1, %v3564_v1  ;;  %v3443_v21 = vld [vmem:[%s10542_s30 + $0x7f] sm:$0x1]  ;;  %v3566_v22 = vld [vmem:[%s10534_s26 + $0x10] sm:$0xff] }
 0x151   : > { %2464 = vmatprep.subr.mxu0 %v11069_v47  ;;  %2556 = vmatprep.subr.mxu1 %v11069_v47 }
 0x152   : > { %2465 = vmatpush1.msra.mxu0 %v11075_v52  ;;  %2557 = vmatpush1.msra.mxu1 %v11075_v52 }
 0x153   : > { %2466 = vmatprep.subr.mxu0 %v11081_v55  ;;  %2558 = vmatprep.subr.mxu1 %v11081_v55 }
 0x154   : > { %2467 = vmatpush1.msra.mxu0 %v11085_v56  ;;  %2559 = vmatpush1.msra.mxu1 %v11085_v56 }
 0x155   : > { %2468 = vmatprep.subr.mxu0 %v11091_v61  ;;  %2560 = vmatprep.subr.mxu1 %v11091_v61 }
 0x156   : > { %2469 = vmatpush1.msra.mxu0 %v11097_v0  ;;  %2561 = vmatpush1.msra.mxu1 %v11097_v0 }
 0x157   : > { %2470 = vmatprep.subr.mxu0 %v11101_v11  ;;  %2562 = vmatprep.subr.mxu1 %v11101_v11 }
 0x158   : > { %2471 = vmatpush1.msra.mxu0 %v11105_v15  ;;  %2563 = vmatpush1.msra.mxu1 %v11105_v15 }
 0x159   : > { %2472 = vmatprep.subr.mxu0 %v11111_v18  ;;  %2564 = vmatprep.subr.mxu1 %v11111_v18 }
 0x15a   : > { %2473 = vmatpush1.msra.mxu0 %v11115_v19  ;;  %2565 = vmatpush1.msra.mxu1 %v11115_v19 }
 0x15b   : > { %2474 = vmatprep.subr.mxu0 %v11119_v20  ;;  %2566 = vmatprep.subr.mxu1 %v11119_v20 }
 0x15c   : > { %2475 = vmatpush1.msra.mxu0 %v11125_v24  ;;  %2508 = vmatprep.mubr.f32.mxu0 %v10329_v37 }
 0x15d   : > { %2567 = vmatpush1.msra.mxu1 %v11125_v24  ;;  %2600 = vmatprep.mubr.f32.mxu1 %v10329_v37 }
 0x15e   : > { %9748 = vmatmul.mubr.msk.f32.vlgmr.msra.gmra.mxu0 %vm601_vm3, %v2441_v43  ;;  %9749 = vmatmul.mubr.msk.f32.vlgmr.msra.gmra.mxu1 %vm601_vm3, %v2533_v6  ;;  %v3080_v43 = vrot.slane %v3073_v3, 7  ;;  %v2980_v6 = vld [vmem:[%s10542_s30 + $0x1a] sm:$0x1] }
 0x15f   : > { %2644 = vmatprep.subr.mxu0 %v11051_v23  ;;  %2736 = vmatprep.subr.mxu1 %v11051_v23  ;;  %v2989_v10 = vsel %vm593_vm0, %v2988_v5, %v2980_v6  ;;  %v3177_v5 = vsel %vm599_vm2, %v3176_v36, %v3175_v39  ;;  %v3441_v6 = vld [vmem:[%s10542_s30 + $0x3f] sm:$0x1]  ;;  %v3790_v39 = vcombine.high %v3566_v22, %v3566_v22 }
 0x160   : > { %2645 = vmatpush1.msra.mxu0 %v11055_v26  ;;  %2737 = vmatpush1.msra.mxu1 %v11055_v26  ;;  %v3081_v12 = vsel %vm593_vm0, %v3080_v43, %v3072_v44  ;;  %v2991_v48 = vsel %vm596_vm1, %v2990_v8, %v2989_v10  ;;  %v3349_v43 = vld [vmem:[%s10542_s30 + $0x3e] sm:$0x1]  ;;  %v3448_v10 = vrot.slane %v3441_v6, 7 }
 0x161   : > { %2646 = vmatprep.subr.mxu0 %v11061_v34  ;;  %2738 = vmatprep.subr.mxu1 %v11061_v34  ;;  %v3083_v49 = vsel %vm596_vm1, %v3082_v45, %v3081_v12  ;;  %v2993_v50 = vsel %vm599_vm2, %v2992_v28, %v2991_v48  ;;  %v3356_v45 = vrot.slane %v3349_v43, 7  ;;  %v3565_v12 = vld [vmem:[%s10534_s26 + $0x8] sm:$0xff]  ;;  %v3348_v48 = vld [vmem:[%s10542_s30 + $0x1e] sm:$0x1] }
 0x162   : > { %2647 = vmatpush1.msra.mxu0 %v11065_v46  ;;  %2739 = vmatpush1.msra.mxu1 %v11065_v46  ;;  %v3085_v51 = vsel %vm599_vm2, %v3084_v31, %v3083_v49  ;;  %v3350_v49 = vld [vmem:[%s10542_s30 + $0x5e] sm:$0x1]  ;;  %v3773_v58 = vcombine.high %v3565_v12, %v3565_v12 }
 0x163   : > { %2648 = vmatprep.subr.mxu0 %v11069_v47  ;;  %2740 = vmatprep.subr.mxu1 %v11069_v47 }
 0x164   : > { %2649 = vmatpush1.msra.mxu0 %v11075_v52  ;;  %2741 = vmatpush1.msra.mxu1 %v11075_v52 }
 0x165   : > { %2650 = vmatprep.subr.mxu0 %v11081_v55  ;;  %2742 = vmatprep.subr.mxu1 %v11081_v55 }
 0x166   : > { %2651 = vmatpush1.msra.mxu0 %v11085_v56  ;;  %2743 = vmatpush1.msra.mxu1 %v11085_v56 }
 0x167   : > { %2652 = vmatprep.subr.mxu0 %v11091_v61  ;;  %2744 = vmatprep.subr.mxu1 %v11091_v61 }
 0x168   : > { %2653 = vmatpush1.msra.mxu0 %v11097_v0  ;;  %2745 = vmatpush1.msra.mxu1 %v11097_v0 }
 0x169   : > { %2654 = vmatprep.subr.mxu0 %v11101_v11  ;;  %2746 = vmatprep.subr.mxu1 %v11101_v11 }
 0x16a   : > { %2655 = vmatpush1.msra.mxu0 %v11105_v15  ;;  %2747 = vmatpush1.msra.mxu1 %v11105_v15  ;;  %v670_v32 = vpop.f32.mrf.mxu0  ;;  %v762_v33 = vpop.f32.mrf.mxu1 }
 0x16b   : > { %2656 = vmatprep.subr.mxu0 %v11111_v18  ;;  %2748 = vmatprep.subr.mxu1 %v11111_v18 }
 0x16c   : > { %2657 = vmatpush1.msra.mxu0 %v11115_v19  ;;  %2749 = vmatpush1.msra.mxu1 %v11115_v19  ;;  %v672_v3 = vpop.f32.mrf.mxu0  ;;  %v764_v4 = vpop.f32.mrf.mxu1 }
 0x16d   : > { %2658 = vmatprep.subr.mxu0 %v11119_v20  ;;  %2750 = vmatprep.subr.mxu1 %v11119_v20  ;;  %v11400_v28 = vcombine.low %v670_v32, %v672_v3  ;;  %v11402_v31 = vcombine.low %v762_v33, %v764_v4  ;;  %v11421_v59 = vcombine.low %v672_v3, %v672_v3 }
 0x16e   : > { %2659 = vmatpush1.msra.mxu0 %v11125_v24  ;;  %2692 = vmatprep.mubr.f32.mxu0 %v10329_v37 }
 0x16f   : > { %2751 = vmatpush1.msra.mxu1 %v11125_v24  ;;  %2784 = vmatprep.mubr.f32.mxu1 %v10329_v37  ;;  %13679 = vst [vmem:[#allocation24_spill] sm:$0xff] %v11402_v31  ;;  %13680 = vst [vmem:[#allocation25_spill] sm:$0xff] %v11421_v59  ;;  %v3676_v13 = vpack.c.bf16 %v11400_v28, %v11400_v28  ;;  %v3678_v16 = vpack.c.bf16 %v11402_v31, %v11402_v31 }
 0x170   : > { %9750 = vmatmul.mubr.msk.f32.vlgmr.msra.gmra.mxu0 %vm601_vm3, %v2625_v60  ;;  %9751 = vmatmul.mubr.msk.f32.vlgmr.msra.gmra.mxu1 %vm601_vm3, %v2717_v62  ;;  %v3264_v60 = vrot.slane %v3257_v54, 7  ;;  %v10330_v62 = vmov 1983009808  }
 0x171   : > { %2828 = vmatprep.subr.mxu0 %v11051_v23  ;;  %2920 = vmatprep.subr.mxu1 %v11051_v23  ;;  %v3758_v63 = vunpack.c.l.s4 %v10330_v62  ;;  %v3358_v62 = vrot.slane %v3350_v49, 6 }
 0x172   : > { %2829 = vmatpush1.msra.mxu0 %v11055_v26  ;;  %2921 = vmatpush1.msra.mxu1 %v11055_v26  ;;  %v3265_v29 = vsel %vm593_vm0, %v3264_v60, %v3256_v14  ;;  %v11433_v14 = vcombine.low %v764_v4, %v764_v4  ;;  %v4094_v4 = vrot.slane %v3678_v16, 6 }
 0x173   : > { %2830 = vmatprep.subr.mxu0 %v11061_v34  ;;  %2922 = vmatprep.subr.mxu1 %v11061_v34  ;;  %v3759_v30 = vunpack.c.0.s8 %v3758_v63 }
 0x174   : > { %2831 = vmatpush1.msra.mxu0 %v11065_v46  ;;  %2923 = vmatpush1.msra.mxu1 %v11065_v46  ;;  %13681 = vst [vmem:[#allocation26_spill] sm:$0xff] %v11433_v14 }
 0x175   : > { %2832 = vmatprep.subr.mxu0 %v11069_v47  ;;  %2924 = vmatprep.subr.mxu1 %v11069_v47 }
 0x176   : > { %2833 = vmatpush1.msra.mxu0 %v11075_v52  ;;  %2925 = vmatpush1.msra.mxu1 %v11075_v52 }
 0x177   : > { %2834 = vmatprep.subr.mxu0 %v11081_v55  ;;  %2926 = vmatprep.subr.mxu1 %v11081_v55 }
 0x178   : > { %2835 = vmatpush1.msra.mxu0 %v11085_v56  ;;  %2927 = vmatpush1.msra.mxu1 %v11085_v56 }
 0x179   : > { %2836 = vmatprep.subr.mxu0 %v11091_v61  ;;  %2928 = vmatprep.subr.mxu1 %v11091_v61 }
 0x17a   : > { %2837 = vmatpush1.msra.mxu0 %v11097_v0  ;;  %2929 = vmatpush1.msra.mxu1 %v11097_v0 }
 0x17b   : > { %2838 = vmatprep.subr.mxu0 %v11101_v11  ;;  %2930 = vmatprep.subr.mxu1 %v11101_v11 }
 0x17c   : > { %2839 = vmatpush1.msra.mxu0 %v11105_v15  ;;  %2931 = vmatpush1.msra.mxu1 %v11105_v15  ;;  %v854_v44 = vpop.f32.mrf.mxu0  ;;  %v946_v7 = vpop.f32.mrf.mxu1 }
 0x17d   : > { %2840 = vmatprep.subr.mxu0 %v11111_v18  ;;  %2932 = vmatprep.subr.mxu1 %v11111_v18 }
 0x17e   : > { %2841 = vmatpush1.msra.mxu0 %v11115_v19  ;;  %2933 = vmatpush1.msra.mxu1 %v11115_v19  ;;  %v948_v53 = vpop.f32.mrf.mxu1 }
 0x17f   : > { %2842 = vmatprep.subr.mxu0 %v11119_v20  ;;  %2934 = vmatprep.subr.mxu1 %v11119_v20 }
 0x180   : > { %2843 = vmatpush1.msra.mxu0 %v11125_v24  ;;  %2876 = vmatprep.mubr.f32.mxu0 %v10329_v37 }
 0x181   : > { %2935 = vmatpush1.msra.mxu1 %v11125_v24  ;;  %2968 = vmatprep.mubr.f32.mxu1 %v10329_v37 }
 0x182   : > { %9752 = vmatmul.mubr.msk.f32.vlgmr.msra.gmra.mxu0 %vm601_vm3, %v2809_v2  ;;  %9753 = vmatmul.mubr.msk.f32.vlgmr.msra.gmra.mxu1 %vm601_vm3, %v2901_v40  ;;  %v3267_v2 = vsel %vm596_vm1, %v3266_v25, %v3265_v29  ;;  %v11375_v40 = vsub.s32 %v3759_v30, %v11363_v35  ;;  %v11446_v29 = vcombine.low %v946_v7, %v948_v53 }
 0x183   : > { %3012 = vmatprep.subr.mxu0 %v11051_v23  ;;  %3104 = vmatprep.subr.mxu1 %v11051_v23  ;;  %v3269_v42 = vsel %vm599_vm2, %v3268_v38, %v3267_v2  ;;  %v11450_v30 = vcombine.low %v948_v53, %v948_v53  ;;  %v3360_v38 = vrot.slane %v3351_v17, 5  ;;  %v4092_v2 = vrot.slane %v3676_v13, 6 }
 0x184   : > { %3013 = vmatpush1.msra.mxu0 %v11055_v26  ;;  %3105 = vmatpush1.msra.mxu1 %v11055_v26  ;;  %v11390_v8 = vrot.slane %v3564_v1, %v11375_v40  ;;  %v11395_v9 = vrot.slane %v3756_v41, %v11375_v40  ;;  %v11419_v57 = vrot.slane %v3565_v12, %v11375_v40  ;;  %v3452_v1 = vrot.slane %v3443_v21, 5 }
 0x185   : > { %3014 = vmatprep.subr.mxu0 %v11061_v34  ;;  %3106 = vmatprep.subr.mxu1 %v11061_v34  ;;  %13684 = vst [vmem:[#allocation29_spill] sm:$0xff] %v11446_v29  ;;  %13685 = vst [vmem:[#allocation30_spill] sm:$0xff] %v11450_v30  ;;  %v11457_v32 = vrot.slane %v3773_v58, %v11375_v40  ;;  %v3679_v41 = vpack.c.bf16 %v11433_v14, %v11433_v14 }
 0x186   : > { %3015 = vmatpush1.msra.mxu0 %v11065_v46  ;;  %3107 = vmatpush1.msra.mxu1 %v11065_v46  ;;  %v3771_v54 = vcombine.high %v11390_v8, %v11390_v8  ;;  %v3683_v43 = vpack.c.bf16 %v11450_v30, %v11450_v30  ;;  %v11501_v7 = vrot.slane %v3790_v39, %v11375_v40  ;;  %v4353_v39 = vld [vmem:[%s13690_s0] sm:$0xff] }
 0x187   : > { %3016 = vmatprep.subr.mxu0 %v11069_v47  ;;  %3108 = vmatprep.subr.mxu1 %v11069_v47  ;;  %v4159_v49 = vsel %vm4156_vm4, %v11390_v8, %v4092_v2 }
 0x188   : > { %3017 = vmatpush1.msra.mxu0 %v11075_v52  ;;  %3109 = vmatpush1.msra.mxu1 %v11075_v52  ;;  %v4099_v53 = vrot.slane %v3683_v43, 6  ;;  %v3806_v58 = vcombine.high %v11501_v7, %v11501_v7  ;;  %v4356_v43 = vld [vmem:[%s13690_s0 + $0x18] sm:$0xff] }
 0x189   : > { %3018 = vmatprep.subr.mxu0 %v11081_v55  ;;  %3110 = vmatprep.subr.mxu1 %v11081_v55 }
 0x18a   : > { %3019 = vmatpush1.msra.mxu0 %v11085_v56  ;;  %3111 = vmatpush1.msra.mxu1 %v11085_v56 }
 0x18b   : > { %3020 = vmatprep.subr.mxu0 %v11091_v61  ;;  %3112 = vmatprep.subr.mxu1 %v11091_v61 }
 0x18c   : > { %3021 = vmatpush1.msra.mxu0 %v11097_v0  ;;  %3113 = vmatpush1.msra.mxu1 %v11097_v0 }
 0x18d   : > { %3022 = vmatprep.subr.mxu0 %v11101_v11  ;;  %3114 = vmatprep.subr.mxu1 %v11101_v11 }
 0x18e   : > { %3023 = vmatpush1.msra.mxu0 %v11105_v15  ;;  %3115 = vmatpush1.msra.mxu1 %v11105_v15  ;;  %v11425_v60 = vpop.f32.mrf.mxu1 }
 0x18f   : > { %3024 = vmatprep.subr.mxu0 %v11111_v18  ;;  %3116 = vmatprep.subr.mxu1 %v11111_v18 }
 0x190   : > { %3025 = vmatpush1.msra.mxu0 %v11115_v19  ;;  %3117 = vmatpush1.msra.mxu1 %v11115_v19  ;;  %v11461_v36 = vpop.f32.mrf.mxu1 }
 0x191   : > { %3026 = vmatprep.subr.mxu0 %v11119_v20  ;;  %3118 = vmatprep.subr.mxu1 %v11119_v20  ;;  %v11489_v6 = vcombine.low %v11461_v36, %v11461_v36 }
 0x192   : > { %3027 = vmatpush1.msra.mxu0 %v11125_v24  ;;  %3060 = vmatprep.mubr.f32.mxu0 %v10329_v37 }
 0x193   : > { %3119 = vmatpush1.msra.mxu1 %v11125_v24  ;;  %3152 = vmatprep.mubr.f32.mxu1 %v10329_v37  ;;  %13687 = vst [vmem:[#allocation32_spill] sm:$0xff] %v11489_v6 }
 0x194   : > { %9754 = vmatmul.mubr.msk.f32.vlgmr.msra.gmra.mxu0 %vm601_vm3, %v2993_v50  ;;  %9755 = vmatmul.mubr.msk.f32.vlgmr.msra.gmra.mxu1 %vm601_vm3, %v3085_v51  ;;  %v3440_v50 = vld [vmem:[%s10542_s30 + $0x1f] sm:$0x1]  ;;  %v856_v51 = vpop.f32.mrf.mxu0 }
 0x195   : > { %3196 = vmatprep.subr.mxu0 %v11051_v23  ;;  %3288 = vmatprep.subr.mxu1 %v11051_v23  ;;  %v3449_v63 = vsel %vm593_vm0, %v3448_v10, %v3440_v50  ;;  %v11442_v25 = vcombine.low %v854_v44, %v856_v51  ;;  %v11444_v27 = vcombine.low %v856_v51, %v856_v51  ;;  %v4095_v10 = vrot.slane %v3679_v41, 6 }
 0x196   : > { %3197 = vmatpush1.msra.mxu0 %v11055_v26  ;;  %3289 = vmatpush1.msra.mxu1 %v11055_v26  ;;  %v11498_v44 = vrot.slane %v3566_v22, %v11375_v40  ;;  %v4165_v50 = vsel %vm4156_vm4, %v11395_v9, %v4094_v4 }
 0x197   : > { %3198 = vmatprep.subr.mxu0 %v11061_v34  ;;  %3290 = vmatprep.subr.mxu1 %v11061_v34  ;;  %13682 = vst [vmem:[#allocation27_spill] sm:$0xff] %v11442_v25  ;;  %13683 = vst [vmem:[#allocation28_spill] sm:$0xff] %v11444_v27 }
 0x198   : > { %3199 = vmatpush1.msra.mxu0 %v11065_v46  ;;  %3291 = vmatpush1.msra.mxu1 %v11065_v46 }
 0x199   : > { %3200 = vmatprep.subr.mxu0 %v11069_v47  ;;  %3292 = vmatprep.subr.mxu1 %v11069_v47 }
 0x19a   : > { %3201 = vmatpush1.msra.mxu0 %v11075_v52  ;;  %3293 = vmatpush1.msra.mxu1 %v11075_v52 }
 0x19b   : > { %3202 = vmatprep.subr.mxu0 %v11081_v55  ;;  %3294 = vmatprep.subr.mxu1 %v11081_v55 }
 0x19c   : > { %3203 = vmatpush1.msra.mxu0 %v11085_v56  ;;  %3295 = vmatpush1.msra.mxu1 %v11085_v56 }
 0x19d   : > { %3204 = vmatprep.subr.mxu0 %v11091_v61  ;;  %3296 = vmatprep.subr.mxu1 %v11091_v61 }
 0x19e   : > { %3205 = vmatpush1.msra.mxu0 %v11097_v0  ;;  %3297 = vmatpush1.msra.mxu1 %v11097_v0 }
 0x19f   : > { %3206 = vmatprep.subr.mxu0 %v11101_v11  ;;  %3298 = vmatprep.subr.mxu1 %v11101_v11 }
 0x1a0   : > { %3207 = vmatpush1.msra.mxu0 %v11105_v15  ;;  %3299 = vmatpush1.msra.mxu1 %v11105_v15  ;;  %v1314_v21 = vpop.f32.mrf.mxu1 }
 0x1a1   : > { %3208 = vmatprep.subr.mxu0 %v11111_v18  ;;  %3300 = vmatprep.subr.mxu1 %v11111_v18 }
 0x1a2   : > { %3209 = vmatpush1.msra.mxu0 %v11115_v19  ;;  %3301 = vmatpush1.msra.mxu1 %v11115_v19 }
 0x1a3   : > { %3210 = vmatprep.subr.mxu0 %v11119_v20  ;;  %3302 = vmatprep.subr.mxu1 %v11119_v20 }
 0x1a4   : > { %3211 = vmatpush1.msra.mxu0 %v11125_v24  ;;  %3244 = vmatprep.mubr.f32.mxu0 %v10329_v37 }
 0x1a5   : > { %3303 = vmatpush1.msra.mxu1 %v11125_v24  ;;  %3336 = vmatprep.mubr.f32.mxu1 %v10329_v37 }
 0x1a6   : > { %9756 = vmatmul.mubr.msk.f32.vlgmr.msra.gmra.mxu0 %vm601_vm3, %v3177_v5  ;;  %9757 = vmatmul.mubr.msk.f32.vlgmr.msra.gmra.mxu1 %vm601_vm3, %v3269_v42  ;;  %v3681_v5 = vpack.c.bf16 %v11444_v27, %v11444_v27  ;;  %v3682_v42 = vpack.c.bf16 %v11446_v29, %v11446_v29 }
 0x1a7   : > { %3380 = vmatprep.subr.mxu0 %v11051_v23  ;;  %3472 = vmatprep.subr.mxu1 %v11051_v23  ;;  %v3442_v23 = vld [vmem:[%s10542_s30 + $0x5f] sm:$0x1] }
 0x1a8   : > { %3381 = vmatpush1.msra.mxu0 %v11055_v26  ;;  %3473 = vmatpush1.msra.mxu1 %v11055_v26  ;;  %v3772_v26 = vcombine.high %v11395_v9, %v11395_v9  ;;  %v4098_v51 = vrot.slane %v3682_v42, 6  ;;  %v11546_v9 = vld [vmem:[%s13577_s5] sm:$0xff]  }
 0x1a9   : > { %3382 = vmatprep.subr.mxu0 %v11061_v34  ;;  %3474 = vmatprep.subr.mxu1 %v11061_v34  ;;  %v11423_v34 = vpop.f32.mrf.mxu0 }
 0x1aa   : > { %3383 = vmatpush1.msra.mxu0 %v11065_v46  ;;  %3475 = vmatpush1.msra.mxu1 %v11065_v46  ;;  %v3357_v46 = vsel %vm593_vm0, %v3356_v45, %v3348_v48  ;;  %v4097_v48 = vrot.slane %v3681_v5, 6  ;;  %v4177_v16 = vsel %vm4156_vm4, %v11457_v32, %v4098_v51 }
 0x1ab   : > { %3384 = vmatprep.subr.mxu0 %v11069_v47  ;;  %3476 = vmatprep.subr.mxu1 %v11069_v47  ;;  %v3450_v47 = vrot.slane %v3442_v23, 6  ;;  %v11459_v33 = vpop.f32.mrf.mxu0  ;;  %v3687_v23 = vpack.c.bf16 %v11489_v6, %v11489_v6 }
 0x1ac   : > { %3385 = vmatpush1.msra.mxu0 %v11075_v52  ;;  %3477 = vmatpush1.msra.mxu1 %v11075_v52  ;;  %v3788_v52 = vcombine.high %v11419_v57, %v11419_v57 }
 0x1ad   : > { %3386 = vmatprep.subr.mxu0 %v11081_v55  ;;  %3478 = vmatprep.subr.mxu1 %v11081_v55  ;;  %v3359_v55 = vsel %vm596_vm1, %v3358_v62, %v3357_v46  ;;  %v3451_v3 = vsel %vm596_vm1, %v3450_v47, %v3449_v63  ;;  %v4399_v62 = vsel %vm4394_vm5, %v4165_v50, 0  ;;  %v4103_v63 = vrot.slane %v3687_v23, 6  ;;  %v1222_v17 = vpop.f32.mrf.mxu0 }
 0x1ae   : > { %3387 = vmatpush1.msra.mxu0 %v11085_v56  ;;  %3479 = vmatpush1.msra.mxu1 %v11085_v56  ;;  %v3677_v56 = vpack.c.bf16 %v11421_v59, %v11421_v59  ;;  %v4174_v8 = vsel %vm4156_vm4, %v3788_v52, %v4097_v48  ;;  %v13590_v47 = vmov 0   ;;  %v4407_v52 = vsel %vm4394_vm5, %v4177_v16, 0 }
 0x1af   : > { %3388 = vmatprep.subr.mxu0 %v11091_v61  ;;  %3480 = vmatprep.subr.mxu1 %v11091_v61  ;;  %v3680_v61 = vpack.c.bf16 %v11442_v25, %v11442_v25 }
 0x1b0   : > { %3389 = vmatpush1.msra.mxu0 %v11097_v0  ;;  %3481 = vmatpush1.msra.mxu1 %v11097_v0  ;;  %v11485_v0 = vcombine.low %v11459_v33, %v11459_v33  ;;  %v4093_v45 = vrot.slane %v3677_v56, 6  ;;  %v11589_v56 = vld [vmem:[%s13577_s5 + $0x8] sm:$0xff]  }
 0x1b1   : > { %3390 = vmatprep.subr.mxu0 %v11101_v11  ;;  %3482 = vmatprep.subr.mxu1 %v11101_v11  ;;  %v3789_v11 = vcombine.high %v11457_v32, %v11457_v32  ;;  %v4096_v12 = vrot.slane %v3680_v61, 6  ;;  %v11569_v32 = vcombine.low %v11425_v60, %v11461_v36  ;;  %v4355_v60 = vld [vmem:[%s13690_s0 + $0x10] sm:$0xff]  ;;  %v4354_v61 = vld [vmem:[%s13690_s0 + $0x8] sm:$0xff] }
 0x1b2   : > { %13686 = vst [vmem:[#allocation31_spill] sm:$0xff] %v11485_v0  ;;  %3391 = vmatpush1.msra.mxu0 %v11105_v15  ;;  %3483 = vmatpush1.msra.mxu1 %v11105_v15  ;;  %v3361_v15 = vsel %vm599_vm2, %v3360_v38, %v3359_v55  ;;  %v4162_v46 = vsel %vm4156_vm4, %v3771_v54, %v4093_v45  ;;  %v1224_v38 = vpop.f32.mrf.mxu0 }
 0x1b3   : > { %3392 = vmatprep.subr.mxu0 %v11111_v18  ;;  %3484 = vmatprep.subr.mxu1 %v11111_v18  ;;  %v3453_v18 = vsel %vm599_vm2, %v3452_v1, %v3451_v3  ;;  %v4171_v54 = vsel %vm4156_vm4, %v11419_v57, %v4096_v12  ;;  %v4180_v13 = vsel %vm4156_vm4, %v3789_v11, %v4099_v53  ;;  %v1316_v1 = vpop.f32.mrf.mxu1 }
 0x1b4   : > { %3393 = vmatpush1.msra.mxu0 %v11115_v19  ;;  %3485 = vmatpush1.msra.mxu1 %v11115_v19  ;;  %v3685_v19 = vpack.c.bf16 %v11485_v0, %v11485_v0  ;;  %v11559_v57 = vcombine.low %v11423_v34, %v11459_v33  ;;  %v4403_v22 = vsel %vm4394_vm5, %v4171_v54, 0  ;;  %13689 = vst [vmem:[#allocation34_spill] sm:$0xff] %v11569_v32  ;;  %v3567_v33 = vld [vmem:[%s10534_s26 + $0x18] sm:$0xff]  ;;  %v1406_v53 = vpop.f32.mrf.mxu0 }
 0x1b5   : > { %3394 = vmatprep.subr.mxu0 %v11119_v20  ;;  %3486 = vmatprep.subr.mxu1 %v11119_v20  ;;  %v3805_v20 = vcombine.high %v11498_v44, %v11498_v44  ;;  %v4192_v34 = vsel %vm4156_vm4, %v3806_v58, %v4103_v63  ;;  %v3807_v2 = vcombine.high %v3567_v33, %v3567_v33 }
 0x1b6   : > { %3395 = vmatpush1.msra.mxu0 %v11125_v24  ;;  %3428 = vmatprep.mubr.f32.mxu0 %v10329_v37  ;;  %13688 = vst [vmem:[#allocation33_spill] sm:$0xff] %v11559_v57  ;;  %v3684_v36 = vpack.c.bf16 %v11559_v57, %v11559_v57  ;;  %v3686_v41 = vpack.c.bf16 %v11569_v32, %v11569_v32 }
 0x1b7   : > { %3487 = vmatpush1.msra.mxu1 %v11125_v24  ;;  %3520 = vmatprep.mubr.f32.mxu1 %v10329_v37  ;;  %v4168_v37 = vsel %vm4156_vm4, %v3772_v26, %v4095_v10  ;;  %v4395_v24 = vsel %vm4394_vm5, %v4159_v49, 0  ;;  %v4101_v26 = vrot.slane %v3685_v19, 6  ;;  %v11595_v3 = vcombine.low %v1224_v38, %v1224_v38  ;;  %v1498_v19 = vpop.f32.mrf.mxu1 }
 0x1b8   : > { %9758 = vmatmul.mubr.msk.f32.vlgmr.msra.gmra.mxu0 %vm601_vm3, %v3361_v15  ;;  %9759 = vmatmul.mubr.msk.f32.vlgmr.msra.gmra.mxu1 %vm601_vm3, %v3453_v18  ;;  %v11597_v4 = vcombine.low %v1316_v1, %v1316_v1  ;;  %v3814_v5 = vrot.slane %v3567_v33, %v11375_v40  ;;  %v3821_v42 = vrot.slane %v3807_v2, %v11375_v40  ;;  %v4100_v11 = vrot.slane %v3684_v36, 6 }
 0x1b9   : > { %9762 = vmatprep.subr.msk.bf16.mxu0 %vm4394_vm5, %v4162_v46  ;;  %9765 = vmatprep.subr.msk.bf16.mxu1 %vm4394_vm5, %v4168_v37  ;;  %v4186_v55 = vsel %vm4156_vm4, %v3805_v20, %v4101_v26  ;;  %13691 = vst [vmem:[#allocation35_spill] sm:$0xff] %v11595_v3  ;;  %v4102_v45 = vrot.slane %v3686_v41, 6  ;;  %v3689_v10 = vpack.c.bf16 %v11595_v3, %v11595_v3  ;;  %v3568_v37 = vld [vmem:[%s10534_s26 + $0x20] sm:$0xff] }
 0x1ba   : > { %4538 = vmatpush1.bf16.msra.mxu0 %v4395_v24  ;;  %4591 = vmatpush1.bf16.msra.mxu1 %v4399_v62  ;;  %13692 = vst [vmem:[#allocation36_spill] sm:$0xff] %v11597_v4  ;;  %v3691_v15 = vpack.c.bf16 %v11597_v4, %v11597_v4  ;;  %v3822_v18 = vcombine.high %v3814_v5, %v3814_v5  ;;  %v1408_v24 = vpop.f32.mrf.mxu0  ;;  %v1500_v62 = vpop.f32.mrf.mxu1 }
 0x1bb   : > { %9768 = vmatprep.subr.msk.bf16.mxu0 %vm4394_vm5, %v4174_v8  ;;  %9771 = vmatprep.subr.msk.bf16.mxu1 %vm4394_vm5, %v4180_v13  ;;  %v3823_v12 = vcombine.high %v3821_v42, %v3821_v42  ;;  %v4105_v48 = vrot.slane %v3689_v10, 6  ;;  %v4183_v50 = vsel %vm4156_vm4, %v11498_v44, %v4100_v11  ;;  %v4189_v51 = vsel %vm4156_vm4, %v11501_v7, %v4102_v45  ;;  %v3569_v45 = vld [vmem:[%s10534_s26 + $0x28] sm:$0xff] }
 0x1bc   : > { %4555 = vmatprep.mubr.bf16.mxu0 %v13590_v47  ;;  %4608 = vmatprep.mubr.bf16.mxu1 %v13590_v47  ;;  %v4107_v49 = vrot.slane %v3691_v15, 6  ;;  %v11621_v23 = vcombine.low %v1222_v17, %v1224_v38  ;;  %v4411_v20 = vsel %vm4394_vm5, %v4183_v50, 0  ;;  %v4415_v58 = vsel %vm4394_vm5, %v4189_v51, 0 }
 0x1bd   : > { %9763 = vmatmul.mubr.msk.bf16.vlgmr.msra.gmra.mxu0 %vm4387_vm6, %v11546_v9  ;;  %9766 = vmatmul.mubr.msk.bf16.vlgmr.msra.gmra.mxu1 %vm4387_vm6, %v11546_v9  ;;  %v11629_v46 = vcombine.low %v1314_v21, %v1316_v1  ;;  %v4198_v44 = vsel %vm4156_vm4, %v3822_v18, %v4105_v48  ;;  %v3824_v8 = vcombine.high %v3568_v37, %v3568_v37 }
 0x1be   : > { %4644 = vmatpush1.bf16.msra.mxu0 %v4403_v22  ;;  %4697 = vmatpush1.bf16.msra.mxu1 %v4407_v52  ;;  %13693 = vst [vmem:[#allocation37_spill] sm:$0xff] %v11621_v23  ;;  %v4204_v7 = vsel %vm4156_vm4, %v3823_v12, %v4107_v49  ;;  %v3688_v54 = vpack.c.bf16 %v11621_v23, %v11621_v23 }
 0x1bf   : > { %9774 = vmatprep.subr.msk.bf16.mxu0 %vm4394_vm5, %v4186_v55  ;;  %9777 = vmatprep.subr.msk.bf16.mxu1 %vm4394_vm5, %v4192_v34  ;;  %13694 = vst [vmem:[#allocation38_spill] sm:$0xff] %v11629_v46  ;;  %v3690_v26 = vpack.c.bf16 %v11629_v46, %v11629_v46  ;;  %v11642_v63 = vcombine.low %v1408_v24, %v1408_v24 }
 0x1c0   : > { %4565 = vmatprep.mubr.bf16.mxu0 %v13590_v47  ;;  %4618 = vmatprep.mubr.bf16.mxu1 %v13590_v47  ;;  %v11644_v13 = vcombine.low %v1500_v62, %v1500_v62  ;;  %v3831_v16 = vrot.slane %v3568_v37, %v11375_v40  ;;  %v3838_v17 = vrot.slane %v3824_v8, %v11375_v40  ;;  %v4104_v21 = vrot.slane %v3688_v54, 6 }
 0x1c1   : > { %10030 = vset.pattern.permute.xlu1 %v13590_v47  ;;  %10029 = vset.pattern.permute.xlu0 %v13590_v47  ;;  %13695 = vst [vmem:[#allocation39_spill] sm:$0xff] %v11642_v63  ;;  %v4106_v22 = vrot.slane %v3690_v26, 6  ;;  %v3693_v52 = vpack.c.bf16 %v11642_v63, %v11642_v63  ;;  %v11660_v41 = vcombine.low %v1406_v53, %v1408_v24 }
 0x1c2   : > { %4359 = vperm.xlu1 %10030, %v4353_v39   ;;  %4369 = vperm.xlu0 %10029, %v4355_v60   ;;  %13696 = vst [vmem:[#allocation40_spill] sm:$0xff] %v11644_v13  ;;  %v3695_v55 = vpack.c.bf16 %v11644_v13, %v11644_v13  ;;  %v3839_v34 = vcombine.high %v3831_v16, %v3831_v16 }
 0x1c3   : > { %v3840_v33 = vcombine.high %v3838_v17, %v3838_v17  ;;  %v4109_v38 = vrot.slane %v3693_v52, 6  ;;  %v4195_v39 = vsel %vm4156_vm4, %v3814_v5, %v4104_v21  ;;  %v4201_v60 = vsel %vm4156_vm4, %v3821_v42, %v4106_v22  ;;  %13697 = vst [vmem:[#allocation41_spill] sm:$0xff] %v11660_v41 }
 0x1c4   : > { %v4111_v1 = vrot.slane %v3695_v55, 6  ;;  %v1590_v36 = vpop.f32.mrf.mxu0  ;;  %v1682_v2 = vpop.f32.mrf.mxu1  ;;  %v11668_v11 = vcombine.low %v1498_v19, %v1500_v62  ;;  %v3841_v18 = vcombine.high %v3569_v45, %v3569_v45  ;;  %v3692_v12 = vpack.c.bf16 %v11660_v41, %v11660_v41 }
 0x1c5   : > { %9764 = vmatmul.mubr.msk.bf16.gmra.mxu0 %vm4387_vm6, %v11589_v56  ;;  %9767 = vmatmul.mubr.msk.bf16.gmra.mxu1 %vm4387_vm6, %v11589_v56  ;;  %v4210_v5 = vsel %vm4156_vm4, %v3839_v34, %v4109_v38  ;;  %v3848_v51 = vrot.slane %v3569_v45, %v11375_v40 }
 0x1c6   : > { %4661 = vmatprep.mubr.bf16.mxu0 %v13590_v47  ;;  %4714 = vmatprep.mubr.bf16.mxu1 %v13590_v47  ;;  %13698 = vst [vmem:[#allocation42_spill] sm:$0xff] %v11668_v11  ;;  %v4216_v42 = vsel %vm4156_vm4, %v3840_v33, %v4111_v1  ;;  %v1592_v10 = vpop.f32.mrf.mxu0  ;;  %v1684_v15 = vpop.f32.mrf.mxu1  ;;  %v3694_v48 = vpack.c.bf16 %v11668_v11, %v11668_v11  ;;  %v4108_v19 = vrot.slane %v3692_v12, 6  ;;  %v3570_v33 = vld [vmem:[%s10534_s26 + $0x30] sm:$0xff] }
 0x1c7   : > { %4364 = vperm.xlu1 %10030, %v4354_v61   ;;  %4374 = vperm.xlu0 %10029, %v4356_v43   ;;  %v4419_v61 = vsel %vm4394_vm5, %v4195_v39, 0  ;;  %v4423_v43 = vsel %vm4394_vm5, %v4201_v60, 0  ;;  %v11681_v49 = vcombine.low %v1592_v10, %v1592_v10  ;;  %v11683_v50 = vcombine.low %v1684_v15, %v1684_v15 }
 0x1c8   : > { %v3855_v53 = vrot.slane %v3841_v18, %v11375_v40  ;;  %v4207_v8 = vsel %vm4156_vm4, %v3831_v16, %v4108_v19  ;;  %v11699_v22 = vcombine.low %v1590_v36, %v1592_v10  ;;  %v11707_v34 = vcombine.low %v1682_v2, %v1684_v15 }
 0x1c9   : > { %13699 = vst [vmem:[#allocation43_spill] sm:$0xff] %v11681_v49  ;;  %13700 = vst [vmem:[#allocation44_spill] sm:$0xff] %v11683_v50  ;;  %v4427_v52 = vsel %vm4394_vm5, %v4207_v8, 0  ;;  %v3858_v39 = vcombine.high %v3570_v33, %v3570_v33 }
 0x1ca   : > { %v3857_v37 = vcombine.high %v3855_v53, %v3855_v53  ;;  %13701 = vst [vmem:[#allocation45_spill] sm:$0xff] %v11699_v22  ;;  %13702 = vst [vmem:[#allocation46_spill] sm:$0xff] %v11707_v34  ;;  %v3696_v60 = vpack.c.bf16 %v11699_v22, %v11699_v22  ;;  %v3698_v36 = vpack.c.bf16 %v11707_v34, %v11707_v34 }
 0x1cc   : > { %v4114_v45 = vrot.slane %v3698_v36, 6 }
 0x1cd   : > { %9769 = vmatmul.mubr.msk.bf16.vlgmr.msra.gmra.mxu0 %vm4387_vm6, %v11546_v9  ;;  %9772 = vmatmul.mubr.msk.bf16.vlgmr.msra.gmra.mxu1 %vm4387_vm6, %v11546_v9 }
 0x1ce   : > { %4750 = vmatpush1.bf16.msra.mxu0 %v4411_v20  ;;  %4803 = vmatpush1.bf16.msra.mxu1 %v4415_v58  ;;  %v4110_v20 = vrot.slane %v3694_v48, 6  ;;  %v3697_v58 = vpack.c.bf16 %v11681_v49, %v11681_v49 }
 0x1cf   : > { %9780 = vmatprep.subr.msk.bf16.mxu0 %vm4394_vm5, %v4198_v44  ;;  %9783 = vmatprep.subr.msk.bf16.mxu1 %vm4394_vm5, %v4204_v7  ;;  %v3699_v44 = vpack.c.bf16 %v11683_v50, %v11683_v50  ;;  %v3856_v7 = vcombine.high %v3848_v51, %v3848_v51 }
 0x1d0   : > { %4671 = vmatprep.mubr.bf16.mxu0 %v13590_v47  ;;  %4724 = vmatprep.mubr.bf16.mxu1 %v13590_v47  ;;  %v4113_v24 = vrot.slane %v3697_v58, 6  ;;  %v4213_v54 = vsel %vm4156_vm4, %v3838_v17, %v4110_v20  ;;  %v4225_v58 = vsel %vm4156_vm4, %v3855_v53, %v4114_v45 }
 0x1d1   : > { %v4115_v62 = vrot.slane %v3699_v44, 6  ;;  %v4431_v55 = vsel %vm4394_vm5, %v4213_v54, 0  ;;  %v3571_v54 = vld [vmem:[%s10534_s26 + $0x38] sm:$0xff] }
 0x1d2   : > { %v4222_v16 = vsel %vm4156_vm4, %v3856_v7, %v4113_v24 }
 0x1d3   : > { %v4228_v17 = vsel %vm4156_vm4, %v3857_v37, %v4115_v62  ;;  %v4439_v62 = vsel %vm4394_vm5, %v4225_v58, 0 }
 0x1d5   : > { %9770 = vmatmul.mubr.msk.bf16.gmra.mxu0 %vm4387_vm6, %v11589_v56  ;;  %9773 = vmatmul.mubr.msk.bf16.gmra.mxu1 %vm4387_vm6, %v11589_v56 }
 0x1d6   : > { %4767 = vmatprep.mubr.bf16.mxu0 %v13590_v47  ;;  %4820 = vmatprep.mubr.bf16.mxu1 %v13590_v47  ;;  %v1774_v26 = vpop.f32.mrf.mxu0  ;;  %v1866_v21 = vpop.f32.mrf.mxu1 }
 0x1d8   : > { %v1776_v38 = vpop.f32.mrf.mxu0  ;;  %v1868_v1 = vpop.f32.mrf.mxu1 }
 0x1d9   : > { %v11720_v2 = vcombine.low %v1776_v38, %v1776_v38  ;;  %v11738_v37 = vcombine.low %v1774_v26, %v1776_v38  ;;  %v11746_v8 = vcombine.low %v1866_v21, %v1868_v1  ;;  %v6604_v21 = vld [vmem:[%s13707_s8] sm:$0xf] }
 0x1da   : > { %6607 = vperm.xlu0 %10029, %v6604_v21  }
 0x1db   : > { %13703 = vst [vmem:[#allocation47_spill] sm:$0xff] %v11720_v2  ;;  %v3701_v10 = vpack.c.bf16 %v11720_v2, %v11720_v2  ;;  %13705 = vst [vmem:[#allocation49_spill] sm:$0xff] %v11738_v37 }
 0x1dc   : > { %13706 = vst [vmem:[#allocation50_spill] sm:$0xff] %v11746_v8 }
 0x1dd   : > { %9775 = vmatmul.mubr.msk.bf16.vlgmr.msra.gmra.mxu0 %vm4387_vm6, %v11546_v9  ;;  %9778 = vmatmul.mubr.msk.bf16.vlgmr.msra.gmra.mxu1 %vm4387_vm6, %v11546_v9  ;;  %v4117_v48 = vrot.slane %v3701_v10, 6 }
 0x1de   : > { %4856 = vmatpush1.bf16.msra.mxu0 %v4419_v61  ;;  %4909 = vmatpush1.bf16.msra.mxu1 %v4423_v43  ;;  %v11722_v61 = vcombine.low %v1868_v1, %v1868_v1  ;;  %v3865_v43 = vrot.slane %v3570_v33, %v11375_v40  ;;  %v3882_v1 = vrot.slane %v3571_v54, %v11375_v40 }
 0x1df   : > { %9786 = vmatprep.subr.msk.bf16.mxu0 %vm4394_vm5, %v4210_v5  ;;  %9789 = vmatprep.subr.msk.bf16.mxu1 %vm4394_vm5, %v4216_v42  ;;  %v3872_v5 = vrot.slane %v3858_v39, %v11375_v40  ;;  %v4112_v42 = vrot.slane %v3696_v60, 6 }
 0x1e0   : > { %4777 = vmatprep.mubr.bf16.mxu0 %v13590_v47  ;;  %4830 = vmatprep.mubr.bf16.mxu1 %v13590_v47  ;;  %13704 = vst [vmem:[#allocation48_spill] sm:$0xff] %v11722_v61  ;;  %v3703_v15 = vpack.c.bf16 %v11722_v61, %v11722_v61  ;;  %v3873_v18 = vcombine.high %v3865_v43, %v3865_v43 }
 0x1e1   : > { %v3874_v12 = vcombine.high %v3872_v5, %v3872_v5  ;;  %v4219_v20 = vsel %vm4156_vm4, %v3848_v51, %v4112_v42  ;;  %v3890_v10 = vcombine.high %v3882_v1, %v3882_v1 }
 0x1e2   : > { %v4119_v19 = vrot.slane %v3703_v15, 6  ;;  %v4435_v24 = vsel %vm4394_vm5, %v4219_v20, 0  ;;  %v4234_v51 = vsel %vm4156_vm4, %v3873_v18, %v4117_v48 }
 0x1e4   : > { %v4240_v53 = vsel %vm4156_vm4, %v3874_v12, %v4119_v19 }
 0x1e5   : > { %9776 = vmatmul.mubr.msk.bf16.gmra.mxu0 %vm4387_vm6, %v11589_v56  ;;  %9779 = vmatmul.mubr.msk.bf16.gmra.mxu1 %vm4387_vm6, %v11589_v56 }
 0x1e6   : > { %4873 = vmatprep.mubr.bf16.mxu0 %v13590_v47  ;;  %4926 = vmatprep.mubr.bf16.mxu1 %v13590_v47 }
 0x1e8   : > { %v1958_v44 = vpop.f32.mrf.mxu0  ;;  %v2050_v7 = vpop.f32.mrf.mxu1 }
 0x1ea   : > { %v1960_v26 = vpop.f32.mrf.mxu0 }
 0x1eb   : > { %v11762_v33 = vcombine.low %v1960_v26, %v1960_v26 }
 0x1ed   : > { %9781 = vmatmul.mubr.msk.bf16.vlgmr.msra.gmra.mxu0 %vm4387_vm6, %v11546_v9  ;;  %9784 = vmatmul.mubr.msk.bf16.vlgmr.msra.gmra.mxu1 %vm4387_vm6, %v11546_v9  ;;  %13708 = vst [vmem:[#allocation51_spill] sm:$0xff] %v11762_v33  ;;  %v3705_v42 = vpack.c.bf16 %v11762_v33, %v11762_v33 }
 0x1ee   : > { %4962 = vmatpush1.bf16.msra.mxu0 %v4427_v52  ;;  %5015 = vmatpush1.bf16.msra.mxu1 %v4431_v55  ;;  %v2052_v52 = vpop.f32.mrf.mxu1  ;;  %v3875_v55 = vcombine.high %v3571_v54, %v3571_v54 }
 0x1ef   : > { %9792 = vmatprep.subr.msk.bf16.mxu0 %vm4394_vm5, %v4222_v16  ;;  %9795 = vmatprep.subr.msk.bf16.mxu1 %vm4394_vm5, %v4228_v17  ;;  %v3700_v16 = vpack.c.bf16 %v11738_v37, %v11738_v37  ;;  %v3702_v17 = vpack.c.bf16 %v11746_v8, %v11746_v8  ;;  %v11764_v38 = vcombine.low %v2052_v52, %v2052_v52  ;;  %v4121_v18 = vrot.slane %v3705_v42, 6 }
 0x1f0   : > { %4883 = vmatprep.mubr.bf16.mxu0 %v13590_v47  ;;  %4936 = vmatprep.mubr.bf16.mxu1 %v13590_v47  ;;  %v3889_v39 = vrot.slane %v3875_v55, %v11375_v40 }
 0x1f1   : > { %13709 = vst [vmem:[#allocation52_spill] sm:$0xff] %v11764_v38  ;;  %v4116_v60 = vrot.slane %v3700_v16, 6  ;;  %v4118_v36 = vrot.slane %v3702_v17, 6  ;;  %v3707_v45 = vpack.c.bf16 %v11764_v38, %v11764_v38 }
 0x1f2   : > { %v3891_v15 = vcombine.high %v3889_v39, %v3889_v39 }
 0x1f3   : > { %v4123_v12 = vrot.slane %v3707_v45, 6  ;;  %v4231_v48 = vsel %vm4156_vm4, %v3865_v43, %v4116_v60  ;;  %v4237_v19 = vsel %vm4156_vm4, %v3872_v5, %v4118_v36  ;;  %v4246_v43 = vsel %vm4156_vm4, %v3890_v10, %v4121_v18 }
 0x1f5   : > { %9782 = vmatmul.mubr.msk.bf16.gmra.mxu0 %vm4387_vm6, %v11589_v56  ;;  %9785 = vmatmul.mubr.msk.bf16.gmra.mxu1 %vm4387_vm6, %v11589_v56  ;;  %v4252_v5 = vsel %vm4156_vm4, %v3891_v15, %v4123_v12 }
 0x1f6   : > { %4979 = vmatprep.mubr.bf16.mxu0 %v13590_v47  ;;  %5032 = vmatprep.mubr.bf16.mxu1 %v13590_v47 }
 0x1fa   : > { %v2142_v20 = vpop.f32.mrf.mxu0  ;;  %v2234_v58 = vpop.f32.mrf.mxu1 }
 0x1fc   : > { %v2144_v54 = vpop.f32.mrf.mxu0 }
 0x1fd   : > { %9787 = vmatmul.mubr.msk.bf16.vlgmr.msra.gmra.mxu0 %vm4387_vm6, %v11546_v9  ;;  %9790 = vmatmul.mubr.msk.bf16.vlgmr.msra.gmra.mxu1 %vm4387_vm6, %v11546_v9  ;;  %v11801_v55 = vcombine.low %v2144_v54, %v2144_v54 }
 0x1fe   : > { %5068 = vmatpush1.bf16.msra.mxu0 %v4435_v24  ;;  %5121 = vmatpush1.bf16.msra.mxu1 %v4439_v62  ;;  %v11780_v24 = vcombine.low %v1958_v44, %v1960_v26  ;;  %v4443_v62 = vsel %vm4394_vm5, %v4231_v48, 0  ;;  %v3572_v44 = vld [vmem:[%s10534_s26 + $0x40] sm:$0xff]  ;;  %v2236_v26 = vpop.f32.mrf.mxu1 }
 0x1ff   : > { %9798 = vmatprep.subr.msk.bf16.mxu0 %vm4394_vm5, %v4234_v51  ;;  %9801 = vmatprep.subr.msk.bf16.mxu1 %vm4394_vm5, %v4240_v53  ;;  %v4447_v51 = vsel %vm4394_vm5, %v4237_v19, 0  ;;  %v11788_v53 = vcombine.low %v2050_v7, %v2052_v52  ;;  %v3892_v21 = vcombine.high %v3572_v44, %v3572_v44  ;;  %13712 = vst [vmem:[#allocation55_spill] sm:$0xff] %v11801_v55 }
 0x200   : > { %4989 = vmatprep.mubr.bf16.mxu0 %v13590_v47  ;;  %5042 = vmatprep.mubr.bf16.mxu1 %v13590_v47  ;;  %13710 = vst [vmem:[#allocation53_spill] sm:$0xff] %v11780_v24  ;;  %v3704_v7 = vpack.c.bf16 %v11780_v24, %v11780_v24  ;;  %v11803_v16 = vcombine.low %v2236_v26, %v2236_v26 }
 0x201   : > { %13711 = vst [vmem:[#allocation54_spill] sm:$0xff] %v11788_v53  ;;  %v3706_v52 = vpack.c.bf16 %v11788_v53, %v11788_v53  ;;  %v3899_v17 = vrot.slane %v3572_v44, %v11375_v40  ;;  %v3906_v60 = vrot.slane %v3892_v21, %v11375_v40  ;;  %v3709_v45 = vpack.c.bf16 %v11801_v55, %v11801_v55 }
 0x202   : > { %13713 = vst [vmem:[#allocation56_spill] sm:$0xff] %v11803_v16  ;;  %v4120_v36 = vrot.slane %v3704_v7, 6  ;;  %v3711_v10 = vpack.c.bf16 %v11803_v16, %v11803_v16  ;;  %v11827_v7 = vcombine.low %v2234_v58, %v2236_v26 }
 0x203   : > { %v4122_v42 = vrot.slane %v3706_v52, 6  ;;  %v3907_v15 = vcombine.high %v3899_v17, %v3899_v17  ;;  %v3908_v18 = vcombine.high %v3906_v60, %v3906_v60  ;;  %v4125_v12 = vrot.slane %v3709_v45, 6 }
 0x204   : > { %v4127_v48 = vrot.slane %v3711_v10, 6  ;;  %v4243_v19 = vsel %vm4156_vm4, %v3882_v1, %v4120_v36  ;;  %13715 = vst [vmem:[#allocation58_spill] sm:$0xff] %v11827_v7  ;;  %v3710_v26 = vpack.c.bf16 %v11827_v7, %v11827_v7  ;;  %v12080_v7 = vld [vmem:[%s13577_s5] sm:$0xff]  }
 0x205   : > { %9788 = vmatmul.mubr.msk.bf16.gmra.mxu0 %vm4387_vm6, %v11589_v56  ;;  %9791 = vmatmul.mubr.msk.bf16.gmra.mxu1 %vm4387_vm6, %v11589_v56  ;;  %v4451_v44 = vsel %vm4394_vm5, %v4243_v19, 0  ;;  %v4258_v1 = vsel %vm4156_vm4, %v3907_v15, %v4125_v12 }
 0x206   : > { %5085 = vmatprep.mubr.bf16.mxu0 %v13590_v47  ;;  %5138 = vmatprep.mubr.bf16.mxu1 %v13590_v47  ;;  %v4126_v12 = vrot.slane %v3710_v26, 6 }
 0x20d   : > { %9793 = vmatmul.mubr.msk.bf16.vlgmr.msra.gmra.mxu0 %vm4387_vm6, %v11546_v9  ;;  %9796 = vmatmul.mubr.msk.bf16.vlgmr.msra.gmra.mxu1 %vm4387_vm6, %v11546_v9 }
 0x20e   : > { %5174 = vmatpush1.bf16.msra.mxu0 %v4443_v62  ;;  %5227 = vmatpush1.bf16.msra.mxu1 %v4447_v51  ;;  %v4249_v62 = vsel %vm4156_vm4, %v3889_v39, %v4122_v42  ;;  %v2326_v51 = vpop.f32.mrf.mxu0  ;;  %v4264_v39 = vsel %vm4156_vm4, %v3908_v18, %v4127_v48 }
 0x20f   : > { %9804 = vmatprep.subr.msk.bf16.mxu0 %vm4394_vm5, %v4246_v43  ;;  %9807 = vmatprep.subr.msk.bf16.mxu1 %vm4394_vm5, %v4252_v5  ;;  %v2418_v43 = vpop.f32.mrf.mxu1  ;;  %v11819_v5 = vcombine.low %v2142_v20, %v2144_v54  ;;  %v4455_v21 = vsel %vm4394_vm5, %v4249_v62, 0  ;;  %v3573_v20 = vld [vmem:[%s10534_s26 + $0x48] sm:$0xff] }
 0x210   : > { %5095 = vmatprep.mubr.bf16.mxu0 %v13590_v47  ;;  %5148 = vmatprep.mubr.bf16.mxu1 %v13590_v47  ;;  %v2328_v54 = vpop.f32.mrf.mxu0  ;;  %v3909_v36 = vcombine.high %v3573_v20, %v3573_v20  ;;  %v3916_v10 = vrot.slane %v3573_v20, %v11375_v40  ;;  %v4261_v20 = vsel %vm4156_vm4, %v3906_v60, %v4126_v12  ;;  %v13720_v12 = vmov 0  }
 0x211   : > { %13714 = vst [vmem:[#allocation57_spill] sm:$0xff] %v11819_v5  ;;  %v2420_v52 = vpop.f32.mrf.mxu1  ;;  %v3708_v58 = vpack.c.bf16 %v11819_v5, %v11819_v5  ;;  %v11840_v42 = vcombine.low %v2328_v54, %v2328_v54  ;;  %v11858_v26 = vcombine.low %v2326_v51, %v2328_v54  ;;  %v3574_v51 = vld [vmem:[%s10534_s26 + $0x50] sm:$0xff] }
 0x212   : > { %v11842_v45 = vcombine.low %v2420_v52, %v2420_v52  ;;  %v3923_v15 = vrot.slane %v3909_v36, %v11375_v40  ;;  %v3924_v62 = vcombine.high %v3916_v10, %v3916_v10 }
 0x213   : > { %13716 = vst [vmem:[#allocation59_spill] sm:$0xff] %v11840_v42  ;;  %v4124_v18 = vrot.slane %v3708_v58, 6  ;;  %v3713_v48 = vpack.c.bf16 %v11840_v42, %v11840_v42  ;;  %13718 = vst [vmem:[#allocation61_spill] sm:$0xff] %v11858_v26 }
 0x214   : > { %13717 = vst [vmem:[#allocation60_spill] sm:$0xff] %v11842_v45  ;;  %v3715_v19 = vpack.c.bf16 %v11842_v45, %v11842_v45  ;;  %v11866_v45 = vcombine.low %v2418_v43, %v2420_v52 }
 0x215   : > { %9794 = vmatmul.mubr.msk.bf16.gmra.mxu0 %vm4387_vm6, %v11589_v56  ;;  %9797 = vmatmul.mubr.msk.bf16.gmra.mxu1 %vm4387_vm6, %v11589_v56 }
 0x216   : > { %5191 = vmatprep.mubr.bf16.mxu0 %v13590_v47  ;;  %5244 = vmatprep.mubr.bf16.mxu1 %v13590_v47  ;;  %13719 = vst [vmem:[#allocation62_spill] sm:$0xff] %v11866_v45  ;;  %v3714_v43 = vpack.c.bf16 %v11866_v45, %v11866_v45 }
 0x21d   : > { %9799 = vmatmul.mubr.msk.bf16.vlgmr.msra.gmra.mxu0 %vm4387_vm6, %v11546_v9  ;;  %9802 = vmatmul.mubr.msk.bf16.vlgmr.msra.gmra.mxu1 %vm4387_vm6, %v11546_v9 }
 0x21e   : > { %5280 = vmatpush1.bf16.msra.mxu0 %v4451_v44  ;;  %5333 = vmatpush1.bf16.msra.mxu1 %v4455_v21  ;;  %v3925_v44 = vcombine.high %v3923_v15, %v3923_v15  ;;  %v4129_v21 = vrot.slane %v3713_v48, 6  ;;  %v2510_v36 = vpop.f32.mrf.mxu0  ;;  %v2602_v58 = vpop.f32.mrf.mxu1  ;;  %v4463_v48 = vsel %vm4394_vm5, %v4261_v20, 0 }
 0x21f   : > { %9810 = vmatprep.subr.msk.bf16.mxu0 %vm4394_vm5, %v4258_v1  ;;  %9813 = vmatprep.subr.msk.bf16.mxu1 %vm4394_vm5, %v4264_v39  ;;  %v4131_v1 = vrot.slane %v3715_v19, 6  ;;  %v4255_v39 = vsel %vm4156_vm4, %v3899_v17, %v4124_v18  ;;  %v3926_v19 = vcombine.high %v3574_v51, %v3574_v51 }
 0x220   : > { %5201 = vmatprep.mubr.bf16.mxu0 %v13590_v47  ;;  %5254 = vmatprep.mubr.bf16.mxu1 %v13590_v47  ;;  %v4270_v17 = vsel %vm4156_vm4, %v3924_v62, %v4129_v21  ;;  %v2512_v54 = vpop.f32.mrf.mxu0  ;;  %v2604_v18 = vpop.f32.mrf.mxu1 }
 0x221   : > { %v4276_v60 = vsel %vm4156_vm4, %v3925_v44, %v4131_v1  ;;  %v11879_v52 = vcombine.low %v2512_v54, %v2512_v54  ;;  %v11881_v62 = vcombine.low %v2604_v18, %v2604_v18  ;;  %v3933_v44 = vrot.slane %v3574_v51, %v11375_v40 }
 0x222   : > { %v3940_v21 = vrot.slane %v3926_v19, %v11375_v40 }
 0x223   : > { %13721 = vst [vmem:[#allocation63_spill] sm:$0xff] %v11879_v52  ;;  %13722 = vst [vmem:[#allocation64_spill] sm:$0xff] %v11881_v62  ;;  %v3717_v20 = vpack.c.bf16 %v11879_v52, %v11879_v52  ;;  %v11905_v52 = vcombine.low %v2602_v58, %v2604_v18 }
 0x225   : > { %9800 = vmatmul.mubr.msk.bf16.gmra.mxu0 %vm4387_vm6, %v11589_v56  ;;  %9803 = vmatmul.mubr.msk.bf16.gmra.mxu1 %vm4387_vm6, %v11589_v56  ;;  %v4133_v42 = vrot.slane %v3717_v20, 6  ;;  %13724 = vst [vmem:[#allocation66_spill] sm:$0xff] %v11905_v52 }
 0x226   : > { %5297 = vmatprep.mubr.bf16.mxu0 %v13590_v47  ;;  %5350 = vmatprep.mubr.bf16.mxu1 %v13590_v47  ;;  %v4459_v47 = vsel %vm4394_vm5, %v4255_v39, 0  ;;  %v4130_v39 = vrot.slane %v3714_v43, 6 }
 0x228   : > { %v4273_v19 = vsel %vm4156_vm4, %v3923_v15, %v4130_v39 }
 0x229   : > { %v4471_v20 = vsel %vm4394_vm5, %v4273_v19, 0 }
 0x22d   : > { %9805 = vmatmul.mubr.msk.bf16.vlgmr.msra.gmra.mxu0 %vm4387_vm6, %v11546_v9  ;;  %9808 = vmatmul.mubr.msk.bf16.vlgmr.msra.gmra.mxu1 %vm4387_vm6, %v11546_v9 }
 0x22e   : > { %5386 = vmatpush1.bf16.msra.mxu0 %v4459_v47  ;;  %5439 = vmatpush1.bf16.msra.mxu1 %v4463_v48  ;;  %v3712_v47 = vpack.c.bf16 %v11858_v26, %v11858_v26  ;;  %v3719_v48 = vpack.c.bf16 %v11881_v62, %v11881_v62  ;;  %v11897_v26 = vcombine.low %v2510_v36, %v2512_v54  ;;  %v3575_v36 = vld [vmem:[%s10534_s26 + $0x58] sm:$0xff] }
 0x22f   : > { %9816 = vmatprep.subr.msk.bf16.mxu0 %vm4394_vm5, %v4270_v17  ;;  %9819 = vmatprep.subr.msk.bf16.mxu1 %vm4394_vm5, %v4276_v60  ;;  %v3941_v17 = vcombine.high %v3933_v44, %v3933_v44  ;;  %v3942_v60 = vcombine.high %v3940_v21, %v3940_v21  ;;  %v3943_v39 = vcombine.high %v3575_v36, %v3575_v36 }
 0x230   : > { %5307 = vmatprep.mubr.bf16.mxu0 %v13720_v12  ;;  %5360 = vmatprep.mubr.bf16.mxu1 %v13720_v12  ;;  %v4128_v1 = vrot.slane %v3712_v47, 6  ;;  %v4135_v45 = vrot.slane %v3719_v48, 6  ;;  %v2694_v47 = vpop.f32.mrf.mxu0  ;;  %v2786_v43 = vpop.f32.mrf.mxu1  ;;  %13723 = vst [vmem:[#allocation65_spill] sm:$0xff] %v11897_v26  ;;  %v3716_v58 = vpack.c.bf16 %v11897_v26, %v11897_v26 }
 0x231   : > { %v3957_v48 = vrot.slane %v3943_v39, %v11375_v40 }
 0x232   : > { %v4267_v51 = vsel %vm4156_vm4, %v3916_v10, %v4128_v1  ;;  %v4282_v10 = vsel %vm4156_vm4, %v3941_v17, %v4133_v42  ;;  %v4288_v15 = vsel %vm4156_vm4, %v3942_v60, %v4135_v45  ;;  %v2696_v54 = vpop.f32.mrf.mxu0  ;;  %v2788_v1 = vpop.f32.mrf.mxu1  ;;  %v3718_v42 = vpack.c.bf16 %v11905_v52, %v11905_v52 }
 0x233   : > { %v4467_v62 = vsel %vm4394_vm5, %v4267_v51, 0  ;;  %v11918_v18 = vcombine.low %v2696_v54, %v2696_v54  ;;  %v11920_v45 = vcombine.low %v2788_v1, %v2788_v1  ;;  %v4132_v17 = vrot.slane %v3716_v58, 6 }
 0x234   : > { %v4134_v60 = vrot.slane %v3718_v42, 6  ;;  %v11936_v26 = vcombine.low %v2694_v47, %v2696_v54  ;;  %v3576_v47 = vld [vmem:[%s10534_s26 + $0x60] sm:$0xff] }
 0x235   : > { %9806 = vmatmul.mubr.msk.bf16.gmra.mxu0 %vm4387_vm6, %v11589_v56  ;;  %9809 = vmatmul.mubr.msk.bf16.gmra.mxu1 %vm4387_vm6, %v11589_v56  ;;  %13725 = vst [vmem:[#allocation67_spill] sm:$0xff] %v11918_v18  ;;  %13726 = vst [vmem:[#allocation68_spill] sm:$0xff] %v11920_v45  ;;  %v3721_v51 = vpack.c.bf16 %v11918_v18, %v11918_v18  ;;  %v3723_v19 = vpack.c.bf16 %v11920_v45, %v11920_v45 }
 0x236   : > { %5403 = vmatprep.mubr.bf16.mxu0 %v13720_v12  ;;  %5456 = vmatprep.mubr.bf16.mxu1 %v13720_v12  ;;  %v4285_v39 = vsel %vm4156_vm4, %v3940_v21, %v4134_v60  ;;  %13727 = vst [vmem:[#allocation69_spill] sm:$0xff] %v11936_v26  ;;  %v11944_v18 = vcombine.low %v2786_v43, %v2788_v1 }
 0x237   : > { %v4139_v52 = vrot.slane %v3723_v19, 6  ;;  %v3960_v60 = vcombine.high %v3576_v47, %v3576_v47  ;;  %v3720_v43 = vpack.c.bf16 %v11936_v26, %v11936_v26  ;;  %v3967_v19 = vrot.slane %v3576_v47, %v11375_v40 }
 0x238   : > { %13728 = vst [vmem:[#allocation70_spill] sm:$0xff] %v11944_v18  ;;  %v3722_v1 = vpack.c.bf16 %v11944_v18, %v11944_v18 }
 0x23d   : > { %9811 = vmatmul.mubr.msk.bf16.vlgmr.msra.gmra.mxu0 %vm4387_vm6, %v11546_v9  ;;  %9814 = vmatmul.mubr.msk.bf16.vlgmr.msra.gmra.mxu1 %vm4387_vm6, %v11546_v9  ;;  %v12221_v4 = vpop.permute.xlu1 %4359 }
 0x23e   : > { %5492 = vmatpush1.bf16.msra.mxu0 %v4467_v62  ;;  %5545 = vmatpush1.bf16.msra.mxu1 %v4471_v20  ;;  %v3950_v62 = vrot.slane %v3575_v36, %v11375_v40  ;;  %v4279_v36 = vsel %vm4156_vm4, %v3933_v44, %v4132_v17 }
 0x23f   : > { %9822 = vmatprep.subr.msk.bf16.mxu0 %vm4394_vm5, %v4282_v10  ;;  %9825 = vmatprep.subr.msk.bf16.mxu1 %vm4394_vm5, %v4288_v15  ;;  %v3959_v10 = vcombine.high %v3957_v48, %v3957_v48  ;;  %v4137_v15 = vrot.slane %v3721_v51, 6  ;;  %v4475_v45 = vsel %vm4394_vm5, %v4279_v36, 0  ;;  %v4479_v51 = vsel %vm4394_vm5, %v4285_v39, 0 }
 0x240   : > { %5413 = vmatprep.mubr.bf16.mxu0 %v13720_v12  ;;  %5466 = vmatprep.mubr.bf16.mxu1 %v13720_v12  ;;  %v3958_v20 = vcombine.high %v3950_v62, %v3950_v62 }
 0x241   : > { %v4300_v21 = vsel %vm4156_vm4, %v3959_v10, %v4139_v52  ;;  %v4136_v10 = vrot.slane %v3720_v43, 6 }
 0x242   : > { %v2878_v58 = vpop.f32.mrf.mxu0  ;;  %v2970_v42 = vpop.f32.mrf.mxu1  ;;  %v4294_v44 = vsel %vm4156_vm4, %v3958_v20, %v4137_v15  ;;  %v3974_v20 = vrot.slane %v3960_v60, %v11375_v40  ;;  %v4138_v15 = vrot.slane %v3722_v1, 6 }
 0x243   : > { %v4291_v47 = vsel %vm4156_vm4, %v3950_v62, %v4136_v10 }
 0x244   : > { %v2880_v54 = vpop.f32.mrf.mxu0  ;;  %v2972_v17 = vpop.f32.mrf.mxu1  ;;  %v4297_v60 = vsel %vm4156_vm4, %v3957_v48, %v4138_v15 }
 0x245   : > { %9812 = vmatmul.mubr.msk.bf16.gmra.mxu0 %vm4387_vm6, %v11589_v56  ;;  %9815 = vmatmul.mubr.msk.bf16.gmra.mxu1 %vm4387_vm6, %v11589_v56  ;;  %v11959_v52 = vcombine.low %v2972_v17, %v2972_v17  ;;  %v11975_v26 = vcombine.low %v2878_v58, %v2880_v54  ;;  %v3577_v58 = vld [vmem:[%s10534_s26 + $0x68] sm:$0xff] }
 0x246   : > { %5509 = vmatprep.mubr.bf16.mxu0 %v13720_v12  ;;  %5562 = vmatprep.mubr.bf16.mxu1 %v13720_v12  ;;  %v3977_v15 = vcombine.high %v3577_v58, %v3577_v58 }
 0x247   : > { %13730 = vst [vmem:[#allocation72_spill] sm:$0xff] %v11959_v52  ;;  %v3727_v39 = vpack.c.bf16 %v11959_v52, %v11959_v52  ;;  %13731 = vst [vmem:[#allocation73_spill] sm:$0xff] %v11975_v26  ;;  %v4483_v52 = vsel %vm4394_vm5, %v4291_v47, 0 }
 0x249   : > { %v4143_v18 = vrot.slane %v3727_v39, 6  ;;  %v3984_v39 = vrot.slane %v3577_v58, %v11375_v40 }
 0x24d   : > { %9817 = vmatmul.mubr.msk.bf16.vlgmr.msra.gmra.mxu0 %vm4387_vm6, %v11546_v9  ;;  %9820 = vmatmul.mubr.msk.bf16.vlgmr.msra.gmra.mxu1 %vm4387_vm6, %v11546_v9 }
 0x24e   : > { %5598 = vmatpush1.bf16.msra.mxu0 %v4475_v45  ;;  %5651 = vmatpush1.bf16.msra.mxu1 %v4479_v51  ;;  %v11957_v45 = vcombine.low %v2880_v54, %v2880_v54  ;;  %v3975_v51 = vcombine.high %v3967_v19, %v3967_v19 }
 0x24f   : > { %9828 = vmatprep.subr.msk.bf16.mxu0 %vm4394_vm5, %v4294_v44  ;;  %9831 = vmatprep.subr.msk.bf16.mxu1 %vm4394_vm5, %v4300_v21  ;;  %v3976_v44 = vcombine.high %v3974_v20, %v3974_v20 }
 0x250   : > { %5519 = vmatprep.mubr.bf16.mxu0 %v13720_v12  ;;  %5572 = vmatprep.mubr.bf16.mxu1 %v13720_v12  ;;  %13729 = vst [vmem:[#allocation71_spill] sm:$0xff] %v11957_v45  ;;  %v3725_v36 = vpack.c.bf16 %v11957_v45, %v11957_v45  ;;  %v11983_v45 = vcombine.low %v2970_v42, %v2972_v17 }
 0x251   : > { %v4312_v48 = vsel %vm4156_vm4, %v3976_v44, %v4143_v18  ;;  %v3724_v42 = vpack.c.bf16 %v11975_v26, %v11975_v26 }
 0x252   : > { %v4141_v21 = vrot.slane %v3725_v36, 6  ;;  %v4487_v36 = vsel %vm4394_vm5, %v4297_v60, 0  ;;  %13732 = vst [vmem:[#allocation74_spill] sm:$0xff] %v11983_v45  ;;  %v3726_v17 = vpack.c.bf16 %v11983_v45, %v11983_v45 }
 0x253   : > { %v4140_v44 = vrot.slane %v3724_v42, 6 }
 0x254   : > { %v3062_v43 = vpop.f32.mrf.mxu0  ;;  %v3154_v1 = vpop.f32.mrf.mxu1  ;;  %v4306_v62 = vsel %vm4156_vm4, %v3975_v51, %v4141_v21  ;;  %v3991_v51 = vrot.slane %v3977_v15, %v11375_v40  ;;  %v4142_v21 = vrot.slane %v3726_v17, 6 }
 0x255   : > { %9818 = vmatmul.mubr.msk.bf16.gmra.mxu0 %vm4387_vm6, %v11589_v56  ;;  %9821 = vmatmul.mubr.msk.bf16.gmra.mxu1 %vm4387_vm6, %v11589_v56  ;;  %v4303_v58 = vsel %vm4156_vm4, %v3967_v19, %v4140_v44 }
 0x256   : > { %5615 = vmatprep.mubr.bf16.mxu0 %v13720_v12  ;;  %5668 = vmatprep.mubr.bf16.mxu1 %v13720_v12  ;;  %v3064_v54 = vpop.f32.mrf.mxu0  ;;  %v3156_v10 = vpop.f32.mrf.mxu1  ;;  %v4309_v15 = vsel %vm4156_vm4, %v3974_v20, %v4142_v21  ;;  %v3578_v21 = vld [vmem:[%s10534_s26 + $0x70] sm:$0xff] }
 0x257   : > { %v11998_v18 = vcombine.low %v3156_v10, %v3156_v10  ;;  %v12022_v44 = vcombine.low %v3062_v43, %v3064_v54  ;;  %v12024_v20 = vcombine.low %v3154_v1, %v3156_v10 }
 0x259   : > { %13734 = vst [vmem:[#allocation76_spill] sm:$0xff] %v11998_v18  ;;  %v3731_v60 = vpack.c.bf16 %v11998_v18, %v11998_v18  ;;  %v4491_v18 = vsel %vm4394_vm5, %v4303_v58, 0  ;;  %13735 = vst [vmem:[#allocation77_spill] sm:$0xff] %v12022_v44 }
 0x25a   : > { %13736 = vst [vmem:[#allocation78_spill] sm:$0xff] %v12024_v20 }
 0x25b   : > { %v4147_v45 = vrot.slane %v3731_v60, 6 }
 0x25d   : > { %9823 = vmatmul.mubr.msk.bf16.vlgmr.msra.gmra.mxu0 %vm4387_vm6, %v11546_v9  ;;  %9826 = vmatmul.mubr.msk.bf16.vlgmr.msra.gmra.mxu1 %vm4387_vm6, %v11546_v9 }
 0x25e   : > { %5704 = vmatpush1.bf16.msra.mxu0 %v4483_v52  ;;  %5757 = vmatpush1.bf16.msra.mxu1 %v4487_v36  ;;  %v11996_v52 = vcombine.low %v3064_v54, %v3064_v54  ;;  %v3992_v36 = vcombine.high %v3984_v39, %v3984_v39  ;;  %v12046_v54 = vrot.slane %v3578_v21, %v11375_v40 }
 0x25f   : > { %9834 = vmatprep.subr.msk.bf16.mxu0 %vm4394_vm5, %v4306_v62  ;;  %9837 = vmatprep.subr.msk.bf16.mxu1 %vm4394_vm5, %v4312_v48  ;;  %v3993_v62 = vcombine.high %v3991_v51, %v3991_v51 }
 0x260   : > { %5625 = vmatprep.mubr.bf16.mxu0 %v13720_v12  ;;  %5678 = vmatprep.mubr.bf16.mxu1 %v13720_v12  ;;  %13733 = vst [vmem:[#allocation75_spill] sm:$0xff] %v11996_v52  ;;  %v3729_v47 = vpack.c.bf16 %v11996_v52, %v11996_v52  ;;  %v4495_v52 = vsel %vm4394_vm5, %v4309_v15, 0 }
 0x261   : > { %v4324_v19 = vsel %vm4156_vm4, %v3993_v62, %v4147_v45  ;;  %v3730_v45 = vpack.c.bf16 %v12024_v20, %v12024_v20 }
 0x262   : > { %v4145_v48 = vrot.slane %v3729_v47, 6 }
 0x263   : > { %v4146_v62 = vrot.slane %v3730_v45, 6 }
 0x264   : > { %v4318_v47 = vsel %vm4156_vm4, %v3992_v36, %v4145_v48 }
 0x265   : > { %9824 = vmatmul.mubr.msk.bf16.gmra.mxu0 %vm4387_vm6, %v11589_v56  ;;  %9827 = vmatmul.mubr.msk.bf16.gmra.mxu1 %vm4387_vm6, %v11589_v56 }
 0x266   : > { %5721 = vmatprep.mubr.bf16.mxu0 %v13720_v12  ;;  %5774 = vmatprep.mubr.bf16.mxu1 %v13720_v12  ;;  %v3246_v42 = vpop.f32.mrf.mxu0  ;;  %v3338_v17 = vpop.f32.mrf.mxu1 }
 0x268   : > { %v3248_v60 = vpop.f32.mrf.mxu0  ;;  %v3340_v26 = vpop.f32.mrf.mxu1 }
 0x269   : > { %v12035_v43 = vcombine.low %v3248_v60, %v3248_v60  ;;  %v12037_v1 = vcombine.low %v3340_v26, %v3340_v26  ;;  %v12075_v55 = vcombine.low %v3246_v42, %v3248_v60 }
 0x26b   : > { %13737 = vst [vmem:[#allocation79_spill] sm:$0xff] %v12035_v43  ;;  %13738 = vst [vmem:[#allocation80_spill] sm:$0xff] %v12037_v1  ;;  %v3733_v48 = vpack.c.bf16 %v12035_v43, %v12035_v43  ;;  %v3735_v58 = vpack.c.bf16 %v12037_v1, %v12037_v1  ;;  %v4321_v1 = vsel %vm4156_vm4, %v3991_v51, %v4146_v62 }
 0x26c   : > { %13739 = vst [vmem:[#allocation81_spill] sm:$0xff] %v12075_v55  ;;  %v4503_v51 = vsel %vm4394_vm5, %v4321_v1, 0 }
 0x26d   : > { %9829 = vmatmul.mubr.msk.bf16.vlgmr.msra.gmra.mxu0 %vm4387_vm6, %v11546_v9  ;;  %9832 = vmatmul.mubr.msk.bf16.vlgmr.msra.gmra.mxu1 %vm4387_vm6, %v11546_v9  ;;  %v4151_v45 = vrot.slane %v3735_v58, 6 }
 0x26e   : > { %5810 = vmatpush1.bf16.msra.mxu0 %v4491_v18  ;;  %5863 = vmatpush1.bf16.msra.mxu1 %v4495_v52  ;;  %v3994_v52 = vcombine.high %v3578_v21, %v3578_v21  ;;  %v3728_v18 = vpack.c.bf16 %v12022_v44, %v12022_v44  ;;  %v4009_v21 = vcombine.high %v12046_v54, %v12046_v54 }
 0x26f   : > { %9840 = vmatprep.subr.msk.bf16.mxu0 %vm4394_vm5, %v4318_v47  ;;  %9843 = vmatprep.subr.msk.bf16.mxu1 %vm4394_vm5, %v4324_v19 }
 0x270   : > { %5731 = vmatprep.mubr.bf16.mxu0 %v13720_v12  ;;  %5784 = vmatprep.mubr.bf16.mxu1 %v13720_v12  ;;  %v12049_v10 = vrot.slane %v3994_v52, %v11375_v40  ;;  %v4144_v36 = vrot.slane %v3728_v18, 6  ;;  %v4149_v18 = vrot.slane %v3733_v48, 6  ;;  %v3579_v48 = vld [vmem:[%s10534_s26 + $0x78] sm:$0xff] }
 0x272   : > { %v4010_v52 = vcombine.high %v12049_v10, %v12049_v10  ;;  %v4315_v43 = vsel %vm4156_vm4, %v3984_v39, %v4144_v36  ;;  %v12086_v36 = vcombine.low %v3338_v17, %v3340_v26  ;;  %v3732_v26 = vpack.c.bf16 %v12075_v55, %v12075_v55 }
 0x273   : > { %v4499_v39 = vsel %vm4394_vm5, %v4315_v43, 0 }
 0x274   : > { %13740 = vst [vmem:[#allocation82_spill] sm:$0xff] %v12086_v36  ;;  %v4336_v42 = vsel %vm4156_vm4, %v4010_v52, %v4151_v45  ;;  %v3734_v58 = vpack.c.bf16 %v12086_v36, %v12086_v36  ;;  %v4011_v45 = vcombine.high %v3579_v48, %v3579_v48  ;;  %v12131_v36 = vrot.slane %v3579_v48, %v11375_v40 }
 0x275   : > { %9830 = vmatmul.mubr.msk.bf16.gmra.mxu0 %vm4387_vm6, %v11589_v56  ;;  %9833 = vmatmul.mubr.msk.bf16.gmra.mxu1 %vm4387_vm6, %v11589_v56 }
 0x276   : > { %5827 = vmatprep.mubr.bf16.mxu0 %v13720_v12  ;;  %5880 = vmatprep.mubr.bf16.mxu1 %v13720_v12  ;;  %v4150_v55 = vrot.slane %v3734_v58, 6  ;;  %v4026_v48 = vcombine.high %v12131_v36, %v12131_v36 }
 0x278   : > { %v12055_v15 = vpop.f32.mrf.mxu0  ;;  %v12057_v47 = vpop.f32.mrf.mxu1  ;;  %v4333_v2 = vsel %vm4156_vm4, %v12049_v10, %v4150_v55 }
 0x279   : > { %v4511_v55 = vsel %vm4394_vm5, %v4333_v2, 0 }
 0x27a   : > { %v12059_v19 = vpop.f32.mrf.mxu0  ;;  %v12061_v20 = vpop.f32.mrf.mxu1 }
 0x27b   : > { %v12107_v17 = vcombine.low %v12059_v19, %v12059_v19 }
 0x27d   : > { %v12069_v44 = vpop.f32.mrf.mxu0  ;;  %v12071_v16 = vpop.f32.mrf.mxu1  ;;  %9835 = vmatmul.mubr.msk.bf16.vlgmr.msra.gmra.mxu0 %vm4387_vm6, %v11546_v9  ;;  %9838 = vmatmul.mubr.msk.bf16.vlgmr.msra.gmra.mxu1 %vm4387_vm6, %v12080_v7  ;;  %v4330_v9 = vsel %vm4156_vm4, %v4009_v21, %v4149_v18  ;;  %13741 = vst [vmem:[#allocation83_spill] sm:$0xff] %v12107_v17  ;;  %v12113_v21 = vcombine.low %v12061_v20, %v12061_v20 }
 0x27e   : > { %5916 = vmatpush1.bf16.msra.mxu0 %v4499_v39  ;;  %5969 = vmatpush1.bf16.msra.mxu1 %v4503_v51 }
 0x27f   : > { %v12090_v60 = vpop.f32.mrf.mxu0  ;;  %v12092_v62 = vpop.f32.mrf.mxu1  ;;  %9846 = vmatprep.subr.msk.bf16.mxu0 %vm4394_vm5, %v4330_v9  ;;  %9849 = vmatprep.subr.msk.bf16.mxu1 %vm4394_vm5, %v4336_v42  ;;  %13742 = vst [vmem:[#allocation84_spill] sm:$0xff] %v12113_v21  ;;  %v4148_v9 = vrot.slane %v3732_v26, 6  ;;  %v3737_v42 = vpack.c.bf16 %v12107_v17, %v12107_v17  ;;  %v3739_v5 = vpack.c.bf16 %v12113_v21, %v12113_v21 }
 0x280   : > { %5837 = vmatprep.mubr.bf16.mxu0 %v13720_v12  ;;  %5890 = vmatprep.mubr.bf16.mxu1 %v13720_v12  ;;  %v4025_v26 = vrot.slane %v4011_v45, %v11375_v40  ;;  %v4613_v6 = vadd.f32 %v12092_v62, %v12221_v4 }
 0x281   : > { %v12097_v43 = vpop.f32.mrf.mxu0  ;;  %v12099_v1 = vpop.f32.mrf.mxu1  ;;  %v4327_v24 = vsel %vm4156_vm4, %v12046_v54, %v4148_v9  ;;  %v4155_v58 = vrot.slane %v3739_v5, 6  ;;  %v12156_v54 = vcombine.low %v12055_v15, %v12059_v19  ;;  %v12166_v9 = vcombine.low %v12057_v47, %v12061_v20 }
 0x282   : > { %v4027_v8 = vcombine.high %v4025_v26, %v4025_v26  ;;  %v4507_v45 = vsel %vm4394_vm5, %v4327_v24, 0  ;;  %v12158_v5 = vpop.permute.xlu0 %4369 }
 0x283   : > { %v12115_v52 = vpop.f32.mrf.mxu0  ;;  %v12117_v18 = vpop.f32.mrf.mxu1  ;;  %13743 = vst [vmem:[#allocation85_spill] sm:$0xff] %v12156_v54  ;;  %13744 = vst [vmem:[#allocation86_spill] sm:$0xff] %v12166_v9  ;;  %v3736_v20 = vpack.c.bf16 %v12156_v54, %v12156_v54 }
 0x284   : > { %v4348_v24 = vsel %vm4156_vm4, %v4027_v8, %v4155_v58  ;;  %v3738_v8 = vpack.c.bf16 %v12166_v9, %v12166_v9 }
 0x285   : > { %v12119_v39 = vpop.f32.mrf.mxu0  ;;  %v12121_v51 = vpop.f32.mrf.mxu1  ;;  %9836 = vmatmul.mubr.msk.bf16.gmra.mxu0 %vm4387_vm6, %v11589_v56  ;;  %9839 = vmatmul.mubr.msk.bf16.gmra.mxu1 %vm4387_vm6, %v11589_v56  ;;  %v4153_v56 = vrot.slane %v3737_v42, 6 }
 0x286   : > { %5933 = vmatprep.mubr.bf16.mxu0 %v13720_v12  ;;  %5986 = vmatprep.mubr.bf16.mxu1 %v13720_v12 }
 0x287   : > { %v4569_v38 = vpop.f32.mrf.mxu0  ;;  %v4622_v33 = vpop.f32.mrf.mxu1  ;;  %v4342_v10 = vsel %vm4156_vm4, %v4026_v48, %v4153_v56 }
 0x288   : > { %v12189_v48 = vpop.permute.xlu0 %4374  ;;  %v4570_v54 = vadd.f32 %v4569_v38, %v12158_v5  ;;  %v4623_v34 = vadd.f32 %v4622_v33, %v12158_v5 }
 0x289   : > { %v12137_v53 = vpop.f32.mrf.mxu0  ;;  %v12139_v17 = vpop.f32.mrf.mxu1 }
 0x28a   : > { %v6350_v46 = vmax.f32 %v4623_v34, 0.0 }
 0x28b   : > { %v4573_v61 = vpop.f32.mrf.mxu0  ;;  %v4626_v21 = vpop.f32.mrf.mxu1 }
 0x28c   : > { %v4574_v58 = vadd.f32 %v4573_v61, %v12189_v48  ;;  %v4627_v9 = vadd.f32 %v4626_v21, %v12189_v48  ;;  %v4154_v61 = vrot.slane %v3738_v8, 6  ;;  %v6348_v8 = vmax.f32 %v4570_v54, 0.0 }
 0x28d   : > { %v12147_v37 = vpop.f32.mrf.mxu0  ;;  %v12149_v40 = vpop.f32.mrf.mxu1  ;;  %9841 = vmatmul.mubr.msk.bf16.vlgmr.msra.gmra.mxu0 %vm4387_vm6, %v12080_v7  ;;  %9844 = vmatmul.mubr.msk.bf16.vlgmr.msra.gmra.mxu1 %vm4387_vm6, %v12080_v7 }
 0x28e   : > { %6022 = vmatpush1.bf16.msra.mxu0 %v4507_v45  ;;  %6075 = vmatpush1.bf16.msra.mxu1 %v4511_v55  ;;  %v6412_v22 = vmax.f32 %v4574_v58, 0.0  ;;  %v6414_v13 = vmax.f32 %v4627_v9, 0.0  ;;  %v4345_v41 = vsel %vm4156_vm4, %v4025_v26, %v4154_v61 }
 0x28f   : > { %9852 = vmatprep.subr.msk.bf16.mxu0 %vm4394_vm5, %v4342_v10  ;;  %v12170_v15 = vpop.f32.mrf.mxu0  ;;  %v12172_v19 = vpop.f32.mrf.mxu1  ;;  %9855 = vmatprep.subr.msk.bf16.mxu1 %vm4394_vm5, %v4348_v24  ;;  %v12199_v10 = vld [vmem:[%s13577_s5 + $0x8] sm:$0xff]   ;;  %v4152_v24 = vrot.slane %v3736_v20, 6 }
 0x290   : > { %5943 = vmatprep.mubr.bf16.mxu0 %v13720_v12  ;;  %5996 = vmatprep.mubr.bf16.mxu1 %v13720_v12  ;;  %v6541_v58 = vpack.c.bf16 %v6412_v22, %v6348_v8  ;;  %v6543_v26 = vpack.c.bf16 %v6414_v13, %v6350_v46  ;;  %v12243_v22 = vpop.permute.xlu1 %4364  ;;  %v4572_v13 = vadd.f32 %v12137_v53, %v12189_v48 }
 0x291   : > { %v12176_v2 = vpop.f32.mrf.mxu0  ;;  %v12178_v42 = vpop.f32.mrf.mxu1  ;;  %v4339_v11 = vsel %vm4156_vm4, %v12131_v36, %v4152_v24  ;;  %v4519_v36 = vsel %vm4394_vm5, %v4345_v41, 0  ;;  %v4562_v41 = vadd.f32 %v12097_v43, %v12243_v22  ;;  %v4564_v8 = vadd.f32 %v12115_v52, %v12243_v22 }
 0x292   : > { %v4515_v9 = vsel %vm4394_vm5, %v4339_v11, 0  ;;  %v4617_v53 = vadd.f32 %v12117_v18, %v12243_v22  ;;  %v4568_v43 = vadd.f32 %v12119_v39, %v12158_v5  ;;  %v4560_v52 = vadd.f32 %v12090_v60, %v12221_v4 }
 0x293   : > { %v12185_v47 = vpop.f32.mrf.mxu0  ;;  %v12187_v56 = vpop.f32.mrf.mxu1  ;;  %v4611_v39 = vadd.f32 %v12071_v16, %v12221_v4  ;;  %v6411_v32 = vmax.f32 %v4572_v13, 0.0  ;;  %v6284_v0 = vmax.f32 %v4564_v8, 0.0  ;;  %v6222_v8 = vmax.f32 %v4613_v6, 0.0 }
 0x294   : > { %v6286_v27 = vmax.f32 %v4617_v53, 0.0  ;;  %v6347_v25 = vmax.f32 %v4568_v43, 0.0  ;;  %v6220_v16 = vmax.f32 %v4560_v52, 0.0 }
 0x295   : > { %v12192_v45 = vpop.f32.mrf.mxu0  ;;  %v12194_v55 = vpop.f32.mrf.mxu1  ;;  %9842 = vmatmul.mubr.msk.bf16.gmra.mxu0 %vm4387_vm6, %v12199_v10  ;;  %9845 = vmatmul.mubr.msk.bf16.gmra.mxu1 %vm4387_vm6, %v12199_v10 }
 0x296   : > { %6039 = vmatprep.mubr.bf16.mxu0 %v13720_v12  ;;  %6092 = vmatprep.mubr.bf16.mxu1 %v13720_v12 }
 0x297   : > { %v12208_v50 = vpop.f32.mrf.mxu0  ;;  %v12210_v49 = vpop.f32.mrf.mxu1 }
 0x298   : > { %v4676_v62 = vadd.f32 %v12208_v50, %v12158_v5  ;;  %v6477_v50 = vpack.c.bf16 %v6284_v0, %v6220_v16 }
 0x299   : > { %v12214_v20 = vpop.f32.mrf.mxu0  ;;  %v12216_v21 = vpop.f32.mrf.mxu1 }
 0x29a   : > { %v4678_v0 = vadd.f32 %v12214_v20, %v12189_v48  ;;  %v4674_v20 = vadd.f32 %v12192_v45, %v12158_v5 }
 0x29b   : > { %v4679_v63 = vpop.f32.mrf.mxu0  ;;  %v4732_v38 = vpop.f32.mrf.mxu1 }
 0x29c   : > { %v4680_v60 = vadd.f32 %v4679_v63, %v12189_v48  ;;  %v4733_v14 = vadd.f32 %v4732_v38, %v12189_v48  ;;  %v6221_v63 = vmax.f32 %v4611_v39, 0.0  ;;  %v4668_v38 = vadd.f32 %v12176_v2, %v12243_v22 }
 0x29d   : > { %v12223_v3 = vpop.f32.mrf.mxu0  ;;  %v12225_v33 = vpop.f32.mrf.mxu1  ;;  %9847 = vmatmul.mubr.msk.bf16.vlgmr.msra.gmra.mxu0 %vm4387_vm6, %v12080_v7  ;;  %9850 = vmatmul.mubr.msk.bf16.vlgmr.msra.gmra.mxu1 %vm4387_vm6, %v12080_v7 }
 0x29e   : > { %6128 = vmatpush1.bf16.msra.mxu0 %v4515_v9  ;;  %6181 = vmatpush1.bf16.msra.mxu1 %v4519_v36  ;;  %v4625_v9 = vadd.f32 %v12139_v17, %v12189_v48  ;;  %v4558_v17 = vadd.f32 %v12069_v44, %v12221_v4  ;;  %v6283_v44 = vmax.f32 %v4562_v41, 0.0  ;;  %v6416_v43 = vmax.f32 %v4680_v60, 0.0 }
 0x29f   : > { %6626 = vmatprep.subr.bf16.mxu0 %v6541_v58  ;;  %v12233_v34 = vpop.f32.mrf.mxu0  ;;  %v12235_v54 = vpop.f32.mrf.mxu1  ;;  %6667 = vmatprep.subr.bf16.mxu1 %v6543_v26  ;;  %v4615_v26 = vadd.f32 %v12099_v1, %v12243_v22  ;;  %v4621_v1 = vadd.f32 %v12121_v51, %v12158_v5  ;;  %v6418_v6 = vmax.f32 %v4733_v14, 0.0  ;;  %v6287_v2 = vmax.f32 %v4668_v38, 0.0 }
 0x2a0   : > { %6049 = vmatprep.mubr.bf16.mxu0 %v13720_v12  ;;  %6102 = vmatprep.mubr.bf16.mxu1 %v13720_v12  ;;  %v6413_v57 = vmax.f32 %v4625_v9, 0.0  ;;  %v6219_v31 = vmax.f32 %v4558_v17, 0.0  ;;  %v6540_v9 = vpack.c.bf16 %v6411_v32, %v6347_v25  ;;  %v4664_v25 = vadd.f32 %v12147_v37, %v12221_v4 }
 0x2a1   : > { %v12238_v24 = vpop.f32.mrf.mxu0  ;;  %v12240_v11 = vpop.f32.mrf.mxu1  ;;  %v6285_v29 = vmax.f32 %v4615_v26, 0.0  ;;  %v6349_v59 = vmax.f32 %v4621_v1, 0.0  ;;  %v4729_v26 = vadd.f32 %v12210_v49, %v12158_v5  ;;  %v4721_v32 = vadd.f32 %v12178_v42, %v12243_v22 }
 0x2a2   : > { %v6476_v1 = vpack.c.bf16 %v6283_v44, %v6219_v31  ;;  %v6352_v49 = vmax.f32 %v4676_v62, 0.0  ;;  %v4731_v37 = vadd.f32 %v12216_v21, %v12189_v48  ;;  %v4727_v21 = vadd.f32 %v12194_v55, %v12158_v5 }
 0x2a3   : > { %v12245_v61 = vpop.f32.mrf.mxu0  ;;  %v12247_v46 = vpop.f32.mrf.mxu1  ;;  %v6542_v53 = vpack.c.bf16 %v6413_v57, %v6349_v59  ;;  %v6478_v39 = vpack.c.bf16 %v6285_v29, %v6221_v63  ;;  %v6479_v59 = vpack.c.bf16 %v6286_v27, %v6222_v8  ;;  %v4717_v57 = vadd.f32 %v12149_v40, %v12221_v4 }
 0x2a4   : > { %v4670_v29 = vadd.f32 %v12185_v47, %v12243_v22  ;;  %v6354_v27 = vmax.f32 %v4729_v26, 0.0  ;;  %v12332_v40 = vadd.f32 %v12172_v19, %v12221_v4  ;;  %v6545_v44 = vpack.c.bf16 %v6416_v43, %v6352_v49 }
 0x2a5   : > { %v12257_v58 = vpop.f32.mrf.mxu0  ;;  %v12259_v36 = vpop.f32.mrf.mxu1  ;;  %9848 = vmatmul.mubr.msk.bf16.gmra.mxu0 %vm4387_vm6, %v12199_v10  ;;  %9851 = vmatmul.mubr.msk.bf16.gmra.mxu1 %vm4387_vm6, %v12199_v10  ;;  %v6223_v60 = vmax.f32 %v4664_v25, 0.0  ;;  %v6289_v16 = vmax.f32 %v4721_v32, 0.0  ;;  %v12345_v19 = vadd.f32 %v12187_v56, %v12243_v22  ;;  %v6417_v45 = vmax.f32 %v4731_v37, 0.0 }
 0x2a6   : > { %6145 = vmatprep.mubr.bf16.mxu0 %v13720_v12  ;;  %6198 = vmatprep.mubr.bf16.mxu1 %v13720_v12  ;;  %v6288_v8 = vmax.f32 %v4670_v29, 0.0  ;;  %v6225_v55 = vmax.f32 %v4717_v57, 0.0  ;;  %v4827_v57 = vadd.f32 %v12240_v11, %v12243_v22  ;;  %v4776_v32 = vadd.f32 %v12245_v61, %v12243_v22 }
 0x2a7   : > { %v12278_v23 = vpop.f32.mrf.mxu0  ;;  %v12280_v18 = vpop.f32.mrf.mxu1  ;;  %v12352_v38 = vpack.c.bf16 %v6287_v2, %v6223_v60  ;;  %v6290_v25 = vmax.f32 %v12345_v19, 0.0  ;;  %v4829_v29 = vadd.f32 %v12247_v46, %v12243_v22  ;;  %v4772_v11 = vadd.f32 %v12233_v34, %v12221_v4  ;;  %v12398_v34 = vld [vmem:[%s13745_s21] sm:$0x3] }
 0x2a8   : > { %v4825_v46 = vadd.f32 %v12235_v54, %v12221_v4 }
 0x2a9   : > { %v12288_v30 = vpop.f32.mrf.mxu0  ;;  %v12290_v51 = vpop.f32.mrf.mxu1  ;;  %v6294_v54 = vmax.f32 %v4829_v29, 0.0 }
 0x2aa   : > { %v4784_v61 = vadd.f32 %v12288_v30, %v12189_v48  ;;  %v6293_v30 = vmax.f32 %v4827_v57, 0.0  ;;  %v4837_v19 = vadd.f32 %v12290_v51, %v12189_v48 }
 0x2ab   : > { %v12295_v13 = vpop.f32.mrf.mxu0  ;;  %v12297_v41 = vpop.f32.mrf.mxu1 }
 0x2ac   : > { %v4786_v37 = vadd.f32 %v12295_v13, %v12189_v48  ;;  %v4780_v13 = vadd.f32 %v12257_v58, %v12158_v5 }
 0x2ad   : > { %v12303_v17 = vpop.f32.mrf.mxu0  ;;  %v12305_v52 = vpop.f32.mrf.mxu1  ;;  %9853 = vmatmul.mubr.msk.bf16.vlgmr.msra.gmra.mxu0 %vm4387_vm6, %v12080_v7  ;;  %9856 = vmatmul.mubr.msk.bf16.vlgmr.msra.gmra.mxu1 %vm4387_vm6, %v12080_v7  ;;  %v4666_v7 = vadd.f32 %v12170_v15, %v12221_v4  ;;  %v6547_v15 = vpack.c.bf16 %v6418_v6, %v6354_v27  ;;  %v4774_v6 = vadd.f32 %v12238_v24, %v12243_v22 }
 0x2ae   : > { %6627 = vmatpush1.bf16.msra.mxu0 %v6540_v9  ;;  %6668 = vmatpush1.bf16.msra.mxu1 %v6542_v53  ;;  %v6415_v9 = vmax.f32 %v4678_v0, 0.0  ;;  %v6226_v53 = vmax.f32 %v12332_v40, 0.0  ;;  %v4823_v0 = vadd.f32 %v12225_v33, %v12221_v4  ;;  %v4839_v33 = vadd.f32 %v12297_v41, %v12189_v48 }
 0x2af   : > { %6628 = vmatprep.subr.bf16.mxu0 %v6477_v50  ;;  %v12317_v31 = vpop.f32.mrf.mxu0  ;;  %v12319_v14 = vpop.f32.mrf.mxu1  ;;  %6669 = vmatprep.subr.bf16.mxu1 %v6479_v59  ;;  %v6224_v26 = vmax.f32 %v4666_v7, 0.0  ;;  %v6351_v50 = vmax.f32 %v4674_v20, 0.0  ;;  %v12367_v59 = vpack.c.bf16 %v6289_v16, %v6225_v55  ;;  %v6292_v20 = vmax.f32 %v4776_v32, 0.0 }
 0x2b0   : > { %6155 = vmatprep.mubr.bf16.mxu0 %v13720_v12  ;;  %6208 = vmatprep.mubr.bf16.mxu1 %v13720_v12  ;;  %v4833_v16 = vadd.f32 %v12259_v36, %v12158_v5  ;;  %v4835_v41 = vadd.f32 %v12280_v18, %v12158_v5  ;;  %v6420_v55 = vmax.f32 %v4786_v37, 0.0  ;;  %v6422_v36 = vmax.f32 %v4839_v33, 0.0 }
 0x2b1   : > { %v12334_v42 = vpop.f32.mrf.mxu0  ;;  %v12336_v47 = vpop.f32.mrf.mxu1  ;;  %v6544_v24 = vpack.c.bf16 %v6415_v9, %v6351_v50  ;;  %v6481_v27 = vpack.c.bf16 %v6288_v8, %v6224_v26  ;;  %v6229_v8 = vmax.f32 %v4823_v0, 0.0  ;;  %v6228_v9 = vmax.f32 %v4772_v11, 0.0 }
 0x2b2   : > { %6629 = vmatpush1.bf16.msra.mxu0 %v6476_v1  ;;  %6670 = vmatpush1.bf16.msra.mxu1 %v6478_v39  ;;  %v6353_v1 = vmax.f32 %v4727_v21, 0.0  ;;  %v4770_v39 = vadd.f32 %v12223_v3, %v12221_v4  ;;  %v4782_v21 = vadd.f32 %v12278_v23, %v12158_v5  ;;  %v6230_v23 = vmax.f32 %v4825_v46, 0.0 }
 0x2b3   : > { %6708 = vmatprep.subr.bf16.mxu0 %v6545_v44  ;;  %v12347_v62 = vpop.f32.mrf.mxu0  ;;  %v12349_v63 = vpop.f32.mrf.mxu1  ;;  %6749 = vmatprep.subr.bf16.mxu1 %v6547_v15  ;;  %v6291_v44 = vmax.f32 %v4774_v6, 0.0  ;;  %v6483_v18 = vpack.c.bf16 %v6290_v25, %v6226_v53  ;;  %v12420_v51 = vpack.c.bf16 %v6293_v30, %v6229_v8  ;;  %v6485_v32 = vpack.c.bf16 %v6292_v20, %v6228_v9 }
 0x2b4   : > { %v6227_v2 = vmax.f32 %v4770_v39, 0.0  ;;  %v6356_v39 = vmax.f32 %v4782_v21, 0.0  ;;  %v6357_v29 = vmax.f32 %v4833_v16, 0.0  ;;  %v6358_v0 = vmax.f32 %v4835_v41, 0.0 }
 0x2b5   : > { %v12354_v43 = vpop.f32.mrf.mxu0  ;;  %v12356_v56 = vpop.f32.mrf.mxu1  ;;  %9854 = vmatmul.mubr.msk.bf16.gmra.mxu0 %vm4387_vm6, %v12199_v10  ;;  %9857 = vmatmul.mubr.msk.bf16.gmra.mxu1 %vm4387_vm6, %v12199_v10  ;;  %v6546_v10 = vpack.c.bf16 %v6417_v45, %v6353_v1  ;;  %v6419_v45 = vmax.f32 %v4784_v61, 0.0  ;;  %v6355_v1 = vmax.f32 %v4780_v13, 0.0  ;;  %v6421_v11 = vmax.f32 %v4837_v19, 0.0 }
 0x2b6   : > { %6646 = vmatprep.mubr.bf16.mxu0 %v13720_v12  ;;  %6687 = vmatprep.mubr.bf16.mxu1 %v13720_v12  ;;  %v12416_v50 = vpack.c.bf16 %v6291_v44, %v6227_v2  ;;  %v6487_v61 = vpack.c.bf16 %v6294_v54, %v6230_v23  ;;  %v4880_v53 = vadd.f32 %v12334_v42, %v12243_v22 }
 0x2b7   : > { %v12374_v49 = vpop.f32.mrf.mxu0  ;;  %v12376_v3 = vpop.f32.mrf.mxu1  ;;  %v6549_v37 = vpack.c.bf16 %v6420_v55, %v6356_v39  ;;  %v4876_v2 = vadd.f32 %v12303_v17, %v12221_v4  ;;  %v4882_v46 = vadd.f32 %v12347_v62, %v12243_v22  ;;  %v6551_v42 = vpack.c.bf16 %v6422_v36, %v6358_v0 }
 0x2b8   : > { %v4935_v33 = vadd.f32 %v12349_v63, %v12243_v22  ;;  %v4888_v30 = vadd.f32 %v12374_v49, %v12158_v5  ;;  %v6550_v21 = vpack.c.bf16 %v6421_v11, %v6357_v29  ;;  %v4878_v62 = vadd.f32 %v12317_v31, %v12221_v4 }
 0x2b9   : > { %v4889_v7 = vpop.f32.mrf.mxu0  ;;  %v12389_v40 = vpop.f32.mrf.mxu1  ;;  %v4931_v49 = vadd.f32 %v12319_v14, %v12221_v4  ;;  %v6231_v31 = vmax.f32 %v4876_v2, 0.0 }
 0x2ba   : > { %v4890_v20 = vadd.f32 %v4889_v7, %v12189_v48  ;;  %v4943_v63 = vadd.f32 %v12389_v40, %v12189_v48  ;;  %v6295_v7 = vmax.f32 %v4880_v53, 0.0  ;;  %v4939_v40 = vadd.f32 %v12356_v56, %v12158_v5 }
 0x2bb   : > { %v4891_v15 = vpop.f32.mrf.mxu0  ;;  %v4944_v60 = vpop.f32.mrf.mxu1  ;;  %v6298_v16 = vmax.f32 %v4935_v33, 0.0  ;;  %v6360_v41 = vmax.f32 %v4888_v30, 0.0  ;;  %v6234_v56 = vmax.f32 %v4931_v49, 0.0 }
 0x2bc   : > { %v4892_v25 = vadd.f32 %v4891_v15, %v12189_v48  ;;  %v4945_v44 = vadd.f32 %v4944_v60, %v12189_v48  ;;  %v6423_v19 = vmax.f32 %v4890_v20, 0.0  ;;  %v6425_v23 = vmax.f32 %v4943_v63, 0.0 }
 0x2bd   : > { %v12410_v58 = vpop.f32.mrf.mxu0  ;;  %v12412_v26 = vpop.f32.mrf.mxu1  ;;  %9858 = vmatmul.mubr.msk.bf16.vlgmr.msra.gmra.mxu0 %vm6610_vm7, %v12398_v34  ;;  %9859 = vmatmul.mubr.msk.bf16.vlgmr.msra.gmra.mxu1 %vm6610_vm7, %v12398_v34  ;;  %v6488_v36 = vpack.c.bf16 %v6295_v7, %v6231_v31  ;;  %v6491_v2 = vpack.c.bf16 %v6298_v16, %v6234_v56 }
 0x2be   : > { %6709 = vmatpush1.bf16.msra.mxu0 %v6544_v24  ;;  %6750 = vmatpush1.bf16.msra.mxu1 %v6546_v10  ;;  %v6548_v24 = vpack.c.bf16 %v6419_v45, %v6355_v1  ;;  %v6424_v15 = vmax.f32 %v4892_v25, 0.0  ;;  %v6426_v14 = vmax.f32 %v4945_v44, 0.0  ;;  %v6232_v45 = vmax.f32 %v4878_v62, 0.0 }
 0x2bf   : > { %6710 = vmatprep.subr.bf16.mxu0 %v6481_v27  ;;  %v12422_v6 = vpop.f32.mrf.mxu0  ;;  %v12424_v57 = vpop.f32.mrf.mxu1  ;;  %6751 = vmatprep.subr.bf16.mxu1 %v6483_v18 }
 0x2c0   : > { %6728 = vmatprep.mubr.bf16.mxu0 %v13720_v12  ;;  %6769 = vmatprep.mubr.bf16.mxu1 %v13720_v12  ;;  %v6553_v29 = vpack.c.bf16 %v6424_v15, %v6360_v41 }
 0x2c1   : > { %v12430_v10 = vpop.f32.mrf.mxu0  ;;  %v12432_v27 = vpop.f32.mrf.mxu1 }
 0x2c2   : > { %6711 = vmatpush1.bf16.msra.mxu0 %v12352_v38  ;;  %6752 = vmatpush1.bf16.msra.mxu1 %v12367_v59  ;;  %v4941_v38 = vadd.f32 %v12376_v3, %v12158_v5  ;;  %v4886_v59 = vadd.f32 %v12354_v43, %v12158_v5  ;;  %v12463_v3 = vadd.f32 %v12336_v47, %v12243_v22  ;;  %v6296_v43 = vmax.f32 %v4882_v46, 0.0 }
 0x2c3   : > { %6790 = vmatprep.subr.bf16.mxu0 %v6549_v37  ;;  %v4987_v17 = vpop.f32.mrf.mxu0  ;;  %v5040_v13 = vpop.f32.mrf.mxu1  ;;  %6831 = vmatprep.subr.bf16.mxu1 %v6551_v42  ;;  %v4929_v47 = vadd.f32 %v12305_v52, %v12221_v4 }
 0x2c4   : > { %v6362_v55 = vmax.f32 %v4941_v38, 0.0  ;;  %v6359_v18 = vmax.f32 %v4886_v59, 0.0  ;;  %v6489_v37 = vpack.c.bf16 %v6296_v43, %v6232_v45  ;;  %v5041_v30 = vadd.f32 %v5040_v13, %v12243_v22 }
 0x2c5   : > { %v4991_v60 = vpop.f32.mrf.mxu0  ;;  %v12457_v54 = vpop.f32.mrf.mxu1  ;;  %9860 = vmatmul.mubr.msk.bf16.vlgmr.msra.gmra.mxu0 %vm6610_vm7, %v12398_v34  ;;  %9861 = vmatmul.mubr.msk.bf16.vlgmr.msra.gmra.mxu1 %vm6610_vm7, %v12398_v34  ;;  %v4984_v13 = vadd.f32 %v12422_v6, %v12221_v4  ;;  %v5037_v59 = vadd.f32 %v12424_v57, %v12221_v4  ;;  %v5039_v6 = vadd.f32 %v12432_v27, %v12243_v22 }
 0x2c6   : > { %6791 = vmatpush1.bf16.msra.mxu0 %v6548_v24  ;;  %6832 = vmatpush1.bf16.msra.mxu1 %v6550_v21  ;;  %v6555_v52 = vpack.c.bf16 %v6426_v14, %v6362_v55  ;;  %v6552_v24 = vpack.c.bf16 %v6423_v19, %v6359_v18  ;;  %v4992_v20 = vadd.f32 %v4991_v60, %v12158_v5 }
 0x2c7   : > { %6792 = vmatprep.subr.bf16.mxu0 %v6485_v32  ;;  %v4993_v8 = vpop.f32.mrf.mxu0  ;;  %v5046_v9 = vpop.f32.mrf.mxu1  ;;  %6833 = vmatprep.subr.bf16.mxu1 %v6487_v61  ;;  %v6361_v32 = vmax.f32 %v4939_v40, 0.0  ;;  %v6297_v61 = vmax.f32 %v12463_v3, 0.0  ;;  %v5045_v15 = vadd.f32 %v12457_v54, %v12158_v5  ;;  %v4986_v3 = vadd.f32 %v12430_v10, %v12243_v22 }
 0x2c8   : > { %6810 = vmatprep.mubr.bf16.mxu0 %v13720_v12  ;;  %6851 = vmatprep.mubr.bf16.mxu1 %v13720_v12  ;;  %v4994_v0 = vadd.f32 %v4993_v8, %v12158_v5  ;;  %v5047_v11 = vadd.f32 %v5046_v9, %v12158_v5  ;;  %v4982_v54 = vadd.f32 %v12410_v58, %v12221_v4  ;;  %v6302_v10 = vmax.f32 %v5041_v30, 0.0 }
 0x2c9   : > { %v4995_v1 = vpop.f32.mrf.mxu0  ;;  %v5048_v39 = vpop.f32.mrf.mxu1  ;;  %v6554_v46 = vpack.c.bf16 %v6425_v23, %v6361_v32  ;;  %v6363_v9 = vmax.f32 %v4992_v20, 0.0  ;;  %v6236_v45 = vmax.f32 %v4984_v13, 0.0  ;;  %v6365_v55 = vmax.f32 %v5045_v15, 0.0 }
 0x2ca   : > { %6793 = vmatpush1.bf16.msra.mxu0 %v12416_v50  ;;  %6834 = vmatpush1.bf16.msra.mxu1 %v12420_v51  ;;  %v4996_v44 = vadd.f32 %v4995_v1, %v12189_v48  ;;  %v4988_v50 = vadd.f32 %v4987_v17, %v12243_v22  ;;  %v5049_v51 = vadd.f32 %v5048_v39, %v12189_v48  ;;  %v6364_v38 = vmax.f32 %v4994_v0, 0.0 }
 0x2cb   : > { %6872 = vmatprep.subr.bf16.mxu0 %v6553_v29  ;;  %v4997_v53 = vpop.f32.mrf.mxu0  ;;  %v5050_v25 = vpop.f32.mrf.mxu1  ;;  %6913 = vmatprep.subr.bf16.mxu1 %v6555_v52  ;;  %v6366_v63 = vmax.f32 %v5047_v11, 0.0  ;;  %v6233_v17 = vmax.f32 %v4929_v47, 0.0  ;;  %v5035_v47 = vadd.f32 %v12412_v26, %v12221_v4  ;;  %v6238_v56 = vmax.f32 %v5037_v59, 0.0 }
 0x2cc   : > { %v4998_v42 = vadd.f32 %v4997_v53, %v12189_v48  ;;  %v5051_v33 = vadd.f32 %v5050_v25, %v12189_v48  ;;  %v6427_v40 = vmax.f32 %v4996_v44, 0.0  ;;  %v6300_v41 = vmax.f32 %v4988_v50, 0.0 }
 0x2cd   : > { %v12485_v21 = vpop.f32.mrf.mxu0  ;;  %v12487_v62 = vpop.f32.mrf.mxu1  ;;  %9862 = vmatmul.mubr.msk.bf16.vlgmr.msra.gmra.mxu0 %vm6610_vm7, %v12398_v34  ;;  %9863 = vmatmul.mubr.msk.bf16.vlgmr.msra.gmra.mxu1 %vm6610_vm7, %v12398_v34  ;;  %v6490_v16 = vpack.c.bf16 %v6297_v61, %v6233_v17  ;;  %v6429_v57 = vmax.f32 %v5049_v51, 0.0  ;;  %v6299_v18 = vmax.f32 %v4986_v3, 0.0  ;;  %v6301_v39 = vmax.f32 %v5039_v6, 0.0 }
 0x2ce   : > { %v6428_v49 = vmax.f32 %v4998_v42, 0.0  ;;  %v6430_v7 = vmax.f32 %v5051_v33, 0.0  ;;  %6873 = vmatpush1.bf16.msra.mxu0 %v6552_v24  ;;  %6914 = vmatpush1.bf16.msra.mxu1 %v6554_v46  ;;  %v6556_v1 = vpack.c.bf16 %v6427_v40, %v6363_v9  ;;  %v6235_v0 = vmax.f32 %v4982_v54, 0.0 }
 0x2cf   : > { %6874 = vmatprep.subr.bf16.mxu0 %v6489_v37  ;;  %v5089_v60 = vpop.f32.mrf.mxu0  ;;  %v5142_v31 = vpop.f32.mrf.mxu1  ;;  %6915 = vmatprep.subr.bf16.mxu1 %v6491_v2  ;;  %v6558_v29 = vpack.c.bf16 %v6429_v57, %v6365_v55  ;;  %v6495_v26 = vpack.c.bf16 %v6302_v10, %v6238_v56  ;;  %v6237_v11 = vmax.f32 %v5035_v47, 0.0  ;;  %v5088_v57 = vadd.f32 %v12485_v21, %v12221_v4 }
 0x2d0   : > { %v6557_v14 = vpack.c.bf16 %v6428_v49, %v6364_v38  ;;  %v6559_v43 = vpack.c.bf16 %v6430_v7, %v6366_v63  ;;  %6892 = vmatprep.mubr.bf16.mxu0 %v13720_v12  ;;  %6933 = vmatprep.mubr.bf16.mxu1 %v13720_v12  ;;  %v6492_v24 = vpack.c.bf16 %v6299_v18, %v6235_v0 }
 0x2d1   : > { %v5091_v19 = vpop.f32.mrf.mxu0  ;;  %v5144_v8 = vpop.f32.mrf.mxu1  ;;  %v6494_v53 = vpack.c.bf16 %v6301_v39, %v6237_v11  ;;  %v5090_v30 = vadd.f32 %v5089_v60, %v12221_v4  ;;  %v5143_v20 = vadd.f32 %v5142_v31, %v12221_v4 }
 0x2d2   : > { %6875 = vmatpush1.bf16.msra.mxu0 %v6488_v36  ;;  %6916 = vmatpush1.bf16.msra.mxu1 %v6490_v16  ;;  %v6493_v36 = vpack.c.bf16 %v6300_v41, %v6236_v45  ;;  %v5092_v7 = vadd.f32 %v5091_v19, %v12243_v22  ;;  %v5145_v17 = vadd.f32 %v5144_v8, %v12243_v22 }
 0x2d3   : > { %6954 = vmatprep.subr.bf16.mxu0 %v6557_v14  ;;  %v5093_v27 = vpop.f32.mrf.mxu0  ;;  %v5146_v23 = vpop.f32.mrf.mxu1  ;;  %6995 = vmatprep.subr.bf16.mxu1 %v6559_v43  ;;  %v5141_v19 = vadd.f32 %v12487_v62, %v12221_v4  ;;  %v6240_v47 = vmax.f32 %v5090_v30, 0.0  ;;  %v6242_v45 = vmax.f32 %v5143_v20, 0.0 }
 0x2d4   : > { %v5094_v25 = vadd.f32 %v5093_v27, %v12243_v22  ;;  %v5147_v37 = vadd.f32 %v5146_v23, %v12243_v22  ;;  %v6303_v23 = vmax.f32 %v5092_v7, 0.0  ;;  %v6305_v56 = vmax.f32 %v5145_v17, 0.0 }
 0x2d5   : > { %v5097_v32 = vpop.f32.mrf.mxu0  ;;  %v5150_v58 = vpop.f32.mrf.mxu1  ;;  %9864 = vmatmul.mubr.msk.bf16.vlgmr.msra.gmra.mxu0 %vm6610_vm7, %v12398_v34  ;;  %9865 = vmatmul.mubr.msk.bf16.vlgmr.msra.gmra.mxu1 %vm6610_vm7, %v12398_v34 }
 0x2d6   : > { %6955 = vmatpush1.bf16.msra.mxu0 %v6556_v1  ;;  %6996 = vmatpush1.bf16.msra.mxu1 %v6558_v29  ;;  %v5098_v51 = vadd.f32 %v5097_v32, %v12158_v5  ;;  %v5151_v38 = vadd.f32 %v5150_v58, %v12158_v5  ;;  %v6304_v15 = vmax.f32 %v5094_v25, 0.0  ;;  %v6306_v3 = vmax.f32 %v5147_v37, 0.0 }
 0x2d7   : > { %6956 = vmatprep.subr.bf16.mxu0 %v6493_v36  ;;  %v5099_v52 = vpop.f32.mrf.mxu0  ;;  %v5152_v61 = vpop.f32.mrf.mxu1  ;;  %6997 = vmatprep.subr.bf16.mxu1 %v6495_v26  ;;  %v6239_v32 = vmax.f32 %v5088_v57, 0.0  ;;  %v6241_v58 = vmax.f32 %v5141_v19, 0.0 }
 0x2d8   : > { %6974 = vmatprep.mubr.bf16.mxu0 %v13720_v12  ;;  %7015 = vmatprep.mubr.bf16.mxu1 %v13720_v12  ;;  %v5100_v44 = vadd.f32 %v5099_v52, %v12158_v5  ;;  %v5153_v42 = vadd.f32 %v5152_v61, %v12158_v5  ;;  %v6367_v8 = vmax.f32 %v5098_v51, 0.0  ;;  %v6369_v54 = vmax.f32 %v5151_v38, 0.0 }
 0x2d9   : > { %v5101_v2 = vpop.f32.mrf.mxu0  ;;  %v5154_v46 = vpop.f32.mrf.mxu1  ;;  %v6497_v21 = vpack.c.bf16 %v6304_v15, %v6240_v47  ;;  %v6499_v62 = vpack.c.bf16 %v6306_v3, %v6242_v45  ;;  %v6496_v26 = vpack.c.bf16 %v6303_v23, %v6239_v32  ;;  %v6498_v11 = vpack.c.bf16 %v6305_v56, %v6241_v58 }
 0x2da   : > { %v5102_v33 = vadd.f32 %v5101_v2, %v12189_v48  ;;  %v5155_v50 = vadd.f32 %v5154_v46, %v12189_v48  ;;  %6957 = vmatpush1.bf16.msra.mxu0 %v6492_v24  ;;  %6998 = vmatpush1.bf16.msra.mxu1 %v6494_v53  ;;  %v6368_v43 = vmax.f32 %v5100_v44, 0.0  ;;  %v6370_v16 = vmax.f32 %v5153_v42, 0.0 }
 0x2db   : > { %v5103_v63 = vpop.f32.mrf.mxu0  ;;  %v5156_v49 = vpop.f32.mrf.mxu1 }
 0x2dc   : > { %v5104_v13 = vadd.f32 %v5103_v63, %v12189_v48  ;;  %v5157_v59 = vadd.f32 %v5156_v49, %v12189_v48  ;;  %v6431_v60 = vmax.f32 %v5102_v33, 0.0  ;;  %v6433_v40 = vmax.f32 %v5155_v50, 0.0 }
 0x2dd   : > { %v12529_v31 = vpop.f32.mrf.mxu0  ;;  %v12531_v14 = vpop.f32.mrf.mxu1  ;;  %9866 = vmatmul.mubr.msk.bf16.vlgmr.msra.gmra.mxu0 %vm6610_vm7, %v12398_v34  ;;  %9867 = vmatmul.mubr.msk.bf16.vlgmr.msra.gmra.mxu1 %vm6610_vm7, %v12398_v34 }
 0x2de   : > { %v6432_v6 = vmax.f32 %v5104_v13, 0.0  ;;  %v6434_v41 = vmax.f32 %v5157_v59, 0.0  ;;  %7056 = vmatprep.mubr.bf16.mxu0 %v13720_v12  ;;  %7097 = vmatprep.mubr.bf16.mxu1 %v13720_v12  ;;  %v6560_v18 = vpack.c.bf16 %v6431_v60, %v6367_v8  ;;  %v6562_v1 = vpack.c.bf16 %v6433_v40, %v6369_v54 }
 0x2df   : > { %v5195_v10 = vpop.f32.mrf.mxu0  ;;  %v5248_v9 = vpop.f32.mrf.mxu1  ;;  %v5194_v8 = vadd.f32 %v12529_v31, %v12221_v4  ;;  %v5247_v54 = vadd.f32 %v12531_v14, %v12221_v4 }
 0x2e0   : > { %v6561_v55 = vpack.c.bf16 %v6432_v6, %v6368_v43  ;;  %v6563_v27 = vpack.c.bf16 %v6434_v41, %v6370_v16  ;;  %v5196_v25 = vadd.f32 %v5195_v10, %v12221_v4  ;;  %v5249_v20 = vadd.f32 %v5248_v9, %v12221_v4 }
 0x2e1   : > { %v5197_v39 = vpop.f32.mrf.mxu0  ;;  %v5250_v29 = vpop.f32.mrf.mxu1  ;;  %v6243_v58 = vmax.f32 %v5194_v8, 0.0  ;;  %v6245_v14 = vmax.f32 %v5247_v54, 0.0 }
 0x2e2   : > { %7036 = vmatprep.subr.bf16.mxu0 %v6561_v55  ;;  %7077 = vmatprep.subr.bf16.mxu1 %v6563_v27  ;;  %v5198_v7 = vadd.f32 %v5197_v39, %v12243_v22  ;;  %v5251_v17 = vadd.f32 %v5250_v29, %v12243_v22  ;;  %v6244_v55 = vmax.f32 %v5196_v25, 0.0  ;;  %v6246_v27 = vmax.f32 %v5249_v20, 0.0 }
 0x2e3   : > { %v5199_v36 = vpop.f32.mrf.mxu0  ;;  %v5252_v0 = vpop.f32.mrf.mxu1  ;;  %7037 = vmatpush1.bf16.msra.mxu0 %v6560_v18  ;;  %7078 = vmatpush1.bf16.msra.mxu1 %v6562_v1 }
 0x2e4   : > { %7038 = vmatprep.subr.bf16.mxu0 %v6497_v21  ;;  %7079 = vmatprep.subr.bf16.mxu1 %v6499_v62  ;;  %v5200_v37 = vadd.f32 %v5199_v36, %v12243_v22  ;;  %v5253_v2 = vadd.f32 %v5252_v0, %v12243_v22  ;;  %v6307_v18 = vmax.f32 %v5198_v7, 0.0  ;;  %v6309_v1 = vmax.f32 %v5251_v17, 0.0 }
 0x2e5   : > { %v5203_v52 = vpop.f32.mrf.mxu0  ;;  %v5256_v61 = vpop.f32.mrf.mxu1 }
 0x2e6   : > { %v5204_v51 = vadd.f32 %v5203_v52, %v12158_v5  ;;  %v5257_v38 = vadd.f32 %v5256_v61, %v12158_v5  ;;  %v6308_v15 = vmax.f32 %v5200_v37, 0.0  ;;  %v6310_v3 = vmax.f32 %v5253_v2, 0.0 }
 0x2e7   : > { %v5205_v24 = vpop.f32.mrf.mxu0  ;;  %v5258_v53 = vpop.f32.mrf.mxu1  ;;  %7039 = vmatpush1.bf16.msra.mxu0 %v6496_v26  ;;  %7080 = vmatpush1.bf16.msra.mxu1 %v6498_v11  ;;  %v6500_v26 = vpack.c.bf16 %v6307_v18, %v6243_v58  ;;  %v6502_v11 = vpack.c.bf16 %v6309_v1, %v6245_v14 }
 0x2e8   : > { %v5206_v46 = vadd.f32 %v5205_v24, %v12158_v5  ;;  %v5259_v33 = vadd.f32 %v5258_v53, %v12158_v5  ;;  %v6371_v10 = vmax.f32 %v5204_v51, 0.0  ;;  %v6373_v9 = vmax.f32 %v5257_v38, 0.0 }
 0x2e9   : > { %v5207_v44 = vpop.f32.mrf.mxu0  ;;  %v5260_v42 = vpop.f32.mrf.mxu1  ;;  %v6501_v31 = vpack.c.bf16 %v6308_v15, %v6244_v55  ;;  %v6503_v32 = vpack.c.bf16 %v6310_v3, %v6246_v27 }
 0x2ea   : > { %v5208_v50 = vadd.f32 %v5207_v44, %v12189_v48  ;;  %v5261_v30 = vadd.f32 %v5260_v42, %v12189_v48  ;;  %9868 = vmatmul.mubr.msk.bf16.vlgmr.msra.gmra.mxu0 %vm6610_vm7, %v12398_v34  ;;  %9869 = vmatmul.mubr.msk.bf16.vlgmr.msra.gmra.mxu1 %vm6610_vm7, %v12398_v34  ;;  %v6372_v6 = vmax.f32 %v5206_v46, 0.0  ;;  %v6374_v41 = vmax.f32 %v5259_v33, 0.0 }
 0x2eb   : > { %v5209_v63 = vpop.f32.mrf.mxu0  ;;  %v5262_v49 = vpop.f32.mrf.mxu1  ;;  %7138 = vmatprep.mubr.bf16.mxu0 %v13720_v12  ;;  %7179 = vmatprep.mubr.bf16.mxu1 %v13720_v12 }
 0x2ec   : > { %v5210_v13 = vadd.f32 %v5209_v63, %v12189_v48  ;;  %v5263_v59 = vadd.f32 %v5262_v49, %v12189_v48  ;;  %v6435_v60 = vmax.f32 %v5208_v50, 0.0  ;;  %v6437_v40 = vmax.f32 %v5261_v30, 0.0 }
 0x2ed   : > { %v12563_v43 = vpop.f32.mrf.mxu0  ;;  %v12565_v16 = vpop.f32.mrf.mxu1 }
 0x2ee   : > { %v6436_v57 = vmax.f32 %v5210_v13, 0.0  ;;  %v6438_v19 = vmax.f32 %v5263_v59, 0.0  ;;  %v6564_v39 = vpack.c.bf16 %v6435_v60, %v6371_v10  ;;  %v6566_v29 = vpack.c.bf16 %v6437_v40, %v6373_v9 }
 0x2ef   : > { %v5301_v47 = vpop.f32.mrf.mxu0  ;;  %v5354_v45 = vpop.f32.mrf.mxu1  ;;  %v5300_v10 = vadd.f32 %v12563_v43, %v12221_v4  ;;  %v5353_v9 = vadd.f32 %v12565_v16, %v12221_v4 }
 0x2f0   : > { %v6565_v23 = vpack.c.bf16 %v6436_v57, %v6372_v6  ;;  %v6567_v56 = vpack.c.bf16 %v6438_v19, %v6374_v41  ;;  %v5302_v25 = vadd.f32 %v5301_v47, %v12221_v4  ;;  %v5355_v20 = vadd.f32 %v5354_v45, %v12221_v4 }
 0x2f1   : > { %v5303_v21 = vpop.f32.mrf.mxu0  ;;  %v5356_v62 = vpop.f32.mrf.mxu1  ;;  %v6247_v14 = vmax.f32 %v5300_v10, 0.0  ;;  %v6249_v16 = vmax.f32 %v5353_v9, 0.0 }
 0x2f2   : > { %7118 = vmatprep.subr.bf16.mxu0 %v6565_v23  ;;  %7159 = vmatprep.subr.bf16.mxu1 %v6567_v56  ;;  %v5304_v7 = vadd.f32 %v5303_v21, %v12243_v22  ;;  %v5357_v17 = vadd.f32 %v5356_v62, %v12243_v22  ;;  %v6248_v23 = vmax.f32 %v5302_v25, 0.0  ;;  %v6250_v56 = vmax.f32 %v5355_v20, 0.0 }
 0x2f3   : > { %v5305_v36 = vpop.f32.mrf.mxu0  ;;  %v5358_v0 = vpop.f32.mrf.mxu1  ;;  %7119 = vmatpush1.bf16.msra.mxu0 %v6564_v39  ;;  %7160 = vmatpush1.bf16.msra.mxu1 %v6566_v29 }
 0x2f4   : > { %7120 = vmatprep.subr.bf16.mxu0 %v6501_v31  ;;  %7161 = vmatprep.subr.bf16.mxu1 %v6503_v32  ;;  %v5306_v37 = vadd.f32 %v5305_v36, %v12243_v22  ;;  %v5359_v2 = vadd.f32 %v5358_v0, %v12243_v22  ;;  %v6311_v39 = vmax.f32 %v5304_v7, 0.0  ;;  %v6313_v29 = vmax.f32 %v5357_v17, 0.0 }
 0x2f5   : > { %v5309_v52 = vpop.f32.mrf.mxu0  ;;  %v5362_v61 = vpop.f32.mrf.mxu1 }
 0x2f6   : > { %v5310_v51 = vadd.f32 %v5309_v52, %v12158_v5  ;;  %v5363_v38 = vadd.f32 %v5362_v61, %v12158_v5  ;;  %v6312_v15 = vmax.f32 %v5306_v37, 0.0  ;;  %v6314_v3 = vmax.f32 %v5359_v2, 0.0 }
 0x2f7   : > { %v5311_v24 = vpop.f32.mrf.mxu0  ;;  %v5364_v53 = vpop.f32.mrf.mxu1  ;;  %7121 = vmatpush1.bf16.msra.mxu0 %v6500_v26  ;;  %7162 = vmatpush1.bf16.msra.mxu1 %v6502_v11  ;;  %v6504_v26 = vpack.c.bf16 %v6311_v39, %v6247_v14  ;;  %v6506_v11 = vpack.c.bf16 %v6313_v29, %v6249_v16 }
 0x2f8   : > { %v5312_v46 = vadd.f32 %v5311_v24, %v12158_v5  ;;  %v5365_v33 = vadd.f32 %v5364_v53, %v12158_v5  ;;  %v6375_v47 = vmax.f32 %v5310_v51, 0.0  ;;  %v6377_v45 = vmax.f32 %v5363_v38, 0.0 }
 0x2f9   : > { %v5313_v44 = vpop.f32.mrf.mxu0  ;;  %v5366_v42 = vpop.f32.mrf.mxu1  ;;  %v6505_v43 = vpack.c.bf16 %v6312_v15, %v6248_v23  ;;  %v6507_v58 = vpack.c.bf16 %v6314_v3, %v6250_v56 }
 0x2fa   : > { %v5314_v50 = vadd.f32 %v5313_v44, %v12189_v48  ;;  %v5367_v30 = vadd.f32 %v5366_v42, %v12189_v48  ;;  %9870 = vmatmul.mubr.msk.bf16.vlgmr.msra.gmra.mxu0 %vm6610_vm7, %v12398_v34  ;;  %9871 = vmatmul.mubr.msk.bf16.vlgmr.msra.gmra.mxu1 %vm6610_vm7, %v12398_v34  ;;  %v6376_v57 = vmax.f32 %v5312_v46, 0.0  ;;  %v6378_v19 = vmax.f32 %v5365_v33, 0.0 }
 0x2fb   : > { %v5315_v63 = vpop.f32.mrf.mxu0  ;;  %v5368_v49 = vpop.f32.mrf.mxu1  ;;  %7220 = vmatprep.mubr.bf16.mxu0 %v13720_v12  ;;  %7261 = vmatprep.mubr.bf16.mxu1 %v13720_v12 }
 0x2fc   : > { %v5316_v13 = vadd.f32 %v5315_v63, %v12189_v48  ;;  %v5369_v59 = vadd.f32 %v5368_v49, %v12189_v48  ;;  %v6439_v60 = vmax.f32 %v5314_v50, 0.0  ;;  %v6441_v40 = vmax.f32 %v5367_v30, 0.0 }
 0x2fd   : > { %v12591_v6 = vpop.f32.mrf.mxu0  ;;  %v12593_v41 = vpop.f32.mrf.mxu1 }
 0x2fe   : > { %v6440_v8 = vmax.f32 %v5316_v13, 0.0  ;;  %v6442_v54 = vmax.f32 %v5369_v59, 0.0  ;;  %v6568_v21 = vpack.c.bf16 %v6439_v60, %v6375_v47  ;;  %v6570_v62 = vpack.c.bf16 %v6441_v40, %v6377_v45 }
 0x2ff   : > { %v5407_v55 = vpop.f32.mrf.mxu0  ;;  %v5460_v27 = vpop.f32.mrf.mxu1  ;;  %v5406_v47 = vadd.f32 %v12591_v6, %v12221_v4  ;;  %v5459_v45 = vadd.f32 %v12593_v41, %v12221_v4 }
 0x300   : > { %v6569_v18 = vpack.c.bf16 %v6440_v8, %v6376_v57  ;;  %v6571_v1 = vpack.c.bf16 %v6442_v54, %v6378_v19  ;;  %v5408_v25 = vadd.f32 %v5407_v55, %v12221_v4  ;;  %v5461_v20 = vadd.f32 %v5460_v27, %v12221_v4 }
 0x301   : > { %v5409_v31 = vpop.f32.mrf.mxu0  ;;  %v5462_v32 = vpop.f32.mrf.mxu1  ;;  %v6251_v16 = vmax.f32 %v5406_v47, 0.0  ;;  %v6253_v41 = vmax.f32 %v5459_v45, 0.0 }
 0x302   : > { %7200 = vmatprep.subr.bf16.mxu0 %v6569_v18  ;;  %7241 = vmatprep.subr.bf16.mxu1 %v6571_v1  ;;  %v5410_v7 = vadd.f32 %v5409_v31, %v12243_v22  ;;  %v5463_v17 = vadd.f32 %v5462_v32, %v12243_v22  ;;  %v6252_v18 = vmax.f32 %v5408_v25, 0.0  ;;  %v6254_v1 = vmax.f32 %v5461_v20, 0.0 }
 0x303   : > { %v5411_v36 = vpop.f32.mrf.mxu0  ;;  %v5464_v0 = vpop.f32.mrf.mxu1  ;;  %7201 = vmatpush1.bf16.msra.mxu0 %v6568_v21  ;;  %7242 = vmatpush1.bf16.msra.mxu1 %v6570_v62 }
 0x304   : > { %7202 = vmatprep.subr.bf16.mxu0 %v6505_v43  ;;  %7243 = vmatprep.subr.bf16.mxu1 %v6507_v58  ;;  %v5412_v37 = vadd.f32 %v5411_v36, %v12243_v22  ;;  %v5465_v2 = vadd.f32 %v5464_v0, %v12243_v22  ;;  %v6315_v21 = vmax.f32 %v5410_v7, 0.0  ;;  %v6317_v62 = vmax.f32 %v5463_v17, 0.0 }
 0x305   : > { %v5415_v52 = vpop.f32.mrf.mxu0  ;;  %v5468_v61 = vpop.f32.mrf.mxu1 }
 0x306   : > { %v5416_v51 = vadd.f32 %v5415_v52, %v12158_v5  ;;  %v5469_v38 = vadd.f32 %v5468_v61, %v12158_v5  ;;  %v6316_v15 = vmax.f32 %v5412_v37, 0.0  ;;  %v6318_v3 = vmax.f32 %v5465_v2, 0.0 }
 0x307   : > { %v5417_v24 = vpop.f32.mrf.mxu0  ;;  %v5470_v53 = vpop.f32.mrf.mxu1  ;;  %7203 = vmatpush1.bf16.msra.mxu0 %v6504_v26  ;;  %7244 = vmatpush1.bf16.msra.mxu1 %v6506_v11  ;;  %v6508_v26 = vpack.c.bf16 %v6315_v21, %v6251_v16  ;;  %v6510_v11 = vpack.c.bf16 %v6317_v62, %v6253_v41 }
 0x308   : > { %v5418_v46 = vadd.f32 %v5417_v24, %v12158_v5  ;;  %v5471_v33 = vadd.f32 %v5470_v53, %v12158_v5  ;;  %v6379_v55 = vmax.f32 %v5416_v51, 0.0  ;;  %v6381_v27 = vmax.f32 %v5469_v38, 0.0 }
 0x309   : > { %v5419_v44 = vpop.f32.mrf.mxu0  ;;  %v5472_v42 = vpop.f32.mrf.mxu1  ;;  %v6509_v6 = vpack.c.bf16 %v6316_v15, %v6252_v18  ;;  %v6511_v14 = vpack.c.bf16 %v6318_v3, %v6254_v1 }
 0x30a   : > { %v5420_v50 = vadd.f32 %v5419_v44, %v12189_v48  ;;  %v5473_v30 = vadd.f32 %v5472_v42, %v12189_v48  ;;  %9872 = vmatmul.mubr.msk.bf16.vlgmr.msra.gmra.mxu0 %vm6610_vm7, %v12398_v34  ;;  %9873 = vmatmul.mubr.msk.bf16.vlgmr.msra.gmra.mxu1 %vm6610_vm7, %v12398_v34  ;;  %v6380_v8 = vmax.f32 %v5418_v46, 0.0  ;;  %v6382_v54 = vmax.f32 %v5471_v33, 0.0 }
 0x30b   : > { %v5421_v63 = vpop.f32.mrf.mxu0  ;;  %v5474_v49 = vpop.f32.mrf.mxu1  ;;  %7302 = vmatprep.mubr.bf16.mxu0 %v13720_v12  ;;  %7343 = vmatprep.mubr.bf16.mxu1 %v13720_v12 }
 0x30c   : > { %v5422_v13 = vadd.f32 %v5421_v63, %v12189_v48  ;;  %v5475_v59 = vadd.f32 %v5474_v49, %v12189_v48  ;;  %v6443_v60 = vmax.f32 %v5420_v50, 0.0  ;;  %v6445_v40 = vmax.f32 %v5473_v30, 0.0 }
 0x30d   : > { %v12619_v57 = vpop.f32.mrf.mxu0  ;;  %v12621_v19 = vpop.f32.mrf.mxu1 }
 0x30e   : > { %v6444_v10 = vmax.f32 %v5422_v13, 0.0  ;;  %v6446_v9 = vmax.f32 %v5475_v59, 0.0  ;;  %v6572_v31 = vpack.c.bf16 %v6443_v60, %v6379_v55  ;;  %v6574_v32 = vpack.c.bf16 %v6445_v40, %v6381_v27 }
 0x30f   : > { %v5513_v23 = vpop.f32.mrf.mxu0  ;;  %v5566_v56 = vpop.f32.mrf.mxu1  ;;  %v5512_v45 = vadd.f32 %v12619_v57, %v12221_v4  ;;  %v5565_v55 = vadd.f32 %v12621_v19, %v12221_v4 }
 0x310   : > { %v6573_v39 = vpack.c.bf16 %v6444_v10, %v6380_v8  ;;  %v6575_v29 = vpack.c.bf16 %v6446_v9, %v6382_v54  ;;  %v5514_v25 = vadd.f32 %v5513_v23, %v12221_v4  ;;  %v5567_v20 = vadd.f32 %v5566_v56, %v12221_v4 }
 0x311   : > { %v5515_v43 = vpop.f32.mrf.mxu0  ;;  %v5568_v58 = vpop.f32.mrf.mxu1  ;;  %v6255_v16 = vmax.f32 %v5512_v45, 0.0  ;;  %v6257_v19 = vmax.f32 %v5565_v55, 0.0 }
 0x312   : > { %7282 = vmatprep.subr.bf16.mxu0 %v6573_v39  ;;  %7323 = vmatprep.subr.bf16.mxu1 %v6575_v29  ;;  %v5516_v7 = vadd.f32 %v5515_v43, %v12243_v22  ;;  %v5569_v17 = vadd.f32 %v5568_v58, %v12243_v22  ;;  %v6256_v1 = vmax.f32 %v5514_v25, 0.0  ;;  %v6258_v39 = vmax.f32 %v5567_v20, 0.0 }
 0x313   : > { %v5517_v36 = vpop.f32.mrf.mxu0  ;;  %v5570_v0 = vpop.f32.mrf.mxu1  ;;  %7283 = vmatpush1.bf16.msra.mxu0 %v6572_v31  ;;  %7324 = vmatpush1.bf16.msra.mxu1 %v6574_v32 }
 0x314   : > { %7284 = vmatprep.subr.bf16.mxu0 %v6509_v6  ;;  %7325 = vmatprep.subr.bf16.mxu1 %v6511_v14  ;;  %v5518_v37 = vadd.f32 %v5517_v36, %v12243_v22  ;;  %v5571_v2 = vadd.f32 %v5570_v0, %v12243_v22  ;;  %v6319_v62 = vmax.f32 %v5516_v7, 0.0  ;;  %v6321_v31 = vmax.f32 %v5569_v17, 0.0 }
 0x315   : > { %v5521_v52 = vpop.f32.mrf.mxu0  ;;  %v5574_v61 = vpop.f32.mrf.mxu1 }
 0x316   : > { %v5522_v51 = vadd.f32 %v5521_v52, %v12158_v5  ;;  %v5575_v38 = vadd.f32 %v5574_v61, %v12158_v5  ;;  %v6320_v59 = vmax.f32 %v5518_v37, 0.0  ;;  %v6322_v15 = vmax.f32 %v5571_v2, 0.0 }
 0x317   : > { %v5523_v24 = vpop.f32.mrf.mxu0  ;;  %v5576_v53 = vpop.f32.mrf.mxu1  ;;  %7285 = vmatpush1.bf16.msra.mxu0 %v6508_v26  ;;  %7326 = vmatpush1.bf16.msra.mxu1 %v6510_v11  ;;  %v6512_v0 = vpack.c.bf16 %v6319_v62, %v6255_v16  ;;  %v6514_v26 = vpack.c.bf16 %v6321_v31, %v6257_v19 }
 0x318   : > { %v5524_v46 = vadd.f32 %v5523_v24, %v12158_v5  ;;  %v5577_v33 = vadd.f32 %v5576_v53, %v12158_v5  ;;  %v6383_v27 = vmax.f32 %v5522_v51, 0.0  ;;  %v6385_v23 = vmax.f32 %v5575_v38, 0.0 }
 0x319   : > { %v5525_v44 = vpop.f32.mrf.mxu0  ;;  %v5578_v42 = vpop.f32.mrf.mxu1  ;;  %v6513_v57 = vpack.c.bf16 %v6320_v59, %v6256_v1  ;;  %v6515_v14 = vpack.c.bf16 %v6322_v15, %v6258_v39 }
 0x31a   : > { %v5526_v50 = vadd.f32 %v5525_v44, %v12189_v48  ;;  %v5579_v30 = vadd.f32 %v5578_v42, %v12189_v48  ;;  %9874 = vmatmul.mubr.msk.bf16.vlgmr.msra.gmra.mxu0 %vm6610_vm7, %v12398_v34  ;;  %9875 = vmatmul.mubr.msk.bf16.vlgmr.msra.gmra.mxu1 %vm6610_vm7, %v12398_v34  ;;  %v6384_v54 = vmax.f32 %v5524_v46, 0.0  ;;  %v6386_v10 = vmax.f32 %v5577_v33, 0.0 }
 0x31b   : > { %v5527_v63 = vpop.f32.mrf.mxu0  ;;  %v5580_v49 = vpop.f32.mrf.mxu1  ;;  %7384 = vmatprep.mubr.bf16.mxu0 %v13720_v12  ;;  %7425 = vmatprep.mubr.bf16.mxu1 %v13720_v12 }
 0x31c   : > { %v5528_v13 = vadd.f32 %v5527_v63, %v12189_v48  ;;  %v5581_v34 = vadd.f32 %v5580_v49, %v12189_v48  ;;  %v6447_v3 = vmax.f32 %v5526_v50, 0.0  ;;  %v6449_v60 = vmax.f32 %v5579_v30, 0.0  ;;  %v12665_v30 = vld [vmem:[%s13745_s21] sm:$0x3] }
 0x31d   : > { %v12647_v40 = vpop.f32.mrf.mxu0  ;;  %v12649_v8 = vpop.f32.mrf.mxu1 }
 0x31e   : > { %v6448_v9 = vmax.f32 %v5528_v13, 0.0  ;;  %v6450_v47 = vmax.f32 %v5581_v34, 0.0  ;;  %v6576_v32 = vpack.c.bf16 %v6447_v3, %v6383_v27  ;;  %v6578_v43 = vpack.c.bf16 %v6449_v60, %v6385_v23 }
 0x31f   : > { %v5619_v56 = vpop.f32.mrf.mxu0  ;;  %v5672_v18 = vpop.f32.mrf.mxu1  ;;  %v5618_v27 = vadd.f32 %v12647_v40, %v12221_v4  ;;  %v5671_v23 = vadd.f32 %v12649_v8, %v12221_v4 }
 0x320   : > { %v6577_v29 = vpack.c.bf16 %v6448_v9, %v6384_v54  ;;  %v6579_v21 = vpack.c.bf16 %v6450_v47, %v6386_v10  ;;  %v5620_v53 = vadd.f32 %v5619_v56, %v12221_v4  ;;  %v5673_v20 = vadd.f32 %v5672_v18, %v12221_v4 }
 0x321   : > { %v5621_v58 = vpop.f32.mrf.mxu0  ;;  %v5674_v6 = vpop.f32.mrf.mxu1  ;;  %v6259_v40 = vmax.f32 %v5618_v27, 0.0  ;;  %v6261_v8 = vmax.f32 %v5671_v23, 0.0 }
 0x322   : > { %7364 = vmatprep.subr.bf16.mxu0 %v6577_v29  ;;  %7405 = vmatprep.subr.bf16.mxu1 %v6579_v21  ;;  %v5622_v7 = vadd.f32 %v5621_v58, %v12243_v22  ;;  %v5675_v17 = vadd.f32 %v5674_v6, %v12243_v22  ;;  %v6260_v29 = vmax.f32 %v5620_v53, 0.0  ;;  %v6262_v21 = vmax.f32 %v5673_v20, 0.0 }
 0x323   : > { %v5623_v41 = vpop.f32.mrf.mxu0  ;;  %v5676_v36 = vpop.f32.mrf.mxu1  ;;  %7365 = vmatpush1.bf16.msra.mxu0 %v6576_v32  ;;  %7406 = vmatpush1.bf16.msra.mxu1 %v6578_v43 }
 0x324   : > { %7366 = vmatprep.subr.bf16.mxu0 %v6513_v57  ;;  %7407 = vmatprep.subr.bf16.mxu1 %v6515_v14  ;;  %v5624_v25 = vadd.f32 %v5623_v41, %v12243_v22  ;;  %v5677_v37 = vadd.f32 %v5676_v36, %v12243_v22  ;;  %v6323_v32 = vmax.f32 %v5622_v7, 0.0  ;;  %v6325_v43 = vmax.f32 %v5675_v17, 0.0 }
 0x325   : > { %v5627_v11 = vpop.f32.mrf.mxu0  ;;  %v5680_v52 = vpop.f32.mrf.mxu1 }
 0x326   : > { %v5628_v51 = vadd.f32 %v5627_v11, %v12158_v5  ;;  %v5681_v38 = vadd.f32 %v5680_v52, %v12158_v5  ;;  %v6324_v59 = vmax.f32 %v5624_v25, 0.0  ;;  %v6326_v15 = vmax.f32 %v5677_v37, 0.0 }
 0x327   : > { %v5629_v61 = vpop.f32.mrf.mxu0  ;;  %v5682_v24 = vpop.f32.mrf.mxu1  ;;  %7367 = vmatpush1.bf16.msra.mxu0 %v6512_v0  ;;  %7408 = vmatpush1.bf16.msra.mxu1 %v6514_v26  ;;  %v6516_v0 = vpack.c.bf16 %v6323_v32, %v6259_v40  ;;  %v6518_v26 = vpack.c.bf16 %v6325_v43, %v6261_v8 }
 0x328   : > { %v5630_v2 = vadd.f32 %v5629_v61, %v12158_v5  ;;  %v5683_v42 = vadd.f32 %v5682_v24, %v12158_v5  ;;  %v6387_v56 = vmax.f32 %v5628_v51, 0.0  ;;  %v6389_v18 = vmax.f32 %v5681_v38, 0.0 }
 0x329   : > { %v5631_v46 = vpop.f32.mrf.mxu0  ;;  %v5684_v44 = vpop.f32.mrf.mxu1  ;;  %v6517_v16 = vpack.c.bf16 %v6324_v59, %v6260_v29  ;;  %v6519_v19 = vpack.c.bf16 %v6326_v15, %v6262_v21 }
 0x32a   : > { %v5632_v33 = vadd.f32 %v5631_v46, %v12189_v48  ;;  %v5685_v50 = vadd.f32 %v5684_v44, %v12189_v48  ;;  %9876 = vmatmul.mubr.msk.bf16.vlgmr.msra.gmra.mxu0 %vm6610_vm7, %v12665_v30  ;;  %9877 = vmatmul.mubr.msk.bf16.vlgmr.msra.gmra.mxu1 %vm6610_vm7, %v12665_v30  ;;  %v6388_v9 = vmax.f32 %v5630_v2, 0.0  ;;  %v6390_v47 = vmax.f32 %v5683_v42, 0.0 }
 0x32b   : > { %v5633_v63 = vpop.f32.mrf.mxu0  ;;  %v5686_v49 = vpop.f32.mrf.mxu1  ;;  %7466 = vmatprep.mubr.bf16.mxu0 %v13720_v12  ;;  %7507 = vmatprep.mubr.bf16.mxu1 %v13720_v12 }
 0x32c   : > { %v5634_v13 = vadd.f32 %v5633_v63, %v12189_v48  ;;  %v5687_v34 = vadd.f32 %v5686_v49, %v12189_v48  ;;  %v6451_v3 = vmax.f32 %v5632_v33, 0.0  ;;  %v6453_v60 = vmax.f32 %v5685_v50, 0.0 }
 0x32d   : > { %v12680_v54 = vpop.f32.mrf.mxu0  ;;  %v12682_v10 = vpop.f32.mrf.mxu1 }
 0x32e   : > { %v6452_v45 = vmax.f32 %v5634_v13, 0.0  ;;  %v6454_v55 = vmax.f32 %v5687_v34, 0.0  ;;  %v6580_v58 = vpack.c.bf16 %v6451_v3, %v6387_v56  ;;  %v6582_v6 = vpack.c.bf16 %v6453_v60, %v6389_v18 }
 0x32f   : > { %v5725_v1 = vpop.f32.mrf.mxu0  ;;  %v5778_v39 = vpop.f32.mrf.mxu1  ;;  %v5724_v56 = vadd.f32 %v12680_v54, %v12221_v4  ;;  %v5777_v18 = vadd.f32 %v12682_v10, %v12221_v4 }
 0x330   : > { %v6581_v62 = vpack.c.bf16 %v6452_v45, %v6388_v9  ;;  %v6583_v31 = vpack.c.bf16 %v6454_v55, %v6390_v47  ;;  %v5726_v53 = vadd.f32 %v5725_v1, %v12221_v4  ;;  %v5779_v20 = vadd.f32 %v5778_v39, %v12221_v4 }
 0x331   : > { %v5727_v57 = vpop.f32.mrf.mxu0  ;;  %v5780_v14 = vpop.f32.mrf.mxu1  ;;  %v6263_v54 = vmax.f32 %v5724_v56, 0.0  ;;  %v6265_v10 = vmax.f32 %v5777_v18, 0.0 }
 0x332   : > { %7446 = vmatprep.subr.bf16.mxu0 %v6581_v62  ;;  %7487 = vmatprep.subr.bf16.mxu1 %v6583_v31  ;;  %v5728_v7 = vadd.f32 %v5727_v57, %v12243_v22  ;;  %v5781_v17 = vadd.f32 %v5780_v14, %v12243_v22  ;;  %v6264_v21 = vmax.f32 %v5726_v53, 0.0  ;;  %v6266_v62 = vmax.f32 %v5779_v20, 0.0 }
 0x333   : > { %v5729_v41 = vpop.f32.mrf.mxu0  ;;  %v5782_v36 = vpop.f32.mrf.mxu1  ;;  %7447 = vmatpush1.bf16.msra.mxu0 %v6580_v58  ;;  %7488 = vmatpush1.bf16.msra.mxu1 %v6582_v6 }
 0x334   : > { %7448 = vmatprep.subr.bf16.mxu0 %v6517_v16  ;;  %7489 = vmatprep.subr.bf16.mxu1 %v6519_v19  ;;  %v5730_v25 = vadd.f32 %v5729_v41, %v12243_v22  ;;  %v5783_v37 = vadd.f32 %v5782_v36, %v12243_v22  ;;  %v6327_v58 = vmax.f32 %v5728_v7, 0.0  ;;  %v6329_v6 = vmax.f32 %v5781_v17, 0.0 }
 0x335   : > { %v5733_v11 = vpop.f32.mrf.mxu0  ;;  %v5786_v52 = vpop.f32.mrf.mxu1 }
 0x336   : > { %v5734_v51 = vadd.f32 %v5733_v11, %v12158_v5  ;;  %v5787_v38 = vadd.f32 %v5786_v52, %v12158_v5  ;;  %v6328_v59 = vmax.f32 %v5730_v25, 0.0  ;;  %v6330_v15 = vmax.f32 %v5783_v37, 0.0 }
 0x337   : > { %v5735_v61 = vpop.f32.mrf.mxu0  ;;  %v5788_v24 = vpop.f32.mrf.mxu1  ;;  %7449 = vmatpush1.bf16.msra.mxu0 %v6516_v0  ;;  %7490 = vmatpush1.bf16.msra.mxu1 %v6518_v26  ;;  %v6520_v0 = vpack.c.bf16 %v6327_v58, %v6263_v54  ;;  %v6522_v26 = vpack.c.bf16 %v6329_v6, %v6265_v10 }
 0x338   : > { %v5736_v2 = vadd.f32 %v5735_v61, %v12158_v5  ;;  %v5789_v42 = vadd.f32 %v5788_v24, %v12158_v5  ;;  %v6391_v1 = vmax.f32 %v5734_v51, 0.0  ;;  %v6393_v39 = vmax.f32 %v5787_v38, 0.0 }
 0x339   : > { %v5737_v46 = vpop.f32.mrf.mxu0  ;;  %v5790_v44 = vpop.f32.mrf.mxu1  ;;  %v6521_v19 = vpack.c.bf16 %v6328_v59, %v6264_v21  ;;  %v6523_v40 = vpack.c.bf16 %v6330_v15, %v6266_v62 }
 0x33a   : > { %v5738_v33 = vadd.f32 %v5737_v46, %v12189_v48  ;;  %v5791_v50 = vadd.f32 %v5790_v44, %v12189_v48  ;;  %9878 = vmatmul.mubr.msk.bf16.vlgmr.msra.gmra.mxu0 %vm6610_vm7, %v12665_v30  ;;  %9879 = vmatmul.mubr.msk.bf16.vlgmr.msra.gmra.mxu1 %vm6610_vm7, %v12665_v30  ;;  %v6392_v47 = vmax.f32 %v5736_v2, 0.0  ;;  %v6394_v45 = vmax.f32 %v5789_v42, 0.0 }
 0x33b   : > { %v5739_v63 = vpop.f32.mrf.mxu0  ;;  %v5792_v49 = vpop.f32.mrf.mxu1  ;;  %7548 = vmatprep.mubr.bf16.mxu0 %v13720_v12  ;;  %7589 = vmatprep.mubr.bf16.mxu1 %v13720_v12 }
 0x33c   : > { %v5740_v13 = vadd.f32 %v5739_v63, %v12189_v48  ;;  %v5793_v34 = vadd.f32 %v5792_v49, %v12189_v48  ;;  %v6455_v3 = vmax.f32 %v5738_v33, 0.0  ;;  %v6457_v60 = vmax.f32 %v5791_v50, 0.0 }
 0x33d   : > { %v5829_v9 = vpop.f32.mrf.mxu0  ;;  %v12708_v23 = vpop.f32.mrf.mxu1 }
 0x33e   : > { %v6456_v55 = vmax.f32 %v5740_v13, 0.0  ;;  %v6458_v27 = vmax.f32 %v5793_v34, 0.0  ;;  %v6584_v57 = vpack.c.bf16 %v6455_v3, %v6391_v1  ;;  %v6586_v14 = vpack.c.bf16 %v6457_v60, %v6393_v39 }
 0x33f   : > { %v5831_v29 = vpop.f32.mrf.mxu0  ;;  %v5884_v43 = vpop.f32.mrf.mxu1  ;;  %v12715_v53 = vadd.f32 %v5829_v9, %v12221_v4 }
 0x340   : > { %v6585_v31 = vpack.c.bf16 %v6456_v55, %v6392_v47  ;;  %v6587_v32 = vpack.c.bf16 %v6458_v27, %v6394_v45  ;;  %v5832_v38 = vadd.f32 %v5831_v29, %v12221_v4  ;;  %v5885_v63 = vadd.f32 %v5884_v43, %v12221_v4  ;;  %v12742_v43 = vld [vmem:[%s10548_s29] sm:$0xff] }
 0x341   : > { %v5833_v16 = vpop.f32.mrf.mxu0  ;;  %v5886_v8 = vpop.f32.mrf.mxu1  ;;  %v5883_v29 = vadd.f32 %v12708_v23, %v12221_v4  ;;  %v6267_v10 = vmax.f32 %v12715_v53, 0.0 }
 0x342   : > { %7528 = vmatprep.subr.bf16.mxu0 %v6585_v31  ;;  %7569 = vmatprep.subr.bf16.mxu1 %v6587_v32  ;;  %v5834_v13 = vadd.f32 %v5833_v16, %v12243_v22  ;;  %v5887_v34 = vadd.f32 %v5886_v8, %v12243_v22  ;;  %v6268_v21 = vmax.f32 %v5832_v38, 0.0  ;;  %v6270_v58 = vmax.f32 %v5885_v63, 0.0 }
 0x343   : > { %v5835_v41 = vpop.f32.mrf.mxu0  ;;  %7529 = vmatpush1.bf16.msra.mxu0 %v6584_v57  ;;  %7570 = vmatpush1.bf16.msra.mxu1 %v6586_v14  ;;  %v5888_v36 = vpop.f32.mrf.mxu1 }
 0x344   : > { %7530 = vmatprep.subr.bf16.mxu0 %v6521_v19  ;;  %7571 = vmatprep.subr.bf16.mxu1 %v6523_v40  ;;  %v5836_v25 = vadd.f32 %v5835_v41, %v12243_v22  ;;  %v5889_v2 = vadd.f32 %v5888_v36, %v12243_v22  ;;  %v6331_v6 = vmax.f32 %v5834_v13, 0.0  ;;  %v6333_v19 = vmax.f32 %v5887_v34, 0.0 }
 0x345   : > { %v5839_v11 = vpop.f32.mrf.mxu0  ;;  %v5892_v52 = vpop.f32.mrf.mxu1  ;;  %v12746_v36 = vsub.s32 0, %v11363_v35  ;;  %v12781_v34 = vsub.s32 7, %v11363_v35 }
 0x346   : > { %v5840_v33 = vadd.f32 %v5839_v11, %v12158_v5  ;;  %v5893_v49 = vadd.f32 %v5892_v52, %v12158_v5  ;;  %v6332_v60 = vmax.f32 %v5836_v25, 0.0  ;;  %v6334_v27 = vmax.f32 %v5889_v2, 0.0 }
 0x347   : > { %v5841_v61 = vpop.f32.mrf.mxu0  ;;  %7531 = vmatpush1.bf16.msra.mxu0 %v6520_v0  ;;  %7572 = vmatpush1.bf16.msra.mxu1 %v6522_v26  ;;  %v5894_v24 = vpop.f32.mrf.mxu1  ;;  %v12749_v0 = vsub.f32 1.0, %v12742_v43  ;;  %v6269_v26 = vmax.f32 %v5883_v29, 0.0  ;;  %v6524_v52 = vpack.c.bf16 %v6331_v6, %v6267_v10  ;;  %v12802_v6 = vld [vmem:[%s10548_s29 + $0x8] sm:$0xff] }
 0x348   : > { %v5842_v46 = vadd.f32 %v5841_v61, %v12158_v5  ;;  %v5895_v50 = vadd.f32 %v5894_v24, %v12158_v5  ;;  %v6395_v56 = vmax.f32 %v5840_v33, 0.0  ;;  %v6397_v62 = vmax.f32 %v5893_v49, 0.0 }
 0x349   : > { %v5843_v37 = vpop.f32.mrf.mxu0  ;;  %v5896_v42 = vpop.f32.mrf.mxu1  ;;  %v6525_v40 = vpack.c.bf16 %v6332_v60, %v6268_v21  ;;  %v6527_v41 = vpack.c.bf16 %v6334_v27, %v6270_v58  ;;  %v6526_v24 = vpack.c.bf16 %v6333_v19, %v6269_v26  ;;  %v8345_v2 = vrot.slane %v12749_v0, %v12746_v36  ;;  %v12811_v26 = vld [vmem:[%s10548_s29 + $0x10] sm:$0xff] }
 0x34a   : > { %v5844_v44 = vadd.f32 %v5843_v37, %v12189_v48  ;;  %9880 = vmatmul.mubr.msk.bf16.vlgmr.msra.gmra.mxu0 %vm6610_vm7, %v12665_v30  ;;  %9881 = vmatmul.mubr.msk.bf16.vlgmr.msra.gmra.mxu1 %vm6610_vm7, %v12665_v30  ;;  %v5897_v20 = vadd.f32 %v5896_v42, %v12189_v48  ;;  %v6396_v9 = vmax.f32 %v5842_v46, 0.0  ;;  %v6398_v18 = vmax.f32 %v5895_v50, 0.0  ;;  %13746 = vst [vmem:[#allocation87_spill] sm:$0xff] %v12811_v26 }
 0x34b   : > { %v5845_v51 = vpop.f32.mrf.mxu0  ;;  %7630 = vmatprep.mubr.bf16.mxu0 %v13720_v12  ;;  %7671 = vmatprep.mubr.bf16.mxu1 %v13720_v12  ;;  %v5898_v17 = vpop.f32.mrf.mxu1  ;;  %v12752_v37 = vsub.s32 1, %v11363_v35  ;;  %v12757_v46 = vsub.s32 2, %v11363_v35  ;;  %v12763_v33 = vsub.s32 4, %v11363_v35  ;;  %v12766_v50 = vsub.s32 5, %v11363_v35 }
 0x34c   : > { %v5846_v7 = vadd.f32 %v5845_v51, %v12189_v48  ;;  %v6459_v59 = vmax.f32 %v5844_v44, 0.0  ;;  %v5899_v15 = vadd.f32 %v5898_v17, %v12189_v48  ;;  %v6461_v47 = vmax.f32 %v5897_v20, 0.0 }
 0x34d   : > { %v5935_v3 = vpop.f32.mrf.mxu0  ;;  %v12737_v55 = vpop.f32.mrf.mxu1  ;;  %v12760_v44 = vsub.s32 3, %v11363_v35  ;;  %v12769_v20 = vsub.s32 6, %v11363_v35 }
 0x34e   : > { %v6460_v45 = vmax.f32 %v5846_v7, 0.0  ;;  %v6462_v1 = vmax.f32 %v5899_v15, 0.0  ;;  %v6588_v57 = vpack.c.bf16 %v6459_v59, %v6395_v56  ;;  %v6590_v8 = vpack.c.bf16 %v6461_v47, %v6397_v62 }
 0x34f   : > { %v5937_v39 = vpop.f32.mrf.mxu0  ;;  %v5990_v32 = vpop.f32.mrf.mxu1  ;;  %v12772_v51 = vadd.f32 %v5935_v3, %v12221_v4 }
 0x350   : > { %v6589_v31 = vpack.c.bf16 %v6460_v45, %v6396_v9  ;;  %v6591_v14 = vpack.c.bf16 %v6462_v1, %v6398_v18  ;;  %v5938_v9 = vadd.f32 %v5937_v39, %v12221_v4  ;;  %v5991_v47 = vadd.f32 %v5990_v32, %v12221_v4 }
 0x351   : > { %v5939_v16 = vpop.f32.mrf.mxu0  ;;  %v5992_v54 = vpop.f32.mrf.mxu1 }
 0x352   : > { %7610 = vmatprep.subr.bf16.mxu0 %v6589_v31  ;;  %7651 = vmatprep.subr.bf16.mxu1 %v6591_v14  ;;  %v5940_v56 = vadd.f32 %v5939_v16, %v12243_v22  ;;  %v5993_v18 = vadd.f32 %v5992_v54, %v12243_v22  ;;  %v6272_v54 = vmax.f32 %v5938_v9, 0.0 }
 0x353   : > { %v5941_v23 = vpop.f32.mrf.mxu0  ;;  %7611 = vmatpush1.bf16.msra.mxu0 %v6588_v57  ;;  %v5994_v11 = vpop.f32.mrf.mxu1  ;;  %7652 = vmatpush1.bf16.msra.mxu1 %v6590_v8  ;;  %v5989_v8 = vadd.f32 %v12737_v55, %v12221_v4 }
 0x354   : > { %7612 = vmatprep.subr.bf16.mxu0 %v6525_v40  ;;  %7653 = vmatprep.subr.bf16.mxu1 %v6527_v41  ;;  %v5942_v63 = vadd.f32 %v5941_v23, %v12243_v22  ;;  %v5995_v49 = vadd.f32 %v5994_v11, %v12243_v22  ;;  %v6274_v11 = vmax.f32 %v5991_v47, 0.0 }
 0x355   : > { %v5945_v61 = vpop.f32.mrf.mxu0  ;;  %v5998_v25 = vpop.f32.mrf.mxu1  ;;  %v6273_v9 = vmax.f32 %v5989_v8, 0.0 }
 0x356   : > { %v5946_v59 = vadd.f32 %v5945_v61, %v12158_v5  ;;  %v5999_v35 = vadd.f32 %v5998_v25, %v12158_v5  ;;  %v6336_v39 = vmax.f32 %v5942_v63, 0.0  ;;  %v6338_v57 = vmax.f32 %v5995_v49, 0.0 }
 0x357   : > { %v5947_v53 = vpop.f32.mrf.mxu0  ;;  %7613 = vmatpush1.bf16.msra.mxu0 %v6524_v52  ;;  %v6000_v42 = vpop.f32.mrf.mxu1  ;;  %7654 = vmatpush1.bf16.msra.mxu1 %v6526_v24  ;;  %v6335_v52 = vmax.f32 %v5940_v56, 0.0  ;;  %v8349_v49 = vrot.slane %v12749_v0, %v12752_v37 }
 0x358   : > { %v5948_v7 = vadd.f32 %v5947_v53, %v12158_v5  ;;  %v6001_v15 = vadd.f32 %v6000_v42, %v12158_v5  ;;  %v6399_v14 = vmax.f32 %v5946_v59, 0.0  ;;  %v6401_v10 = vmax.f32 %v5999_v35, 0.0 }
 0x359   : > { %v5949_v38 = vpop.f32.mrf.mxu0  ;;  %v6002_v13 = vpop.f32.mrf.mxu1  ;;  %v12816_v53 = vsub.f32 1.0, %v12802_v6  ;;  %v6337_v42 = vmax.f32 %v5993_v18, 0.0  ;;  %v8369_v35 = vrot.slane %v12749_v0, %v12769_v20 }
 0x35a   : > { %v5950_v17 = vadd.f32 %v5949_v38, %v12189_v48  ;;  %9882 = vmatmul.mubr.msk.bf16.vlgmr.msra.gmra.mxu0 %vm6610_vm7, %v12665_v30  ;;  %v6003_v3 = vadd.f32 %v6002_v13, %v12189_v48  ;;  %9883 = vmatmul.mubr.msk.bf16.vlgmr.msra.gmra.mxu1 %vm6610_vm7, %v12665_v30  ;;  %v6400_v62 = vmax.f32 %v5948_v7, 0.0  ;;  %v6402_v19 = vmax.f32 %v6001_v15, 0.0 }
 0x35b   : > { %v5951_v60 = vpop.f32.mrf.mxu0  ;;  %7712 = vmatprep.mubr.bf16.mxu0 %v13720_v12  ;;  %v6004_v27 = vpop.f32.mrf.mxu1  ;;  %7753 = vmatprep.mubr.bf16.mxu1 %v13720_v12  ;;  %v6529_v38 = vpack.c.bf16 %v6336_v39, %v6272_v54  ;;  %v8353_v7 = vrot.slane %v12749_v0, %v12757_v46  ;;  %v6531_v13 = vpack.c.bf16 %v6338_v57, %v6274_v11 }
 0x35c   : > { %v5952_v45 = vadd.f32 %v5951_v60, %v12189_v48  ;;  %v6463_v1 = vmax.f32 %v5950_v17, 0.0  ;;  %v6005_v29 = vadd.f32 %v6004_v27, %v12189_v48  ;;  %v6465_v31 = vmax.f32 %v6003_v3, 0.0 }
 0x35d   : > { %v12797_v21 = vpop.f32.mrf.mxu0  ;;  %v12799_v58 = vpop.f32.mrf.mxu1  ;;  %v6271_v17 = vmax.f32 %v12772_v51, 0.0  ;;  %v8357_v15 = vrot.slane %v12749_v0, %v12760_v44  ;;  %v8361_v3 = vrot.slane %v12749_v0, %v12763_v33  ;;  %v12830_v60 = vsub.f32 1.0, %v12811_v26 }
 0x35e   : > { %v6464_v32 = vmax.f32 %v5952_v45, 0.0  ;;  %v6466_v16 = vmax.f32 %v6005_v29, 0.0  ;;  %v6592_v61 = vpack.c.bf16 %v6463_v1, %v6399_v14  ;;  %v6594_v63 = vpack.c.bf16 %v6465_v31, %v6401_v10 }
 0x35f   : > { %v12804_v40 = vpop.f32.mrf.mxu0  ;;  %v12808_v23 = vpop.f32.mrf.mxu1  ;;  %13747 = vst [vmem:[#allocation88_spill] sm:$0xff] %v12830_v60  ;;  %v8365_v51 = vrot.slane %v12749_v0, %v12766_v50  ;;  %v8373_v45 = vrot.slane %v12749_v0, %v12781_v34  ;;  %v6528_v27 = vpack.c.bf16 %v6335_v52, %v6271_v17  ;;  %v8377_v18 = vrot.slane %v12816_v53, %v12746_v36  ;;  %v13748_v52 = vld [vmem:[#allocation25_spill] sm:$0xff]  ;;  %v13759_v0 = vld [vmem:[#allocation34_spill] sm:$0xff] }
 0x360   : > { %v6593_v41 = vpack.c.bf16 %v6464_v32, %v6400_v62  ;;  %v6595_v24 = vpack.c.bf16 %v6466_v16, %v6402_v19  ;;  %v6530_v39 = vpack.c.bf16 %v6337_v42, %v6273_v9  ;;  %v12864_v11 = vmul.f32 %v8345_v2, %v11400_v28 }
 0x361   : > { %v12813_v25 = vpop.f32.mrf.mxu0  ;;  %v12818_v55 = vpop.f32.mrf.mxu1  ;;  %v12873_v42 = vadd.f32 %v12797_v21, %v12221_v4 }
 0x362   : > { %7692 = vmatprep.subr.bf16.mxu0 %v6593_v41  ;;  %7733 = vmatprep.subr.bf16.mxu1 %v6595_v24 }
 0x363   : > { %v6047_v59 = vpop.f32.mrf.mxu0  ;;  %7693 = vmatpush1.bf16.msra.mxu0 %v6592_v61  ;;  %v6100_v47 = vpop.f32.mrf.mxu1  ;;  %7734 = vmatpush1.bf16.msra.mxu1 %v6594_v63  ;;  %v12867_v61 = vmul.f32 %v13748_v52, %v8349_v49  ;;  %v6099_v52 = vadd.f32 %v12818_v55, %v12243_v22 }
 0x364   : > { %7694 = vmatprep.subr.bf16.mxu0 %v6529_v38  ;;  %7735 = vmatprep.subr.bf16.mxu1 %v6531_v13  ;;  %v6048_v63 = vadd.f32 %v6047_v59, %v12243_v22  ;;  %v6101_v17 = vadd.f32 %v6100_v47, %v12243_v22  ;;  %v6044_v47 = vadd.f32 %v12804_v40, %v12221_v4 }
 0x365   : > { %v6051_v56 = vpop.f32.mrf.mxu0  ;;  %v6104_v62 = vpop.f32.mrf.mxu1 }
 0x366   : > { %v6052_v49 = vadd.f32 %v6051_v56, %v12158_v5  ;;  %v6340_v24 = vmax.f32 %v6048_v63, 0.0  ;;  %v6276_v55 = vmax.f32 %v6044_v47, 0.0 }
 0x367   : > { %v6053_v19 = vpop.f32.mrf.mxu0  ;;  %7695 = vmatpush1.bf16.msra.mxu0 %v6528_v27  ;;  %v6106_v41 = vpop.f32.mrf.mxu1  ;;  %7736 = vmatpush1.bf16.msra.mxu1 %v6530_v39  ;;  %v6097_v27 = vadd.f32 %v12808_v23, %v12221_v4  ;;  %v6105_v39 = vadd.f32 %v6104_v62, %v12158_v5 }
 0x368   : > { %v6054_v13 = vadd.f32 %v6053_v19, %v12158_v5  ;;  %v6107_v9 = vadd.f32 %v6106_v41, %v12158_v5  ;;  %v6046_v41 = vadd.f32 %v12813_v25, %v12243_v22  ;;  %v6403_v8 = vmax.f32 %v6052_v49, 0.0 }
 0x369   : > { %v6055_v38 = vpop.f32.mrf.mxu0  ;;  %v6108_v2 = vpop.f32.mrf.mxu1  ;;  %v6095_v25 = vadd.f32 %v12799_v58, %v12221_v4  ;;  %v6278_v31 = vmax.f32 %v6097_v27, 0.0  ;;  %v6341_v49 = vmax.f32 %v6099_v52, 0.0  ;;  %v13750_v58 = vld [vmem:[#allocation26_spill] sm:$0xff]  ;;  %v13757_v52 = vld [vmem:[#allocation31_spill] sm:$0xff] }
 0x36a   : > { %v6056_v28 = vadd.f32 %v6055_v38, %v12189_v48  ;;  %9884 = vmatmul.mubr.msk.bf16.vlgmr.msra.gmra.mxu0 %vm6610_vm7, %v12665_v30  ;;  %v6109_v21 = vadd.f32 %v6108_v2, %v12189_v48  ;;  %9885 = vmatmul.mubr.msk.bf16.vlgmr.msra.gmra.mxu1 %vm6610_vm7, %v12665_v30  ;;  %v6404_v23 = vmax.f32 %v6054_v13, 0.0  ;;  %v6406_v16 = vmax.f32 %v6107_v9, 0.0 }
 0x36b   : > { %v6057_v59 = vpop.f32.mrf.mxu0  ;;  %7794 = vmatprep.mubr.bf16.mxu0 %v13720_v12  ;;  %v6110_v19 = vpop.f32.mrf.mxu1  ;;  %7835 = vmatprep.mubr.bf16.mxu1 %v13720_v12  ;;  %v6339_v29 = vmax.f32 %v6046_v41, 0.0  ;;  %v6533_v9 = vpack.c.bf16 %v6340_v24, %v6276_v55  ;;  %v12915_v47 = vmul.f32 %v13750_v58, %v8357_v15  ;;  %v13753_v15 = vld [vmem:[#allocation29_spill] sm:$0xff]  ;;  %v13762_v55 = vld [vmem:[#allocation32_spill] sm:$0xff] }
 0x36c   : > { %v6058_v56 = vadd.f32 %v6057_v59, %v12189_v48  ;;  %v6467_v38 = vmax.f32 %v6056_v28, 0.0  ;;  %v6111_v2 = vadd.f32 %v6110_v19, %v12189_v48  ;;  %v6469_v10 = vmax.f32 %v6109_v21, 0.0  ;;  %v13755_v41 = vld [vmem:[#allocation33_spill] sm:$0xff] }
 0x36d   : > { %v12899_v40 = vpop.f32.mrf.mxu0  ;;  %v12901_v54 = vpop.f32.mrf.mxu1  ;;  %v6342_v59 = vmax.f32 %v6101_v17, 0.0  ;;  %v6405_v28 = vmax.f32 %v6105_v39, 0.0  ;;  %v12934_v27 = vmul.f32 %v8369_v35, %v13753_v15  ;;  %v13756_v35 = vrot.slane %v12816_v53, %v12752_v37  ;;  %v12979_v58 = vld [vmem:[%s10550_s4 + $0x8] sm:$0xff] }
 0x36e   : > { %v6468_v62 = vmax.f32 %v6058_v56, 0.0  ;;  %v6470_v14 = vmax.f32 %v6111_v2, 0.0  ;;  %v6596_v63 = vpack.c.bf16 %v6467_v38, %v6403_v8  ;;  %v13749_v56 = vld [vmem:[#allocation24_spill] sm:$0xff]  ;;  %v13751_v8 = vld [vmem:[#allocation27_spill] sm:$0xff] }
 0x36f   : > { %v6149_v57 = vpop.f32.mrf.mxu0  ;;  %v6202_v19 = vpop.f32.mrf.mxu1  ;;  %v12909_v17 = vmul.f32 %v8353_v7, %v13749_v56  ;;  %v6598_v2 = vpack.c.bf16 %v6469_v10, %v6405_v28  ;;  %v6275_v7 = vmax.f32 %v12873_v42, 0.0  ;;  %v6277_v42 = vmax.f32 %v6095_v25, 0.0  ;;  %v12961_v25 = vld [vmem:[%s10550_s4] sm:$0xff] }
 0x370   : > { %v6597_v32 = vpack.c.bf16 %v6468_v62, %v6404_v23  ;;  %v6599_v13 = vpack.c.bf16 %v6470_v14, %v6406_v16  ;;  %v12921_v14 = vmul.f32 %v8361_v3, %v13751_v8  ;;  %v6535_v16 = vpack.c.bf16 %v6342_v59, %v6278_v31  ;;  %v13754_v3 = vld [vmem:[#allocation30_spill] sm:$0xff] }
 0x371   : > { %v6151_v21 = vpop.f32.mrf.mxu0  ;;  %v6204_v1 = vpop.f32.mrf.mxu1  ;;  %v12940_v31 = vmul.f32 %v13754_v3, %v8373_v45  ;;  %v12952_v38 = vmul.f32 %v13757_v52, %v13756_v35  ;;  %v13760_v45 = vrot.slane %v12816_v53, %v12757_v46  ;;  %v6532_v62 = vpack.c.bf16 %v6339_v29, %v6275_v7 }
 0x372   : > { %7774 = vmatprep.subr.bf16.mxu0 %v6597_v32  ;;  %7815 = vmatprep.subr.bf16.mxu1 %v6599_v13  ;;  %v13752_v32 = vld [vmem:[#allocation28_spill] sm:$0xff]  ;;  %v13765_v13 = vrot.slane %v12816_v53, %v12763_v33  ;;  %v12982_v8 = vadd.f32 %v6202_v19, %v12221_v4  ;;  %v12994_v15 = vadd.f32 %v6204_v1, %v12243_v22 }
 0x373   : > { %v6153_v10 = vpop.f32.mrf.mxu0  ;;  %7775 = vmatpush1.bf16.msra.mxu0 %v6596_v63  ;;  %v12928_v24 = vmul.f32 %v13752_v32, %v8365_v51  ;;  %v6206_v39 = vpop.f32.mrf.mxu1  ;;  %7816 = vmatpush1.bf16.msra.mxu1 %v6598_v2  ;;  %v12946_v51 = vmul.f32 %v8377_v18, %v13755_v41  ;;  %13758 = vst [vmem:[#allocation25_spill] sm:$0xff] %v12952_v38  ;;  %v13764_v63 = vld [vmem:[#allocation37_spill] sm:$0xff] }
 0x374   : > { %7776 = vmatprep.subr.bf16.mxu0 %v6533_v9  ;;  %v12958_v23 = vmul.f32 %v13760_v45, %v13759_v0  ;;  %7817 = vmatprep.subr.bf16.mxu1 %v6535_v16  ;;  %v13761_v18 = vrot.slane %v12816_v53, %v12760_v44  ;;  %v12973_v56 = vmul.f32 %v13765_v13, %v13764_v63  ;;  %v6345_v63 = vmax.f32 %v12994_v15, 0.0 }
 0x375   : > { %v6157_v59 = vpop.f32.mrf.mxu0  ;;  %v6534_v9 = vpack.c.bf16 %v6341_v49, %v6277_v42  ;;  %v12976_v2 = vadd.f32 %v6149_v57, %v12221_v4  ;;  %v6210_v29 = vpop.f32.mrf.mxu1  ;;  %v7945_v16 = vrot.slane %v12742_v43, %v12746_v36  ;;  %v7953_v32 = vrot.slane %v12742_v43, %v12757_v46 }
 0x376   : > { %v12967_v28 = vmul.f32 %v13762_v55, %v13761_v18  ;;  %13766 = vst [vmem:[#allocation26_spill] sm:$0xff] %v12973_v56  ;;  %v7949_v49 = vrot.slane %v12742_v43, %v12752_v37  ;;  %v12991_v57 = vadd.f32 %v6151_v21, %v12243_v22  ;;  %v7957_v42 = vrot.slane %v12742_v43, %v12760_v44 }
 0x377   : > { %v6159_v7 = vpop.f32.mrf.mxu0  ;;  %7777 = vmatpush1.bf16.msra.mxu0 %v6532_v62  ;;  %v6212_v3 = vpop.f32.mrf.mxu1  ;;  %7818 = vmatpush1.bf16.msra.mxu1 %v6534_v9  ;;  %v13002_v41 = vadd.f32 %v12899_v40, %v12221_v4  ;;  %v6154_v35 = vadd.f32 %v6153_v10, %v12243_v22  ;;  %v6207_v21 = vadd.f32 %v6206_v39, %v12243_v22  ;;  %v6280_v45 = vmax.f32 %v12976_v2, 0.0 }
 0x378   : > { %13763 = vst [vmem:[#allocation24_spill] sm:$0xff] %v12967_v28  ;;  %v13010_v0 = vadd.f32 %v12901_v54, %v12221_v4  ;;  %v6160_v62 = vadd.f32 %v6159_v7, %v12158_v5  ;;  %v6282_v22 = vmax.f32 %v12982_v8, 0.0  ;;  %v6158_v10 = vadd.f32 %v6157_v59, %v12158_v5  ;;  %v13029_v59 = vpop.permute.xlu0 %6607 }
 0x379   : > { %v6161_v52 = vpop.f32.mrf.mxu0  ;;  %v6214_v40 = vpop.f32.mrf.mxu1  ;;  %v6213_v39 = vadd.f32 %v6212_v3, %v12158_v5  ;;  %v6343_v54 = vmax.f32 %v12991_v57, 0.0  ;;  %v6211_v13 = vadd.f32 %v6210_v29, %v12158_v5  ;;  %v6344_v8 = vmax.f32 %v6154_v35, 0.0 }
 0x37a   : > { %v6162_v18 = vadd.f32 %v6161_v52, %v12189_v48  ;;  %9886 = vmatmul.mubr.msk.bf16.vlgmr.msra.gmra.mxu0 %vm6610_vm7, %v12665_v30  ;;  %v6215_v55 = vadd.f32 %v6214_v40, %v12189_v48  ;;  %9887 = vmatmul.mubr.msk.bf16.vlgmr.msra.gmra.mxu1 %vm6610_vm7, %v12665_v30  ;;  %v6346_v7 = vmax.f32 %v6207_v21, 0.0  ;;  %v6408_v1 = vmax.f32 %v6160_v62, 0.0 }
 0x37b   : > { %v6163_v4 = vpop.f32.mrf.mxu0  ;;  %7876 = vmatprep.mubr.bf16.mxu0 %v13720_v12  ;;  %v6216_v2 = vpop.f32.mrf.mxu1  ;;  %7917 = vmatprep.mubr.bf16.mxu1 %v13720_v12  ;;  %v6407_v5 = vmax.f32 %v6158_v10, 0.0  ;;  %v6410_v29 = vmax.f32 %v6213_v39, 0.0  ;;  %v6409_v60 = vmax.f32 %v6211_v13, 0.0 }
 0x37c   : > { %v6164_v9 = vadd.f32 %v6163_v4, %v12189_v48  ;;  %v6471_v3 = vmax.f32 %v6162_v18, 0.0  ;;  %v6217_v52 = vadd.f32 %v6216_v2, %v12189_v48  ;;  %v6473_v19 = vmax.f32 %v6215_v55, 0.0 }
 0x37d   : > { %v6648_v40 = vpop.f32.mrf.mxu0  ;;  %v6689_v26 = vpop.f32.mrf.mxu1 }
 0x37e   : > { %v6472_v57 = vmax.f32 %v6164_v9, 0.0  ;;  %v6649_v15 = vadd.f32 %v6648_v40, %v13029_v59  ;;  %v6474_v4 = vmax.f32 %v6217_v52, 0.0  ;;  %v6690_v56 = vadd.f32 %v6689_v26, %v13029_v59 }
 0x37f   : > { %v6650_v12 = vpop.f32.mrf.mxu0  ;;  %v6691_v18 = vpop.f32.mrf.mxu1  ;;  %v6600_v48 = vpack.c.bf16 %v6471_v3, %v6407_v5  ;;  %v6537_v40 = vpack.c.bf16 %v6344_v8, %v6280_v45  ;;  %v6602_v38 = vpack.c.bf16 %v6473_v19, %v6409_v60  ;;  %v6279_v26 = vmax.f32 %v13002_v41, 0.0  ;;  %v13769_v8 = vld [vmem:[#allocation35_spill] sm:$0xff] }
 0x380   : > { %v6601_v28 = vpack.c.bf16 %v6472_v57, %v6408_v1  ;;  %v8262_v35 = vmul.f32 %v7945_v16, %v6649_v15  ;;  %v6651_v21 = vadd.f32 %v6650_v12, %v13029_v59  ;;  %v6603_v2 = vpack.c.bf16 %v6474_v4, %v6410_v29  ;;  %v8824_v15 = vld [vmem:[%s10550_s4 + $0x10] sm:$0xff] }
 0x381   : > { %v8264_v62 = vmul.f32 %v7953_v32, %v6690_v56  ;;  %v6692_v55 = vadd.f32 %v6691_v18, %v13029_v59  ;;  %v6652_v9 = vpop.f32.mrf.mxu0  ;;  %v6693_v52 = vpop.f32.mrf.mxu1  ;;  %v6539_v1 = vpack.c.bf16 %v6346_v7, %v6282_v22  ;;  %v6281_v56 = vmax.f32 %v13010_v0, 0.0 }
 0x382   : > { %v8726_v10 = vadd.f32 %v12864_v11, %v8262_v35  ;;  %v8263_v39 = vmul.f32 %v7949_v49, %v6651_v21  ;;  %7856 = vmatprep.subr.bf16.mxu0 %v6601_v28  ;;  %7897 = vmatprep.subr.bf16.mxu1 %v6603_v2  ;;  %v7961_v11 = vrot.slane %v12742_v43, %v12763_v33  ;;  %v8825_v21 = vld [vmem:[%s10550_s4 + $0x18] sm:$0xff] }
 0x383   : > { %v8728_v16 = vadd.f32 %v12909_v17, %v8264_v62  ;;  %v8265_v13 = vmul.f32 %v7957_v42, %v6692_v55  ;;  %v6653_v3 = vpop.f32.mrf.mxu0  ;;  %7857 = vmatpush1.bf16.msra.mxu0 %v6600_v48  ;;  %v6694_v19 = vpop.f32.mrf.mxu1  ;;  %7898 = vmatpush1.bf16.msra.mxu1 %v6602_v38  ;;  %v6536_v28 = vpack.c.bf16 %v6343_v54, %v6279_v26  ;;  %v8790_v62 = vld [vmem:[#allocation3 + $0xb0] sm:$0xff] }
 0x384   : > { %v8950_v32 = vsub.f32 %v8726_v10, %v12961_v25  ;;  %v8727_v60 = vadd.f32 %v12867_v61, %v8263_v39  ;;  %7858 = vmatprep.subr.bf16.mxu0 %v6537_v40  ;;  %7899 = vmatprep.subr.bf16.mxu1 %v6539_v1  ;;  %v7969_v41 = vrot.slane %v12742_v43, %v12769_v20  ;;  %v8791_v39 = vld [vmem:[#allocation3] sm:$0xff] }
 0x385   : > { %v8952_v17 = vsub.f32 %v8728_v16, %v12979_v58  ;;  %v8729_v49 = vadd.f32 %v12915_v47, %v8265_v13  ;;  %v6730_v42 = vpop.f32.mrf.mxu0  ;;  %v6538_v0 = vpack.c.bf16 %v6345_v63, %v6281_v56  ;;  %v13767_v61 = vcombine.high %v12961_v25, %v12961_v25  ;;  %v6771_v22 = vpop.f32.mrf.mxu1 }
 0x386   : > { %v6731_v45 = vadd.f32 %v6730_v42, %v13029_v59  ;;  %v7965_v54 = vrot.slane %v12742_v43, %v12766_v50  ;;  %v13768_v47 = vrot.slane %v12816_v53, %v12766_v50  ;;  %v13770_v57 = vcombine.high %v12979_v58, %v12979_v58 }
 0x387   : > { %v8951_v38 = vsub.f32 %v8727_v60, %v13767_v61  ;;  %v6772_v25 = vadd.f32 %v6771_v22, %v13029_v59  ;;  %v6732_v5 = vpop.f32.mrf.mxu0  ;;  %v7973_v29 = vrot.slane %v12742_v43, %v12781_v34  ;;  %7859 = vmatpush1.bf16.msra.mxu0 %v6536_v28  ;;  %v9014_v4 = vand.u32 2147483647, %v8950_v32  ;;  %v6773_v48 = vpop.f32.mrf.mxu1  ;;  %7900 = vmatpush1.bf16.msra.mxu1 %v6538_v0  ;;  %v13771_v0 = vld [vmem:[#allocation38_spill] sm:$0xff] }
 0x388   : > { %v13058_v7 = vmul.f32 %v13769_v8, %v13768_v47  ;;  %v8953_v63 = vsub.f32 %v8729_v49, %v13770_v57  ;;  %v8266_v35 = vmul.f32 %v7961_v11, %v6731_v45  ;;  %v6733_v18 = vadd.f32 %v6732_v5, %v13029_v59  ;;  %v8826_v57 = vld [vmem:[%s10550_s4 + $0x20] sm:$0xff] }
 0x389   : > { %v9015_v12 = vand.u32 2147483647, %v8951_v38  ;;  %v9016_v2 = vand.u32 2147483647, %v8952_v17  ;;  %v8268_v55 = vmul.f32 %v7969_v41, %v6772_v25  ;;  %v6774_v9 = vadd.f32 %v6773_v48, %v13029_v59  ;;  %v6734_v40 = vpop.f32.mrf.mxu0  ;;  %v6775_v1 = vpop.f32.mrf.mxu1 }
 0x38a   : > { %v9017_v58 = vand.u32 2147483647, %v8953_v63  ;;  %v8730_v43 = vadd.f32 %v12921_v14, %v8266_v35  ;;  %v8267_v52 = vmul.f32 %v7965_v54, %v6733_v18  ;;  %v8888_v26 = vcombine.high %v8824_v15, %v8824_v15  ;;  %9888 = vmatmul.mubr.msk.bf16.vlgmr.msra.gmra.mxu0 %vm6610_vm7, %v12665_v30  ;;  %9889 = vmatmul.mubr.msk.bf16.vlgmr.msra.gmra.mxu1 %vm6610_vm7, %v12665_v30  ;;  %v13774_v54 = vld [vmem:[#allocation36_spill] sm:$0xff]  ;;  %v8792_v18 = vld [vmem:[#allocation3 + $0xd8] sm:$0xff] }
 0x38b   : > { %v9142_v10 = vcombine.low %v9014_v4, %v9015_v12  ;;  %v8732_v13 = vadd.f32 %v12934_v27, %v8268_v55  ;;  %v8269_v3 = vmul.f32 %v7973_v29, %v6774_v9  ;;  %v8889_v56 = vcombine.high %v8825_v21, %v8825_v21  ;;  %v6735_v32 = vpop.f32.mrf.mxu0  ;;  %v6776_v14 = vpop.f32.mrf.mxu1  ;;  %v8827_v12 = vld [vmem:[%s10550_s4 + $0x28] sm:$0xff]  ;;  %v8793_v9 = vld [vmem:[#allocation3 + $0x18] sm:$0xff] }
 0x38c   : > { %v9143_v16 = vcombine.low %v9016_v2, %v9017_v58  ;;  %v8954_v19 = vsub.f32 %v8730_v43, %v8824_v15  ;;  %v8731_v11 = vadd.f32 %v12928_v24, %v8267_v52  ;;  %v7977_v28 = vrot.slane %v12802_v6, %v12746_v36  ;;  %v13775_v32 = vld [vmem:[#allocation25_spill] sm:$0xff] }
 0x38d   : > { %v9206_v60 = vadd.f32 %v9142_v10, %v8790_v62  ;;  %v8956_v49 = vsub.f32 %v8732_v13, %v8825_v21  ;;  %v8733_v42 = vadd.f32 %v12940_v31, %v8269_v3  ;;  %v6812_v27 = vpop.f32.mrf.mxu0  ;;  %v7985_v41 = vrot.slane %v12802_v6, %v12757_v46  ;;  %v6853_v45 = vpop.f32.mrf.mxu1 }
 0x38e   : > { %v9207_v17 = vadd.f32 %v9143_v16, %v8791_v39  ;;  %v13772_v30 = vrot.slane %v12816_v53, %v12769_v20  ;;  %v8955_v24 = vsub.f32 %v8731_v11, %v8888_v26  ;;  %v6813_v38 = vadd.f32 %v6812_v27, %v13029_v59  ;;  %v13778_v27 = vld [vmem:[#allocation88_spill] sm:$0xff] }
 0x38f   : > { %9238 = vst [vmem:[#allocation3 + $0xb0] sm:$0xff] %v9206_v60  ;;  %v7981_v22 = vrot.slane %v12802_v6, %v12752_v37  ;;  %v13773_v31 = vrot.slane %v12816_v53, %v12781_v34  ;;  %v8957_v8 = vsub.f32 %v8733_v42, %v8889_v56  ;;  %v6854_v63 = vadd.f32 %v6853_v45, %v13029_v59  ;;  %v6814_v15 = vpop.f32.mrf.mxu0  ;;  %v6855_v21 = vpop.f32.mrf.mxu1  ;;  %v13777_v42 = vld [vmem:[#allocation41_spill] sm:$0xff] }
 0x390   : > { %v13086_v61 = vmul.f32 %v13772_v30, %v13771_v0  ;;  %9239 = vst [vmem:[#allocation3] sm:$0xff] %v9207_v17  ;;  %v7989_v25 = vrot.slane %v12802_v6, %v12760_v44  ;;  %v9018_v5 = vand.u32 2147483647, %v8954_v19  ;;  %v9019_v29 = vand.u32 2147483647, %v8955_v24 }
 0x391   : > { %v13095_v47 = vmul.f32 %v13774_v54, %v13773_v31  ;;  %v8270_v4 = vmul.f32 %v7977_v28, %v6813_v38  ;;  %v6815_v35 = vadd.f32 %v6814_v15, %v13029_v59  ;;  %v9020_v53 = vand.u32 2147483647, %v8956_v49  ;;  %v6816_v58 = vpop.f32.mrf.mxu0  ;;  %v6857_v43 = vpop.f32.mrf.mxu1  ;;  %v13776_v28 = vld [vmem:[#allocation24_spill] sm:$0xff]  ;;  %v13781_v31 = vld [vmem:[#allocation39_spill] sm:$0xff] }
 0x392   : > { %v9021_v48 = vand.u32 2147483647, %v8957_v8  ;;  %v8272_v2 = vmul.f32 %v7985_v41, %v6854_v63  ;;  %v6856_v62 = vadd.f32 %v6855_v21, %v13029_v59  ;;  %v9144_v55 = vcombine.low %v9018_v5, %v9019_v29 }
 0x393   : > { %v8734_v40 = vadd.f32 %v12946_v51, %v8270_v4  ;;  %v8271_v10 = vmul.f32 %v7981_v22, %v6815_v35  ;;  %v8890_v39 = vcombine.high %v8826_v57, %v8826_v57  ;;  %v8891_v16 = vcombine.high %v8827_v12, %v8827_v12  ;;  %v6817_v13 = vpop.f32.mrf.mxu0  ;;  %v6858_v19 = vpop.f32.mrf.mxu1 }
 0x394   : > { %v9145_v52 = vcombine.low %v9020_v53, %v9021_v48  ;;  %v8736_v26 = vadd.f32 %v12958_v23, %v8272_v2  ;;  %v8273_v1 = vmul.f32 %v7989_v25, %v6856_v62  ;;  %v9208_v3 = vadd.f32 %v9144_v55, %v8792_v18  ;;  %v8794_v18 = vld [vmem:[#allocation3 + $0x50] sm:$0xff]  ;;  %v13783_v19 = vld [vmem:[#allocation87_spill] sm:$0xff] }
 0x395   : > { %v8958_v56 = vsub.f32 %v8734_v40, %v8826_v57  ;;  %v8735_v60 = vadd.f32 %v13775_v32, %v8271_v10  ;;  %v7993_v11 = vrot.slane %v12802_v6, %v12763_v33  ;;  %v6894_v49 = vpop.f32.mrf.mxu0  ;;  %v8001_v23 = vrot.slane %v12802_v6, %v12769_v20  ;;  %v6935_v38 = vpop.f32.mrf.mxu1  ;;  %v8828_v57 = vld [vmem:[%s10550_s4 + $0x30] sm:$0xff] }
 0x396   : > { %v9209_v14 = vadd.f32 %v9145_v52, %v8793_v9  ;;  %v8960_v51 = vsub.f32 %v8736_v26, %v8827_v12  ;;  %v8737_v17 = vadd.f32 %v13776_v28, %v8273_v1  ;;  %v13779_v41 = vrot.slane %v13778_v27, %v12746_v36  ;;  %9240 = vst [vmem:[#allocation3 + $0xd8] sm:$0xff] %v9208_v3  ;;  %v8829_v12 = vld [vmem:[%s10550_s4 + $0x38] sm:$0xff]  ;;  %v8795_v9 = vld [vmem:[#allocation3 + $0x68] sm:$0xff]  ;;  %v13782_v40 = vld [vmem:[#allocation26_spill] sm:$0xff] }
 0x397   : > { %v8959_v30 = vsub.f32 %v8735_v60, %v8890_v39  ;;  %v6895_v24 = vadd.f32 %v6894_v49, %v13029_v59  ;;  %v7997_v45 = vrot.slane %v12802_v6, %v12766_v50  ;;  %v13780_v22 = vrot.slane %v13778_v27, %v12752_v37  ;;  %v6896_v15 = vpop.f32.mrf.mxu0  ;;  %v6937_v21 = vpop.f32.mrf.mxu1  ;;  %v13784_v49 = vld [vmem:[#allocation42_spill] sm:$0xff] }
 0x398   : > { %v13116_v0 = vmul.f32 %v13779_v41, %v13777_v42  ;;  %9241 = vst [vmem:[#allocation3 + $0x18] sm:$0xff] %v9209_v14  ;;  %v8961_v8 = vsub.f32 %v8737_v17, %v8891_v16  ;;  %v6936_v63 = vadd.f32 %v6935_v38, %v13029_v59  ;;  %v8005_v25 = vrot.slane %v12802_v6, %v12781_v34  ;;  %v13787_v38 = vld [vmem:[#allocation40_spill] sm:$0xff] }
 0x399   : > { %v13125_v54 = vmul.f32 %v13781_v31, %v13780_v22  ;;  %v9022_v5 = vand.u32 2147483647, %v8958_v56  ;;  %v9023_v29 = vand.u32 2147483647, %v8959_v30  ;;  %v8274_v4 = vmul.f32 %v7993_v11, %v6895_v24  ;;  %v6898_v58 = vpop.f32.mrf.mxu0  ;;  %v6939_v43 = vpop.f32.mrf.mxu1  ;;  %v8830_v31 = vld [vmem:[%s10550_s4 + $0x40] sm:$0xff] }
 0x39a   : > { %v6897_v35 = vadd.f32 %v6896_v15, %v13029_v59  ;;  %v9024_v53 = vand.u32 2147483647, %v8960_v51  ;;  %v9025_v48 = vand.u32 2147483647, %v8961_v8  ;;  %v8276_v2 = vmul.f32 %v8001_v23, %v6936_v63  ;;  %v8797_v58 = vld [vmem:[#allocation3 + $0x48] sm:$0xff] }
 0x39b   : > { %v6938_v62 = vadd.f32 %v6937_v21, %v13029_v59  ;;  %v9146_v55 = vcombine.low %v9022_v5, %v9023_v29  ;;  %v8738_v10 = vadd.f32 %v13782_v40, %v8274_v4  ;;  %v8892_v6 = vcombine.high %v8828_v57, %v8828_v57  ;;  %v6899_v13 = vpop.f32.mrf.mxu0  ;;  %v6940_v60 = vpop.f32.mrf.mxu1  ;;  %v8831_v29 = vld [vmem:[%s10550_s4 + $0x48] sm:$0xff]  ;;  %v8796_v21 = vld [vmem:[#allocation3 + $0x30] sm:$0xff] }
 0x39c   : > { %v8275_v39 = vmul.f32 %v7997_v45, %v6897_v35  ;;  %v9147_v52 = vcombine.low %v9024_v53, %v9025_v48  ;;  %v8740_v26 = vadd.f32 %v13086_v61, %v8276_v2  ;;  %v8893_v16 = vcombine.high %v8829_v12, %v8829_v12 }
 0x39d   : > { %v8277_v1 = vmul.f32 %v8005_v25, %v6938_v62  ;;  %v9210_v3 = vadd.f32 %v9146_v55, %v8794_v18  ;;  %v8962_v56 = vsub.f32 %v8738_v10, %v8828_v57  ;;  %v8009_v11 = vrot.slane %v13783_v19, %v12746_v36  ;;  %v6976_v17 = vpop.f32.mrf.mxu0  ;;  %v7017_v30 = vpop.f32.mrf.mxu1 }
 0x39e   : > { %v8739_v32 = vadd.f32 %v13058_v7, %v8275_v39  ;;  %v9211_v14 = vadd.f32 %v9147_v52, %v8795_v9  ;;  %v8964_v51 = vsub.f32 %v8740_v26, %v8829_v12  ;;  %v8017_v61 = vrot.slane %v13783_v19, %v12757_v46 }
 0x39f   : > { %v8741_v28 = vadd.f32 %v13095_v47, %v8277_v1  ;;  %v13785_v23 = vrot.slane %v13778_v27, %v12757_v46  ;;  %9242 = vst [vmem:[#allocation3 + $0x50] sm:$0xff] %v9210_v3  ;;  %v6977_v41 = vadd.f32 %v6976_v17, %v13029_v59  ;;  %v8013_v24 = vrot.slane %v13783_v19, %v12752_v37  ;;  %v6978_v57 = vpop.f32.mrf.mxu0  ;;  %v7019_v12 = vpop.f32.mrf.mxu1 }
 0x3a0   : > { %v8963_v7 = vsub.f32 %v8739_v32, %v8892_v6  ;;  %v13786_v47 = vrot.slane %v13778_v27, %v12760_v44  ;;  %9243 = vst [vmem:[#allocation3 + $0x68] sm:$0xff] %v9211_v14  ;;  %v7018_v8 = vadd.f32 %v7017_v30, %v13029_v59  ;;  %v8021_v63 = vrot.slane %v13783_v19, %v12760_v44 }
 0x3a1   : > { %v8680_v42 = vmul.f32 %v13785_v23, %v13784_v49  ;;  %v8965_v22 = vsub.f32 %v8741_v28, %v8893_v16  ;;  %v9026_v15 = vand.u32 2147483647, %v8962_v56  ;;  %v8278_v5 = vmul.f32 %v8009_v11, %v6977_v41  ;;  %v6980_v2 = vpop.f32.mrf.mxu0  ;;  %v7021_v10 = vpop.f32.mrf.mxu1  ;;  %v8798_v49 = vld [vmem:[#allocation3 + $0x80] sm:$0xff] }
 0x3a2   : > { %v8681_v45 = vmul.f32 %v13787_v38, %v13786_v47  ;;  %v9027_v25 = vand.u32 2147483647, %v8963_v7  ;;  %v6979_v4 = vadd.f32 %v6978_v57, %v13029_v59  ;;  %v9028_v35 = vand.u32 2147483647, %v8964_v51  ;;  %v13788_v57 = vld [vmem:[#allocation45_spill] sm:$0xff]  ;;  %v13790_v2 = vld [vmem:[#allocation43_spill] sm:$0xff] }
 0x3a3   : > { %v9029_v53 = vand.u32 2147483647, %v8965_v22  ;;  %v8280_v18 = vmul.f32 %v8017_v61, %v7018_v8  ;;  %v7020_v48 = vadd.f32 %v7019_v12, %v13029_v59  ;;  %v8742_v55 = vadd.f32 %v13116_v0, %v8278_v5  ;;  %v6981_v26 = vpop.f32.mrf.mxu0  ;;  %v7022_v3 = vpop.f32.mrf.mxu1 }
 0x3a4   : > { %v9148_v62 = vcombine.low %v9026_v15, %v9027_v25  ;;  %v8279_v9 = vmul.f32 %v8013_v24, %v6979_v4  ;;  %v8894_v40 = vcombine.high %v8830_v31, %v8830_v31  ;;  %v8895_v52 = vcombine.high %v8831_v29, %v8831_v29  ;;  %v8799_v24 = vld [vmem:[#allocation3 + $0x88] sm:$0xff]  ;;  %v13789_v15 = vld [vmem:[#allocation46_spill] sm:$0xff] }
 0x3a5   : > { %v9149_v39 = vcombine.low %v9028_v35, %v9029_v53  ;;  %v8744_v6 = vadd.f32 %v8680_v42, %v8280_v18  ;;  %v8281_v43 = vmul.f32 %v8021_v63, %v7020_v48  ;;  %v8966_v16 = vsub.f32 %v8742_v55, %v8830_v31  ;;  %v8833_v18 = vld [vmem:[%s10550_s4 + $0x58] sm:$0xff] }
 0x3a6   : > { %v9212_v1 = vadd.f32 %v9148_v62, %v8796_v21  ;;  %v8743_v13 = vadd.f32 %v13125_v54, %v8279_v9  ;;  %v8425_v14 = vrot.slane %v13778_v27, %v12763_v33  ;;  %v8433_v51 = vrot.slane %v13778_v27, %v12769_v20 }
 0x3a7   : > { %v9213_v56 = vadd.f32 %v9149_v39, %v8797_v58  ;;  %v8968_v32 = vsub.f32 %v8744_v6, %v8831_v29  ;;  %v8745_v60 = vadd.f32 %v8681_v45, %v8281_v43  ;;  %v9030_v28 = vand.u32 2147483647, %v8966_v16  ;;  %v8832_v29 = vld [vmem:[%s10550_s4 + $0x50] sm:$0xff] }
 0x3a8   : > { %9244 = vst [vmem:[#allocation3 + $0x30] sm:$0xff] %v9212_v1  ;;  %v8967_v11 = vsub.f32 %v8743_v13, %v8894_v40  ;;  %v8025_v54 = vrot.slane %v13783_v19, %v12763_v33  ;;  %v8033_v42 = vrot.slane %v13783_v19, %v12769_v20  ;;  %v8429_v7 = vrot.slane %v13778_v27, %v12766_v50  ;;  %v13189_v13 = vld [vmem:[%s10548_s29 + $0x18] sm:$0xff] }
 0x3a9   : > { %9245 = vst [vmem:[#allocation3 + $0x48] sm:$0xff] %v9213_v56  ;;  %v8969_v0 = vsub.f32 %v8745_v60, %v8895_v52  ;;  %v9032_v61 = vand.u32 2147483647, %v8968_v32  ;;  %v8437_v41 = vrot.slane %v13778_v27, %v12781_v34  ;;  %v8029_v8 = vrot.slane %v13783_v19, %v12766_v50 }
 0x3aa   : > { %v9031_v17 = vand.u32 2147483647, %v8967_v11  ;;  %v7058_v47 = vpop.f32.mrf.mxu0  ;;  %v7099_v38 = vpop.f32.mrf.mxu1  ;;  %v8682_v63 = vmul.f32 %v8425_v14, %v13788_v57  ;;  %v8684_v25 = vmul.f32 %v8433_v51, %v13789_v15  ;;  %v8037_v12 = vrot.slane %v13783_v19, %v12781_v34  ;;  %v13791_v19 = vld [vmem:[#allocation44_spill] sm:$0xff] }
 0x3ab   : > { %v9033_v23 = vand.u32 2147483647, %v8969_v0  ;;  %v7059_v22 = vadd.f32 %v7058_v47, %v13029_v59  ;;  %v7100_v31 = vadd.f32 %v7099_v38, %v13029_v59  ;;  %v8683_v62 = vmul.f32 %v13790_v2, %v8429_v7 }
 0x3ac   : > { %v9150_v30 = vcombine.low %v9030_v28, %v9031_v17  ;;  %v7060_v27 = vpop.f32.mrf.mxu0  ;;  %v7101_v4 = vpop.f32.mrf.mxu1  ;;  %v8896_v6 = vcombine.high %v8832_v29, %v8832_v29  ;;  %v8685_v43 = vmul.f32 %v13791_v19, %v8437_v41  ;;  %v8897_v26 = vcombine.high %v8833_v18, %v8833_v18 }
 0x3ad   : > { %v9151_v45 = vcombine.low %v9032_v61, %v9033_v23  ;;  %v8282_v21 = vmul.f32 %v8025_v54, %v7059_v22  ;;  %v8284_v53 = vmul.f32 %v8033_v42, %v7100_v31  ;;  %v7061_v48 = vadd.f32 %v7060_v27, %v13029_v59  ;;  %v8800_v61 = vld [vmem:[#allocation3 + $0xe8] sm:$0xff]  ;;  %v8801_v54 = vld [vmem:[#allocation3 + $0xb8] sm:$0xff] }
 0x3ae   : > { %v9214_v5 = vadd.f32 %v9150_v30, %v8798_v49  ;;  %v7102_v58 = vadd.f32 %v7101_v4, %v13029_v59  ;;  %v7062_v55 = vpop.f32.mrf.mxu0  ;;  %v7103_v9 = vpop.f32.mrf.mxu1  ;;  %v13192_v0 = vsub.f32 1.0, %v13189_v13  ;;  %v8049_v47 = vrot.slane %v13189_v13, %v12757_v46  ;;  %v13792_v27 = vld [vmem:[#allocation49_spill] sm:$0xff] }
 0x3af   : > { %v9215_v35 = vadd.f32 %v9151_v45, %v8799_v24  ;;  %v8746_v40 = vadd.f32 %v8682_v63, %v8282_v21  ;;  %v8748_v10 = vadd.f32 %v8684_v25, %v8284_v53  ;;  %v8283_v39 = vmul.f32 %v8029_v8, %v7061_v48  ;;  %v8834_v63 = vld [vmem:[%s10550_s4 + $0x60] sm:$0xff]  ;;  %v8835_v25 = vld [vmem:[%s10550_s4 + $0x68] sm:$0xff] }
 0x3b0   : > { %9246 = vst [vmem:[#allocation3 + $0x80] sm:$0xff] %v9214_v5  ;;  %v8285_v52 = vmul.f32 %v8037_v12, %v7102_v58  ;;  %v7063_v1 = vpop.f32.mrf.mxu0  ;;  %v7104_v16 = vpop.f32.mrf.mxu1  ;;  %v8441_v42 = vrot.slane %v13192_v0, %v12746_v36  ;;  %v8449_v7 = vrot.slane %v13192_v0, %v12757_v46  ;;  %v8041_v24 = vrot.slane %v13189_v13, %v12746_v36  ;;  %v13793_v12 = vld [vmem:[#allocation50_spill] sm:$0xff]  ;;  %v13794_v58 = vld [vmem:[#allocation47_spill] sm:$0xff]  ;;  %v13795_v9 = vld [vmem:[#allocation48_spill] sm:$0xff] }
 0x3b1   : > { %9247 = vst [vmem:[#allocation3 + $0x88] sm:$0xff] %v9215_v35  ;;  %v8970_v3 = vsub.f32 %v8746_v40, %v8832_v29  ;;  %v8747_v56 = vadd.f32 %v8683_v62, %v8283_v39  ;;  %v8972_v32 = vsub.f32 %v8748_v10, %v8833_v18  ;;  %v8445_v38 = vrot.slane %v13192_v0, %v12752_v37 }
 0x3b2   : > { %v8749_v60 = vadd.f32 %v8685_v43, %v8285_v52  ;;  %v8453_v45 = vrot.slane %v13192_v0, %v12760_v44  ;;  %v8045_v5 = vrot.slane %v13189_v13, %v12752_v37  ;;  %v8053_v29 = vrot.slane %v13189_v13, %v12760_v44 }
 0x3b3   : > { %v8971_v11 = vsub.f32 %v8747_v56, %v8896_v6  ;;  %v9034_v51 = vand.u32 2147483647, %v8970_v3  ;;  %v9036_v17 = vand.u32 2147483647, %v8972_v32  ;;  %v8686_v4 = vmul.f32 %v8441_v42, %v13792_v27 }
 0x3b4   : > { %v8973_v14 = vsub.f32 %v8749_v60, %v8897_v26  ;;  %v8688_v35 = vmul.f32 %v8449_v7, %v13793_v12  ;;  %v8687_v55 = vmul.f32 %v13794_v58, %v8445_v38  ;;  %v8689_v40 = vmul.f32 %v13795_v9, %v8453_v45  ;;  %v13798_v58 = vld [vmem:[#allocation51_spill] sm:$0xff]  ;;  %v13799_v9 = vld [vmem:[#allocation52_spill] sm:$0xff] }
 0x3b5   : > { %v9035_v28 = vand.u32 2147483647, %v8971_v11  ;;  %v8898_v10 = vcombine.high %v8834_v63, %v8834_v63  ;;  %v8899_v39 = vcombine.high %v8835_v25, %v8835_v25  ;;  %v8057_v38 = vrot.slane %v13189_v13, %v12763_v33 }
 0x3b6   : > { %v9037_v49 = vand.u32 2147483647, %v8973_v14  ;;  %v8065_v45 = vrot.slane %v13189_v13, %v12769_v20  ;;  %v8069_v27 = vrot.slane %v13189_v13, %v12781_v34 }
 0x3b7   : > { %v9152_v23 = vcombine.low %v9034_v51, %v9035_v28 }
 0x3b8   : > { %v9153_v41 = vcombine.low %v9036_v17, %v9037_v49 }
 0x3b9   : > { %v9216_v30 = vadd.f32 %v9152_v23, %v8800_v61  ;;  %v8802_v23 = vld [vmem:[#allocation3 + $0x60] sm:$0xff] }
 0x3ba   : > { %v9217_v22 = vadd.f32 %v9153_v41, %v8801_v54  ;;  %v7140_v31 = vpop.f32.mrf.mxu0  ;;  %v7181_v8 = vpop.f32.mrf.mxu1  ;;  %v8803_v54 = vld [vmem:[#allocation3 + $0xf0] sm:$0xff]  ;;  %v8457_v41 = vrot.slane %v13192_v0, %v12763_v33 }
 0x3bb   : > { %9248 = vst [vmem:[#allocation3 + $0xe8] sm:$0xff] %v9216_v30  ;;  %v7141_v57 = vadd.f32 %v7140_v31, %v13029_v59  ;;  %v7182_v15 = vadd.f32 %v7181_v8, %v13029_v59  ;;  %v8465_v30 = vrot.slane %v13192_v0, %v12769_v20  ;;  %v8469_v31 = vrot.slane %v13192_v0, %v12781_v34 }
 0x3bc   : > { %9249 = vst [vmem:[#allocation3 + $0xb8] sm:$0xff] %v9217_v22  ;;  %v7142_v21 = vpop.f32.mrf.mxu0  ;;  %v7183_v53 = vpop.f32.mrf.mxu1  ;;  %v8461_v22 = vrot.slane %v13192_v0, %v12766_v50 }
 0x3bd   : > { %v8286_v18 = vmul.f32 %v8041_v24, %v7141_v57  ;;  %v8288_v48 = vmul.f32 %v8049_v47, %v7182_v15  ;;  %v7143_v2 = vadd.f32 %v7142_v21, %v13029_v59  ;;  %v7184_v62 = vadd.f32 %v7183_v53, %v13029_v59  ;;  %v8836_v15 = vld [vmem:[%s10550_s4 + $0x70] sm:$0xff] }
 0x3be   : > { %v7144_v6 = vpop.f32.mrf.mxu0  ;;  %v7185_v19 = vpop.f32.mrf.mxu1 }
 0x3bf   : > { %v8750_v43 = vadd.f32 %v8686_v4, %v8286_v18  ;;  %v8752_v52 = vadd.f32 %v8688_v35, %v8288_v48  ;;  %v8287_v26 = vmul.f32 %v8045_v5, %v7143_v2  ;;  %v8289_v1 = vmul.f32 %v8053_v29, %v7184_v62  ;;  %v8837_v5 = vld [vmem:[%s10550_s4 + $0x78] sm:$0xff]  ;;  %v13796_v4 = vld [vmem:[#allocation53_spill] sm:$0xff]  ;;  %v13797_v35 = vld [vmem:[#allocation54_spill] sm:$0xff] }
 0x3c0   : > { %v7145_v16 = vpop.f32.mrf.mxu0  ;;  %v7186_v3 = vpop.f32.mrf.mxu1  ;;  %v8061_v29 = vrot.slane %v13189_v13, %v12766_v50  ;;  %v8690_v12 = vmul.f32 %v8457_v41, %v13796_v4  ;;  %v8692_v0 = vmul.f32 %v8465_v30, %v13797_v35 }
 0x3c1   : > { %v8974_v56 = vsub.f32 %v8750_v43, %v8834_v63  ;;  %v8976_v32 = vsub.f32 %v8752_v52, %v8835_v25  ;;  %v8751_v60 = vadd.f32 %v8687_v55, %v8287_v26  ;;  %v8753_v11 = vadd.f32 %v8689_v40, %v8289_v1  ;;  %v13247_v3 = vld [vmem:[%s10548_s29 + $0x20] sm:$0xff] }
 0x3c2   : > { %v8691_v55 = vmul.f32 %v13798_v58, %v8461_v22  ;;  %v8693_v40 = vmul.f32 %v13799_v9, %v8469_v31  ;;  %v8081_v22 = vrot.slane %v13247_v3, %v12757_v46  ;;  %v8085_v4 = vrot.slane %v13247_v3, %v12760_v44 }
 0x3c3   : > { %v8975_v14 = vsub.f32 %v8751_v60, %v8898_v10  ;;  %v8977_v51 = vsub.f32 %v8753_v11, %v8899_v39  ;;  %v9038_v28 = vand.u32 2147483647, %v8974_v56  ;;  %v9040_v17 = vand.u32 2147483647, %v8976_v32 }
 0x3c4   : > { %v8900_v10 = vcombine.high %v8836_v15, %v8836_v15  ;;  %v8901_v39 = vcombine.high %v8837_v5, %v8837_v5 }
 0x3c5   : > { %v9039_v61 = vand.u32 2147483647, %v8975_v14  ;;  %v9041_v49 = vand.u32 2147483647, %v8977_v51 }
 0x3c7   : > { %v9154_v42 = vcombine.low %v9038_v28, %v9039_v61  ;;  %v9155_v7 = vcombine.low %v9040_v17, %v9041_v49  ;;  %v13250_v28 = vsub.f32 1.0, %v13247_v3 }
 0x3c9   : > { %v9218_v24 = vadd.f32 %v9154_v42, %v8802_v23  ;;  %v9219_v47 = vadd.f32 %v9155_v7, %v8803_v54  ;;  %v8804_v54 = vld [vmem:[#allocation3 + $0x8] sm:$0xff]  ;;  %v8805_v42 = vld [vmem:[#allocation3 + $0x78] sm:$0xff]  ;;  %v8473_v30 = vrot.slane %v13250_v28, %v12746_v36  ;;  %v8477_v31 = vrot.slane %v13250_v28, %v12752_v37 }
 0x3ca   : > { %v7222_v8 = vpop.f32.mrf.mxu0  ;;  %v7263_v57 = vpop.f32.mrf.mxu1 }
 0x3cb   : > { %9250 = vst [vmem:[#allocation3 + $0x60] sm:$0xff] %v9218_v24  ;;  %9251 = vst [vmem:[#allocation3 + $0xf0] sm:$0xff] %v9219_v47  ;;  %v7223_v63 = vadd.f32 %v7222_v8, %v13029_v59  ;;  %v7264_v25 = vadd.f32 %v7263_v57, %v13029_v59  ;;  %v8481_v24 = vrot.slane %v13250_v28, %v12757_v46 }
 0x3cc   : > { %v7224_v21 = vpop.f32.mrf.mxu0  ;;  %v7265_v53 = vpop.f32.mrf.mxu1  ;;  %v8485_v8 = vrot.slane %v13250_v28, %v12760_v44 }
 0x3cd   : > { %v8290_v18 = vmul.f32 %v8057_v38, %v7223_v63  ;;  %v8292_v48 = vmul.f32 %v8065_v45, %v7264_v25  ;;  %v7225_v2 = vadd.f32 %v7224_v21, %v13029_v59  ;;  %v7266_v62 = vadd.f32 %v7265_v53, %v13029_v59  ;;  %v8838_v25 = vld [vmem:[%s10550_s4 + $0x80] sm:$0xff] }
 0x3ce   : > { %v7226_v13 = vpop.f32.mrf.mxu0  ;;  %v7267_v6 = vpop.f32.mrf.mxu1  ;;  %v8073_v45 = vrot.slane %v13247_v3, %v12746_v36 }
 0x3cf   : > { %v8754_v19 = vadd.f32 %v8690_v12, %v8290_v18  ;;  %v8756_v43 = vadd.f32 %v8692_v0, %v8292_v48  ;;  %v8291_v52 = vmul.f32 %v8061_v29, %v7225_v2  ;;  %v8293_v26 = vmul.f32 %v8069_v27, %v7266_v62  ;;  %v8839_v29 = vld [vmem:[%s10550_s4 + $0x88] sm:$0xff]  ;;  %v13801_v0 = vld [vmem:[#allocation58_spill] sm:$0xff] }
 0x3d0   : > { %v7227_v1 = vpop.f32.mrf.mxu0  ;;  %v7268_v16 = vpop.f32.mrf.mxu1  ;;  %v8077_v27 = vrot.slane %v13247_v3, %v12752_v37  ;;  %v13800_v12 = vld [vmem:[#allocation57_spill] sm:$0xff]  ;;  %v8696_v21 = vmul.f32 %v8481_v24, %v13801_v0  ;;  %v8903_v13 = vcombine.high %v8839_v29, %v8839_v29  ;;  %v8489_v24 = vrot.slane %v13250_v28, %v12763_v33 }
 0x3d1   : > { %v8978_v56 = vsub.f32 %v8754_v19, %v8836_v15  ;;  %v8980_v32 = vsub.f32 %v8756_v43, %v8837_v5  ;;  %v8755_v60 = vadd.f32 %v8691_v55, %v8291_v52  ;;  %v8757_v11 = vadd.f32 %v8693_v40, %v8293_v26  ;;  %v13802_v55 = vld [vmem:[#allocation55_spill] sm:$0xff]  ;;  %v13803_v40 = vld [vmem:[#allocation56_spill] sm:$0xff] }
 0x3d2   : > { %v8694_v35 = vmul.f32 %v8473_v30, %v13800_v12  ;;  %v8695_v9 = vmul.f32 %v13802_v55, %v8477_v31  ;;  %v8097_v31 = vrot.slane %v13247_v3, %v12769_v20  ;;  %v8101_v12 = vrot.slane %v13247_v3, %v12781_v34  ;;  %v13806_v55 = vld [vmem:[#allocation59_spill] sm:$0xff] }
 0x3d3   : > { %v8979_v14 = vsub.f32 %v8755_v60, %v8900_v10  ;;  %v8981_v51 = vsub.f32 %v8757_v11, %v8901_v39  ;;  %v9042_v17 = vand.u32 2147483647, %v8978_v56  ;;  %v9044_v61 = vand.u32 2147483647, %v8980_v32 }
 0x3d4   : > { %v8697_v10 = vmul.f32 %v13803_v40, %v8485_v8  ;;  %v8902_v39 = vcombine.high %v8838_v25, %v8838_v25  ;;  %v8493_v8 = vrot.slane %v13250_v28, %v12766_v50  ;;  %v13807_v40 = vld [vmem:[#allocation60_spill] sm:$0xff] }
 0x3d5   : > { %v9043_v49 = vand.u32 2147483647, %v8979_v14  ;;  %v9045_v23 = vand.u32 2147483647, %v8981_v51 }
 0x3d7   : > { %v9156_v7 = vcombine.low %v9042_v17, %v9043_v49  ;;  %v9157_v41 = vcombine.low %v9044_v61, %v9045_v23 }
 0x3d9   : > { %v9220_v47 = vadd.f32 %v9156_v7, %v8804_v54  ;;  %v9221_v38 = vadd.f32 %v9157_v41, %v8805_v42  ;;  %v8806_v42 = vld [vmem:[#allocation3 + $0x38] sm:$0xff] }
 0x3da   : > { %v7304_v57 = vpop.f32.mrf.mxu0  ;;  %v7345_v63 = vpop.f32.mrf.mxu1  ;;  %v8807_v7 = vld [vmem:[#allocation3 + $0x58] sm:$0xff] }
 0x3db   : > { %9252 = vst [vmem:[#allocation3 + $0x8] sm:$0xff] %v9220_v47  ;;  %9253 = vst [vmem:[#allocation3 + $0x78] sm:$0xff] %v9221_v38  ;;  %v7305_v15 = vadd.f32 %v7304_v57, %v13029_v59  ;;  %v7346_v5 = vadd.f32 %v7345_v63, %v13029_v59  ;;  %v8497_v47 = vrot.slane %v13250_v28, %v12769_v20 }
 0x3dc   : > { %v7306_v53 = vpop.f32.mrf.mxu0  ;;  %v7347_v18 = vpop.f32.mrf.mxu1  ;;  %v8501_v57 = vrot.slane %v13250_v28, %v12781_v34 }
 0x3dd   : > { %v8294_v48 = vmul.f32 %v8073_v45, %v7305_v15  ;;  %v8296_v2 = vmul.f32 %v8081_v22, %v7346_v5  ;;  %v7307_v62 = vadd.f32 %v7306_v53, %v13029_v59  ;;  %v7348_v58 = vadd.f32 %v7347_v18, %v13029_v59  ;;  %v8840_v5 = vld [vmem:[%s10550_s4 + $0x90] sm:$0xff] }
 0x3de   : > { %v7308_v6 = vpop.f32.mrf.mxu0  ;;  %v7349_v19 = vpop.f32.mrf.mxu1  ;;  %v8089_v22 = vrot.slane %v13247_v3, %v12763_v33 }
 0x3df   : > { %v8758_v43 = vadd.f32 %v8694_v35, %v8294_v48  ;;  %v8760_v52 = vadd.f32 %v8696_v21, %v8296_v2  ;;  %v8295_v26 = vmul.f32 %v8077_v27, %v7307_v62  ;;  %v8297_v1 = vmul.f32 %v8085_v4, %v7348_v58  ;;  %v8841_v27 = vld [vmem:[%s10550_s4 + $0x98] sm:$0xff]  ;;  %v13804_v35 = vld [vmem:[#allocation61_spill] sm:$0xff]  ;;  %v13805_v21 = vld [vmem:[#allocation62_spill] sm:$0xff] }
 0x3e0   : > { %v7309_v16 = vpop.f32.mrf.mxu0  ;;  %v7350_v56 = vpop.f32.mrf.mxu1  ;;  %v8093_v4 = vrot.slane %v13247_v3, %v12766_v50  ;;  %v8698_v0 = vmul.f32 %v8489_v24, %v13804_v35  ;;  %v8700_v28 = vmul.f32 %v8497_v47, %v13805_v21 }
 0x3e1   : > { %v8982_v32 = vsub.f32 %v8758_v43, %v8838_v25  ;;  %v8984_v60 = vsub.f32 %v8760_v52, %v8839_v29  ;;  %v8759_v11 = vadd.f32 %v8695_v9, %v8295_v26  ;;  %v8761_v14 = vadd.f32 %v8697_v10, %v8297_v1  ;;  %v13305_v56 = vld [vmem:[%s10548_s29 + $0x28] sm:$0xff] }
 0x3e2   : > { %v8699_v9 = vmul.f32 %v13806_v55, %v8493_v8  ;;  %v8701_v10 = vmul.f32 %v13807_v40, %v8501_v57  ;;  %v8113_v8 = vrot.slane %v13305_v56, %v12757_v46  ;;  %v8117_v35 = vrot.slane %v13305_v56, %v12760_v44 }
 0x3e3   : > { %v8983_v51 = vsub.f32 %v8759_v11, %v8902_v39  ;;  %v8985_v17 = vsub.f32 %v8761_v14, %v8903_v13  ;;  %v9046_v61 = vand.u32 2147483647, %v8982_v32  ;;  %v9048_v49 = vand.u32 2147483647, %v8984_v60 }
 0x3e4   : > { %v8904_v39 = vcombine.high %v8840_v5, %v8840_v5  ;;  %v8905_v13 = vcombine.high %v8841_v27, %v8841_v27 }
 0x3e5   : > { %v9047_v23 = vand.u32 2147483647, %v8983_v51  ;;  %v9049_v54 = vand.u32 2147483647, %v8985_v17 }
 0x3e7   : > { %v9158_v41 = vcombine.low %v9046_v61, %v9047_v23  ;;  %v9159_v30 = vcombine.low %v9048_v49, %v9049_v54  ;;  %v13308_v61 = vsub.f32 1.0, %v13305_v56 }
 0x3e9   : > { %v9222_v38 = vadd.f32 %v9158_v41, %v8806_v42  ;;  %v9223_v45 = vadd.f32 %v9159_v30, %v8807_v7  ;;  %v8808_v7 = vld [vmem:[#allocation3 + $0x40] sm:$0xff]  ;;  %v8809_v41 = vld [vmem:[#allocation3 + $0xc8] sm:$0xff]  ;;  %v8505_v47 = vrot.slane %v13308_v61, %v12746_v36  ;;  %v8509_v57 = vrot.slane %v13308_v61, %v12752_v37 }
 0x3ea   : > { %v7386_v63 = vpop.f32.mrf.mxu0  ;;  %v7427_v15 = vpop.f32.mrf.mxu1 }
 0x3eb   : > { %9254 = vst [vmem:[#allocation3 + $0x38] sm:$0xff] %v9222_v38  ;;  %9255 = vst [vmem:[#allocation3 + $0x58] sm:$0xff] %v9223_v45  ;;  %v7387_v25 = vadd.f32 %v7386_v63, %v13029_v59  ;;  %v7428_v29 = vadd.f32 %v7427_v15, %v13029_v59  ;;  %v8513_v38 = vrot.slane %v13308_v61, %v12757_v46 }
 0x3ec   : > { %v7388_v53 = vpop.f32.mrf.mxu0  ;;  %v7429_v18 = vpop.f32.mrf.mxu1  ;;  %v8517_v63 = vrot.slane %v13308_v61, %v12760_v44 }
 0x3ed   : > { %v8298_v48 = vmul.f32 %v8089_v22, %v7387_v25  ;;  %v8300_v2 = vmul.f32 %v8097_v31, %v7428_v29  ;;  %v7389_v62 = vadd.f32 %v7388_v53, %v13029_v59  ;;  %v7430_v58 = vadd.f32 %v7429_v18, %v13029_v59  ;;  %v8842_v29 = vld [vmem:[%s10550_s4 + $0xa0] sm:$0xff] }
 0x3ee   : > { %v7390_v3 = vpop.f32.mrf.mxu0  ;;  %v7431_v6 = vpop.f32.mrf.mxu1  ;;  %v8105_v31 = vrot.slane %v13305_v56, %v12746_v36 }
 0x3ef   : > { %v8762_v19 = vadd.f32 %v8698_v0, %v8298_v48  ;;  %v8764_v43 = vadd.f32 %v8700_v28, %v8300_v2  ;;  %v8299_v52 = vmul.f32 %v8093_v4, %v7389_v62  ;;  %v8301_v26 = vmul.f32 %v8101_v12, %v7430_v58  ;;  %v8843_v4 = vld [vmem:[%s10550_s4 + $0xa8] sm:$0xff]  ;;  %v13809_v28 = vld [vmem:[#allocation66_spill] sm:$0xff] }
 0x3f0   : > { %v7391_v1 = vpop.f32.mrf.mxu0  ;;  %v7432_v16 = vpop.f32.mrf.mxu1  ;;  %v8109_v12 = vrot.slane %v13305_v56, %v12752_v37  ;;  %v13808_v0 = vld [vmem:[#allocation65_spill] sm:$0xff]  ;;  %v8704_v53 = vmul.f32 %v8513_v38, %v13809_v28  ;;  %v8907_v3 = vcombine.high %v8843_v4, %v8843_v4  ;;  %v8521_v38 = vrot.slane %v13308_v61, %v12763_v33 }
 0x3f1   : > { %v8986_v32 = vsub.f32 %v8762_v19, %v8840_v5  ;;  %v8988_v60 = vsub.f32 %v8764_v43, %v8841_v27  ;;  %v8763_v11 = vadd.f32 %v8699_v9, %v8299_v52  ;;  %v8765_v14 = vadd.f32 %v8701_v10, %v8301_v26  ;;  %v13810_v9 = vld [vmem:[#allocation63_spill] sm:$0xff]  ;;  %v13811_v10 = vld [vmem:[#allocation64_spill] sm:$0xff] }
 0x3f2   : > { %v8702_v21 = vmul.f32 %v8505_v47, %v13808_v0  ;;  %v8703_v40 = vmul.f32 %v13810_v9, %v8509_v57  ;;  %v8129_v57 = vrot.slane %v13305_v56, %v12769_v20  ;;  %v8133_v0 = vrot.slane %v13305_v56, %v12781_v34  ;;  %v13814_v9 = vld [vmem:[#allocation67_spill] sm:$0xff] }
 0x3f3   : > { %v8987_v51 = vsub.f32 %v8763_v11, %v8904_v39  ;;  %v8989_v17 = vsub.f32 %v8765_v14, %v8905_v13  ;;  %v9050_v49 = vand.u32 2147483647, %v8986_v32  ;;  %v9052_v23 = vand.u32 2147483647, %v8988_v60 }
 0x3f4   : > { %v8705_v39 = vmul.f32 %v13811_v10, %v8517_v63  ;;  %v8906_v13 = vcombine.high %v8842_v29, %v8842_v29  ;;  %v8525_v63 = vrot.slane %v13308_v61, %v12766_v50  ;;  %v13815_v10 = vld [vmem:[#allocation68_spill] sm:$0xff] }
 0x3f5   : > { %v9051_v54 = vand.u32 2147483647, %v8987_v51  ;;  %v9053_v42 = vand.u32 2147483647, %v8989_v17 }
 0x3f7   : > { %v9160_v30 = vcombine.low %v9050_v49, %v9051_v54  ;;  %v9161_v24 = vcombine.low %v9052_v23, %v9053_v42 }
 0x3f9   : > { %v9224_v45 = vadd.f32 %v9160_v30, %v8808_v7  ;;  %v9225_v22 = vadd.f32 %v9161_v24, %v8809_v41  ;;  %v8810_v41 = vld [vmem:[#allocation3 + $0xe0] sm:$0xff]  ;;  %v8811_v30 = vld [vmem:[#allocation3 + $0x90] sm:$0xff] }
 0x3fa   : > { %v7468_v15 = vpop.f32.mrf.mxu0  ;;  %v7509_v25 = vpop.f32.mrf.mxu1 }
 0x3fb   : > { %9256 = vst [vmem:[#allocation3 + $0x40] sm:$0xff] %v9224_v45  ;;  %9257 = vst [vmem:[#allocation3 + $0xc8] sm:$0xff] %v9225_v22  ;;  %v7469_v5 = vadd.f32 %v7468_v15, %v13029_v59  ;;  %v7510_v27 = vadd.f32 %v7509_v25, %v13029_v59  ;;  %v8529_v45 = vrot.slane %v13308_v61, %v12769_v20 }
 0x3fc   : > { %v7470_v18 = vpop.f32.mrf.mxu0  ;;  %v7511_v48 = vpop.f32.mrf.mxu1  ;;  %v8533_v15 = vrot.slane %v13308_v61, %v12781_v34 }
 0x3fd   : > { %v8302_v2 = vmul.f32 %v8105_v31, %v7469_v5  ;;  %v8304_v62 = vmul.f32 %v8113_v8, %v7510_v27  ;;  %v7471_v58 = vadd.f32 %v7470_v18, %v13029_v59  ;;  %v7512_v55 = vadd.f32 %v7511_v48, %v13029_v59  ;;  %v8844_v27 = vld [vmem:[%s10550_s4 + $0xb0] sm:$0xff] }
 0x3fe   : > { %v7472_v6 = vpop.f32.mrf.mxu0  ;;  %v7513_v19 = vpop.f32.mrf.mxu1  ;;  %v8121_v8 = vrot.slane %v13305_v56, %v12763_v33 }
 0x3ff   : > { %v8766_v43 = vadd.f32 %v8702_v21, %v8302_v2  ;;  %v8768_v52 = vadd.f32 %v8704_v53, %v8304_v62  ;;  %v8303_v26 = vmul.f32 %v8109_v12, %v7471_v58  ;;  %v8305_v1 = vmul.f32 %v8117_v35, %v7512_v55  ;;  %v8845_v12 = vld [vmem:[%s10550_s4 + $0xb8] sm:$0xff]  ;;  %v13812_v21 = vld [vmem:[#allocation69_spill] sm:$0xff]  ;;  %v13813_v53 = vld [vmem:[#allocation70_spill] sm:$0xff] }
 0x400   : > { %v7473_v16 = vpop.f32.mrf.mxu0  ;;  %v7514_v32 = vpop.f32.mrf.mxu1  ;;  %v8125_v35 = vrot.slane %v13305_v56, %v12766_v50  ;;  %v8706_v28 = vmul.f32 %v8521_v38, %v13812_v21  ;;  %v8708_v61 = vmul.f32 %v8529_v45, %v13813_v53 }
 0x401   : > { %v8990_v60 = vsub.f32 %v8766_v43, %v8842_v29  ;;  %v8992_v11 = vsub.f32 %v8768_v52, %v8843_v4  ;;  %v8767_v14 = vadd.f32 %v8703_v40, %v8303_v26  ;;  %v8769_v51 = vadd.f32 %v8705_v39, %v8305_v1  ;;  %v13363_v32 = vld [vmem:[%s10548_s29 + $0x30] sm:$0xff] }
 0x402   : > { %v8707_v40 = vmul.f32 %v13814_v9, %v8525_v63  ;;  %v8709_v39 = vmul.f32 %v13815_v10, %v8533_v15  ;;  %v8145_v15 = vrot.slane %v13363_v32, %v12757_v46  ;;  %v8149_v21 = vrot.slane %v13363_v32, %v12760_v44  ;;  %v13818_v10 = vld [vmem:[#allocation71_spill] sm:$0xff] }
 0x403   : > { %v8991_v17 = vsub.f32 %v8767_v14, %v8906_v13  ;;  %v8993_v49 = vsub.f32 %v8769_v51, %v8907_v3  ;;  %v9054_v23 = vand.u32 2147483647, %v8990_v60  ;;  %v9056_v54 = vand.u32 2147483647, %v8992_v11 }
 0x404   : > { %v8908_v13 = vcombine.high %v8844_v27, %v8844_v27  ;;  %v8909_v3 = vcombine.high %v8845_v12, %v8845_v12 }
 0x405   : > { %v9055_v42 = vand.u32 2147483647, %v8991_v17  ;;  %v9057_v7 = vand.u32 2147483647, %v8993_v49 }
 0x407   : > { %v9162_v24 = vcombine.low %v9054_v23, %v9055_v42  ;;  %v9163_v47 = vcombine.low %v9056_v54, %v9057_v7  ;;  %v13366_v23 = vsub.f32 1.0, %v13363_v32 }
 0x409   : > { %v9226_v22 = vadd.f32 %v9162_v24, %v8810_v41  ;;  %v9227_v31 = vadd.f32 %v9163_v47, %v8811_v30  ;;  %v8812_v30 = vld [vmem:[#allocation3 + $0x70] sm:$0xff]  ;;  %v8813_v24 = vld [vmem:[#allocation3 + $0xc0] sm:$0xff]  ;;  %v8537_v45 = vrot.slane %v13366_v23, %v12746_v36 }
 0x40a   : > { %v7550_v25 = vpop.f32.mrf.mxu0  ;;  %v7591_v5 = vpop.f32.mrf.mxu1 }
 0x40b   : > { %9258 = vst [vmem:[#allocation3 + $0xe0] sm:$0xff] %v9226_v22  ;;  %9259 = vst [vmem:[#allocation3 + $0x90] sm:$0xff] %v9227_v31  ;;  %v7551_v29 = vadd.f32 %v7550_v25, %v13029_v59  ;;  %v7592_v4 = vadd.f32 %v7591_v5, %v13029_v59  ;;  %v8541_v25 = vrot.slane %v13366_v23, %v12752_v37 }
 0x40c   : > { %v7552_v18 = vpop.f32.mrf.mxu0  ;;  %v7593_v48 = vpop.f32.mrf.mxu1 }
 0x40d   : > { %v8306_v2 = vmul.f32 %v8121_v8, %v7551_v29  ;;  %v8308_v62 = vmul.f32 %v8129_v57, %v7592_v4  ;;  %v7553_v58 = vadd.f32 %v7552_v18, %v13029_v59  ;;  %v7594_v55 = vadd.f32 %v7593_v48, %v13029_v59  ;;  %v8847_v18 = vld [vmem:[%s10550_s4 + $0xc8] sm:$0xff] }
 0x40e   : > { %v7554_v56 = vpop.f32.mrf.mxu0  ;;  %v7595_v6 = vpop.f32.mrf.mxu1  ;;  %v8137_v8 = vrot.slane %v13363_v32, %v12746_v36  ;;  %v8545_v57 = vrot.slane %v13366_v23, %v12757_v46  ;;  %v8549_v4 = vrot.slane %v13366_v23, %v12760_v44 }
 0x40f   : > { %v8770_v19 = vadd.f32 %v8706_v28, %v8306_v2  ;;  %v8772_v43 = vadd.f32 %v8708_v61, %v8308_v62  ;;  %v8307_v52 = vmul.f32 %v8125_v35, %v7553_v58  ;;  %v8309_v26 = vmul.f32 %v8133_v0, %v7594_v55  ;;  %v13816_v28 = vld [vmem:[#allocation73_spill] sm:$0xff]  ;;  %v13817_v62 = vld [vmem:[#allocation74_spill] sm:$0xff] }
 0x410   : > { %v7555_v1 = vpop.f32.mrf.mxu0  ;;  %v7596_v16 = vpop.f32.mrf.mxu1  ;;  %v8710_v53 = vmul.f32 %v8537_v45, %v13816_v28  ;;  %v8712_v58 = vmul.f32 %v8545_v57, %v13817_v62  ;;  %v8561_v57 = vrot.slane %v13366_v23, %v12769_v20  ;;  %v8165_v28 = vrot.slane %v13363_v32, %v12781_v34 }
 0x411   : > { %v8994_v60 = vsub.f32 %v8770_v19, %v8844_v27  ;;  %v8996_v11 = vsub.f32 %v8772_v43, %v8845_v12  ;;  %v8771_v14 = vadd.f32 %v8707_v40, %v8307_v52  ;;  %v8773_v51 = vadd.f32 %v8709_v39, %v8309_v26  ;;  %v8846_v12 = vld [vmem:[%s10550_s4 + $0xc0] sm:$0xff] }
 0x412   : > { %v8141_v27 = vrot.slane %v13363_v32, %v12752_v37  ;;  %v8711_v39 = vmul.f32 %v13818_v10, %v8541_v25  ;;  %v8910_v56 = vcombine.high %v8846_v12, %v8846_v12  ;;  %v13819_v19 = vld [vmem:[#allocation72_spill] sm:$0xff]  ;;  %v8911_v1 = vcombine.high %v8847_v18, %v8847_v18  ;;  %v13822_v10 = vld [vmem:[#allocation75_spill] sm:$0xff] }
 0x413   : > { %v8995_v17 = vsub.f32 %v8771_v14, %v8908_v13  ;;  %v8997_v49 = vsub.f32 %v8773_v51, %v8909_v3  ;;  %v9058_v54 = vand.u32 2147483647, %v8994_v60  ;;  %v9060_v42 = vand.u32 2147483647, %v8996_v11 }
 0x414   : > { %v8713_v43 = vmul.f32 %v13819_v19, %v8549_v4  ;;  %v8161_v25 = vrot.slane %v13363_v32, %v12769_v20  ;;  %v8157_v4 = vrot.slane %v13363_v32, %v12766_v50 }
 0x415   : > { %v9059_v7 = vand.u32 2147483647, %v8995_v17  ;;  %v9061_v41 = vand.u32 2147483647, %v8997_v49 }
 0x417   : > { %v9164_v47 = vcombine.low %v9058_v54, %v9059_v7  ;;  %v9165_v38 = vcombine.low %v9060_v42, %v9061_v41 }
 0x419   : > { %v9228_v22 = vadd.f32 %v9164_v47, %v8812_v30  ;;  %v9229_v31 = vadd.f32 %v9165_v38, %v8813_v24  ;;  %v8814_v30 = vld [vmem:[#allocation3 + $0xa8] sm:$0xff]  ;;  %v8815_v38 = vld [vmem:[#allocation3 + $0xd0] sm:$0xff] }
 0x41a   : > { %v7632_v63 = vpop.f32.mrf.mxu0  ;;  %v7673_v29 = vpop.f32.mrf.mxu1 }
 0x41b   : > { %9260 = vst [vmem:[#allocation3 + $0x70] sm:$0xff] %v9228_v22  ;;  %9261 = vst [vmem:[#allocation3 + $0xc0] sm:$0xff] %v9229_v31  ;;  %v7633_v5 = vadd.f32 %v7632_v63, %v13029_v59  ;;  %v7674_v35 = vadd.f32 %v7673_v29, %v13029_v59  ;;  %v8553_v22 = vrot.slane %v13366_v23, %v12763_v33 }
 0x41c   : > { %v7634_v0 = vpop.f32.mrf.mxu0  ;;  %v7675_v2 = vpop.f32.mrf.mxu1 }
 0x41d   : > { %v8310_v61 = vmul.f32 %v8137_v8, %v7633_v5  ;;  %v7635_v48 = vadd.f32 %v7634_v0, %v13029_v59  ;;  %v8312_v55 = vmul.f32 %v8145_v15, %v7674_v35  ;;  %v7676_v9 = vadd.f32 %v7675_v2, %v13029_v59  ;;  %v8848_v35 = vld [vmem:[%s10550_s4 + $0xd0] sm:$0xff] }
 0x41e   : > { %v7636_v40 = vpop.f32.mrf.mxu0  ;;  %v7677_v6 = vpop.f32.mrf.mxu1  ;;  %v8153_v8 = vrot.slane %v13363_v32, %v12763_v33  ;;  %v8557_v5 = vrot.slane %v13366_v23, %v12766_v50 }
 0x41f   : > { %v8774_v13 = vadd.f32 %v8710_v53, %v8310_v61  ;;  %v8311_v3 = vmul.f32 %v8141_v27, %v7635_v48  ;;  %v8776_v52 = vadd.f32 %v8712_v58, %v8312_v55  ;;  %v8313_v26 = vmul.f32 %v8149_v21, %v7676_v9  ;;  %v13820_v53 = vld [vmem:[#allocation77_spill] sm:$0xff]  ;;  %v8849_v48 = vld [vmem:[%s10550_s4 + $0xd8] sm:$0xff]  ;;  %v13821_v58 = vld [vmem:[#allocation78_spill] sm:$0xff] }
 0x420   : > { %v7637_v16 = vpop.f32.mrf.mxu0  ;;  %v7678_v14 = vpop.f32.mrf.mxu1  ;;  %v8714_v61 = vmul.f32 %v8553_v22, %v13820_v53  ;;  %v8716_v55 = vmul.f32 %v8561_v57, %v13821_v58  ;;  %v13823_v6 = vld [vmem:[#allocation76_spill] sm:$0xff] }
 0x421   : > { %v8998_v60 = vsub.f32 %v8774_v13, %v8846_v12  ;;  %v8775_v11 = vadd.f32 %v8711_v39, %v8311_v3  ;;  %v9000_v51 = vsub.f32 %v8776_v52, %v8847_v18  ;;  %v8777_v17 = vadd.f32 %v8713_v43, %v8313_v26  ;;  %v13421_v14 = vld [vmem:[%s10548_s29 + $0x38] sm:$0xff] }
 0x422   : > { %v8565_v12 = vrot.slane %v13366_v23, %v12781_v34  ;;  %v8715_v39 = vmul.f32 %v13822_v10, %v8557_v5  ;;  %v8913_v26 = vcombine.high %v8849_v48, %v8849_v48  ;;  %v8169_v57 = vrot.slane %v13421_v14, %v12746_v36 }
 0x423   : > { %v8999_v49 = vsub.f32 %v8775_v11, %v8910_v56  ;;  %v9001_v54 = vsub.f32 %v8777_v17, %v8911_v1  ;;  %v9062_v42 = vand.u32 2147483647, %v8998_v60  ;;  %v9064_v41 = vand.u32 2147483647, %v9000_v51 }
 0x424   : > { %v8912_v56 = vcombine.high %v8848_v35, %v8848_v35  ;;  %v8717_v19 = vmul.f32 %v13823_v6, %v8565_v12  ;;  %v8177_v5 = vrot.slane %v13421_v14, %v12757_v46  ;;  %v8173_v12 = vrot.slane %v13421_v14, %v12752_v37 }
 0x425   : > { %v9063_v7 = vand.u32 2147483647, %v8999_v49  ;;  %v9065_v24 = vand.u32 2147483647, %v9001_v54 }
 0x427   : > { %v9166_v47 = vcombine.low %v9062_v42, %v9063_v7  ;;  %v9167_v45 = vcombine.low %v9064_v41, %v9065_v24  ;;  %v13424_v42 = vsub.f32 1.0, %v13421_v14  ;;  %v8816_v24 = vld [vmem:[#allocation3 + $0x10] sm:$0xff] }
 0x429   : > { %v9230_v31 = vadd.f32 %v9166_v47, %v8814_v30  ;;  %v9231_v63 = vadd.f32 %v9167_v45, %v8815_v38  ;;  %v8817_v45 = vld [vmem:[#allocation3 + $0x28] sm:$0xff] }
 0x42a   : > { %v7714_v15 = vpop.f32.mrf.mxu0  ;;  %v7755_v27 = vpop.f32.mrf.mxu1 }
 0x42b   : > { %9262 = vst [vmem:[#allocation3 + $0xa8] sm:$0xff] %v9230_v31  ;;  %v7715_v29 = vadd.f32 %v7714_v15, %v13029_v59  ;;  %9263 = vst [vmem:[#allocation3 + $0xd0] sm:$0xff] %v9231_v63  ;;  %v7756_v0 = vadd.f32 %v7755_v27, %v13029_v59  ;;  %v8569_v31 = vrot.slane %v13424_v42, %v12746_v36 }
 0x42c   : > { %v7716_v21 = vpop.f32.mrf.mxu0  ;;  %v7757_v62 = vpop.f32.mrf.mxu1  ;;  %v8577_v63 = vrot.slane %v13424_v42, %v12757_v46  ;;  %v8581_v36 = vrot.slane %v13424_v42, %v12760_v44  ;;  %v8181_v46 = vrot.slane %v13421_v14, %v12760_v44  ;;  %v13827_v44 = vld [vmem:[#allocation80_spill] sm:$0xff] }
 0x42d   : > { %v8314_v18 = vmul.f32 %v8153_v8, %v7715_v29  ;;  %v7717_v2 = vadd.f32 %v7716_v21, %v13029_v59  ;;  %v8316_v9 = vmul.f32 %v8161_v25, %v7756_v0  ;;  %v7758_v23 = vadd.f32 %v7757_v62, %v13029_v59  ;;  %v13825_v62 = vld [vmem:[#allocation82_spill] sm:$0xff] }
 0x42e   : > { %v7718_v40 = vpop.f32.mrf.mxu0  ;;  %v7759_v32 = vpop.f32.mrf.mxu1  ;;  %v8573_v29 = vrot.slane %v13424_v42, %v12752_v37  ;;  %v8720_v37 = vmul.f32 %v8577_v63, %v13825_v62  ;;  %v8193_v63 = vrot.slane %v13421_v14, %v12769_v20 }
 0x42f   : > { %v8778_v13 = vadd.f32 %v8714_v61, %v8314_v18  ;;  %v8315_v3 = vmul.f32 %v8157_v4, %v7717_v2  ;;  %v8780_v43 = vadd.f32 %v8716_v55, %v8316_v9  ;;  %v8317_v52 = vmul.f32 %v8165_v28, %v7758_v23  ;;  %v13824_v28 = vld [vmem:[#allocation81_spill] sm:$0xff]  ;;  %v13826_v23 = vld [vmem:[#allocation79_spill] sm:$0xff] }
 0x430   : > { %v7719_v1 = vpop.f32.mrf.mxu0  ;;  %v7760_v11 = vpop.f32.mrf.mxu1  ;;  %v8718_v53 = vmul.f32 %v8569_v31, %v13824_v28  ;;  %v8851_v18 = vld [vmem:[%s10550_s4 + $0xe8] sm:$0xff]  ;;  %v8719_v40 = vmul.f32 %v13826_v23, %v8573_v29  ;;  %v8593_v31 = vrot.slane %v13424_v42, %v12769_v20  ;;  %v8189_v29 = vrot.slane %v13421_v14, %v12766_v50 }
 0x431   : > { %v9002_v16 = vsub.f32 %v8778_v13, %v8848_v35  ;;  %v8779_v60 = vadd.f32 %v8715_v39, %v8315_v3  ;;  %v9004_v51 = vsub.f32 %v8780_v43, %v8849_v48  ;;  %v8781_v17 = vadd.f32 %v8717_v19, %v8317_v52  ;;  %v8850_v35 = vld [vmem:[%s10550_s4 + $0xe0] sm:$0xff] }
 0x432   : > { %v8914_v13 = vcombine.high %v8850_v35, %v8850_v35  ;;  %v8915_v19 = vcombine.high %v8851_v18, %v8851_v18  ;;  %v8197_v20 = vrot.slane %v13421_v14, %v12781_v34 }
 0x433   : > { %v9003_v49 = vsub.f32 %v8779_v60, %v8912_v56  ;;  %v9005_v54 = vsub.f32 %v8781_v17, %v8913_v26  ;;  %v9066_v7 = vand.u32 2147483647, %v9002_v16  ;;  %v9068_v30 = vand.u32 2147483647, %v9004_v51 }
 0x434   : > { %v8721_v56 = vmul.f32 %v13827_v44, %v8581_v36  ;;  %v13828_v36 = vld [vmem:[#allocation85_spill] sm:$0xff] }
 0x435   : > { %v9067_v41 = vand.u32 2147483647, %v9003_v49  ;;  %v9069_v47 = vand.u32 2147483647, %v9005_v54 }
 0x437   : > { %v9168_v38 = vcombine.low %v9066_v7, %v9067_v41  ;;  %v9169_v22 = vcombine.low %v9068_v30, %v9069_v47  ;;  %v8818_v7 = vld [vmem:[#allocation3 + $0xa0] sm:$0xff] }
 0x439   : > { %v9232_v8 = vadd.f32 %v9168_v38, %v8816_v24  ;;  %v9233_v15 = vadd.f32 %v9169_v22, %v8817_v45  ;;  %v8819_v24 = vld [vmem:[#allocation3 + $0xf8] sm:$0xff]  ;;  %v8585_v38 = vrot.slane %v13424_v42, %v12763_v33  ;;  %v8185_v22 = vrot.slane %v13421_v14, %v12763_v33 }
 0x43a   : > { %v7796_v25 = vpop.f32.mrf.mxu0  ;;  %v7837_v4 = vpop.f32.mrf.mxu1  ;;  %v8597_v33 = vrot.slane %v13424_v42, %v12781_v34  ;;  %v13831_v34 = vld [vmem:[#allocation84_spill] sm:$0xff] }
 0x43b   : > { %9264 = vst [vmem:[#allocation3 + $0x10] sm:$0xff] %v9232_v8  ;;  %v7797_v27 = vadd.f32 %v7796_v25, %v13029_v59  ;;  %9265 = vst [vmem:[#allocation3 + $0x28] sm:$0xff] %v9233_v15  ;;  %v7838_v0 = vadd.f32 %v7837_v4, %v13029_v59  ;;  %v8589_v15 = vrot.slane %v13424_v42, %v12766_v50 }
 0x43c   : > { %v7798_v21 = vpop.f32.mrf.mxu0  ;;  %v7839_v2 = vpop.f32.mrf.mxu1  ;;  %v8725_v14 = vmul.f32 %v13831_v34, %v8597_v33 }
 0x43d   : > { %v8318_v61 = vmul.f32 %v8169_v57, %v7797_v27  ;;  %v7799_v48 = vadd.f32 %v7798_v21, %v13029_v59  ;;  %v8320_v58 = vmul.f32 %v8177_v5, %v7838_v0  ;;  %v7840_v55 = vadd.f32 %v7839_v2, %v13029_v59  ;;  %v8852_v27 = vld [vmem:[%s10550_s4 + $0xf0] sm:$0xff]  ;;  %v8853_v21 = vld [vmem:[%s10550_s4 + $0xf8] sm:$0xff] }
 0x43e   : > { %v7800_v9 = vpop.f32.mrf.mxu0  ;;  %v7841_v3 = vpop.f32.mrf.mxu1 }
 0x43f   : > { %v8782_v10 = vadd.f32 %v8718_v53, %v8318_v61  ;;  %v8319_v39 = vmul.f32 %v8173_v12, %v7799_v48  ;;  %v8784_v32 = vadd.f32 %v8720_v37, %v8320_v58  ;;  %v8321_v6 = vmul.f32 %v8181_v46, %v7840_v55  ;;  %v13829_v53 = vld [vmem:[#allocation86_spill] sm:$0xff]  ;;  %v13830_v48 = vld [vmem:[#allocation83_spill] sm:$0xff] }
 0x440   : > { %v7801_v43 = vpop.f32.mrf.mxu0  ;;  %v7842_v1 = vpop.f32.mrf.mxu1  ;;  %v8724_v50 = vmul.f32 %v8593_v31, %v13829_v53  ;;  %v8723_v2 = vmul.f32 %v13830_v48, %v8589_v15  ;;  %v8916_v58 = vcombine.high %v8852_v27, %v8852_v27 }
 0x441   : > { %v9006_v52 = vsub.f32 %v8782_v10, %v8850_v35  ;;  %v8783_v26 = vadd.f32 %v8719_v40, %v8319_v39  ;;  %v9008_v16 = vsub.f32 %v8784_v32, %v8851_v18  ;;  %v8785_v60 = vadd.f32 %v8721_v56, %v8321_v6 }
 0x442   : > { %v8722_v35 = vmul.f32 %v8585_v38, %v13828_v36  ;;  %v8917_v40 = vcombine.high %v8853_v21, %v8853_v21 }
 0x443   : > { %v9007_v11 = vsub.f32 %v8783_v26, %v8914_v13  ;;  %v9009_v51 = vsub.f32 %v8785_v60, %v8915_v19  ;;  %v9070_v17 = vand.u32 2147483647, %v9006_v52  ;;  %v9072_v54 = vand.u32 2147483647, %v9008_v16  ;;  %v8820_v52 = vld [vmem:[#allocation3 + $0x20] sm:$0xff]  ;;  %v8821_v16 = vld [vmem:[#allocation3 + $0x98] sm:$0xff] }
 0x445   : > { %v9071_v49 = vand.u32 2147483647, %v9007_v11  ;;  %v9073_v41 = vand.u32 2147483647, %v9009_v51 }
 0x447   : > { %v9170_v30 = vcombine.low %v9070_v17, %v9071_v49  ;;  %v9171_v47 = vcombine.low %v9072_v54, %v9073_v41 }
 0x449   : > { %v9234_v45 = vadd.f32 %v9170_v30, %v8818_v7  ;;  %v9235_v8 = vadd.f32 %v9171_v47, %v8819_v24 }
 0x44a   : > { %v7878_v57 = vpop.f32.mrf.mxu0  ;;  %v7919_v5 = vpop.f32.mrf.mxu1 }
 0x44b   : > { %9266 = vst [vmem:[#allocation3 + $0xa0] sm:$0xff] %v9234_v45  ;;  %v7879_v25 = vadd.f32 %v7878_v57, %v13029_v59  ;;  %9267 = vst [vmem:[#allocation3 + $0xf8] sm:$0xff] %v9235_v8  ;;  %v7920_v4 = vadd.f32 %v7919_v5, %v13029_v59 }
 0x44c   : > { %v7880_v12 = vpop.f32.mrf.mxu0  ;;  %v7921_v28 = vpop.f32.mrf.mxu1 }
 0x44d   : > { %v8322_v0 = vmul.f32 %v8185_v22, %v7879_v25  ;;  %v7881_v46 = vadd.f32 %v7880_v12, %v13029_v59  ;;  %v8324_v61 = vmul.f32 %v8193_v63, %v7920_v4  ;;  %v7922_v42 = vadd.f32 %v7921_v28, %v13029_v59 }
 0x44e   : > { %v7882_v18 = vpop.f32.mrf.mxu0  ;;  %v7923_v55 = vpop.f32.mrf.mxu1 }
 0x44f   : > { %v8786_v62 = vadd.f32 %v8722_v35, %v8322_v0  ;;  %v8323_v37 = vmul.f32 %v8189_v29, %v7881_v46  ;;  %v8788_v9 = vadd.f32 %v8724_v50, %v8324_v61  ;;  %v8325_v23 = vmul.f32 %v8197_v20, %v7922_v42 }
 0x450   : > { %v7883_v10 = vpop.f32.mrf.mxu0  ;;  %v7924_v3 = vpop.f32.mrf.mxu1 }
 0x451   : > { %v9010_v39 = vsub.f32 %v8786_v62, %v8852_v27  ;;  %v8787_v13 = vadd.f32 %v8723_v2, %v8323_v37  ;;  %v9012_v44 = vsub.f32 %v8788_v9, %v8853_v21  ;;  %v8789_v56 = vadd.f32 %v8725_v14, %v8325_v23 }
 0x453   : > { %v9011_v32 = vsub.f32 %v8787_v13, %v8916_v58  ;;  %v9013_v59 = vsub.f32 %v8789_v56, %v8917_v40  ;;  %v9074_v6 = vand.u32 2147483647, %v9010_v39  ;;  %v9076_v43 = vand.u32 2147483647, %v9012_v44 }
 0x455   : > { %v9075_v19 = vand.u32 2147483647, %v9011_v32  ;;  %v9077_v26 = vand.u32 2147483647, %v9013_v59 }
 0x457   : > { %v9172_v1 = vcombine.low %v9074_v6, %v9075_v19  ;;  %v9173_v60 = vcombine.low %v9076_v43, %v9077_v26  ;;  %9273 = sbr.rel (%p9890_p6) target bundleno = 1448 (0x5a8), region = 84 }
 0x459   : > { %v9236_v11 = vadd.f32 %v9172_v1, %v8820_v52  ;;  %v9237_v51 = vadd.f32 %v9173_v60, %v8821_v16 }
 0x45b   : > { %9268 = vst [vmem:[#allocation3 + $0x20] sm:$0xff] %v9236_v11  ;;  %9269 = vst [vmem:[#allocation3 + $0x98] sm:$0xff] %v9237_v51 }
 0x45c   : > { %v9274_v17 = vld [vmem:[#allocation3 + $0xb0] sm:$0xff]  ;;  %v9275_v49 = vld [vmem:[#allocation3] sm:$0xff]  ;;  %v9276_v30 = vld [vmem:[#allocation3 + $0xd8] sm:$0xff]  ;;  %vm9539_vm8 = vcmask 0  }
 0x45d   : > { %v9338_v54 = vcombine.high %v9274_v17, %v9274_v17  ;;  %v9339_v7 = vcombine.high %v9275_v49, %v9275_v49  ;;  %v9402_v41 = vsel %vm4394_vm5, %v9274_v17, 0.0  ;;  %v9405_v47 = vsel %vm4394_vm5, %v9275_v49, 0.0  ;;  %v9277_v31 = vld [vmem:[#allocation3 + $0x18] sm:$0xff]  ;;  %v9278_v5 = vld [vmem:[#allocation3 + $0x50] sm:$0xff]  ;;  %v9279_v20 = vld [vmem:[#allocation3 + $0x68] sm:$0xff] }
 0x45e   : > { %v9340_v45 = vcombine.high %v9276_v30, %v9276_v30  ;;  %v9409_v57 = vsel %vm4394_vm5, %v9276_v30, 0.0  ;;  %v9341_v15 = vcombine.high %v9277_v31, %v9277_v31  ;;  %v9413_v33 = vsel %vm4394_vm5, %v9277_v31, 0.0  ;;  %v9280_v28 = vld [vmem:[#allocation3 + $0x30] sm:$0xff]  ;;  %v9281_v48 = vld [vmem:[#allocation3 + $0x48] sm:$0xff]  ;;  %v9282_v34 = vld [vmem:[#allocation3 + $0x80] sm:$0xff] }
 0x45f   : > { %v9403_v24 = vsel %vm4394_vm5, %v9338_v54, 0.0  ;;  %v9407_v22 = vsel %vm4394_vm5, %v9339_v7, 0.0  ;;  %v9342_v4 = vcombine.high %v9278_v5, %v9278_v5  ;;  %v9417_v35 = vsel %vm4394_vm5, %v9278_v5, 0.0  ;;  %v9283_v39 = vld [vmem:[#allocation3 + $0x88] sm:$0xff]  ;;  %v9285_v1 = vld [vmem:[#allocation3 + $0xb8] sm:$0xff]  ;;  %v9286_v49 = vld [vmem:[#allocation3 + $0x60] sm:$0xff] }
 0x460   : > { %v9404_v38 = vadd.f32 %v9403_v24, %v9402_v41  ;;  %v9411_v25 = vsel %vm4394_vm5, %v9340_v45, 0.0  ;;  %v9415_v12 = vsel %vm4394_vm5, %v9341_v15, 0.0  ;;  %v9343_v21 = vcombine.high %v9279_v20, %v9279_v20  ;;  %v9284_v59 = vld [vmem:[#allocation3 + $0xe8] sm:$0xff] }
 0x461   : > { %v9419_v46 = vsel %vm4394_vm5, %v9342_v4, 0.0  ;;  %v9421_v50 = vsel %vm4394_vm5, %v9279_v20, 0.0  ;;  %v9344_v42 = vcombine.high %v9280_v28, %v9280_v28  ;;  %v9425_v62 = vsel %vm4394_vm5, %v9280_v28, 0.0 }
 0x462   : > { %v9406_v8 = vadd.f32 %v9405_v47, %v9404_v38  ;;  %v9423_v18 = vsel %vm4394_vm5, %v9343_v21, 0.0  ;;  %v9345_v58 = vcombine.high %v9281_v48, %v9281_v48  ;;  %v9429_v9 = vsel %vm4394_vm5, %v9281_v48, 0.0  ;;  %v9287_v47 = vld [vmem:[#allocation3 + $0xf0] sm:$0xff] }
 0x463   : > { %v9427_v55 = vsel %vm4394_vm5, %v9344_v42, 0.0  ;;  %v9346_v40 = vcombine.high %v9282_v34, %v9282_v34  ;;  %v9433_v3 = vsel %vm4394_vm5, %v9282_v34, 0.0  ;;  %v9347_v56 = vcombine.high %v9283_v39, %v9283_v39 }
 0x464   : > { %v9408_v63 = vadd.f32 %v9407_v22, %v9406_v8  ;;  %v9431_v10 = vsel %vm4394_vm5, %v9345_v58, 0.0  ;;  %v9437_v19 = vsel %vm4394_vm5, %v9283_v39, 0.0  ;;  %v9348_v52 = vcombine.high %v9284_v59, %v9284_v59 }
 0x465   : > { %v9435_v32 = vsel %vm4394_vm5, %v9346_v40, 0.0  ;;  %v9439_v26 = vsel %vm4394_vm5, %v9347_v56, 0.0  ;;  %v9441_v60 = vsel %vm4394_vm5, %v9284_v59, 0.0  ;;  %v9349_v51 = vcombine.high %v9285_v1, %v9285_v1 }
 0x466   : > { %v9410_v29 = vadd.f32 %v9409_v57, %v9408_v63  ;;  %v9443_v17 = vsel %vm4394_vm5, %v9348_v52, 0.0  ;;  %v9445_v7 = vsel %vm4394_vm5, %v9285_v1, 0.0  ;;  %v9350_v30 = vcombine.high %v9286_v49, %v9286_v49  ;;  %v9288_v57 = vld [vmem:[#allocation3 + $0x8] sm:$0xff] }
 0x467   : > { %v9447_v24 = vsel %vm4394_vm5, %v9349_v51, 0.0  ;;  %v9449_v45 = vsel %vm4394_vm5, %v9286_v49, 0.0  ;;  %v9351_v31 = vcombine.high %v9287_v47, %v9287_v47  ;;  %v9453_v15 = vsel %vm4394_vm5, %v9287_v47, 0.0 }
 0x468   : > { %v9412_v27 = vadd.f32 %v9411_v25, %v9410_v29  ;;  %v9451_v8 = vsel %vm4394_vm5, %v9350_v30, 0.0  ;;  %v9352_v5 = vcombine.high %v9288_v57, %v9288_v57  ;;  %v9457_v4 = vsel %vm4394_vm5, %v9288_v57, 0.0 }
 0x469   : > { %v9455_v29 = vsel %vm4394_vm5, %v9351_v31, 0.0 }
 0x46a   : > { %v9414_v36 = vadd.f32 %v9413_v33, %v9412_v27  ;;  %v9289_v33 = vld [vmem:[#allocation3 + $0x78] sm:$0xff] }
 0x46b   : > { %v9353_v20 = vcombine.high %v9289_v33, %v9289_v33  ;;  %v9461_v21 = vsel %vm4394_vm5, %v9289_v33, 0.0 }
 0x46c   : > { %v9416_v0 = vadd.f32 %v9415_v12, %v9414_v36  ;;  %v9459_v36 = vsel %vm4394_vm5, %v9352_v5, 0.0 }
 0x46e   : > { %v9418_v53 = vadd.f32 %v9417_v35, %v9416_v0  ;;  %v9290_v35 = vld [vmem:[#allocation3 + $0x38] sm:$0xff] }
 0x46f   : > { %v9354_v28 = vcombine.high %v9290_v35, %v9290_v35  ;;  %v9465_v42 = vsel %vm4394_vm5, %v9290_v35, 0.0 }
 0x470   : > { %v9420_v61 = vadd.f32 %v9419_v46, %v9418_v53  ;;  %v9463_v53 = vsel %vm4394_vm5, %v9353_v20, 0.0 }
 0x472   : > { %v9422_v2 = vadd.f32 %v9421_v50, %v9420_v61  ;;  %v9291_v50 = vld [vmem:[#allocation3 + $0x58] sm:$0xff] }
 0x473   : > { %v9355_v48 = vcombine.high %v9291_v50, %v9291_v50  ;;  %v9469_v58 = vsel %vm4394_vm5, %v9291_v50, 0.0 }
 0x474   : > { %v9424_v37 = vadd.f32 %v9423_v18, %v9422_v2  ;;  %v9467_v2 = vsel %vm4394_vm5, %v9354_v28, 0.0 }
 0x476   : > { %v9426_v14 = vadd.f32 %v9425_v62, %v9424_v37  ;;  %v9292_v62 = vld [vmem:[#allocation3 + $0x40] sm:$0xff] }
 0x477   : > { %v9356_v34 = vcombine.high %v9292_v62, %v9292_v62  ;;  %v9473_v40 = vsel %vm4394_vm5, %v9292_v62, 0.0 }
 0x478   : > { %v9428_v23 = vadd.f32 %v9427_v55, %v9426_v14  ;;  %v9471_v14 = vsel %vm4394_vm5, %v9355_v48, 0.0 }
 0x47a   : > { %v9430_v13 = vadd.f32 %v9429_v9, %v9428_v23  ;;  %v9293_v9 = vld [vmem:[#allocation3 + $0xc8] sm:$0xff] }
 0x47b   : > { %v9357_v39 = vcombine.high %v9293_v9, %v9293_v9  ;;  %v9477_v56 = vsel %vm4394_vm5, %v9293_v9, 0.0 }
 0x47c   : > { %v9432_v44 = vadd.f32 %v9431_v10, %v9430_v13  ;;  %v9475_v13 = vsel %vm4394_vm5, %v9356_v34, 0.0 }
 0x47e   : > { %v9434_v6 = vadd.f32 %v9433_v3, %v9432_v44  ;;  %v9294_v3 = vld [vmem:[#allocation3 + $0xe0] sm:$0xff] }
 0x47f   : > { %v9358_v59 = vcombine.high %v9294_v3, %v9294_v3  ;;  %v9481_v52 = vsel %vm4394_vm5, %v9294_v3, 0.0 }
 0x480   : > { %v9436_v43 = vadd.f32 %v9435_v32, %v9434_v6  ;;  %v9479_v6 = vsel %vm4394_vm5, %v9357_v39, 0.0 }
 0x482   : > { %v9438_v16 = vadd.f32 %v9437_v19, %v9436_v43  ;;  %v9295_v19 = vld [vmem:[#allocation3 + $0x90] sm:$0xff] }
 0x483   : > { %v9359_v1 = vcombine.high %v9295_v19, %v9295_v19  ;;  %v9485_v51 = vsel %vm4394_vm5, %v9295_v19, 0.0 }
 0x484   : > { %v9440_v11 = vadd.f32 %v9439_v26, %v9438_v16  ;;  %v9483_v16 = vsel %vm4394_vm5, %v9358_v59, 0.0 }
 0x486   : > { %v9442_v54 = vadd.f32 %v9441_v60, %v9440_v11  ;;  %v9296_v60 = vld [vmem:[#allocation3 + $0x70] sm:$0xff] }
 0x487   : > { %v9360_v49 = vcombine.high %v9296_v60, %v9296_v60  ;;  %v9489_v30 = vsel %vm4394_vm5, %v9296_v60, 0.0 }
 0x488   : > { %v9444_v41 = vadd.f32 %v9443_v17, %v9442_v54  ;;  %v9487_v54 = vsel %vm4394_vm5, %v9359_v1, 0.0 }
 0x48a   : > { %v9446_v38 = vadd.f32 %v9445_v7, %v9444_v41  ;;  %v9297_v7 = vld [vmem:[#allocation3 + $0xc0] sm:$0xff] }
 0x48b   : > { %v9361_v47 = vcombine.high %v9297_v7, %v9297_v7  ;;  %v9493_v31 = vsel %vm4394_vm5, %v9297_v7, 0.0 }
 0x48c   : > { %v9448_v22 = vadd.f32 %v9447_v24, %v9446_v38  ;;  %v9491_v38 = vsel %vm4394_vm5, %v9360_v49, 0.0 }
 0x48e   : > { %v9450_v63 = vadd.f32 %v9449_v45, %v9448_v22  ;;  %v9298_v45 = vld [vmem:[#allocation3 + $0xa8] sm:$0xff] }
 0x48f   : > { %v9362_v57 = vcombine.high %v9298_v45, %v9298_v45  ;;  %v9497_v5 = vsel %vm4394_vm5, %v9298_v45, 0.0 }
 0x490   : > { %v9452_v25 = vadd.f32 %v9451_v8, %v9450_v63  ;;  %v9495_v63 = vsel %vm4394_vm5, %v9361_v47, 0.0 }
 0x492   : > { %v9454_v27 = vadd.f32 %v9453_v15, %v9452_v25  ;;  %v9299_v15 = vld [vmem:[#allocation3 + $0xd0] sm:$0xff] }
 0x493   : > { %v9363_v33 = vcombine.high %v9299_v15, %v9299_v15  ;;  %v9501_v20 = vsel %vm4394_vm5, %v9299_v15, 0.0 }
 0x494   : > { %v9456_v12 = vadd.f32 %v9455_v29, %v9454_v27  ;;  %v9499_v27 = vsel %vm4394_vm5, %v9362_v57, 0.0 }
 0x496   : > { %v9458_v0 = vadd.f32 %v9457_v4, %v9456_v12  ;;  %v9300_v4 = vld [vmem:[#allocation3 + $0x10] sm:$0xff] }
 0x497   : > { %v9364_v35 = vcombine.high %v9300_v4, %v9300_v4  ;;  %v9505_v28 = vsel %vm4394_vm5, %v9300_v4, 0.0 }
 0x498   : > { %v9460_v46 = vadd.f32 %v9459_v36, %v9458_v0  ;;  %v9503_v0 = vsel %vm4394_vm5, %v9363_v33, 0.0 }
 0x49a   : > { %v9462_v61 = vadd.f32 %v9461_v21, %v9460_v46  ;;  %v9301_v21 = vld [vmem:[#allocation3 + $0x28] sm:$0xff] }
 0x49b   : > { %v9365_v50 = vcombine.high %v9301_v21, %v9301_v21  ;;  %v9509_v48 = vsel %vm4394_vm5, %v9301_v21, 0.0 }
 0x49c   : > { %v9464_v18 = vadd.f32 %v9463_v53, %v9462_v61  ;;  %v9507_v61 = vsel %vm4394_vm5, %v9364_v35, 0.0 }
 0x49e   : > { %v9466_v37 = vadd.f32 %v9465_v42, %v9464_v18  ;;  %v9302_v42 = vld [vmem:[#allocation3 + $0xa0] sm:$0xff] }
 0x49f   : > { %v9366_v62 = vcombine.high %v9302_v42, %v9302_v42  ;;  %v9513_v34 = vsel %vm4394_vm5, %v9302_v42, 0.0 }
 0x4a0   : > { %v9468_v55 = vadd.f32 %v9467_v2, %v9466_v37  ;;  %v9511_v37 = vsel %vm4394_vm5, %v9365_v50, 0.0 }
 0x4a2   : > { %v9470_v23 = vadd.f32 %v9469_v58, %v9468_v55  ;;  %v9303_v58 = vld [vmem:[#allocation3 + $0xf8] sm:$0xff] }
 0x4a3   : > { %v9367_v9 = vcombine.high %v9303_v58, %v9303_v58  ;;  %v9517_v39 = vsel %vm4394_vm5, %v9303_v58, 0.0 }
 0x4a4   : > { %v9472_v10 = vadd.f32 %v9471_v14, %v9470_v23  ;;  %v9515_v23 = vsel %vm4394_vm5, %v9366_v62, 0.0 }
 0x4a6   : > { %v9474_v44 = vadd.f32 %v9473_v40, %v9472_v10  ;;  %v9304_v40 = vld [vmem:[#allocation3 + $0x20] sm:$0xff] }
 0x4a7   : > { %v9368_v3 = vcombine.high %v9304_v40, %v9304_v40  ;;  %v9521_v59 = vsel %vm4394_vm5, %v9304_v40, 0.0 }
 0x4a8   : > { %v9476_v32 = vadd.f32 %v9475_v13, %v9474_v44  ;;  %v9519_v44 = vsel %vm4394_vm5, %v9367_v9, 0.0 }
 0x4aa   : > { %v9478_v43 = vadd.f32 %v9477_v56, %v9476_v32  ;;  %v9305_v56 = vld [vmem:[#allocation3 + $0x98] sm:$0xff] }
 0x4ab   : > { %v9369_v19 = vcombine.high %v9305_v56, %v9305_v56 }
 0x4ac   : > { %v9480_v26 = vadd.f32 %v9479_v6, %v9478_v43  ;;  %v9523_v43 = vsel %vm4394_vm5, %v9368_v3, 0.0 }
 0x4ae   : > { %v9482_v11 = vadd.f32 %v9481_v52, %v9480_v26  ;;  %v9525_v26 = vsel %vm4394_vm5, %v9305_v56, 0.0 }
 0x4b0   : > { %v9484_v17 = vadd.f32 %v9483_v16, %v9482_v11  ;;  %v9527_v16 = vsel %vm4394_vm5, %v9369_v19, 0.0 }
 0x4b2   : > { %v9486_v41 = vadd.f32 %v9485_v51, %v9484_v17 }
 0x4b4   : > { %v9488_v24 = vadd.f32 %v9487_v54, %v9486_v41 }
 0x4b6   : > { %v9490_v22 = vadd.f32 %v9489_v30, %v9488_v24 }
 0x4b8   : > { %v9492_v8 = vadd.f32 %v9491_v38, %v9490_v22 }
 0x4ba   : > { %v9494_v25 = vadd.f32 %v9493_v31, %v9492_v8 }
 0x4bc   : > { %v9496_v29 = vadd.f32 %v9495_v63, %v9494_v25 }
 0x4be   : > { %v9498_v12 = vadd.f32 %v9497_v5, %v9496_v29 }
 0x4c0   : > { %v9500_v36 = vadd.f32 %v9499_v27, %v9498_v12 }
 0x4c2   : > { %v9502_v46 = vadd.f32 %v9501_v20, %v9500_v36 }
 0x4c4   : > { %v9504_v53 = vadd.f32 %v9503_v0, %v9502_v46 }
 0x4c6   : > { %v9506_v18 = vadd.f32 %v9505_v28, %v9504_v53 }
 0x4c8   : > { %v9508_v2 = vadd.f32 %v9507_v61, %v9506_v18 }
 0x4ca   : > { %v9510_v55 = vadd.f32 %v9509_v48, %v9508_v2 }
 0x4cc   : > { %v9512_v14 = vadd.f32 %v9511_v37, %v9510_v55 }
 0x4ce   : > { %v9514_v10 = vadd.f32 %v9513_v34, %v9512_v14 }
 0x4d0   : > { %v9516_v13 = vadd.f32 %v9515_v23, %v9514_v10 }
 0x4d2   : > { %v9518_v32 = vadd.f32 %v9517_v39, %v9516_v13 }
 0x4d4   : > { %v9520_v6 = vadd.f32 %v9519_v44, %v9518_v32 }
 0x4d6   : > { %v9522_v52 = vadd.f32 %v9521_v59, %v9520_v6 }
 0x4d8   : > { %v9524_v1 = vadd.f32 %v9523_v43, %v9522_v52 }
 0x4da   : > { %v9526_v60 = vadd.f32 %v9525_v26, %v9524_v1 }
 0x4dc   : > { %v9528_v11 = vadd.f32 %v9527_v16, %v9526_v60 }
 0x4de   : > { %9529 = vadd.xlane.f32.xlu0 %v9528_v11 }
 0x567   : > { %v9530_v51 = vpop.xlane.xlu0 %9529 }
 0x568   : > { %v9531_v17 = vrot.slane %v9530_v51, 4 }
 0x56a   : > { %v9532_v49 = vadd.f32 %v9531_v17, %v9530_v51 }
 0x56c   : > { %v9533_v54 = vrot.slane %v9532_v49, 2 }
 0x56e   : > { %v9534_v7 = vadd.f32 %v9533_v54, %v9532_v49 }
 0x570   : > { %v9535_v41 = vrot.slane %v9534_v7, 1 }
 0x572   : > { %v9536_v30 = vadd.f32 %v9535_v41, %v9534_v7 }
 0x574   : > { %9925 = vpush %v9536_v30 }
 0x5a5   : > { %s9926_s12 = spop %9925 }
 0x5a6   : > { %v9538_v24 = vstv %s9926_s12 }
 0x5a7   : > { %9540 = vst.msk [vmem:[%s530_s20] sm:$0x1] %vm9539_vm8, %v9538_v24 }
 0x5a8 PF: > { %s28_s16 = sadd.s32 1, %s10314_s16   ;;  %s13832_s28 = sld [smem:[#allocation19_spill]] }
 0x5a9   : > { %p25_p7 = scmp.ge.s32.totalorder %s28_s16, 6   ;;  %s13833_s11 = sld [smem:[#allocation23_spill]] }
 0x5aa   : > { %s13834_s13 = sld [smem:[#allocation20_spill]]  ;;  %s13837_s30 = smov %s10290_s10 }
 0x5ab   : > { %s13835_s7 = sld [smem:[#allocation21_spill]]  ;;  %s13839_s12 = smov %s10306_s14 }
 0x5ac   : > { %s13836_s15 = sld [smem:[#allocation22_spill]] }
 0x5ad   :  { %27 = sbr.rel (!%p25_p7) target bundleno = 16 (0x10), region = 150 }
 0x5ae   : > { %s13838_s10 = smov %s13832_s28 }
 0x5b1   : > { %s13840_s14 = smov %s13835_s7 }
 0x5b2   :  { %9558 = vsyncpa [#allocation5], 1 }
 0x5b3   :  { %9560 = vsyncpa [#allocation5 + $0x1], 1 }
 0x5b4   :  { %9561 = vsyncpa [#allocation7], 1 }
 0x5b5   :  { %9563 = vsyncpa [#allocation7 + $0x1], 1 }
 0x5b6   :  { %9564 = vsyncpa [#allocation10], 1 }
 0x5b7   :  { %9566 = vsyncpa [#allocation10 + $0x1], 1 }

</bundles_post_ra>
